<compile_context>
chip_gen: v6e
topology: v6e:2x2x1
jax: 0.10.0
libtpu: 0.0.40
codegen_flags: <defaults>
</compile_context>

<pallas_src>
import functools

import numpy as np
import jax
import jax.numpy as jnp
from jax.experimental import pallas as pl
from jax.experimental.pallas import tpu as pltpu


# ----------------------------------------------------------------------------
# Fused Pallas kernel: full nn.TransformerEncoder (num_layers stacked
# TransformerEncoderLayer, batch_first, norm_first=False, relu, eps=1e-5)
# applied to one packed block of graphs (block-diagonal attention mask).
# ----------------------------------------------------------------------------
def fused_encoder_kernel(
    x_ref, gid_row_ref, gid_col_ref,
    wqkv_ref, wo_ref, w1_ref, w2_ref,                  # bf16 matmul weights, layer-stacked
    bqkv_ref, bo_ref, b1_ref, b2_ref,                  # f32 biases, layer-stacked
    ln1g_ref, ln1b_ref, ln2g_ref, ln2b_ref,            # f32 layernorm params, layer-stacked
    o_ref,
    *, num_layers, num_heads, head_dim, ff_chunk, use_einshape,
):
    f32 = jnp.float32
    bf16 = jnp.bfloat16
    D = num_heads * head_dim
    M = x_ref.shape[1]
    F = b1_ref.shape[-1]

    x = x_ref[0].astype(f32)                           # (M, D) packed tokens of this graph block

    # Build the additive block-diagonal mask ONCE per block from per-row graph ids
    # (replaces a 4*M*M-byte HBM DMA with 8*M bytes + a trivial VPU compare/select).
    gid_r = gid_row_ref[0]                             # (M, 1) int32, -1 marks padding
    gid_c = gid_col_ref[0]                             # (1, M) int32
    amask = jnp.where((gid_r == gid_c) & (gid_c >= 0), f32(0.0), f32(-1e30))   # (M, M)

    def to_heads(t2):                                  # (M, D) f32 -> (H, M, hd) bf16
        t2 = t2.astype(bf16)
        if use_einshape:
            return pltpu.einshape("mhd->hmd", t2.reshape(M, num_heads, head_dim))
        return jnp.stack(
            [t2[:, h * head_dim:(h + 1) * head_dim] for h in range(num_heads)], 0)

    def from_heads(c3):                                # (H, M, hd) f32 -> (M, D) f32
        if use_einshape:
            return pltpu.einshape("hme->mhe", c3).reshape(M, D)
        return jnp.concatenate([c3[h] for h in range(num_heads)], axis=-1)

    for l in range(num_layers):                        # static unroll: activations stay on-chip
        xb = x.astype(bf16)

        # ---- fused QKV projection: one lane-dense (M, 3D) matmul --------------
        # (1/sqrt(head_dim) is already folded into the wq / bq slices.)
        qkv = jnp.dot(xb, wqkv_ref[l], preferred_element_type=f32) + bqkv_ref[l]  # (M, 3D)
        q3 = to_heads(qkv[:, :D])
        k3 = to_heads(qkv[:, D:2 * D])
        v3 = to_heads(qkv[:, 2 * D:])

        # ---- multi-head self-attention (head-batched einsums on the MXU) ------
        s = jnp.einsum("hme,hne->hmn", q3, k3, preferred_element_type=f32) + amask  # (H, M, M)
        s = s - jnp.max(s, axis=-1, keepdims=True)
        p = jnp.exp(s)
        p = p * pl.reciprocal(jnp.sum(p, axis=-1, keepdims=True), approx=True)
        ctx = jnp.einsum("hmn,hne->hme", p.astype(bf16), v3, preferred_element_type=f32)

        attn = from_heads(ctx)                                                     # (M, D)
        attn = jnp.dot(attn.astype(bf16), wo_ref[l], preferred_element_type=f32) + bo_ref[l]

        # ---- residual + LayerNorm1 (post-norm, f32 element-wise) --------------
        y = x + attn
        mu = jnp.mean(y, axis=-1, keepdims=True)
        var = jnp.mean((y - mu) ** 2, axis=-1, keepdims=True)
        y = (y - mu) * jax.lax.rsqrt(var + 1e-5) * ln1g_ref[l] + ln1b_ref[l]

        # ---- feed-forward: linear1 -> relu -> linear2, chunked over dim_ff -----
        yb = y.astype(bf16)
        h2 = jnp.zeros((M, D), f32)
        for c in range(F // ff_chunk):
            lo = c * ff_chunk
            h1c = jnp.dot(yb, w1_ref[l, :, lo:lo + ff_chunk],
                          preferred_element_type=f32) + b1_ref[l, :, lo:lo + ff_chunk]
            h1c = jnp.maximum(h1c, 0.0)
            h2 = h2 + jnp.dot(h1c.astype(bf16), w2_ref[l, lo:lo + ff_chunk, :],
                              preferred_element_type=f32)
        h2 = h2 + b2_ref[l]

        # ---- residual + LayerNorm2 ---------------------------------------------
        z = y + h2
        mu2 = jnp.mean(z, axis=-1, keepdims=True)
        var2 = jnp.mean((z - mu2) ** 2, axis=-1, keepdims=True)
        x = (z - mu2) * jax.lax.rsqrt(var2 + 1e-5) * ln2g_ref[l] + ln2b_ref[l]

    o_ref[0] = x.astype(o_ref.dtype)


# ----------------------------------------------------------------------------
# Wrapper: one pallas_call over all packed graph blocks, weights VMEM-resident.
# ----------------------------------------------------------------------------
def _pick_ff_chunk(F, prefer):
    for c in (prefer, 512, 256, 128, 64):
        if c <= F and F % c == 0:
            return c
    return F


def mask_tf_packed(x_packed, gid_row, gid_col, kparams, *, num_heads,
                   ff_chunk_pref=512, use_einshape=True):
    n_blocks, M, D = x_packed.shape
    num_layers = kparams["wqkv"].shape[0]
    head_dim = D // num_heads
    F = kparams["b1"].shape[-1]
    ff_chunk = _pick_ff_chunk(F, ff_chunk_pref)
    use_einshape = bool(use_einshape) and hasattr(pltpu, "einshape")

    weights = (kparams["wqkv"], kparams["wo"], kparams["w1"], kparams["w2"],
               kparams["bqkv"], kparams["bo"], kparams["b1"], kparams["b2"],
               kparams["ln1_g"], kparams["ln1_b"], kparams["ln2_g"], kparams["ln2_b"])

    in_specs = [
        pl.BlockSpec((1, M, D), lambda b: (b, 0, 0)),   # tokens: one block per grid step
        pl.BlockSpec((1, M, 1), lambda b: (b, 0, 0)),   # graph id per row (column vector)
        pl.BlockSpec((1, 1, M), lambda b: (b, 0, 0)),   # graph id per row (row vector)
    ] + [
        # Full-array blocks with constant index_maps: fetched once, resident across the grid.
        pl.BlockSpec(w.shape, lambda b: (0, 0, 0)) for w in weights
    ]

    kernel = functools.partial(
        fused_encoder_kernel, num_layers=num_layers, num_heads=num_heads,
        head_dim=head_dim, ff_chunk=ff_chunk, use_einshape=use_einshape)

    return pl.pallas_call(
        kernel,
        out_shape=jax.ShapeDtypeStruct((n_blocks, M, D), jnp.float32),
        grid=(n_blocks,),
        in_specs=in_specs,
        out_specs=pl.BlockSpec((1, M, D), lambda b: (b, 0, 0)),
        compiler_params=pltpu.CompilerParams(
            dimension_semantics=("parallel",)),          # graph blocks shard across TCs (v7x)
    )(x_packed, gid_row, gid_col, *weights)


# ----------------------------------------------------------------------------
# Host-side packing of variable-size graphs into fixed (M, D) blocks + graph ids.
# ----------------------------------------------------------------------------
def pack_graphs(tokens, batch, *, max_rows_per_block=256, min_blocks=1):
    batch_np = np.asarray(batch)
    num_graphs = int(batch_np.max()) + 1
    graph_rows = [np.nonzero(batch_np == g)[0] for g in range(num_graphs)]
    sizes = [int(r.size) for r in graph_rows]

    s_pad = max(8, int(-(-max(max(sizes), 1) // 8) * 8))          # pad graph length to mult of 8
    gb = max(1, min(num_graphs, max_rows_per_block // s_pad))     # graphs per block
    if min_blocks > 1:                                            # keep >=min_blocks grid steps
        gb = max(1, min(gb, -(-num_graphs // min_blocks)))
    n_blocks = -(-num_graphs // gb)
    M = gb * s_pad
    D = tokens.shape[1]

    gather = np.zeros((n_blocks, M), np.int32)
    gid = np.full((n_blocks, M), -1, np.int32)
    for g in range(num_graphs):                                    # empty graphs handled (skipped)
        b, slot = divmod(g, gb)
        lo = slot * s_pad
        n = sizes[g]
        gather[b, lo:lo + n] = graph_rows[g]
        gid[b, lo:lo + n] = g

    x_packed = jnp.take(tokens, jnp.asarray(gather.reshape(-1)), axis=0).reshape(n_blocks, M, D)
    x_packed = x_packed * jnp.asarray((gid >= 0), jnp.float32).reshape(n_blocks, M, 1)

    gid_row = jnp.asarray(gid.reshape(n_blocks, M, 1), jnp.int32)
    gid_col = jnp.asarray(gid.reshape(n_blocks, 1, M), jnp.int32)

    out_rows = []                                                  # rows in graph-id order (= torch.cat)
    for g in range(num_graphs):
        b, slot = divmod(g, gb)
        out_rows.append(b * M + slot * s_pad + np.arange(sizes[g], dtype=np.int32))
    out_rows = np.concatenate(out_rows) if out_rows else np.zeros((0,), np.int32)
    return x_packed, gid_row, gid_col, jnp.asarray(out_rows, dtype=jnp.int32)


# ----------------------------------------------------------------------------
# Host-side weight packing: fuse QKV, fold softmax scale into wq/bq, cast to bf16.
# ----------------------------------------------------------------------------
def pack_encoder_params(params, *, num_heads):
    D = params["wq"].shape[-1]
    head_dim = D // num_heads
    scale = jnp.float32(1.0 / np.sqrt(head_dim))
    bf16 = jnp.bfloat16
    wqkv = jnp.concatenate([params["wq"] * scale, params["wk"], params["wv"]],
                           axis=-1).astype(bf16)                   # (L, D, 3D)
    bqkv = jnp.concatenate([params["bq"] * scale, params["bk"], params["bv"]],
                           axis=-1).astype(jnp.float32)            # (L, 1, 3D)
    return dict(
        wqkv=wqkv,
        wo=params["wo"].astype(bf16),
        w1=params["w1"].astype(bf16),
        w2=params["w2"].astype(bf16),
        bqkv=bqkv, bo=params["bo"], b1=params["b1"], b2=params["b2"],
        ln1_g=params["ln1_g"], ln1_b=params["ln1_b"],
        ln2_g=params["ln2_g"], ln2_b=params["ln2_b"],
    )


def _is_v5e():
    try:
        kind = jax.devices()[0].device_kind.lower()
    except Exception:
        return False
    return ("v5 lite" in kind) or ("v5e" in kind) or ("v5litepod" in kind)


# ----------------------------------------------------------------------------
# TopModel.forward (batched branch: G.batch is not None)
# ----------------------------------------------------------------------------
def top_model_forward(aig_hs, aig_hf, batch, params, *, n_head, dim_hidden):
    v5e = _is_v5e()
    max_rows = 128 if v5e else 256          # v5e MXU rows = 128; v6e/v7x benefit from M=256
    ff_pref = 256 if v5e else 512           # smaller live FFN intermediate on v5e
    min_blocks = 1 if v5e else 2            # keep >=2 grid steps so v7x's 2nd TC isn't idle

    aig_tokens = jnp.concatenate([aig_hs, aig_hf], axis=1)         # (N, 2*dim_hidden)
    x_packed, gid_row, gid_col, out_rows = pack_graphs(
        aig_tokens, batch, max_rows_per_block=max_rows, min_blocks=min_blocks)
    kparams = pack_encoder_params(params, num_heads=n_head)

    try:
        out_packed = mask_tf_packed(x_packed, gid_row, gid_col, kparams,
                                    num_heads=n_head, ff_chunk_pref=ff_pref,
                                    use_einshape=True)
        out_packed = jax.block_until_ready(out_packed)
    except Exception:
        # Fallback to the proven per-head slice/stack path if einshape fails to lower.
        out_packed = mask_tf_packed(x_packed, gid_row, gid_col, kparams,
                                    num_heads=n_head, ff_chunk_pref=ff_pref,
                                    use_einshape=False)

    out_flat = out_packed.reshape(-1, aig_tokens.shape[1])
    mcm_pm_tokens = jnp.take(out_flat, out_rows, axis=0)           # drop padding, graph-id order
    hs = mcm_pm_tokens[:, :dim_hidden]
    hf = mcm_pm_tokens[:, dim_hidden:]
    return mcm_pm_tokens, hf, hs


# ----------------------------------------------------------------------------
# Parameter init (deterministic, synthetic — TopModel normally loads checkpoints)
# ----------------------------------------------------------------------------
def init_params(key, num_layers, d_model, dim_ff):
    s = 0.05
    names = ["wq", "wk", "wv", "wo", "w1", "w2", "bq", "bk", "bv", "bo", "b1", "b2",
             "ln1_g", "ln1_b", "ln2_g", "ln2_b"]
    acc = {n: [] for n in names}
    for _ in range(num_layers):
        key, k0, k1, k2, k3, k4, k5 = jax.random.split(key, 7)
        acc["wq"].append(jax.random.normal(k0, (d_model, d_model), jnp.float32) * s)
        acc["wk"].append(jax.random.normal(k1, (d_model, d_model), jnp.float32) * s)
        acc["wv"].append(jax.random.normal(k2, (d_model, d_model), jnp.float32) * s)
        acc["wo"].append(jax.random.normal(k3, (d_model, d_model), jnp.float32) * s)
        acc["w1"].append(jax.random.normal(k4, (d_model, dim_ff), jnp.float32) * s)
        acc["w2"].append(jax.random.normal(k5, (dim_ff, d_model), jnp.float32) * s)
        acc["bq"].append(jnp.zeros((1, d_model), jnp.float32))
        acc["bk"].append(jnp.zeros((1, d_model), jnp.float32))
        acc["bv"].append(jnp.zeros((1, d_model), jnp.float32))
        acc["bo"].append(jnp.zeros((1, d_model), jnp.float32))
        acc["b1"].append(jnp.zeros((1, dim_ff), jnp.float32))
        acc["b2"].append(jnp.zeros((1, d_model), jnp.float32))
        acc["ln1_g"].append(jnp.ones((1, d_model), jnp.float32))
        acc["ln1_b"].append(jnp.zeros((1, d_model), jnp.float32))
        acc["ln2_g"].append(jnp.ones((1, d_model), jnp.float32))
        acc["ln2_b"].append(jnp.zeros((1, d_model), jnp.float32))
    return {n: jnp.stack(acc[n], 0) for n in names}


# ----------------------------------------------------------------------------
# Pure-JAX reference (same bf16-matmul / f32-elementwise recipe) for a sanity check
# ----------------------------------------------------------------------------
def _ln(x, g, b, eps=1e-5):
    mu = jnp.mean(x, -1, keepdims=True)
    var = jnp.mean((x - mu) ** 2, -1, keepdims=True)
    return (x - mu) * jax.lax.rsqrt(var + eps) * g + b


def ref_encoder(x, params, *, num_heads):
    f32, bf16 = jnp.float32, jnp.bfloat16
    D = x.shape[-1]
    hd = D // num_heads
    scale = 1.0 / np.sqrt(hd)
    num_layers = params["wq"].shape[0]
    for l in range(num_layers):
        xb = x.astype(bf16)
        q = jnp.dot(xb, params["wq"][l].astype(bf16), preferred_element_type=f32) + params["bq"][l]
        k = jnp.dot(xb, params["wk"][l].astype(bf16), preferred_element_type=f32) + params["bk"][l]
        v = jnp.dot(xb, params["wv"][l].astype(bf16), preferred_element_type=f32) + params["bv"][l]
        q = q.reshape(-1, num_heads, hd).transpose(1, 0, 2).astype(bf16)
        k = k.reshape(-1, num_heads, hd).transpose(1, 0, 2).astype(bf16)
        v = v.reshape(-1, num_heads, hd).transpose(1, 0, 2).astype(bf16)
        s = jnp.einsum("hme,hne->hmn", q, k, preferred_element_type=f32) * scale
        p = jax.nn.softmax(s, axis=-1)
        ctx = jnp.einsum("hmn,hne->hme", p.astype(bf16), v, preferred_element_type=f32)
        attn = ctx.transpose(1, 0, 2).reshape(-1, D)
        attn = jnp.dot(attn.astype(bf16), params["wo"][l].astype(bf16),
                       preferred_element_type=f32) + params["bo"][l]
        y = _ln(x + attn, params["ln1_g"][l], params["ln1_b"][l])
        h1 = jnp.maximum(jnp.dot(y.astype(bf16), params["w1"][l].astype(bf16),
                                 preferred_element_type=f32) + params["b1"][l], 0.0)
        h2 = jnp.dot(h1.astype(bf16), params["w2"][l].astype(bf16),
                     preferred_element_type=f32) + params["b2"][l]
        x = _ln(y + h2, params["ln2_g"][l], params["ln2_b"][l])
    return x


# ----------------------------------------------------------------------------
# main
# ----------------------------------------------------------------------------
if __name__ == "__main__":
    # args: dim_hidden=32, tf_head=4, tf_layer=2 -> d_model=64, dim_feedforward=2048 (PyTorch default)
    dim_hidden = 32
    tf_head = 4
    tf_layers = 2
    d_model = 2 * dim_hidden
    dim_ff = 2048

    num_graphs = 2
    nodes_per_graph = 16
    num_nodes = num_graphs * nodes_per_graph

    key = jax.random.PRNGKey(0)
    k_hs, k_hf, k_params = jax.random.split(key, 3)

    # Synthetic DeepGate outputs (structural/functional embeddings per AIG node).
    aig_hs = jax.random.normal(k_hs, (num_nodes, dim_hidden), jnp.float32)
    aig_hf = jax.random.normal(k_hf, (num_nodes, dim_hidden), jnp.float32)
    # G.batch: graph id per node (two graphs of 16 nodes each).
    batch = np.repeat(np.arange(num_graphs, dtype=np.int32), nodes_per_graph)

    params = init_params(k_params, tf_layers, d_model, dim_ff)

    mcm_pm_tokens, hf, hs = top_model_forward(
        aig_hs, aig_hf, batch, params, n_head=tf_head, dim_hidden=dim_hidden)
    jax.block_until_ready((mcm_pm_tokens, hf, hs))

    assert mcm_pm_tokens.shape == (num_nodes, d_model)
    assert hf.shape == (num_nodes, dim_hidden)
    assert hs.shape == (num_nodes, dim_hidden)
    assert bool(jnp.all(jnp.isfinite(mcm_pm_tokens)))

    # Correctness check vs pure-JAX per-graph reference (loose tol: approx reciprocal + bf16
    # matmuls + scale folded into wq; deliberate deviations from the f32 torch encoder).
    aig_tokens = jnp.concatenate([aig_hs, aig_hf], axis=1)
    refs = []
    for g in range(num_graphs):
        rows = np.nonzero(batch == g)[0]
        refs.append(ref_encoder(aig_tokens[rows], params, num_heads=tf_head))
    ref_out = jnp.concatenate(refs, axis=0)
    max_err = float(jnp.max(jnp.abs(ref_out - mcm_pm_tokens)))
    assert max_err < 5e-2, f"kernel/reference mismatch: max abs err {max_err}"

    print("KERNEL_OK")
</pallas_src>

<mosaic_0001>
module attributes {stable_mosaic.version = 11 : i64} {
  func.func @fused_encoder_kernel(%arg0: i32, %arg1: memref<1x16x64xf32, #tpu.memory_space<vmem>>, %arg2: memref<1x16x1xi32, #tpu.memory_space<vmem>>, %arg3: memref<1x1x16xi32, #tpu.memory_space<vmem>>, %arg4: memref<2x64x192xbf16, #tpu.memory_space<vmem>>, %arg5: memref<2x64x64xbf16, #tpu.memory_space<vmem>>, %arg6: memref<2x64x2048xbf16, #tpu.memory_space<vmem>>, %arg7: memref<2x2048x64xbf16, #tpu.memory_space<vmem>>, %arg8: memref<2x1x192xf32, #tpu.memory_space<vmem>>, %arg9: memref<2x1x64xf32, #tpu.memory_space<vmem>>, %arg10: memref<2x1x2048xf32, #tpu.memory_space<vmem>>, %arg11: memref<2x1x64xf32, #tpu.memory_space<vmem>>, %arg12: memref<2x1x64xf32, #tpu.memory_space<vmem>>, %arg13: memref<2x1x64xf32, #tpu.memory_space<vmem>>, %arg14: memref<2x1x64xf32, #tpu.memory_space<vmem>>, %arg15: memref<2x1x64xf32, #tpu.memory_space<vmem>>, %arg16: memref<1x16x64xf32, #tpu.memory_space<vmem>>) attributes {dimension_semantics = [#tpu.dimension_semantics<parallel>], iteration_bounds = array<i64: 2>, scalar_prefetch = 0 : i64, scratch_operands = 0 : i64, tpu.core_type = #tpu.core_type<tc>, window_params = [{transform_indices = @transform_0, window_bounds = array<i64: 1, 16, 64>}, {transform_indices = @transform_1, window_bounds = array<i64: 1, 16, 1>}, {transform_indices = @transform_2, window_bounds = array<i64: 1, 1, 16>}, {pipeline_mode = #tpu.pipeline_mode<synchronous>, transform_indices = @transform_3, window_bounds = array<i64: 2, 64, 192>}, {pipeline_mode = #tpu.pipeline_mode<synchronous>, transform_indices = @transform_4, window_bounds = array<i64: 2, 64, 64>}, {pipeline_mode = #tpu.pipeline_mode<synchronous>, transform_indices = @transform_5, window_bounds = array<i64: 2, 64, 2048>}, {pipeline_mode = #tpu.pipeline_mode<synchronous>, transform_indices = @transform_6, window_bounds = array<i64: 2, 2048, 64>}, {pipeline_mode = #tpu.pipeline_mode<synchronous>, transform_indices = @transform_7, window_bounds = array<i64: 2, 1, 192>}, {pipeline_mode = #tpu.pipeline_mode<synchronous>, transform_indices = @transform_8, window_bounds = array<i64: 2, 1, 64>}, {pipeline_mode = #tpu.pipeline_mode<synchronous>, transform_indices = @transform_9, window_bounds = array<i64: 2, 1, 2048>}, {pipeline_mode = #tpu.pipeline_mode<synchronous>, transform_indices = @transform_10, window_bounds = array<i64: 2, 1, 64>}, {pipeline_mode = #tpu.pipeline_mode<synchronous>, transform_indices = @transform_11, window_bounds = array<i64: 2, 1, 64>}, {pipeline_mode = #tpu.pipeline_mode<synchronous>, transform_indices = @transform_12, window_bounds = array<i64: 2, 1, 64>}, {pipeline_mode = #tpu.pipeline_mode<synchronous>, transform_indices = @transform_13, window_bounds = array<i64: 2, 1, 64>}, {pipeline_mode = #tpu.pipeline_mode<synchronous>, transform_indices = @transform_14, window_bounds = array<i64: 2, 1, 64>}, {transform_indices = @transform_15, window_bounds = array<i64: 1, 16, 64>}]} {
    %c0 = arith.constant 0 : index
    %c0_0 = arith.constant 0 : index
    %c0_1 = arith.constant 0 : index
    %0 = vector.load %arg1[%c0, %c0_0, %c0_1] : memref<1x16x64xf32, #tpu.memory_space<vmem>>, vector<1x16x64xf32>
    %1 = vector.shape_cast %0 : vector<1x16x64xf32> to vector<16x64xf32>
    %c0_2 = arith.constant 0 : index
    %c0_3 = arith.constant 0 : index
    %c0_4 = arith.constant 0 : index
    %2 = vector.load %arg2[%c0_2, %c0_3, %c0_4] : memref<1x16x1xi32, #tpu.memory_space<vmem>>, vector<1x16x1xi32>
    %3 = vector.shape_cast %2 : vector<1x16x1xi32> to vector<16x1xi32>
    %c0_5 = arith.constant 0 : index
    %c0_6 = arith.constant 0 : index
    %c0_7 = arith.constant 0 : index
    %4 = vector.load %arg3[%c0_5, %c0_6, %c0_7] : memref<1x1x16xi32, #tpu.memory_space<vmem>>, vector<1x1x16xi32>
    %5 = vector.shape_cast %4 : vector<1x1x16xi32> to vector<1x16xi32>
    %6 = vector.broadcast %3 : vector<16x1xi32> to vector<16x16xi32>
    %7 = vector.broadcast %5 : vector<1x16xi32> to vector<16x16xi32>
    %8 = arith.cmpi eq, %6, %7 : vector<16x16xi32>
    %c0_i32 = arith.constant 0 : i32
    %9 = vector.broadcast %c0_i32 : i32 to vector<1x16xi32>
    %10 = arith.cmpi sge, %5, %9 : vector<1x16xi32>
    %11 = vector.broadcast %10 : vector<1x16xi1> to vector<16x16xi1>
    %12 = arith.andi %8, %11 : vector<16x16xi1>
    %cst = arith.constant 0.000000e+00 : f32
    %cst_8 = arith.constant -1.000000e+30 : f32
    %13 = vector.broadcast %cst : f32 to vector<16x16xf32>
    %14 = vector.broadcast %cst_8 : f32 to vector<16x16xf32>
    %15 = arith.select %12, %13, %14 : vector<16x16xi1>, vector<16x16xf32>
    %16 = arith.truncf %1 : vector<16x64xf32> to vector<16x64xbf16>
    %c0_9 = arith.constant 0 : index
    %c0_10 = arith.constant 0 : index
    %c0_11 = arith.constant 0 : index
    %17 = vector.load %arg4[%c0_9, %c0_10, %c0_11] : memref<2x64x192xbf16, #tpu.memory_space<vmem>>, vector<1x64x192xbf16>
    %18 = vector.shape_cast %17 : vector<1x64x192xbf16> to vector<64x192xbf16>
    %cst_12 = arith.constant dense<0.000000e+00> : vector<16x192xf32>
    %19 = tpu.matmul %16, %18, %cst_12 {dimension_numbers = #tpu.dot_dimension_numbers<[1], [0], [0], [1], [0, 0, 1, 1], [], []>} : vector<16x64xbf16>, vector<64x192xbf16>, vector<16x192xf32> -> vector<16x192xf32>
    %c0_13 = arith.constant 0 : index
    %c0_14 = arith.constant 0 : index
    %c0_15 = arith.constant 0 : index
    %20 = vector.load %arg8[%c0_13, %c0_14, %c0_15] : memref<2x1x192xf32, #tpu.memory_space<vmem>>, vector<1x1x192xf32>
    %21 = vector.shape_cast %20 : vector<1x1x192xf32> to vector<1x192xf32>
    %22 = vector.broadcast %21 : vector<1x192xf32> to vector<16x192xf32>
    %23 = arith.addf %19, %22 : vector<16x192xf32>
    %24 = vector.extract_strided_slice %23 {offsets = [0, 0], sizes = [16, 64], strides = [1, 1]} : vector<16x192xf32> to vector<16x64xf32>
    %25 = arith.truncf %24 : vector<16x64xf32> to vector<16x64xbf16>
    %26 = vector.shape_cast %25 : vector<16x64xbf16> to vector<16x4x16xbf16>
    %27 = tpu.transpose %26, [1, 0, 2] : vector<16x4x16xbf16> -> vector<4x16x16xbf16>
    %28 = vector.extract_strided_slice %23 {offsets = [0, 64], sizes = [16, 64], strides = [1, 1]} : vector<16x192xf32> to vector<16x64xf32>
    %29 = arith.truncf %28 : vector<16x64xf32> to vector<16x64xbf16>
    %30 = vector.shape_cast %29 : vector<16x64xbf16> to vector<16x4x16xbf16>
    %31 = tpu.transpose %30, [1, 0, 2] : vector<16x4x16xbf16> -> vector<4x16x16xbf16>
    %32 = vector.extract_strided_slice %23 {offsets = [0, 128], sizes = [16, 64], strides = [1, 1]} : vector<16x192xf32> to vector<16x64xf32>
    %33 = arith.truncf %32 : vector<16x64xf32> to vector<16x64xbf16>
    %34 = vector.shape_cast %33 : vector<16x64xbf16> to vector<16x4x16xbf16>
    %35 = tpu.transpose %34, [1, 0, 2] : vector<16x4x16xbf16> -> vector<4x16x16xbf16>
    "tpu.trace_start"() <{level = 10 : i32, message = "hme,hne->hmn"}> : () -> ()
    %cst_16 = arith.constant dense<0.000000e+00> : vector<4x16x16xf32>
    %36 = tpu.matmul %27, %31, %cst_16 {dimension_numbers = #tpu.dot_dimension_numbers<[2], [2], [1], [1], [0, 0, 0, 1, 1, 1], [0], [0]>} : vector<4x16x16xbf16>, vector<4x16x16xbf16>, vector<4x16x16xf32> -> vector<4x16x16xf32>
    "tpu.trace_stop"() : () -> ()
    %37 = vector.shape_cast %15 : vector<16x16xf32> to vector<1x16x16xf32>
    %38 = vector.broadcast %37 : vector<1x16x16xf32> to vector<4x16x16xf32>
    %39 = arith.addf %36, %38 : vector<4x16x16xf32>
    %cst_17 = arith.constant dense<0xFF800000> : vector<4x16xf32>
    %40 = vector.multi_reduction <maximumf>, %39, %cst_17 [2] : vector<4x16x16xf32> to vector<4x16xf32>
    %41 = vector.shape_cast %40 : vector<4x16xf32> to vector<4x16x1xf32>
    %42 = vector.broadcast %41 : vector<4x16x1xf32> to vector<4x16x16xf32>
    %43 = arith.subf %39, %42 : vector<4x16x16xf32>
    %44 = math.exp %43 : vector<4x16x16xf32>
    %cst_18 = arith.constant dense<0.000000e+00> : vector<4x16xf32>
    %45 = vector.multi_reduction <add>, %44, %cst_18 [2] : vector<4x16x16xf32> to vector<4x16xf32>
    %46 = vector.shape_cast %45 : vector<4x16xf32> to vector<4x16x1xf32>
    %47 = tpu.reciprocal %46 {approx = true} : vector<4x16x1xf32> -> vector<4x16x1xf32>
    %48 = vector.broadcast %47 : vector<4x16x1xf32> to vector<4x16x16xf32>
    %49 = arith.mulf %44, %48 : vector<4x16x16xf32>
    %50 = arith.truncf %49 : vector<4x16x16xf32> to vector<4x16x16xbf16>
    "tpu.trace_start"() <{level = 10 : i32, message = "hmn,hne->hme"}> : () -> ()
    %cst_19 = arith.constant dense<0.000000e+00> : vector<4x16x16xf32>
    %51 = tpu.matmul %50, %35, %cst_19 {dimension_numbers = #tpu.dot_dimension_numbers<[2], [1], [1], [2], [0, 0, 0, 1, 1, 2], [0], [0]>} : vector<4x16x16xbf16>, vector<4x16x16xbf16>, vector<4x16x16xf32> -> vector<4x16x16xf32>
    "tpu.trace_stop"() : () -> ()
    %52 = tpu.transpose %51, [1, 0, 2] : vector<4x16x16xf32> -> vector<16x4x16xf32>
    %53 = vector.shape_cast %52 : vector<16x4x16xf32> to vector<16x64xf32>
    %54 = arith.truncf %53 : vector<16x64xf32> to vector<16x64xbf16>
    %c0_20 = arith.constant 0 : index
    %c0_21 = arith.constant 0 : index
    %c0_22 = arith.constant 0 : index
    %55 = vector.load %arg5[%c0_20, %c0_21, %c0_22] : memref<2x64x64xbf16, #tpu.memory_space<vmem>>, vector<1x64x64xbf16>
    %56 = vector.shape_cast %55 : vector<1x64x64xbf16> to vector<64x64xbf16>
    %cst_23 = arith.constant dense<0.000000e+00> : vector<16x64xf32>
    %57 = tpu.matmul %54, %56, %cst_23 {dimension_numbers = #tpu.dot_dimension_numbers<[1], [0], [0], [1], [0, 0, 1, 1], [], []>} : vector<16x64xbf16>, vector<64x64xbf16>, vector<16x64xf32> -> vector<16x64xf32>
    %c0_24 = arith.constant 0 : index
    %c0_25 = arith.constant 0 : index
    %c0_26 = arith.constant 0 : index
    %58 = vector.load %arg9[%c0_24, %c0_25, %c0_26] : memref<2x1x64xf32, #tpu.memory_space<vmem>>, vector<1x1x64xf32>
    %59 = vector.shape_cast %58 : vector<1x1x64xf32> to vector<1x64xf32>
    %60 = vector.broadcast %59 : vector<1x64xf32> to vector<16x64xf32>
    %61 = arith.addf %57, %60 : vector<16x64xf32>
    %62 = arith.addf %1, %61 : vector<16x64xf32>
    %cst_27 = arith.constant dense<0.000000e+00> : vector<16xf32>
    %63 = vector.multi_reduction <add>, %62, %cst_27 [1] : vector<16x64xf32> to vector<16xf32>
    %64 = vector.shape_cast %63 : vector<16xf32> to vector<16x1xf32>
    %cst_28 = arith.constant 6.400000e+01 : f32
    %65 = vector.broadcast %cst_28 : f32 to vector<16x1xf32>
    %66 = arith.divf %64, %65 : vector<16x1xf32>
    %67 = vector.broadcast %66 : vector<16x1xf32> to vector<16x64xf32>
    %68 = arith.subf %62, %67 : vector<16x64xf32>
    %69 = arith.mulf %68, %68 : vector<16x64xf32>
    %cst_29 = arith.constant dense<0.000000e+00> : vector<16xf32>
    %70 = vector.multi_reduction <add>, %69, %cst_29 [1] : vector<16x64xf32> to vector<16xf32>
    %71 = vector.shape_cast %70 : vector<16xf32> to vector<16x1xf32>
    %cst_30 = arith.constant 6.400000e+01 : f32
    %72 = vector.broadcast %cst_30 : f32 to vector<16x1xf32>
    %73 = arith.divf %71, %72 : vector<16x1xf32>
    %74 = vector.broadcast %66 : vector<16x1xf32> to vector<16x64xf32>
    %75 = arith.subf %62, %74 : vector<16x64xf32>
    %cst_31 = arith.constant 9.99999974E-6 : f32
    %76 = vector.broadcast %cst_31 : f32 to vector<16x1xf32>
    %77 = arith.addf %73, %76 : vector<16x1xf32>
    %78 = math.rsqrt %77 : vector<16x1xf32>
    %79 = vector.broadcast %78 : vector<16x1xf32> to vector<16x64xf32>
    %80 = arith.mulf %75, %79 : vector<16x64xf32>
    %c0_32 = arith.constant 0 : index
    %c0_33 = arith.constant 0 : index
    %c0_34 = arith.constant 0 : index
    %81 = vector.load %arg12[%c0_32, %c0_33, %c0_34] : memref<2x1x64xf32, #tpu.memory_space<vmem>>, vector<1x1x64xf32>
    %82 = vector.shape_cast %81 : vector<1x1x64xf32> to vector<1x64xf32>
    %83 = vector.broadcast %82 : vector<1x64xf32> to vector<16x64xf32>
    %84 = arith.mulf %80, %83 : vector<16x64xf32>
    %c0_35 = arith.constant 0 : index
    %c0_36 = arith.constant 0 : index
    %c0_37 = arith.constant 0 : index
    %85 = vector.load %arg13[%c0_35, %c0_36, %c0_37] : memref<2x1x64xf32, #tpu.memory_space<vmem>>, vector<1x1x64xf32>
    %86 = vector.shape_cast %85 : vector<1x1x64xf32> to vector<1x64xf32>
    %87 = vector.broadcast %86 : vector<1x64xf32> to vector<16x64xf32>
    %88 = arith.addf %84, %87 : vector<16x64xf32>
    %89 = arith.truncf %88 : vector<16x64xf32> to vector<16x64xbf16>
    %cst_38 = arith.constant 0.000000e+00 : f32
    %90 = vector.broadcast %cst_38 : f32 to vector<16x64xf32>
    %c0_39 = arith.constant 0 : index
    %c0_40 = arith.constant 0 : index
    %c0_41 = arith.constant 0 : index
    %91 = vector.load %arg6[%c0_39, %c0_40, %c0_41] : memref<2x64x2048xbf16, #tpu.memory_space<vmem>>, vector<1x64x512xbf16>
    %92 = vector.shape_cast %91 : vector<1x64x512xbf16> to vector<64x512xbf16>
    %cst_42 = arith.constant dense<0.000000e+00> : vector<16x512xf32>
    %93 = tpu.matmul %89, %92, %cst_42 {dimension_numbers = #tpu.dot_dimension_numbers<[1], [0], [0], [1], [0, 0, 1, 1], [], []>} : vector<16x64xbf16>, vector<64x512xbf16>, vector<16x512xf32> -> vector<16x512xf32>
    %c0_43 = arith.constant 0 : index
    %c0_44 = arith.constant 0 : index
    %c0_45 = arith.constant 0 : index
    %94 = vector.load %arg10[%c0_43, %c0_44, %c0_45] : memref<2x1x2048xf32, #tpu.memory_space<vmem>>, vector<1x1x512xf32>
    %95 = vector.shape_cast %94 : vector<1x1x512xf32> to vector<1x512xf32>
    %96 = vector.broadcast %95 : vector<1x512xf32> to vector<16x512xf32>
    %97 = arith.addf %93, %96 : vector<16x512xf32>
    %cst_46 = arith.constant 0.000000e+00 : f32
    %98 = vector.broadcast %cst_46 : f32 to vector<16x512xf32>
    %99 = arith.maximumf %97, %98 : vector<16x512xf32>
    %100 = arith.truncf %99 : vector<16x512xf32> to vector<16x512xbf16>
    %c0_47 = arith.constant 0 : index
    %c0_48 = arith.constant 0 : index
    %c0_49 = arith.constant 0 : index
    %101 = vector.load %arg7[%c0_47, %c0_48, %c0_49] : memref<2x2048x64xbf16, #tpu.memory_space<vmem>>, vector<1x512x64xbf16>
    %102 = vector.shape_cast %101 : vector<1x512x64xbf16> to vector<512x64xbf16>
    %cst_50 = arith.constant dense<0.000000e+00> : vector<16x64xf32>
    %103 = tpu.matmul %100, %102, %cst_50 {dimension_numbers = #tpu.dot_dimension_numbers<[1], [0], [0], [1], [0, 0, 1, 1], [], []>} : vector<16x512xbf16>, vector<512x64xbf16>, vector<16x64xf32> -> vector<16x64xf32>
    %104 = arith.addf %90, %103 : vector<16x64xf32>
    %c0_51 = arith.constant 0 : index
    %c0_52 = arith.constant 0 : index
    %c512 = arith.constant 512 : index
    %105 = vector.load %arg6[%c0_51, %c0_52, %c512] : memref<2x64x2048xbf16, #tpu.memory_space<vmem>>, vector<1x64x512xbf16>
    %106 = vector.shape_cast %105 : vector<1x64x512xbf16> to vector<64x512xbf16>
    %cst_53 = arith.constant dense<0.000000e+00> : vector<16x512xf32>
    %107 = tpu.matmul %89, %106, %cst_53 {dimension_numbers = #tpu.dot_dimension_numbers<[1], [0], [0], [1], [0, 0, 1, 1], [], []>} : vector<16x64xbf16>, vector<64x512xbf16>, vector<16x512xf32> -> vector<16x512xf32>
    %c0_54 = arith.constant 0 : index
    %c0_55 = arith.constant 0 : index
    %c512_56 = arith.constant 512 : index
    %108 = vector.load %arg10[%c0_54, %c0_55, %c512_56] : memref<2x1x2048xf32, #tpu.memory_space<vmem>>, vector<1x1x512xf32>
    %109 = vector.shape_cast %108 : vector<1x1x512xf32> to vector<1x512xf32>
    %110 = vector.broadcast %109 : vector<1x512xf32> to vector<16x512xf32>
    %111 = arith.addf %107, %110 : vector<16x512xf32>
    %cst_57 = arith.constant 0.000000e+00 : f32
    %112 = vector.broadcast %cst_57 : f32 to vector<16x512xf32>
    %113 = arith.maximumf %111, %112 : vector<16x512xf32>
    %114 = arith.truncf %113 : vector<16x512xf32> to vector<16x512xbf16>
    %c0_58 = arith.constant 0 : index
    %c512_59 = arith.constant 512 : index
    %c0_60 = arith.constant 0 : index
    %115 = vector.load %arg7[%c0_58, %c512_59, %c0_60] : memref<2x2048x64xbf16, #tpu.memory_space<vmem>>, vector<1x512x64xbf16>
    %116 = vector.shape_cast %115 : vector<1x512x64xbf16> to vector<512x64xbf16>
    %cst_61 = arith.constant dense<0.000000e+00> : vector<16x64xf32>
    %117 = tpu.matmul %114, %116, %cst_61 {dimension_numbers = #tpu.dot_dimension_numbers<[1], [0], [0], [1], [0, 0, 1, 1], [], []>} : vector<16x512xbf16>, vector<512x64xbf16>, vector<16x64xf32> -> vector<16x64xf32>
    %118 = arith.addf %104, %117 : vector<16x64xf32>
    %c0_62 = arith.constant 0 : index
    %c0_63 = arith.constant 0 : index
    %c1024 = arith.constant 1024 : index
    %119 = vector.load %arg6[%c0_62, %c0_63, %c1024] : memref<2x64x2048xbf16, #tpu.memory_space<vmem>>, vector<1x64x512xbf16>
    %120 = vector.shape_cast %119 : vector<1x64x512xbf16> to vector<64x512xbf16>
    %cst_64 = arith.constant dense<0.000000e+00> : vector<16x512xf32>
    %121 = tpu.matmul %89, %120, %cst_64 {dimension_numbers = #tpu.dot_dimension_numbers<[1], [0], [0], [1], [0, 0, 1, 1], [], []>} : vector<16x64xbf16>, vector<64x512xbf16>, vector<16x512xf32> -> vector<16x512xf32>
    %c0_65 = arith.constant 0 : index
    %c0_66 = arith.constant 0 : index
    %c1024_67 = arith.constant 1024 : index
    %122 = vector.load %arg10[%c0_65, %c0_66, %c1024_67] : memref<2x1x2048xf32, #tpu.memory_space<vmem>>, vector<1x1x512xf32>
    %123 = vector.shape_cast %122 : vector<1x1x512xf32> to vector<1x512xf32>
    %124 = vector.broadcast %123 : vector<1x512xf32> to vector<16x512xf32>
    %125 = arith.addf %121, %124 : vector<16x512xf32>
    %cst_68 = arith.constant 0.000000e+00 : f32
    %126 = vector.broadcast %cst_68 : f32 to vector<16x512xf32>
    %127 = arith.maximumf %125, %126 : vector<16x512xf32>
    %128 = arith.truncf %127 : vector<16x512xf32> to vector<16x512xbf16>
    %c0_69 = arith.constant 0 : index
    %c1024_70 = arith.constant 1024 : index
    %c0_71 = arith.constant 0 : index
    %129 = vector.load %arg7[%c0_69, %c1024_70, %c0_71] : memref<2x2048x64xbf16, #tpu.memory_space<vmem>>, vector<1x512x64xbf16>
    %130 = vector.shape_cast %129 : vector<1x512x64xbf16> to vector<512x64xbf16>
    %cst_72 = arith.constant dense<0.000000e+00> : vector<16x64xf32>
    %131 = tpu.matmul %128, %130, %cst_72 {dimension_numbers = #tpu.dot_dimension_numbers<[1], [0], [0], [1], [0, 0, 1, 1], [], []>} : vector<16x512xbf16>, vector<512x64xbf16>, vector<16x64xf32> -> vector<16x64xf32>
    %132 = arith.addf %118, %131 : vector<16x64xf32>
    %c0_73 = arith.constant 0 : index
    %c0_74 = arith.constant 0 : index
    %c1536 = arith.constant 1536 : index
    %133 = vector.load %arg6[%c0_73, %c0_74, %c1536] : memref<2x64x2048xbf16, #tpu.memory_space<vmem>>, vector<1x64x512xbf16>
    %134 = vector.shape_cast %133 : vector<1x64x512xbf16> to vector<64x512xbf16>
    %cst_75 = arith.constant dense<0.000000e+00> : vector<16x512xf32>
    %135 = tpu.matmul %89, %134, %cst_75 {dimension_numbers = #tpu.dot_dimension_numbers<[1], [0], [0], [1], [0, 0, 1, 1], [], []>} : vector<16x64xbf16>, vector<64x512xbf16>, vector<16x512xf32> -> vector<16x512xf32>
    %c0_76 = arith.constant 0 : index
    %c0_77 = arith.constant 0 : index
    %c1536_78 = arith.constant 1536 : index
    %136 = vector.load %arg10[%c0_76, %c0_77, %c1536_78] : memref<2x1x2048xf32, #tpu.memory_space<vmem>>, vector<1x1x512xf32>
    %137 = vector.shape_cast %136 : vector<1x1x512xf32> to vector<1x512xf32>
    %138 = vector.broadcast %137 : vector<1x512xf32> to vector<16x512xf32>
    %139 = arith.addf %135, %138 : vector<16x512xf32>
    %cst_79 = arith.constant 0.000000e+00 : f32
    %140 = vector.broadcast %cst_79 : f32 to vector<16x512xf32>
    %141 = arith.maximumf %139, %140 : vector<16x512xf32>
    %142 = arith.truncf %141 : vector<16x512xf32> to vector<16x512xbf16>
    %c0_80 = arith.constant 0 : index
    %c1536_81 = arith.constant 1536 : index
    %c0_82 = arith.constant 0 : index
    %143 = vector.load %arg7[%c0_80, %c1536_81, %c0_82] : memref<2x2048x64xbf16, #tpu.memory_space<vmem>>, vector<1x512x64xbf16>
    %144 = vector.shape_cast %143 : vector<1x512x64xbf16> to vector<512x64xbf16>
    %cst_83 = arith.constant dense<0.000000e+00> : vector<16x64xf32>
    %145 = tpu.matmul %142, %144, %cst_83 {dimension_numbers = #tpu.dot_dimension_numbers<[1], [0], [0], [1], [0, 0, 1, 1], [], []>} : vector<16x512xbf16>, vector<512x64xbf16>, vector<16x64xf32> -> vector<16x64xf32>
    %146 = arith.addf %132, %145 : vector<16x64xf32>
    %c0_84 = arith.constant 0 : index
    %c0_85 = arith.constant 0 : index
    %c0_86 = arith.constant 0 : index
    %147 = vector.load %arg11[%c0_84, %c0_85, %c0_86] : memref<2x1x64xf32, #tpu.memory_space<vmem>>, vector<1x1x64xf32>
    %148 = vector.shape_cast %147 : vector<1x1x64xf32> to vector<1x64xf32>
    %149 = vector.broadcast %148 : vector<1x64xf32> to vector<16x64xf32>
    %150 = arith.addf %146, %149 : vector<16x64xf32>
    %151 = arith.addf %88, %150 : vector<16x64xf32>
    %cst_87 = arith.constant dense<0.000000e+00> : vector<16xf32>
    %152 = vector.multi_reduction <add>, %151, %cst_87 [1] : vector<16x64xf32> to vector<16xf32>
    %153 = vector.shape_cast %152 : vector<16xf32> to vector<16x1xf32>
    %cst_88 = arith.constant 6.400000e+01 : f32
    %154 = vector.broadcast %cst_88 : f32 to vector<16x1xf32>
    %155 = arith.divf %153, %154 : vector<16x1xf32>
    %156 = vector.broadcast %155 : vector<16x1xf32> to vector<16x64xf32>
    %157 = arith.subf %151, %156 : vector<16x64xf32>
    %158 = arith.mulf %157, %157 : vector<16x64xf32>
    %cst_89 = arith.constant dense<0.000000e+00> : vector<16xf32>
    %159 = vector.multi_reduction <add>, %158, %cst_89 [1] : vector<16x64xf32> to vector<16xf32>
    %160 = vector.shape_cast %159 : vector<16xf32> to vector<16x1xf32>
    %cst_90 = arith.constant 6.400000e+01 : f32
    %161 = vector.broadcast %cst_90 : f32 to vector<16x1xf32>
    %162 = arith.divf %160, %161 : vector<16x1xf32>
    %163 = vector.broadcast %155 : vector<16x1xf32> to vector<16x64xf32>
    %164 = arith.subf %151, %163 : vector<16x64xf32>
    %cst_91 = arith.constant 9.99999974E-6 : f32
    %165 = vector.broadcast %cst_91 : f32 to vector<16x1xf32>
    %166 = arith.addf %162, %165 : vector<16x1xf32>
    %167 = math.rsqrt %166 : vector<16x1xf32>
    %168 = vector.broadcast %167 : vector<16x1xf32> to vector<16x64xf32>
    %169 = arith.mulf %164, %168 : vector<16x64xf32>
    %c0_92 = arith.constant 0 : index
    %c0_93 = arith.constant 0 : index
    %c0_94 = arith.constant 0 : index
    %170 = vector.load %arg14[%c0_92, %c0_93, %c0_94] : memref<2x1x64xf32, #tpu.memory_space<vmem>>, vector<1x1x64xf32>
    %171 = vector.shape_cast %170 : vector<1x1x64xf32> to vector<1x64xf32>
    %172 = vector.broadcast %171 : vector<1x64xf32> to vector<16x64xf32>
    %173 = arith.mulf %169, %172 : vector<16x64xf32>
    %c0_95 = arith.constant 0 : index
    %c0_96 = arith.constant 0 : index
    %c0_97 = arith.constant 0 : index
    %174 = vector.load %arg15[%c0_95, %c0_96, %c0_97] : memref<2x1x64xf32, #tpu.memory_space<vmem>>, vector<1x1x64xf32>
    %175 = vector.shape_cast %174 : vector<1x1x64xf32> to vector<1x64xf32>
    %176 = vector.broadcast %175 : vector<1x64xf32> to vector<16x64xf32>
    %177 = arith.addf %173, %176 : vector<16x64xf32>
    %178 = arith.truncf %177 : vector<16x64xf32> to vector<16x64xbf16>
    %c1 = arith.constant 1 : index
    %c0_98 = arith.constant 0 : index
    %c0_99 = arith.constant 0 : index
    %179 = vector.load %arg4[%c1, %c0_98, %c0_99] : memref<2x64x192xbf16, #tpu.memory_space<vmem>>, vector<1x64x192xbf16>
    %180 = vector.shape_cast %179 : vector<1x64x192xbf16> to vector<64x192xbf16>
    %cst_100 = arith.constant dense<0.000000e+00> : vector<16x192xf32>
    %181 = tpu.matmul %178, %180, %cst_100 {dimension_numbers = #tpu.dot_dimension_numbers<[1], [0], [0], [1], [0, 0, 1, 1], [], []>} : vector<16x64xbf16>, vector<64x192xbf16>, vector<16x192xf32> -> vector<16x192xf32>
    %c1_101 = arith.constant 1 : index
    %c0_102 = arith.constant 0 : index
    %c0_103 = arith.constant 0 : index
    %182 = vector.load %arg8[%c1_101, %c0_102, %c0_103] : memref<2x1x192xf32, #tpu.memory_space<vmem>>, vector<1x1x192xf32>
    %183 = vector.shape_cast %182 : vector<1x1x192xf32> to vector<1x192xf32>
    %184 = vector.broadcast %183 : vector<1x192xf32> to vector<16x192xf32>
    %185 = arith.addf %181, %184 : vector<16x192xf32>
    %186 = vector.extract_strided_slice %185 {offsets = [0, 0], sizes = [16, 64], strides = [1, 1]} : vector<16x192xf32> to vector<16x64xf32>
    %187 = arith.truncf %186 : vector<16x64xf32> to vector<16x64xbf16>
    %188 = vector.shape_cast %187 : vector<16x64xbf16> to vector<16x4x16xbf16>
    %189 = tpu.transpose %188, [1, 0, 2] : vector<16x4x16xbf16> -> vector<4x16x16xbf16>
    %190 = vector.extract_strided_slice %185 {offsets = [0, 64], sizes = [16, 64], strides = [1, 1]} : vector<16x192xf32> to vector<16x64xf32>
    %191 = arith.truncf %190 : vector<16x64xf32> to vector<16x64xbf16>
    %192 = vector.shape_cast %191 : vector<16x64xbf16> to vector<16x4x16xbf16>
    %193 = tpu.transpose %192, [1, 0, 2] : vector<16x4x16xbf16> -> vector<4x16x16xbf16>
    %194 = vector.extract_strided_slice %185 {offsets = [0, 128], sizes = [16, 64], strides = [1, 1]} : vector<16x192xf32> to vector<16x64xf32>
    %195 = arith.truncf %194 : vector<16x64xf32> to vector<16x64xbf16>
    %196 = vector.shape_cast %195 : vector<16x64xbf16> to vector<16x4x16xbf16>
    %197 = tpu.transpose %196, [1, 0, 2] : vector<16x4x16xbf16> -> vector<4x16x16xbf16>
    "tpu.trace_start"() <{level = 10 : i32, message = "hme,hne->hmn"}> : () -> ()
    %cst_104 = arith.constant dense<0.000000e+00> : vector<4x16x16xf32>
    %198 = tpu.matmul %189, %193, %cst_104 {dimension_numbers = #tpu.dot_dimension_numbers<[2], [2], [1], [1], [0, 0, 0, 1, 1, 1], [0], [0]>} : vector<4x16x16xbf16>, vector<4x16x16xbf16>, vector<4x16x16xf32> -> vector<4x16x16xf32>
    "tpu.trace_stop"() : () -> ()
    %199 = vector.shape_cast %15 : vector<16x16xf32> to vector<1x16x16xf32>
    %200 = vector.broadcast %199 : vector<1x16x16xf32> to vector<4x16x16xf32>
    %201 = arith.addf %198, %200 : vector<4x16x16xf32>
    %cst_105 = arith.constant dense<0xFF800000> : vector<4x16xf32>
    %202 = vector.multi_reduction <maximumf>, %201, %cst_105 [2] : vector<4x16x16xf32> to vector<4x16xf32>
    %203 = vector.shape_cast %202 : vector<4x16xf32> to vector<4x16x1xf32>
    %204 = vector.broadcast %203 : vector<4x16x1xf32> to vector<4x16x16xf32>
    %205 = arith.subf %201, %204 : vector<4x16x16xf32>
    %206 = math.exp %205 : vector<4x16x16xf32>
    %cst_106 = arith.constant dense<0.000000e+00> : vector<4x16xf32>
    %207 = vector.multi_reduction <add>, %206, %cst_106 [2] : vector<4x16x16xf32> to vector<4x16xf32>
    %208 = vector.shape_cast %207 : vector<4x16xf32> to vector<4x16x1xf32>
    %209 = tpu.reciprocal %208 {approx = true} : vector<4x16x1xf32> -> vector<4x16x1xf32>
    %210 = vector.broadcast %209 : vector<4x16x1xf32> to vector<4x16x16xf32>
    %211 = arith.mulf %206, %210 : vector<4x16x16xf32>
    %212 = arith.truncf %211 : vector<4x16x16xf32> to vector<4x16x16xbf16>
    "tpu.trace_start"() <{level = 10 : i32, message = "hmn,hne->hme"}> : () -> ()
    %cst_107 = arith.constant dense<0.000000e+00> : vector<4x16x16xf32>
    %213 = tpu.matmul %212, %197, %cst_107 {dimension_numbers = #tpu.dot_dimension_numbers<[2], [1], [1], [2], [0, 0, 0, 1, 1, 2], [0], [0]>} : vector<4x16x16xbf16>, vector<4x16x16xbf16>, vector<4x16x16xf32> -> vector<4x16x16xf32>
    "tpu.trace_stop"() : () -> ()
    %214 = tpu.transpose %213, [1, 0, 2] : vector<4x16x16xf32> -> vector<16x4x16xf32>
    %215 = vector.shape_cast %214 : vector<16x4x16xf32> to vector<16x64xf32>
    %216 = arith.truncf %215 : vector<16x64xf32> to vector<16x64xbf16>
    %c1_108 = arith.constant 1 : index
    %c0_109 = arith.constant 0 : index
    %c0_110 = arith.constant 0 : index
    %217 = vector.load %arg5[%c1_108, %c0_109, %c0_110] : memref<2x64x64xbf16, #tpu.memory_space<vmem>>, vector<1x64x64xbf16>
    %218 = vector.shape_cast %217 : vector<1x64x64xbf16> to vector<64x64xbf16>
    %cst_111 = arith.constant dense<0.000000e+00> : vector<16x64xf32>
    %219 = tpu.matmul %216, %218, %cst_111 {dimension_numbers = #tpu.dot_dimension_numbers<[1], [0], [0], [1], [0, 0, 1, 1], [], []>} : vector<16x64xbf16>, vector<64x64xbf16>, vector<16x64xf32> -> vector<16x64xf32>
    %c1_112 = arith.constant 1 : index
    %c0_113 = arith.constant 0 : index
    %c0_114 = arith.constant 0 : index
    %220 = vector.load %arg9[%c1_112, %c0_113, %c0_114] : memref<2x1x64xf32, #tpu.memory_space<vmem>>, vector<1x1x64xf32>
    %221 = vector.shape_cast %220 : vector<1x1x64xf32> to vector<1x64xf32>
    %222 = vector.broadcast %221 : vector<1x64xf32> to vector<16x64xf32>
    %223 = arith.addf %219, %222 : vector<16x64xf32>
    %224 = arith.addf %177, %223 : vector<16x64xf32>
    %cst_115 = arith.constant dense<0.000000e+00> : vector<16xf32>
    %225 = vector.multi_reduction <add>, %224, %cst_115 [1] : vector<16x64xf32> to vector<16xf32>
    %226 = vector.shape_cast %225 : vector<16xf32> to vector<16x1xf32>
    %cst_116 = arith.constant 6.400000e+01 : f32
    %227 = vector.broadcast %cst_116 : f32 to vector<16x1xf32>
    %228 = arith.divf %226, %227 : vector<16x1xf32>
    %229 = vector.broadcast %228 : vector<16x1xf32> to vector<16x64xf32>
    %230 = arith.subf %224, %229 : vector<16x64xf32>
    %231 = arith.mulf %230, %230 : vector<16x64xf32>
    %cst_117 = arith.constant dense<0.000000e+00> : vector<16xf32>
    %232 = vector.multi_reduction <add>, %231, %cst_117 [1] : vector<16x64xf32> to vector<16xf32>
    %233 = vector.shape_cast %232 : vector<16xf32> to vector<16x1xf32>
    %cst_118 = arith.constant 6.400000e+01 : f32
    %234 = vector.broadcast %cst_118 : f32 to vector<16x1xf32>
    %235 = arith.divf %233, %234 : vector<16x1xf32>
    %236 = vector.broadcast %228 : vector<16x1xf32> to vector<16x64xf32>
    %237 = arith.subf %224, %236 : vector<16x64xf32>
    %cst_119 = arith.constant 9.99999974E-6 : f32
    %238 = vector.broadcast %cst_119 : f32 to vector<16x1xf32>
    %239 = arith.addf %235, %238 : vector<16x1xf32>
    %240 = math.rsqrt %239 : vector<16x1xf32>
    %241 = vector.broadcast %240 : vector<16x1xf32> to vector<16x64xf32>
    %242 = arith.mulf %237, %241 : vector<16x64xf32>
    %c1_120 = arith.constant 1 : index
    %c0_121 = arith.constant 0 : index
    %c0_122 = arith.constant 0 : index
    %243 = vector.load %arg12[%c1_120, %c0_121, %c0_122] : memref<2x1x64xf32, #tpu.memory_space<vmem>>, vector<1x1x64xf32>
    %244 = vector.shape_cast %243 : vector<1x1x64xf32> to vector<1x64xf32>
    %245 = vector.broadcast %244 : vector<1x64xf32> to vector<16x64xf32>
    %246 = arith.mulf %242, %245 : vector<16x64xf32>
    %c1_123 = arith.constant 1 : index
    %c0_124 = arith.constant 0 : index
    %c0_125 = arith.constant 0 : index
    %247 = vector.load %arg13[%c1_123, %c0_124, %c0_125] : memref<2x1x64xf32, #tpu.memory_space<vmem>>, vector<1x1x64xf32>
    %248 = vector.shape_cast %247 : vector<1x1x64xf32> to vector<1x64xf32>
    %249 = vector.broadcast %248 : vector<1x64xf32> to vector<16x64xf32>
    %250 = arith.addf %246, %249 : vector<16x64xf32>
    %251 = arith.truncf %250 : vector<16x64xf32> to vector<16x64xbf16>
    %cst_126 = arith.constant 0.000000e+00 : f32
    %252 = vector.broadcast %cst_126 : f32 to vector<16x64xf32>
    %c1_127 = arith.constant 1 : index
    %c0_128 = arith.constant 0 : index
    %c0_129 = arith.constant 0 : index
    %253 = vector.load %arg6[%c1_127, %c0_128, %c0_129] : memref<2x64x2048xbf16, #tpu.memory_space<vmem>>, vector<1x64x512xbf16>
    %254 = vector.shape_cast %253 : vector<1x64x512xbf16> to vector<64x512xbf16>
    %cst_130 = arith.constant dense<0.000000e+00> : vector<16x512xf32>
    %255 = tpu.matmul %251, %254, %cst_130 {dimension_numbers = #tpu.dot_dimension_numbers<[1], [0], [0], [1], [0, 0, 1, 1], [], []>} : vector<16x64xbf16>, vector<64x512xbf16>, vector<16x512xf32> -> vector<16x512xf32>
    %c1_131 = arith.constant 1 : index
    %c0_132 = arith.constant 0 : index
    %c0_133 = arith.constant 0 : index
    %256 = vector.load %arg10[%c1_131, %c0_132, %c0_133] : memref<2x1x2048xf32, #tpu.memory_space<vmem>>, vector<1x1x512xf32>
    %257 = vector.shape_cast %256 : vector<1x1x512xf32> to vector<1x512xf32>
    %258 = vector.broadcast %257 : vector<1x512xf32> to vector<16x512xf32>
    %259 = arith.addf %255, %258 : vector<16x512xf32>
    %cst_134 = arith.constant 0.000000e+00 : f32
    %260 = vector.broadcast %cst_134 : f32 to vector<16x512xf32>
    %261 = arith.maximumf %259, %260 : vector<16x512xf32>
    %262 = arith.truncf %261 : vector<16x512xf32> to vector<16x512xbf16>
    %c1_135 = arith.constant 1 : index
    %c0_136 = arith.constant 0 : index
    %c0_137 = arith.constant 0 : index
    %263 = vector.load %arg7[%c1_135, %c0_136, %c0_137] : memref<2x2048x64xbf16, #tpu.memory_space<vmem>>, vector<1x512x64xbf16>
    %264 = vector.shape_cast %263 : vector<1x512x64xbf16> to vector<512x64xbf16>
    %cst_138 = arith.constant dense<0.000000e+00> : vector<16x64xf32>
    %265 = tpu.matmul %262, %264, %cst_138 {dimension_numbers = #tpu.dot_dimension_numbers<[1], [0], [0], [1], [0, 0, 1, 1], [], []>} : vector<16x512xbf16>, vector<512x64xbf16>, vector<16x64xf32> -> vector<16x64xf32>
    %266 = arith.addf %252, %265 : vector<16x64xf32>
    %c1_139 = arith.constant 1 : index
    %c0_140 = arith.constant 0 : index
    %c512_141 = arith.constant 512 : index
    %267 = vector.load %arg6[%c1_139, %c0_140, %c512_141] : memref<2x64x2048xbf16, #tpu.memory_space<vmem>>, vector<1x64x512xbf16>
    %268 = vector.shape_cast %267 : vector<1x64x512xbf16> to vector<64x512xbf16>
    %cst_142 = arith.constant dense<0.000000e+00> : vector<16x512xf32>
    %269 = tpu.matmul %251, %268, %cst_142 {dimension_numbers = #tpu.dot_dimension_numbers<[1], [0], [0], [1], [0, 0, 1, 1], [], []>} : vector<16x64xbf16>, vector<64x512xbf16>, vector<16x512xf32> -> vector<16x512xf32>
    %c1_143 = arith.constant 1 : index
    %c0_144 = arith.constant 0 : index
    %c512_145 = arith.constant 512 : index
    %270 = vector.load %arg10[%c1_143, %c0_144, %c512_145] : memref<2x1x2048xf32, #tpu.memory_space<vmem>>, vector<1x1x512xf32>
    %271 = vector.shape_cast %270 : vector<1x1x512xf32> to vector<1x512xf32>
    %272 = vector.broadcast %271 : vector<1x512xf32> to vector<16x512xf32>
    %273 = arith.addf %269, %272 : vector<16x512xf32>
    %cst_146 = arith.constant 0.000000e+00 : f32
    %274 = vector.broadcast %cst_146 : f32 to vector<16x512xf32>
    %275 = arith.maximumf %273, %274 : vector<16x512xf32>
    %276 = arith.truncf %275 : vector<16x512xf32> to vector<16x512xbf16>
    %c1_147 = arith.constant 1 : index
    %c512_148 = arith.constant 512 : index
    %c0_149 = arith.constant 0 : index
    %277 = vector.load %arg7[%c1_147, %c512_148, %c0_149] : memref<2x2048x64xbf16, #tpu.memory_space<vmem>>, vector<1x512x64xbf16>
    %278 = vector.shape_cast %277 : vector<1x512x64xbf16> to vector<512x64xbf16>
    %cst_150 = arith.constant dense<0.000000e+00> : vector<16x64xf32>
    %279 = tpu.matmul %276, %278, %cst_150 {dimension_numbers = #tpu.dot_dimension_numbers<[1], [0], [0], [1], [0, 0, 1, 1], [], []>} : vector<16x512xbf16>, vector<512x64xbf16>, vector<16x64xf32> -> vector<16x64xf32>
    %280 = arith.addf %266, %279 : vector<16x64xf32>
    %c1_151 = arith.constant 1 : index
    %c0_152 = arith.constant 0 : index
    %c1024_153 = arith.constant 1024 : index
    %281 = vector.load %arg6[%c1_151, %c0_152, %c1024_153] : memref<2x64x2048xbf16, #tpu.memory_space<vmem>>, vector<1x64x512xbf16>
    %282 = vector.shape_cast %281 : vector<1x64x512xbf16> to vector<64x512xbf16>
    %cst_154 = arith.constant dense<0.000000e+00> : vector<16x512xf32>
    %283 = tpu.matmul %251, %282, %cst_154 {dimension_numbers = #tpu.dot_dimension_numbers<[1], [0], [0], [1], [0, 0, 1, 1], [], []>} : vector<16x64xbf16>, vector<64x512xbf16>, vector<16x512xf32> -> vector<16x512xf32>
    %c1_155 = arith.constant 1 : index
    %c0_156 = arith.constant 0 : index
    %c1024_157 = arith.constant 1024 : index
    %284 = vector.load %arg10[%c1_155, %c0_156, %c1024_157] : memref<2x1x2048xf32, #tpu.memory_space<vmem>>, vector<1x1x512xf32>
    %285 = vector.shape_cast %284 : vector<1x1x512xf32> to vector<1x512xf32>
    %286 = vector.broadcast %285 : vector<1x512xf32> to vector<16x512xf32>
    %287 = arith.addf %283, %286 : vector<16x512xf32>
    %cst_158 = arith.constant 0.000000e+00 : f32
    %288 = vector.broadcast %cst_158 : f32 to vector<16x512xf32>
    %289 = arith.maximumf %287, %288 : vector<16x512xf32>
    %290 = arith.truncf %289 : vector<16x512xf32> to vector<16x512xbf16>
    %c1_159 = arith.constant 1 : index
    %c1024_160 = arith.constant 1024 : index
    %c0_161 = arith.constant 0 : index
    %291 = vector.load %arg7[%c1_159, %c1024_160, %c0_161] : memref<2x2048x64xbf16, #tpu.memory_space<vmem>>, vector<1x512x64xbf16>
    %292 = vector.shape_cast %291 : vector<1x512x64xbf16> to vector<512x64xbf16>
    %cst_162 = arith.constant dense<0.000000e+00> : vector<16x64xf32>
    %293 = tpu.matmul %290, %292, %cst_162 {dimension_numbers = #tpu.dot_dimension_numbers<[1], [0], [0], [1], [0, 0, 1, 1], [], []>} : vector<16x512xbf16>, vector<512x64xbf16>, vector<16x64xf32> -> vector<16x64xf32>
    %294 = arith.addf %280, %293 : vector<16x64xf32>
    %c1_163 = arith.constant 1 : index
    %c0_164 = arith.constant 0 : index
    %c1536_165 = arith.constant 1536 : index
    %295 = vector.load %arg6[%c1_163, %c0_164, %c1536_165] : memref<2x64x2048xbf16, #tpu.memory_space<vmem>>, vector<1x64x512xbf16>
    %296 = vector.shape_cast %295 : vector<1x64x512xbf16> to vector<64x512xbf16>
    %cst_166 = arith.constant dense<0.000000e+00> : vector<16x512xf32>
    %297 = tpu.matmul %251, %296, %cst_166 {dimension_numbers = #tpu.dot_dimension_numbers<[1], [0], [0], [1], [0, 0, 1, 1], [], []>} : vector<16x64xbf16>, vector<64x512xbf16>, vector<16x512xf32> -> vector<16x512xf32>
    %c1_167 = arith.constant 1 : index
    %c0_168 = arith.constant 0 : index
    %c1536_169 = arith.constant 1536 : index
    %298 = vector.load %arg10[%c1_167, %c0_168, %c1536_169] : memref<2x1x2048xf32, #tpu.memory_space<vmem>>, vector<1x1x512xf32>
    %299 = vector.shape_cast %298 : vector<1x1x512xf32> to vector<1x512xf32>
    %300 = vector.broadcast %299 : vector<1x512xf32> to vector<16x512xf32>
    %301 = arith.addf %297, %300 : vector<16x512xf32>
    %cst_170 = arith.constant 0.000000e+00 : f32
    %302 = vector.broadcast %cst_170 : f32 to vector<16x512xf32>
    %303 = arith.maximumf %301, %302 : vector<16x512xf32>
    %304 = arith.truncf %303 : vector<16x512xf32> to vector<16x512xbf16>
    %c1_171 = arith.constant 1 : index
    %c1536_172 = arith.constant 1536 : index
    %c0_173 = arith.constant 0 : index
    %305 = vector.load %arg7[%c1_171, %c1536_172, %c0_173] : memref<2x2048x64xbf16, #tpu.memory_space<vmem>>, vector<1x512x64xbf16>
    %306 = vector.shape_cast %305 : vector<1x512x64xbf16> to vector<512x64xbf16>
    %cst_174 = arith.constant dense<0.000000e+00> : vector<16x64xf32>
    %307 = tpu.matmul %304, %306, %cst_174 {dimension_numbers = #tpu.dot_dimension_numbers<[1], [0], [0], [1], [0, 0, 1, 1], [], []>} : vector<16x512xbf16>, vector<512x64xbf16>, vector<16x64xf32> -> vector<16x64xf32>
    %308 = arith.addf %294, %307 : vector<16x64xf32>
    %c1_175 = arith.constant 1 : index
    %c0_176 = arith.constant 0 : index
    %c0_177 = arith.constant 0 : index
    %309 = vector.load %arg11[%c1_175, %c0_176, %c0_177] : memref<2x1x64xf32, #tpu.memory_space<vmem>>, vector<1x1x64xf32>
    %310 = vector.shape_cast %309 : vector<1x1x64xf32> to vector<1x64xf32>
    %311 = vector.broadcast %310 : vector<1x64xf32> to vector<16x64xf32>
    %312 = arith.addf %308, %311 : vector<16x64xf32>
    %313 = arith.addf %250, %312 : vector<16x64xf32>
    %cst_178 = arith.constant dense<0.000000e+00> : vector<16xf32>
    %314 = vector.multi_reduction <add>, %313, %cst_178 [1] : vector<16x64xf32> to vector<16xf32>
    %315 = vector.shape_cast %314 : vector<16xf32> to vector<16x1xf32>
    %cst_179 = arith.constant 6.400000e+01 : f32
    %316 = vector.broadcast %cst_179 : f32 to vector<16x1xf32>
    %317 = arith.divf %315, %316 : vector<16x1xf32>
    %318 = vector.broadcast %317 : vector<16x1xf32> to vector<16x64xf32>
    %319 = arith.subf %313, %318 : vector<16x64xf32>
    %320 = arith.mulf %319, %319 : vector<16x64xf32>
    %cst_180 = arith.constant dense<0.000000e+00> : vector<16xf32>
    %321 = vector.multi_reduction <add>, %320, %cst_180 [1] : vector<16x64xf32> to vector<16xf32>
    %322 = vector.shape_cast %321 : vector<16xf32> to vector<16x1xf32>
    %cst_181 = arith.constant 6.400000e+01 : f32
    %323 = vector.broadcast %cst_181 : f32 to vector<16x1xf32>
    %324 = arith.divf %322, %323 : vector<16x1xf32>
    %325 = vector.broadcast %317 : vector<16x1xf32> to vector<16x64xf32>
    %326 = arith.subf %313, %325 : vector<16x64xf32>
    %cst_182 = arith.constant 9.99999974E-6 : f32
    %327 = vector.broadcast %cst_182 : f32 to vector<16x1xf32>
    %328 = arith.addf %324, %327 : vector<16x1xf32>
    %329 = math.rsqrt %328 : vector<16x1xf32>
    %330 = vector.broadcast %329 : vector<16x1xf32> to vector<16x64xf32>
    %331 = arith.mulf %326, %330 : vector<16x64xf32>
    %c1_183 = arith.constant 1 : index
    %c0_184 = arith.constant 0 : index
    %c0_185 = arith.constant 0 : index
    %332 = vector.load %arg14[%c1_183, %c0_184, %c0_185] : memref<2x1x64xf32, #tpu.memory_space<vmem>>, vector<1x1x64xf32>
    %333 = vector.shape_cast %332 : vector<1x1x64xf32> to vector<1x64xf32>
    %334 = vector.broadcast %333 : vector<1x64xf32> to vector<16x64xf32>
    %335 = arith.mulf %331, %334 : vector<16x64xf32>
    %c1_186 = arith.constant 1 : index
    %c0_187 = arith.constant 0 : index
    %c0_188 = arith.constant 0 : index
    %336 = vector.load %arg15[%c1_186, %c0_187, %c0_188] : memref<2x1x64xf32, #tpu.memory_space<vmem>>, vector<1x1x64xf32>
    %337 = vector.shape_cast %336 : vector<1x1x64xf32> to vector<1x64xf32>
    %338 = vector.broadcast %337 : vector<1x64xf32> to vector<16x64xf32>
    %339 = arith.addf %335, %338 : vector<16x64xf32>
    %c0_189 = arith.constant 0 : index
    %c0_190 = arith.constant 0 : index
    %c0_191 = arith.constant 0 : index
    %340 = vector.load %arg16[%c0_189, %c0_190, %c0_191] : memref<1x16x64xf32, #tpu.memory_space<vmem>>, vector<1x16x64xf32>
    %341 = vector.shape_cast %340 : vector<1x16x64xf32> to vector<16x64xf32>
    %342 = vector.shape_cast %339 : vector<16x64xf32> to vector<1x16x64xf32>
    tpu.vector_store %arg16[%c0_189, %c0_190, %c0_191], %342 {strides = array<i32>} : memref<1x16x64xf32, #tpu.memory_space<vmem>>, vector<1x16x64xf32>,
    return
  }
  func.func @transform_0(%arg0: i32) -> (i32, i32, i32) {
    %c0_i32 = arith.constant 0 : i32
    %c0_i32_0 = arith.constant 0 : i32
    %c0_i32_1 = arith.constant 0 : i32
    return %arg0, %c0_i32, %c0_i32_0 : i32, i32, i32
  }
  func.func @transform_1(%arg0: i32) -> (i32, i32, i32) {
    %c0_i32 = arith.constant 0 : i32
    %c0_i32_0 = arith.constant 0 : i32
    %c0_i32_1 = arith.constant 0 : i32
    return %arg0, %c0_i32, %c0_i32_0 : i32, i32, i32
  }
  func.func @transform_2(%arg0: i32) -> (i32, i32, i32) {
    %c0_i32 = arith.constant 0 : i32
    %c0_i32_0 = arith.constant 0 : i32
    %c0_i32_1 = arith.constant 0 : i32
    return %arg0, %c0_i32, %c0_i32_0 : i32, i32, i32
  }
  func.func @transform_3(%arg0: i32) -> (i32, i32, i32) {
    %c0_i32 = arith.constant 0 : i32
    %c0_i32_0 = arith.constant 0 : i32
    %c0_i32_1 = arith.constant 0 : i32
    %c0_i32_2 = arith.constant 0 : i32
    return %c0_i32, %c0_i32_0, %c0_i32_1 : i32, i32, i32
  }
  func.func @transform_4(%arg0: i32) -> (i32, i32, i32) {
    %c0_i32 = arith.constant 0 : i32
    %c0_i32_0 = arith.constant 0 : i32
    %c0_i32_1 = arith.constant 0 : i32
    %c0_i32_2 = arith.constant 0 : i32
    return %c0_i32, %c0_i32_0, %c0_i32_1 : i32, i32, i32
  }
  func.func @transform_5(%arg0: i32) -> (i32, i32, i32) {
    %c0_i32 = arith.constant 0 : i32
    %c0_i32_0 = arith.constant 0 : i32
    %c0_i32_1 = arith.constant 0 : i32
    %c0_i32_2 = arith.constant 0 : i32
    return %c0_i32, %c0_i32_0, %c0_i32_1 : i32, i32, i32
  }
  func.func @transform_6(%arg0: i32) -> (i32, i32, i32) {
    %c0_i32 = arith.constant 0 : i32
    %c0_i32_0 = arith.constant 0 : i32
    %c0_i32_1 = arith.constant 0 : i32
    %c0_i32_2 = arith.constant 0 : i32
    return %c0_i32, %c0_i32_0, %c0_i32_1 : i32, i32, i32
  }
  func.func @transform_7(%arg0: i32) -> (i32, i32, i32) {
    %c0_i32 = arith.constant 0 : i32
    %c0_i32_0 = arith.constant 0 : i32
    %c0_i32_1 = arith.constant 0 : i32
    %c0_i32_2 = arith.constant 0 : i32
    return %c0_i32, %c0_i32_0, %c0_i32_1 : i32, i32, i32
  }
  func.func @transform_8(%arg0: i32) -> (i32, i32, i32) {
    %c0_i32 = arith.constant 0 : i32
    %c0_i32_0 = arith.constant 0 : i32
    %c0_i32_1 = arith.constant 0 : i32
    %c0_i32_2 = arith.constant 0 : i32
    return %c0_i32, %c0_i32_0, %c0_i32_1 : i32, i32, i32
  }
  func.func @transform_9(%arg0: i32) -> (i32, i32, i32) {
    %c0_i32 = arith.constant 0 : i32
    %c0_i32_0 = arith.constant 0 : i32
    %c0_i32_1 = arith.constant 0 : i32
    %c0_i32_2 = arith.constant 0 : i32
    return %c0_i32, %c0_i32_0, %c0_i32_1 : i32, i32, i32
  }
  func.func @transform_10(%arg0: i32) -> (i32, i32, i32) {
    %c0_i32 = arith.constant 0 : i32
    %c0_i32_0 = arith.constant 0 : i32
    %c0_i32_1 = arith.constant 0 : i32
    %c0_i32_2 = arith.constant 0 : i32
    return %c0_i32, %c0_i32_0, %c0_i32_1 : i32, i32, i32
  }
  func.func @transform_11(%arg0: i32) -> (i32, i32, i32) {
    %c0_i32 = arith.constant 0 : i32
    %c0_i32_0 = arith.constant 0 : i32
    %c0_i32_1 = arith.constant 0 : i32
    %c0_i32_2 = arith.constant 0 : i32
    return %c0_i32, %c0_i32_0, %c0_i32_1 : i32, i32, i32
  }
  func.func @transform_12(%arg0: i32) -> (i32, i32, i32) {
    %c0_i32 = arith.constant 0 : i32
    %c0_i32_0 = arith.constant 0 : i32
    %c0_i32_1 = arith.constant 0 : i32
    %c0_i32_2 = arith.constant 0 : i32
    return %c0_i32, %c0_i32_0, %c0_i32_1 : i32, i32, i32
  }
  func.func @transform_13(%arg0: i32) -> (i32, i32, i32) {
    %c0_i32 = arith.constant 0 : i32
    %c0_i32_0 = arith.constant 0 : i32
    %c0_i32_1 = arith.constant 0 : i32
    %c0_i32_2 = arith.constant 0 : i32
    return %c0_i32, %c0_i32_0, %c0_i32_1 : i32, i32, i32
  }
  func.func @transform_14(%arg0: i32) -> (i32, i32, i32) {
    %c0_i32 = arith.constant 0 : i32
    %c0_i32_0 = arith.constant 0 : i32
    %c0_i32_1 = arith.constant 0 : i32
    %c0_i32_2 = arith.constant 0 : i32
    return %c0_i32, %c0_i32_0, %c0_i32_1 : i32, i32, i32
  }
  func.func @transform_15(%arg0: i32) -> (i32, i32, i32) {
    %c0_i32 = arith.constant 0 : i32
    %c0_i32_0 = arith.constant 0 : i32
    %c0_i32_1 = arith.constant 0 : i32
    return %arg0, %c0_i32, %c0_i32_0 : i32, i32, i32
  }
}

module attributes {stable_mosaic.version = 11 : i64} {
  func.func @fused_encoder_kernel(%arg0: i32, %arg1: memref<1x16x64xf32, #tpu.memory_space<vmem>>, %arg2: memref<1x16x1xi32, #tpu.memory_space<vmem>>, %arg3: memref<1x1x16xi32, #tpu.memory_space<vmem>>, %arg4: memref<2x64x192xbf16, #tpu.memory_space<vmem>>, %arg5: memref<2x64x64xbf16, #tpu.memory_space<vmem>>, %arg6: memref<2x64x2048xbf16, #tpu.memory_space<vmem>>, %arg7: memref<2x2048x64xbf16, #tpu.memory_space<vmem>>, %arg8: memref<2x1x192xf32, #tpu.memory_space<vmem>>, %arg9: memref<2x1x64xf32, #tpu.memory_space<vmem>>, %arg10: memref<2x1x2048xf32, #tpu.memory_space<vmem>>, %arg11: memref<2x1x64xf32, #tpu.memory_space<vmem>>, %arg12: memref<2x1x64xf32, #tpu.memory_space<vmem>>, %arg13: memref<2x1x64xf32, #tpu.memory_space<vmem>>, %arg14: memref<2x1x64xf32, #tpu.memory_space<vmem>>, %arg15: memref<2x1x64xf32, #tpu.memory_space<vmem>>, %arg16: memref<1x16x64xf32, #tpu.memory_space<vmem>>) attributes {dimension_semantics = [#tpu.dimension_semantics<parallel>], iteration_bounds = array<i64: 2>, scalar_prefetch = 0 : i64, scratch_operands = 0 : i64, tpu.core_type = #tpu.core_type<tc>, window_params = [{transform_indices = @transform_0, window_bounds = array<i64: 1, 16, 64>}, {transform_indices = @transform_1, window_bounds = array<i64: 1, 16, 1>}, {transform_indices = @transform_2, window_bounds = array<i64: 1, 1, 16>}, {pipeline_mode = #tpu.pipeline_mode<synchronous>, transform_indices = @transform_3, window_bounds = array<i64: 2, 64, 192>}, {pipeline_mode = #tpu.pipeline_mode<synchronous>, transform_indices = @transform_4, window_bounds = array<i64: 2, 64, 64>}, {pipeline_mode = #tpu.pipeline_mode<synchronous>, transform_indices = @transform_5, window_bounds = array<i64: 2, 64, 2048>}, {pipeline_mode = #tpu.pipeline_mode<synchronous>, transform_indices = @transform_6, window_bounds = array<i64: 2, 2048, 64>}, {pipeline_mode = #tpu.pipeline_mode<synchronous>, transform_indices = @transform_7, window_bounds = array<i64: 2, 1, 192>}, {pipeline_mode = #tpu.pipeline_mode<synchronous>, transform_indices = @transform_8, window_bounds = array<i64: 2, 1, 64>}, {pipeline_mode = #tpu.pipeline_mode<synchronous>, transform_indices = @transform_9, window_bounds = array<i64: 2, 1, 2048>}, {pipeline_mode = #tpu.pipeline_mode<synchronous>, transform_indices = @transform_10, window_bounds = array<i64: 2, 1, 64>}, {pipeline_mode = #tpu.pipeline_mode<synchronous>, transform_indices = @transform_11, window_bounds = array<i64: 2, 1, 64>}, {pipeline_mode = #tpu.pipeline_mode<synchronous>, transform_indices = @transform_12, window_bounds = array<i64: 2, 1, 64>}, {pipeline_mode = #tpu.pipeline_mode<synchronous>, transform_indices = @transform_13, window_bounds = array<i64: 2, 1, 64>}, {pipeline_mode = #tpu.pipeline_mode<synchronous>, transform_indices = @transform_14, window_bounds = array<i64: 2, 1, 64>}, {transform_indices = @transform_15, window_bounds = array<i64: 1, 16, 64>}]} {
    %c0 = arith.constant 0 : index
    %c0_0 = arith.constant 0 : index
    %c0_1 = arith.constant 0 : index
    %0 = vector.load %arg1[%c0, %c0_0, %c0_1] : memref<1x16x64xf32, #tpu.memory_space<vmem>>, vector<1x16x64xf32>
    %1 = vector.shape_cast %0 : vector<1x16x64xf32> to vector<16x64xf32>
    %c0_2 = arith.constant 0 : index
    %c0_3 = arith.constant 0 : index
    %c0_4 = arith.constant 0 : index
    %2 = vector.load %arg2[%c0_2, %c0_3, %c0_4] : memref<1x16x1xi32, #tpu.memory_space<vmem>>, vector<1x16x1xi32>
    %3 = vector.shape_cast %2 : vector<1x16x1xi32> to vector<16x1xi32>
    %c0_5 = arith.constant 0 : index
    %c0_6 = arith.constant 0 : index
    %c0_7 = arith.constant 0 : index
    %4 = vector.load %arg3[%c0_5, %c0_6, %c0_7] : memref<1x1x16xi32, #tpu.memory_space<vmem>>, vector<1x1x16xi32>
    %5 = vector.shape_cast %4 : vector<1x1x16xi32> to vector<1x16xi32>
    %6 = vector.broadcast %3 : vector<16x1xi32> to vector<16x16xi32>
    %7 = vector.broadcast %5 : vector<1x16xi32> to vector<16x16xi32>
    %8 = arith.cmpi eq, %6, %7 : vector<16x16xi32>
    %c0_i32 = arith.constant 0 : i32
    %9 = vector.broadcast %c0_i32 : i32 to vector<1x16xi32>
    %10 = arith.cmpi sge, %5, %9 : vector<1x16xi32>
    %11 = vector.broadcast %10 : vector<1x16xi1> to vector<16x16xi1>
    %12 = arith.andi %8, %11 : vector<16x16xi1>
    %cst = arith.constant 0.000000e+00 : f32
    %cst_8 = arith.constant -1.000000e+30 : f32
    %13 = vector.broadcast %cst : f32 to vector<16x16xf32>
    %14 = vector.broadcast %cst_8 : f32 to vector<16x16xf32>
    %15 = arith.select %12, %13, %14 : vector<16x16xi1>, vector<16x16xf32>
    %16 = arith.truncf %1 : vector<16x64xf32> to vector<16x64xbf16>
    %c0_9 = arith.constant 0 : index
    %c0_10 = arith.constant 0 : index
    %c0_11 = arith.constant 0 : index
    %17 = vector.load %arg4[%c0_9, %c0_10, %c0_11] : memref<2x64x192xbf16, #tpu.memory_space<vmem>>, vector<1x64x192xbf16>
    %18 = vector.shape_cast %17 : vector<1x64x192xbf16> to vector<64x192xbf16>
    %cst_12 = arith.constant dense<0.000000e+00> : vector<16x192xf32>
    %19 = tpu.matmul %16, %18, %cst_12 {dimension_numbers = #tpu.dot_dimension_numbers<[1], [0], [0], [1], [0, 0, 1, 1], [], []>} : vector<16x64xbf16>, vector<64x192xbf16>, vector<16x192xf32> -> vector<16x192xf32>
    %c0_13 = arith.constant 0 : index
    %c0_14 = arith.constant 0 : index
    %c0_15 = arith.constant 0 : index
    %20 = vector.load %arg8[%c0_13, %c0_14, %c0_15] : memref<2x1x192xf32, #tpu.memory_space<vmem>>, vector<1x1x192xf32>
    %21 = vector.shape_cast %20 : vector<1x1x192xf32> to vector<1x192xf32>
    %22 = vector.broadcast %21 : vector<1x192xf32> to vector<16x192xf32>
    %23 = arith.addf %19, %22 : vector<16x192xf32>
    %24 = vector.extract_strided_slice %23 {offsets = [0, 0], sizes = [16, 64], strides = [1, 1]} : vector<16x192xf32> to vector<16x64xf32>
    %25 = arith.truncf %24 : vector<16x64xf32> to vector<16x64xbf16>
    %26 = vector.extract_strided_slice %25 {offsets = [0, 0], sizes = [16, 16], strides = [1, 1]} : vector<16x64xbf16> to vector<16x16xbf16>
    %27 = vector.extract_strided_slice %25 {offsets = [0, 16], sizes = [16, 16], strides = [1, 1]} : vector<16x64xbf16> to vector<16x16xbf16>
    %28 = vector.extract_strided_slice %25 {offsets = [0, 32], sizes = [16, 16], strides = [1, 1]} : vector<16x64xbf16> to vector<16x16xbf16>
    %29 = vector.extract_strided_slice %25 {offsets = [0, 48], sizes = [16, 16], strides = [1, 1]} : vector<16x64xbf16> to vector<16x16xbf16>
    %30 = vector.shape_cast %26 : vector<16x16xbf16> to vector<1x16x16xbf16>
    %31 = vector.shape_cast %27 : vector<16x16xbf16> to vector<1x16x16xbf16>
    %32 = vector.shape_cast %28 : vector<16x16xbf16> to vector<1x16x16xbf16>
    %33 = vector.shape_cast %29 : vector<16x16xbf16> to vector<1x16x16xbf16>
    %34 = tpu.concatenate %30, %31, %32, %33 in 0 : vector<1x16x16xbf16>, vector<1x16x16xbf16>, vector<1x16x16xbf16>, vector<1x16x16xbf16> -> vector<4x16x16xbf16>
    %35 = vector.extract_strided_slice %23 {offsets = [0, 64], sizes = [16, 64], strides = [1, 1]} : vector<16x192xf32> to vector<16x64xf32>
    %36 = arith.truncf %35 : vector<16x64xf32> to vector<16x64xbf16>
    %37 = vector.extract_strided_slice %36 {offsets = [0, 0], sizes = [16, 16], strides = [1, 1]} : vector<16x64xbf16> to vector<16x16xbf16>
    %38 = vector.extract_strided_slice %36 {offsets = [0, 16], sizes = [16, 16], strides = [1, 1]} : vector<16x64xbf16> to vector<16x16xbf16>
    %39 = vector.extract_strided_slice %36 {offsets = [0, 32], sizes = [16, 16], strides = [1, 1]} : vector<16x64xbf16> to vector<16x16xbf16>
    %40 = vector.extract_strided_slice %36 {offsets = [0, 48], sizes = [16, 16], strides = [1, 1]} : vector<16x64xbf16> to vector<16x16xbf16>
    %41 = vector.shape_cast %37 : vector<16x16xbf16> to vector<1x16x16xbf16>
    %42 = vector.shape_cast %38 : vector<16x16xbf16> to vector<1x16x16xbf16>
    %43 = vector.shape_cast %39 : vector<16x16xbf16> to vector<1x16x16xbf16>
    %44 = vector.shape_cast %40 : vector<16x16xbf16> to vector<1x16x16xbf16>
    %45 = tpu.concatenate %41, %42, %43, %44 in 0 : vector<1x16x16xbf16>, vector<1x16x16xbf16>, vector<1x16x16xbf16>, vector<1x16x16xbf16> -> vector<4x16x16xbf16>
    %46 = vector.extract_strided_slice %23 {offsets = [0, 128], sizes = [16, 64], strides = [1, 1]} : vector<16x192xf32> to vector<16x64xf32>
    %47 = arith.truncf %46 : vector<16x64xf32> to vector<16x64xbf16>
    %48 = vector.extract_strided_slice %47 {offsets = [0, 0], sizes = [16, 16], strides = [1, 1]} : vector<16x64xbf16> to vector<16x16xbf16>
    %49 = vector.extract_strided_slice %47 {offsets = [0, 16], sizes = [16, 16], strides = [1, 1]} : vector<16x64xbf16> to vector<16x16xbf16>
    %50 = vector.extract_strided_slice %47 {offsets = [0, 32], sizes = [16, 16], strides = [1, 1]} : vector<16x64xbf16> to vector<16x16xbf16>
    %51 = vector.extract_strided_slice %47 {offsets = [0, 48], sizes = [16, 16], strides = [1, 1]} : vector<16x64xbf16> to vector<16x16xbf16>
    %52 = vector.shape_cast %48 : vector<16x16xbf16> to vector<1x16x16xbf16>
    %53 = vector.shape_cast %49 : vector<16x16xbf16> to vector<1x16x16xbf16>
    %54 = vector.shape_cast %50 : vector<16x16xbf16> to vector<1x16x16xbf16>
    %55 = vector.shape_cast %51 : vector<16x16xbf16> to vector<1x16x16xbf16>
    %56 = tpu.concatenate %52, %53, %54, %55 in 0 : vector<1x16x16xbf16>, vector<1x16x16xbf16>, vector<1x16x16xbf16>, vector<1x16x16xbf16> -> vector<4x16x16xbf16>
    "tpu.trace_start"() <{level = 10 : i32, message = "hme,hne->hmn"}> : () -> ()
    %cst_16 = arith.constant dense<0.000000e+00> : vector<4x16x16xf32>
    %57 = tpu.matmul %34, %45, %cst_16 {dimension_numbers = #tpu.dot_dimension_numbers<[2], [2], [1], [1], [0, 0, 0, 1, 1, 1], [0], [0]>} : vector<4x16x16xbf16>, vector<4x16x16xbf16>, vector<4x16x16xf32> -> vector<4x16x16xf32>
    "tpu.trace_stop"() : () -> ()
    %58 = vector.shape_cast %15 : vector<16x16xf32> to vector<1x16x16xf32>
    %59 = vector.broadcast %58 : vector<1x16x16xf32> to vector<4x16x16xf32>
    %60 = arith.addf %57, %59 : vector<4x16x16xf32>
    %cst_17 = arith.constant dense<0xFF800000> : vector<4x16xf32>
    %61 = vector.multi_reduction <maximumf>, %60, %cst_17 [2] : vector<4x16x16xf32> to vector<4x16xf32>
    %62 = vector.shape_cast %61 : vector<4x16xf32> to vector<4x16x1xf32>
    %63 = vector.broadcast %62 : vector<4x16x1xf32> to vector<4x16x16xf32>
    %64 = arith.subf %60, %63 : vector<4x16x16xf32>
    %65 = math.exp %64 : vector<4x16x16xf32>
    %cst_18 = arith.constant dense<0.000000e+00> : vector<4x16xf32>
    %66 = vector.multi_reduction <add>, %65, %cst_18 [2] : vector<4x16x16xf32> to vector<4x16xf32>
    %67 = vector.shape_cast %66 : vector<4x16xf32> to vector<4x16x1xf32>
    %68 = tpu.reciprocal %67 {approx = true} : vector<4x16x1xf32> -> vector<4x16x1xf32>
    %69 = vector.broadcast %68 : vector<4x16x1xf32> to vector<4x16x16xf32>
    %70 = arith.mulf %65, %69 : vector<4x16x16xf32>
    %71 = arith.truncf %70 : vector<4x16x16xf32> to vector<4x16x16xbf16>
    "tpu.trace_start"() <{level = 10 : i32, message = "hmn,hne->hme"}> : () -> ()
    %cst_19 = arith.constant dense<0.000000e+00> : vector<4x16x16xf32>
    %72 = tpu.matmul %71, %56, %cst_19 {dimension_numbers = #tpu.dot_dimension_numbers<[2], [1], [1], [2], [0, 0, 0, 1, 1, 2], [0], [0]>} : vector<4x16x16xbf16>, vector<4x16x16xbf16>, vector<4x16x16xf32> -> vector<4x16x16xf32>
    "tpu.trace_stop"() : () -> ()
    %73 = vector.extract_strided_slice %72 {offsets = [0, 0, 0], sizes = [1, 16, 16], strides = [1, 1, 1]} : vector<4x16x16xf32> to vector<1x16x16xf32>
    %74 = vector.shape_cast %73 : vector<1x16x16xf32> to vector<16x16xf32>
    %75 = vector.extract_strided_slice %72 {offsets = [1, 0, 0], sizes = [1, 16, 16], strides = [1, 1, 1]} : vector<4x16x16xf32> to vector<1x16x16xf32>
    %76 = vector.shape_cast %75 : vector<1x16x16xf32> to vector<16x16xf32>
    %77 = vector.extract_strided_slice %72 {offsets = [2, 0, 0], sizes = [1, 16, 16], strides = [1, 1, 1]} : vector<4x16x16xf32> to vector<1x16x16xf32>
    %78 = vector.shape_cast %77 : vector<1x16x16xf32> to vector<16x16xf32>
    %79 = vector.extract_strided_slice %72 {offsets = [3, 0, 0], sizes = [1, 16, 16], strides = [1, 1, 1]} : vector<4x16x16xf32> to vector<1x16x16xf32>
    %80 = vector.shape_cast %79 : vector<1x16x16xf32> to vector<16x16xf32>
    %81 = tpu.concatenate %74, %76, %78, %80 in 1 : vector<16x16xf32>, vector<16x16xf32>, vector<16x16xf32>, vector<16x16xf32> -> vector<16x64xf32>
    %82 = arith.truncf %81 : vector<16x64xf32> to vector<16x64xbf16>
    %c0_20 = arith.constant 0 : index
    %c0_21 = arith.constant 0 : index
    %c0_22 = arith.constant 0 : index
    %83 = vector.load %arg5[%c0_20, %c0_21, %c0_22] : memref<2x64x64xbf16, #tpu.memory_space<vmem>>, vector<1x64x64xbf16>
    %84 = vector.shape_cast %83 : vector<1x64x64xbf16> to vector<64x64xbf16>
    %cst_23 = arith.constant dense<0.000000e+00> : vector<16x64xf32>
    %85 = tpu.matmul %82, %84, %cst_23 {dimension_numbers = #tpu.dot_dimension_numbers<[1], [0], [0], [1], [0, 0, 1, 1], [], []>} : vector<16x64xbf16>, vector<64x64xbf16>, vector<16x64xf32> -> vector<16x64xf32>
    %c0_24 = arith.constant 0 : index
    %c0_25 = arith.constant 0 : index
    %c0_26 = arith.constant 0 : index
    %86 = vector.load %arg9[%c0_24, %c0_25, %c0_26] : memref<2x1x64xf32, #tpu.memory_space<vmem>>, vector<1x1x64xf32>
    %87 = vector.shape_cast %86 : vector<1x1x64xf32> to vector<1x64xf32>
    %88 = vector.broadcast %87 : vector<1x64xf32> to vector<16x64xf32>
    %89 = arith.addf %85, %88 : vector<16x64xf32>
    %90 = arith.addf %1, %89 : vector<16x64xf32>
    %cst_27 = arith.constant dense<0.000000e+00> : vector<16xf32>
    %91 = vector.multi_reduction <add>, %90, %cst_27 [1] : vector<16x64xf32> to vector<16xf32>
    %92 = vector.shape_cast %91 : vector<16xf32> to vector<16x1xf32>
    %cst_28 = arith.constant 6.400000e+01 : f32
    %93 = vector.broadcast %cst_28 : f32 to vector<16x1xf32>
    %94 = arith.divf %92, %93 : vector<16x1xf32>
    %95 = vector.broadcast %94 : vector<16x1xf32> to vector<16x64xf32>
    %96 = arith.subf %90, %95 : vector<16x64xf32>
    %97 = arith.mulf %96, %96 : vector<16x64xf32>
    %cst_29 = arith.constant dense<0.000000e+00> : vector<16xf32>
    %98 = vector.multi_reduction <add>, %97, %cst_29 [1] : vector<16x64xf32> to vector<16xf32>
    %99 = vector.shape_cast %98 : vector<16xf32> to vector<16x1xf32>
    %cst_30 = arith.constant 6.400000e+01 : f32
    %100 = vector.broadcast %cst_30 : f32 to vector<16x1xf32>
    %101 = arith.divf %99, %100 : vector<16x1xf32>
    %102 = vector.broadcast %94 : vector<16x1xf32> to vector<16x64xf32>
    %103 = arith.subf %90, %102 : vector<16x64xf32>
    %cst_31 = arith.constant 9.99999974E-6 : f32
    %104 = vector.broadcast %cst_31 : f32 to vector<16x1xf32>
    %105 = arith.addf %101, %104 : vector<16x1xf32>
    %106 = math.rsqrt %105 : vector<16x1xf32>
    %107 = vector.broadcast %106 : vector<16x1xf32> to vector<16x64xf32>
    %108 = arith.mulf %103, %107 : vector<16x64xf32>
    %c0_32 = arith.constant 0 : index
    %c0_33 = arith.constant 0 : index
    %c0_34 = arith.constant 0 : index
    %109 = vector.load %arg12[%c0_32, %c0_33, %c0_34] : memref<2x1x64xf32, #tpu.memory_space<vmem>>, vector<1x1x64xf32>
    %110 = vector.shape_cast %109 : vector<1x1x64xf32> to vector<1x64xf32>
    %111 = vector.broadcast %110 : vector<1x64xf32> to vector<16x64xf32>
    %112 = arith.mulf %108, %111 : vector<16x64xf32>
    %c0_35 = arith.constant 0 : index
    %c0_36 = arith.constant 0 : index
    %c0_37 = arith.constant 0 : index
    %113 = vector.load %arg13[%c0_35, %c0_36, %c0_37] : memref<2x1x64xf32, #tpu.memory_space<vmem>>, vector<1x1x64xf32>
    %114 = vector.shape_cast %113 : vector<1x1x64xf32> to vector<1x64xf32>
    %115 = vector.broadcast %114 : vector<1x64xf32> to vector<16x64xf32>
    %116 = arith.addf %112, %115 : vector<16x64xf32>
    %117 = arith.truncf %116 : vector<16x64xf32> to vector<16x64xbf16>
    %cst_38 = arith.constant 0.000000e+00 : f32
    %118 = vector.broadcast %cst_38 : f32 to vector<16x64xf32>
    %c0_39 = arith.constant 0 : index
    %c0_40 = arith.constant 0 : index
    %c0_41 = arith.constant 0 : index
    %119 = vector.load %arg6[%c0_39, %c0_40, %c0_41] : memref<2x64x2048xbf16, #tpu.memory_space<vmem>>, vector<1x64x512xbf16>
    %120 = vector.shape_cast %119 : vector<1x64x512xbf16> to vector<64x512xbf16>
    %cst_42 = arith.constant dense<0.000000e+00> : vector<16x512xf32>
    %121 = tpu.matmul %117, %120, %cst_42 {dimension_numbers = #tpu.dot_dimension_numbers<[1], [0], [0], [1], [0, 0, 1, 1], [], []>} : vector<16x64xbf16>, vector<64x512xbf16>, vector<16x512xf32> -> vector<16x512xf32>
    %c0_43 = arith.constant 0 : index
    %c0_44 = arith.constant 0 : index
    %c0_45 = arith.constant 0 : index
    %122 = vector.load %arg10[%c0_43, %c0_44, %c0_45] : memref<2x1x2048xf32, #tpu.memory_space<vmem>>, vector<1x1x512xf32>
    %123 = vector.shape_cast %122 : vector<1x1x512xf32> to vector<1x512xf32>
    %124 = vector.broadcast %123 : vector<1x512xf32> to vector<16x512xf32>
    %125 = arith.addf %121, %124 : vector<16x512xf32>
    %cst_46 = arith.constant 0.000000e+00 : f32
    %126 = vector.broadcast %cst_46 : f32 to vector<16x512xf32>
    %127 = arith.maximumf %125, %126 : vector<16x512xf32>
    %128 = arith.truncf %127 : vector<16x512xf32> to vector<16x512xbf16>
    %c0_47 = arith.constant 0 : index
    %c0_48 = arith.constant 0 : index
    %c0_49 = arith.constant 0 : index
    %129 = vector.load %arg7[%c0_47, %c0_48, %c0_49] : memref<2x2048x64xbf16, #tpu.memory_space<vmem>>, vector<1x512x64xbf16>
    %130 = vector.shape_cast %129 : vector<1x512x64xbf16> to vector<512x64xbf16>
    %cst_50 = arith.constant dense<0.000000e+00> : vector<16x64xf32>
    %131 = tpu.matmul %128, %130, %cst_50 {dimension_numbers = #tpu.dot_dimension_numbers<[1], [0], [0], [1], [0, 0, 1, 1], [], []>} : vector<16x512xbf16>, vector<512x64xbf16>, vector<16x64xf32> -> vector<16x64xf32>
    %132 = arith.addf %118, %131 : vector<16x64xf32>
    %c0_51 = arith.constant 0 : index
    %c0_52 = arith.constant 0 : index
    %c512 = arith.constant 512 : index
    %133 = vector.load %arg6[%c0_51, %c0_52, %c512] : memref<2x64x2048xbf16, #tpu.memory_space<vmem>>, vector<1x64x512xbf16>
    %134 = vector.shape_cast %133 : vector<1x64x512xbf16> to vector<64x512xbf16>
    %cst_53 = arith.constant dense<0.000000e+00> : vector<16x512xf32>
    %135 = tpu.matmul %117, %134, %cst_53 {dimension_numbers = #tpu.dot_dimension_numbers<[1], [0], [0], [1], [0, 0, 1, 1], [], []>} : vector<16x64xbf16>, vector<64x512xbf16>, vector<16x512xf32> -> vector<16x512xf32>
    %c0_54 = arith.constant 0 : index
    %c0_55 = arith.constant 0 : index
    %c512_56 = arith.constant 512 : index
    %136 = vector.load %arg10[%c0_54, %c0_55, %c512_56] : memref<2x1x2048xf32, #tpu.memory_space<vmem>>, vector<1x1x512xf32>
    %137 = vector.shape_cast %136 : vector<1x1x512xf32> to vector<1x512xf32>
    %138 = vector.broadcast %137 : vector<1x512xf32> to vector<16x512xf32>
    %139 = arith.addf %135, %138 : vector<16x512xf32>
    %cst_57 = arith.constant 0.000000e+00 : f32
    %140 = vector.broadcast %cst_57 : f32 to vector<16x512xf32>
    %141 = arith.maximumf %139, %140 : vector<16x512xf32>
    %142 = arith.truncf %141 : vector<16x512xf32> to vector<16x512xbf16>
    %c0_58 = arith.constant 0 : index
    %c512_59 = arith.constant 512 : index
    %c0_60 = arith.constant 0 : index
    %143 = vector.load %arg7[%c0_58, %c512_59, %c0_60] : memref<2x2048x64xbf16, #tpu.memory_space<vmem>>, vector<1x512x64xbf16>
    %144 = vector.shape_cast %143 : vector<1x512x64xbf16> to vector<512x64xbf16>
    %cst_61 = arith.constant dense<0.000000e+00> : vector<16x64xf32>
    %145 = tpu.matmul %142, %144, %cst_61 {dimension_numbers = #tpu.dot_dimension_numbers<[1], [0], [0], [1], [0, 0, 1, 1], [], []>} : vector<16x512xbf16>, vector<512x64xbf16>, vector<16x64xf32> -> vector<16x64xf32>
    %146 = arith.addf %132, %145 : vector<16x64xf32>
    %c0_62 = arith.constant 0 : index
    %c0_63 = arith.constant 0 : index
    %c1024 = arith.constant 1024 : index
    %147 = vector.load %arg6[%c0_62, %c0_63, %c1024] : memref<2x64x2048xbf16, #tpu.memory_space<vmem>>, vector<1x64x512xbf16>
    %148 = vector.shape_cast %147 : vector<1x64x512xbf16> to vector<64x512xbf16>
    %cst_64 = arith.constant dense<0.000000e+00> : vector<16x512xf32>
    %149 = tpu.matmul %117, %148, %cst_64 {dimension_numbers = #tpu.dot_dimension_numbers<[1], [0], [0], [1], [0, 0, 1, 1], [], []>} : vector<16x64xbf16>, vector<64x512xbf16>, vector<16x512xf32> -> vector<16x512xf32>
    %c0_65 = arith.constant 0 : index
    %c0_66 = arith.constant 0 : index
    %c1024_67 = arith.constant 1024 : index
    %150 = vector.load %arg10[%c0_65, %c0_66, %c1024_67] : memref<2x1x2048xf32, #tpu.memory_space<vmem>>, vector<1x1x512xf32>
    %151 = vector.shape_cast %150 : vector<1x1x512xf32> to vector<1x512xf32>
    %152 = vector.broadcast %151 : vector<1x512xf32> to vector<16x512xf32>
    %153 = arith.addf %149, %152 : vector<16x512xf32>
    %cst_68 = arith.constant 0.000000e+00 : f32
    %154 = vector.broadcast %cst_68 : f32 to vector<16x512xf32>
    %155 = arith.maximumf %153, %154 : vector<16x512xf32>
    %156 = arith.truncf %155 : vector<16x512xf32> to vector<16x512xbf16>
    %c0_69 = arith.constant 0 : index
    %c1024_70 = arith.constant 1024 : index
    %c0_71 = arith.constant 0 : index
    %157 = vector.load %arg7[%c0_69, %c1024_70, %c0_71] : memref<2x2048x64xbf16, #tpu.memory_space<vmem>>, vector<1x512x64xbf16>
    %158 = vector.shape_cast %157 : vector<1x512x64xbf16> to vector<512x64xbf16>
    %cst_72 = arith.constant dense<0.000000e+00> : vector<16x64xf32>
    %159 = tpu.matmul %156, %158, %cst_72 {dimension_numbers = #tpu.dot_dimension_numbers<[1], [0], [0], [1], [0, 0, 1, 1], [], []>} : vector<16x512xbf16>, vector<512x64xbf16>, vector<16x64xf32> -> vector<16x64xf32>
    %160 = arith.addf %146, %159 : vector<16x64xf32>
    %c0_73 = arith.constant 0 : index
    %c0_74 = arith.constant 0 : index
    %c1536 = arith.constant 1536 : index
    %161 = vector.load %arg6[%c0_73, %c0_74, %c1536] : memref<2x64x2048xbf16, #tpu.memory_space<vmem>>, vector<1x64x512xbf16>
    %162 = vector.shape_cast %161 : vector<1x64x512xbf16> to vector<64x512xbf16>
    %cst_75 = arith.constant dense<0.000000e+00> : vector<16x512xf32>
    %163 = tpu.matmul %117, %162, %cst_75 {dimension_numbers = #tpu.dot_dimension_numbers<[1], [0], [0], [1], [0, 0, 1, 1], [], []>} : vector<16x64xbf16>, vector<64x512xbf16>, vector<16x512xf32> -> vector<16x512xf32>
    %c0_76 = arith.constant 0 : index
    %c0_77 = arith.constant 0 : index
    %c1536_78 = arith.constant 1536 : index
    %164 = vector.load %arg10[%c0_76, %c0_77, %c1536_78] : memref<2x1x2048xf32, #tpu.memory_space<vmem>>, vector<1x1x512xf32>
    %165 = vector.shape_cast %164 : vector<1x1x512xf32> to vector<1x512xf32>
    %166 = vector.broadcast %165 : vector<1x512xf32> to vector<16x512xf32>
    %167 = arith.addf %163, %166 : vector<16x512xf32>
    %cst_79 = arith.constant 0.000000e+00 : f32
    %168 = vector.broadcast %cst_79 : f32 to vector<16x512xf32>
    %169 = arith.maximumf %167, %168 : vector<16x512xf32>
    %170 = arith.truncf %169 : vector<16x512xf32> to vector<16x512xbf16>
    %c0_80 = arith.constant 0 : index
    %c1536_81 = arith.constant 1536 : index
    %c0_82 = arith.constant 0 : index
    %171 = vector.load %arg7[%c0_80, %c1536_81, %c0_82] : memref<2x2048x64xbf16, #tpu.memory_space<vmem>>, vector<1x512x64xbf16>
    %172 = vector.shape_cast %171 : vector<1x512x64xbf16> to vector<512x64xbf16>
    %cst_83 = arith.constant dense<0.000000e+00> : vector<16x64xf32>
    %173 = tpu.matmul %170, %172, %cst_83 {dimension_numbers = #tpu.dot_dimension_numbers<[1], [0], [0], [1], [0, 0, 1, 1], [], []>} : vector<16x512xbf16>, vector<512x64xbf16>, vector<16x64xf32> -> vector<16x64xf32>
    %174 = arith.addf %160, %173 : vector<16x64xf32>
    %c0_84 = arith.constant 0 : index
    %c0_85 = arith.constant 0 : index
    %c0_86 = arith.constant 0 : index
    %175 = vector.load %arg11[%c0_84, %c0_85, %c0_86] : memref<2x1x64xf32, #tpu.memory_space<vmem>>, vector<1x1x64xf32>
    %176 = vector.shape_cast %175 : vector<1x1x64xf32> to vector<1x64xf32>
    %177 = vector.broadcast %176 : vector<1x64xf32> to vector<16x64xf32>
    %178 = arith.addf %174, %177 : vector<16x64xf32>
    %179 = arith.addf %116, %178 : vector<16x64xf32>
    %cst_87 = arith.constant dense<0.000000e+00> : vector<16xf32>
    %180 = vector.multi_reduction <add>, %179, %cst_87 [1] : vector<16x64xf32> to vector<16xf32>
    %181 = vector.shape_cast %180 : vector<16xf32> to vector<16x1xf32>
    %cst_88 = arith.constant 6.400000e+01 : f32
    %182 = vector.broadcast %cst_88 : f32 to vector<16x1xf32>
    %183 = arith.divf %181, %182 : vector<16x1xf32>
    %184 = vector.broadcast %183 : vector<16x1xf32> to vector<16x64xf32>
    %185 = arith.subf %179, %184 : vector<16x64xf32>
    %186 = arith.mulf %185, %185 : vector<16x64xf32>
    %cst_89 = arith.constant dense<0.000000e+00> : vector<16xf32>
    %187 = vector.multi_reduction <add>, %186, %cst_89 [1] : vector<16x64xf32> to vector<16xf32>
    %188 = vector.shape_cast %187 : vector<16xf32> to vector<16x1xf32>
    %cst_90 = arith.constant 6.400000e+01 : f32
    %189 = vector.broadcast %cst_90 : f32 to vector<16x1xf32>
    %190 = arith.divf %188, %189 : vector<16x1xf32>
    %191 = vector.broadcast %183 : vector<16x1xf32> to vector<16x64xf32>
    %192 = arith.subf %179, %191 : vector<16x64xf32>
    %cst_91 = arith.constant 9.99999974E-6 : f32
    %193 = vector.broadcast %cst_91 : f32 to vector<16x1xf32>
    %194 = arith.addf %190, %193 : vector<16x1xf32>
    %195 = math.rsqrt %194 : vector<16x1xf32>
    %196 = vector.broadcast %195 : vector<16x1xf32> to vector<16x64xf32>
    %197 = arith.mulf %192, %196 : vector<16x64xf32>
    %c0_92 = arith.constant 0 : index
    %c0_93 = arith.constant 0 : index
    %c0_94 = arith.constant 0 : index
    %198 = vector.load %arg14[%c0_92, %c0_93, %c0_94] : memref<2x1x64xf32, #tpu.memory_space<vmem>>, vector<1x1x64xf32>
    %199 = vector.shape_cast %198 : vector<1x1x64xf32> to vector<1x64xf32>
    %200 = vector.broadcast %199 : vector<1x64xf32> to vector<16x64xf32>
    %201 = arith.mulf %197, %200 : vector<16x64xf32>
    %c0_95 = arith.constant 0 : index
    %c0_96 = arith.constant 0 : index
    %c0_97 = arith.constant 0 : index
    %202 = vector.load %arg15[%c0_95, %c0_96, %c0_97] : memref<2x1x64xf32, #tpu.memory_space<vmem>>, vector<1x1x64xf32>
    %203 = vector.shape_cast %202 : vector<1x1x64xf32> to vector<1x64xf32>
    %204 = vector.broadcast %203 : vector<1x64xf32> to vector<16x64xf32>
    %205 = arith.addf %201, %204 : vector<16x64xf32>
    %206 = arith.truncf %205 : vector<16x64xf32> to vector<16x64xbf16>
    %c1 = arith.constant 1 : index
    %c0_98 = arith.constant 0 : index
    %c0_99 = arith.constant 0 : index
    %207 = vector.load %arg4[%c1, %c0_98, %c0_99] : memref<2x64x192xbf16, #tpu.memory_space<vmem>>, vector<1x64x192xbf16>
    %208 = vector.shape_cast %207 : vector<1x64x192xbf16> to vector<64x192xbf16>
    %cst_100 = arith.constant dense<0.000000e+00> : vector<16x192xf32>
    %209 = tpu.matmul %206, %208, %cst_100 {dimension_numbers = #tpu.dot_dimension_numbers<[1], [0], [0], [1], [0, 0, 1, 1], [], []>} : vector<16x64xbf16>, vector<64x192xbf16>, vector<16x192xf32> -> vector<16x192xf32>
    %c1_101 = arith.constant 1 : index
    %c0_102 = arith.constant 0 : index
    %c0_103 = arith.constant 0 : index
    %210 = vector.load %arg8[%c1_101, %c0_102, %c0_103] : memref<2x1x192xf32, #tpu.memory_space<vmem>>, vector<1x1x192xf32>
    %211 = vector.shape_cast %210 : vector<1x1x192xf32> to vector<1x192xf32>
    %212 = vector.broadcast %211 : vector<1x192xf32> to vector<16x192xf32>
    %213 = arith.addf %209, %212 : vector<16x192xf32>
    %214 = vector.extract_strided_slice %213 {offsets = [0, 0], sizes = [16, 64], strides = [1, 1]} : vector<16x192xf32> to vector<16x64xf32>
    %215 = arith.truncf %214 : vector<16x64xf32> to vector<16x64xbf16>
    %216 = vector.extract_strided_slice %215 {offsets = [0, 0], sizes = [16, 16], strides = [1, 1]} : vector<16x64xbf16> to vector<16x16xbf16>
    %217 = vector.extract_strided_slice %215 {offsets = [0, 16], sizes = [16, 16], strides = [1, 1]} : vector<16x64xbf16> to vector<16x16xbf16>
    %218 = vector.extract_strided_slice %215 {offsets = [0, 32], sizes = [16, 16], strides = [1, 1]} : vector<16x64xbf16> to vector<16x16xbf16>
    %219 = vector.extract_strided_slice %215 {offsets = [0, 48], sizes = [16, 16], strides = [1, 1]} : vector<16x64xbf16> to vector<16x16xbf16>
    %220 = vector.shape_cast %216 : vector<16x16xbf16> to vector<1x16x16xbf16>
    %221 = vector.shape_cast %217 : vector<16x16xbf16> to vector<1x16x16xbf16>
    %222 = vector.shape_cast %218 : vector<16x16xbf16> to vector<1x16x16xbf16>
    %223 = vector.shape_cast %219 : vector<16x16xbf16> to vector<1x16x16xbf16>
    %224 = tpu.concatenate %220, %221, %222, %223 in 0 : vector<1x16x16xbf16>, vector<1x16x16xbf16>, vector<1x16x16xbf16>, vector<1x16x16xbf16> -> vector<4x16x16xbf16>
    %225 = vector.extract_strided_slice %213 {offsets = [0, 64], sizes = [16, 64], strides = [1, 1]} : vector<16x192xf32> to vector<16x64xf32>
    %226 = arith.truncf %225 : vector<16x64xf32> to vector<16x64xbf16>
    %227 = vector.extract_strided_slice %226 {offsets = [0, 0], sizes = [16, 16], strides = [1, 1]} : vector<16x64xbf16> to vector<16x16xbf16>
    %228 = vector.extract_strided_slice %226 {offsets = [0, 16], sizes = [16, 16], strides = [1, 1]} : vector<16x64xbf16> to vector<16x16xbf16>
    %229 = vector.extract_strided_slice %226 {offsets = [0, 32], sizes = [16, 16], strides = [1, 1]} : vector<16x64xbf16> to vector<16x16xbf16>
    %230 = vector.extract_strided_slice %226 {offsets = [0, 48], sizes = [16, 16], strides = [1, 1]} : vector<16x64xbf16> to vector<16x16xbf16>
    %231 = vector.shape_cast %227 : vector<16x16xbf16> to vector<1x16x16xbf16>
    %232 = vector.shape_cast %228 : vector<16x16xbf16> to vector<1x16x16xbf16>
    %233 = vector.shape_cast %229 : vector<16x16xbf16> to vector<1x16x16xbf16>
    %234 = vector.shape_cast %230 : vector<16x16xbf16> to vector<1x16x16xbf16>
    %235 = tpu.concatenate %231, %232, %233, %234 in 0 : vector<1x16x16xbf16>, vector<1x16x16xbf16>, vector<1x16x16xbf16>, vector<1x16x16xbf16> -> vector<4x16x16xbf16>
    %236 = vector.extract_strided_slice %213 {offsets = [0, 128], sizes = [16, 64], strides = [1, 1]} : vector<16x192xf32> to vector<16x64xf32>
    %237 = arith.truncf %236 : vector<16x64xf32> to vector<16x64xbf16>
    %238 = vector.extract_strided_slice %237 {offsets = [0, 0], sizes = [16, 16], strides = [1, 1]} : vector<16x64xbf16> to vector<16x16xbf16>
    %239 = vector.extract_strided_slice %237 {offsets = [0, 16], sizes = [16, 16], strides = [1, 1]} : vector<16x64xbf16> to vector<16x16xbf16>
    %240 = vector.extract_strided_slice %237 {offsets = [0, 32], sizes = [16, 16], strides = [1, 1]} : vector<16x64xbf16> to vector<16x16xbf16>
    %241 = vector.extract_strided_slice %237 {offsets = [0, 48], sizes = [16, 16], strides = [1, 1]} : vector<16x64xbf16> to vector<16x16xbf16>
    %242 = vector.shape_cast %238 : vector<16x16xbf16> to vector<1x16x16xbf16>
    %243 = vector.shape_cast %239 : vector<16x16xbf16> to vector<1x16x16xbf16>
    %244 = vector.shape_cast %240 : vector<16x16xbf16> to vector<1x16x16xbf16>
    %245 = vector.shape_cast %241 : vector<16x16xbf16> to vector<1x16x16xbf16>
    %246 = tpu.concatenate %242, %243, %244, %245 in 0 : vector<1x16x16xbf16>, vector<1x16x16xbf16>, vector<1x16x16xbf16>, vector<1x16x16xbf16> -> vector<4x16x16xbf16>
    "tpu.trace_start"() <{level = 10 : i32, message = "hme,hne->hmn"}> : () -> ()
    %cst_104 = arith.constant dense<0.000000e+00> : vector<4x16x16xf32>
    %247 = tpu.matmul %224, %235, %cst_104 {dimension_numbers = #tpu.dot_dimension_numbers<[2], [2], [1], [1], [0, 0, 0, 1, 1, 1], [0], [0]>} : vector<4x16x16xbf16>, vector<4x16x16xbf16>, vector<4x16x16xf32> -> vector<4x16x16xf32>
    "tpu.trace_stop"() : () -> ()
    %248 = vector.shape_cast %15 : vector<16x16xf32> to vector<1x16x16xf32>
    %249 = vector.broadcast %248 : vector<1x16x16xf32> to vector<4x16x16xf32>
    %250 = arith.addf %247, %249 : vector<4x16x16xf32>
    %cst_105 = arith.constant dense<0xFF800000> : vector<4x16xf32>
    %251 = vector.multi_reduction <maximumf>, %250, %cst_105 [2] : vector<4x16x16xf32> to vector<4x16xf32>
    %252 = vector.shape_cast %251 : vector<4x16xf32> to vector<4x16x1xf32>
    %253 = vector.broadcast %252 : vector<4x16x1xf32> to vector<4x16x16xf32>
    %254 = arith.subf %250, %253 : vector<4x16x16xf32>
    %255 = math.exp %254 : vector<4x16x16xf32>
    %cst_106 = arith.constant dense<0.000000e+00> : vector<4x16xf32>
    %256 = vector.multi_reduction <add>, %255, %cst_106 [2] : vector<4x16x16xf32> to vector<4x16xf32>
    %257 = vector.shape_cast %256 : vector<4x16xf32> to vector<4x16x1xf32>
    %258 = tpu.reciprocal %257 {approx = true} : vector<4x16x1xf32> -> vector<4x16x1xf32>
    %259 = vector.broadcast %258 : vector<4x16x1xf32> to vector<4x16x16xf32>
    %260 = arith.mulf %255, %259 : vector<4x16x16xf32>
    %261 = arith.truncf %260 : vector<4x16x16xf32> to vector<4x16x16xbf16>
    "tpu.trace_start"() <{level = 10 : i32, message = "hmn,hne->hme"}> : () -> ()
    %cst_107 = arith.constant dense<0.000000e+00> : vector<4x16x16xf32>
    %262 = tpu.matmul %261, %246, %cst_107 {dimension_numbers = #tpu.dot_dimension_numbers<[2], [1], [1], [2], [0, 0, 0, 1, 1, 2], [0], [0]>} : vector<4x16x16xbf16>, vector<4x16x16xbf16>, vector<4x16x16xf32> -> vector<4x16x16xf32>
    "tpu.trace_stop"() : () -> ()
    %263 = vector.extract_strided_slice %262 {offsets = [0, 0, 0], sizes = [1, 16, 16], strides = [1, 1, 1]} : vector<4x16x16xf32> to vector<1x16x16xf32>
    %264 = vector.shape_cast %263 : vector<1x16x16xf32> to vector<16x16xf32>
    %265 = vector.extract_strided_slice %262 {offsets = [1, 0, 0], sizes = [1, 16, 16], strides = [1, 1, 1]} : vector<4x16x16xf32> to vector<1x16x16xf32>
    %266 = vector.shape_cast %265 : vector<1x16x16xf32> to vector<16x16xf32>
    %267 = vector.extract_strided_slice %262 {offsets = [2, 0, 0], sizes = [1, 16, 16], strides = [1, 1, 1]} : vector<4x16x16xf32> to vector<1x16x16xf32>
    %268 = vector.shape_cast %267 : vector<1x16x16xf32> to vector<16x16xf32>
    %269 = vector.extract_strided_slice %262 {offsets = [3, 0, 0], sizes = [1, 16, 16], strides = [1, 1, 1]} : vector<4x16x16xf32> to vector<1x16x16xf32>
    %270 = vector.shape_cast %269 : vector<1x16x16xf32> to vector<16x16xf32>
    %271 = tpu.concatenate %264, %266, %268, %270 in 1 : vector<16x16xf32>, vector<16x16xf32>, vector<16x16xf32>, vector<16x16xf32> -> vector<16x64xf32>
    %272 = arith.truncf %271 : vector<16x64xf32> to vector<16x64xbf16>
    %c1_108 = arith.constant 1 : index
    %c0_109 = arith.constant 0 : index
    %c0_110 = arith.constant 0 : index
    %273 = vector.load %arg5[%c1_108, %c0_109, %c0_110] : memref<2x64x64xbf16, #tpu.memory_space<vmem>>, vector<1x64x64xbf16>
    %274 = vector.shape_cast %273 : vector<1x64x64xbf16> to vector<64x64xbf16>
    %cst_111 = arith.constant dense<0.000000e+00> : vector<16x64xf32>
    %275 = tpu.matmul %272, %274, %cst_111 {dimension_numbers = #tpu.dot_dimension_numbers<[1], [0], [0], [1], [0, 0, 1, 1], [], []>} : vector<16x64xbf16>, vector<64x64xbf16>, vector<16x64xf32> -> vector<16x64xf32>
    %c1_112 = arith.constant 1 : index
    %c0_113 = arith.constant 0 : index
    %c0_114 = arith.constant 0 : index
    %276 = vector.load %arg9[%c1_112, %c0_113, %c0_114] : memref<2x1x64xf32, #tpu.memory_space<vmem>>, vector<1x1x64xf32>
    %277 = vector.shape_cast %276 : vector<1x1x64xf32> to vector<1x64xf32>
    %278 = vector.broadcast %277 : vector<1x64xf32> to vector<16x64xf32>
    %279 = arith.addf %275, %278 : vector<16x64xf32>
    %280 = arith.addf %205, %279 : vector<16x64xf32>
    %cst_115 = arith.constant dense<0.000000e+00> : vector<16xf32>
    %281 = vector.multi_reduction <add>, %280, %cst_115 [1] : vector<16x64xf32> to vector<16xf32>
    %282 = vector.shape_cast %281 : vector<16xf32> to vector<16x1xf32>
    %cst_116 = arith.constant 6.400000e+01 : f32
    %283 = vector.broadcast %cst_116 : f32 to vector<16x1xf32>
    %284 = arith.divf %282, %283 : vector<16x1xf32>
    %285 = vector.broadcast %284 : vector<16x1xf32> to vector<16x64xf32>
    %286 = arith.subf %280, %285 : vector<16x64xf32>
    %287 = arith.mulf %286, %286 : vector<16x64xf32>
    %cst_117 = arith.constant dense<0.000000e+00> : vector<16xf32>
    %288 = vector.multi_reduction <add>, %287, %cst_117 [1] : vector<16x64xf32> to vector<16xf32>
    %289 = vector.shape_cast %288 : vector<16xf32> to vector<16x1xf32>
    %cst_118 = arith.constant 6.400000e+01 : f32
    %290 = vector.broadcast %cst_118 : f32 to vector<16x1xf32>
    %291 = arith.divf %289, %290 : vector<16x1xf32>
    %292 = vector.broadcast %284 : vector<16x1xf32> to vector<16x64xf32>
    %293 = arith.subf %280, %292 : vector<16x64xf32>
    %cst_119 = arith.constant 9.99999974E-6 : f32
    %294 = vector.broadcast %cst_119 : f32 to vector<16x1xf32>
    %295 = arith.addf %291, %294 : vector<16x1xf32>
    %296 = math.rsqrt %295 : vector<16x1xf32>
    %297 = vector.broadcast %296 : vector<16x1xf32> to vector<16x64xf32>
    %298 = arith.mulf %293, %297 : vector<16x64xf32>
    %c1_120 = arith.constant 1 : index
    %c0_121 = arith.constant 0 : index
    %c0_122 = arith.constant 0 : index
    %299 = vector.load %arg12[%c1_120, %c0_121, %c0_122] : memref<2x1x64xf32, #tpu.memory_space<vmem>>, vector<1x1x64xf32>
    %300 = vector.shape_cast %299 : vector<1x1x64xf32> to vector<1x64xf32>
    %301 = vector.broadcast %300 : vector<1x64xf32> to vector<16x64xf32>
    %302 = arith.mulf %298, %301 : vector<16x64xf32>
    %c1_123 = arith.constant 1 : index
    %c0_124 = arith.constant 0 : index
    %c0_125 = arith.constant 0 : index
    %303 = vector.load %arg13[%c1_123, %c0_124, %c0_125] : memref<2x1x64xf32, #tpu.memory_space<vmem>>, vector<1x1x64xf32>
    %304 = vector.shape_cast %303 : vector<1x1x64xf32> to vector<1x64xf32>
    %305 = vector.broadcast %304 : vector<1x64xf32> to vector<16x64xf32>
    %306 = arith.addf %302, %305 : vector<16x64xf32>
    %307 = arith.truncf %306 : vector<16x64xf32> to vector<16x64xbf16>
    %cst_126 = arith.constant 0.000000e+00 : f32
    %308 = vector.broadcast %cst_126 : f32 to vector<16x64xf32>
    %c1_127 = arith.constant 1 : index
    %c0_128 = arith.constant 0 : index
    %c0_129 = arith.constant 0 : index
    %309 = vector.load %arg6[%c1_127, %c0_128, %c0_129] : memref<2x64x2048xbf16, #tpu.memory_space<vmem>>, vector<1x64x512xbf16>
    %310 = vector.shape_cast %309 : vector<1x64x512xbf16> to vector<64x512xbf16>
    %cst_130 = arith.constant dense<0.000000e+00> : vector<16x512xf32>
    %311 = tpu.matmul %307, %310, %cst_130 {dimension_numbers = #tpu.dot_dimension_numbers<[1], [0], [0], [1], [0, 0, 1, 1], [], []>} : vector<16x64xbf16>, vector<64x512xbf16>, vector<16x512xf32> -> vector<16x512xf32>
    %c1_131 = arith.constant 1 : index
    %c0_132 = arith.constant 0 : index
    %c0_133 = arith.constant 0 : index
    %312 = vector.load %arg10[%c1_131, %c0_132, %c0_133] : memref<2x1x2048xf32, #tpu.memory_space<vmem>>, vector<1x1x512xf32>
    %313 = vector.shape_cast %312 : vector<1x1x512xf32> to vector<1x512xf32>
    %314 = vector.broadcast %313 : vector<1x512xf32> to vector<16x512xf32>
    %315 = arith.addf %311, %314 : vector<16x512xf32>
    %cst_134 = arith.constant 0.000000e+00 : f32
    %316 = vector.broadcast %cst_134 : f32 to vector<16x512xf32>
    %317 = arith.maximumf %315, %316 : vector<16x512xf32>
    %318 = arith.truncf %317 : vector<16x512xf32> to vector<16x512xbf16>
    %c1_135 = arith.constant 1 : index
    %c0_136 = arith.constant 0 : index
    %c0_137 = arith.constant 0 : index
    %319 = vector.load %arg7[%c1_135, %c0_136, %c0_137] : memref<2x2048x64xbf16, #tpu.memory_space<vmem>>, vector<1x512x64xbf16>
    %320 = vector.shape_cast %319 : vector<1x512x64xbf16> to vector<512x64xbf16>
    %cst_138 = arith.constant dense<0.000000e+00> : vector<16x64xf32>
    %321 = tpu.matmul %318, %320, %cst_138 {dimension_numbers = #tpu.dot_dimension_numbers<[1], [0], [0], [1], [0, 0, 1, 1], [], []>} : vector<16x512xbf16>, vector<512x64xbf16>, vector<16x64xf32> -> vector<16x64xf32>
    %322 = arith.addf %308, %321 : vector<16x64xf32>
    %c1_139 = arith.constant 1 : index
    %c0_140 = arith.constant 0 : index
    %c512_141 = arith.constant 512 : index
    %323 = vector.load %arg6[%c1_139, %c0_140, %c512_141] : memref<2x64x2048xbf16, #tpu.memory_space<vmem>>, vector<1x64x512xbf16>
    %324 = vector.shape_cast %323 : vector<1x64x512xbf16> to vector<64x512xbf16>
    %cst_142 = arith.constant dense<0.000000e+00> : vector<16x512xf32>
    %325 = tpu.matmul %307, %324, %cst_142 {dimension_numbers = #tpu.dot_dimension_numbers<[1], [0], [0], [1], [0, 0, 1, 1], [], []>} : vector<16x64xbf16>, vector<64x512xbf16>, vector<16x512xf32> -> vector<16x512xf32>
    %c1_143 = arith.constant 1 : index
    %c0_144 = arith.constant 0 : index
    %c512_145 = arith.constant 512 : index
    %326 = vector.load %arg10[%c1_143, %c0_144, %c512_145] : memref<2x1x2048xf32, #tpu.memory_space<vmem>>, vector<1x1x512xf32>
    %327 = vector.shape_cast %326 : vector<1x1x512xf32> to vector<1x512xf32>
    %328 = vector.broadcast %327 : vector<1x512xf32> to vector<16x512xf32>
    %329 = arith.addf %325, %328 : vector<16x512xf32>
    %cst_146 = arith.constant 0.000000e+00 : f32
    %330 = vector.broadcast %cst_146 : f32 to vector<16x512xf32>
    %331 = arith.maximumf %329, %330 : vector<16x512xf32>
    %332 = arith.truncf %331 : vector<16x512xf32> to vector<16x512xbf16>
    %c1_147 = arith.constant 1 : index
    %c512_148 = arith.constant 512 : index
    %c0_149 = arith.constant 0 : index
    %333 = vector.load %arg7[%c1_147, %c512_148, %c0_149] : memref<2x2048x64xbf16, #tpu.memory_space<vmem>>, vector<1x512x64xbf16>
    %334 = vector.shape_cast %333 : vector<1x512x64xbf16> to vector<512x64xbf16>
    %cst_150 = arith.constant dense<0.000000e+00> : vector<16x64xf32>
    %335 = tpu.matmul %332, %334, %cst_150 {dimension_numbers = #tpu.dot_dimension_numbers<[1], [0], [0], [1], [0, 0, 1, 1], [], []>} : vector<16x512xbf16>, vector<512x64xbf16>, vector<16x64xf32> -> vector<16x64xf32>
    %336 = arith.addf %322, %335 : vector<16x64xf32>
    %c1_151 = arith.constant 1 : index
    %c0_152 = arith.constant 0 : index
    %c1024_153 = arith.constant 1024 : index
    %337 = vector.load %arg6[%c1_151, %c0_152, %c1024_153] : memref<2x64x2048xbf16, #tpu.memory_space<vmem>>, vector<1x64x512xbf16>
    %338 = vector.shape_cast %337 : vector<1x64x512xbf16> to vector<64x512xbf16>
    %cst_154 = arith.constant dense<0.000000e+00> : vector<16x512xf32>
    %339 = tpu.matmul %307, %338, %cst_154 {dimension_numbers = #tpu.dot_dimension_numbers<[1], [0], [0], [1], [0, 0, 1, 1], [], []>} : vector<16x64xbf16>, vector<64x512xbf16>, vector<16x512xf32> -> vector<16x512xf32>
    %c1_155 = arith.constant 1 : index
    %c0_156 = arith.constant 0 : index
    %c1024_157 = arith.constant 1024 : index
    %340 = vector.load %arg10[%c1_155, %c0_156, %c1024_157] : memref<2x1x2048xf32, #tpu.memory_space<vmem>>, vector<1x1x512xf32>
    %341 = vector.shape_cast %340 : vector<1x1x512xf32> to vector<1x512xf32>
    %342 = vector.broadcast %341 : vector<1x512xf32> to vector<16x512xf32>
    %343 = arith.addf %339, %342 : vector<16x512xf32>
    %cst_158 = arith.constant 0.000000e+00 : f32
    %344 = vector.broadcast %cst_158 : f32 to vector<16x512xf32>
    %345 = arith.maximumf %343, %344 : vector<16x512xf32>
    %346 = arith.truncf %345 : vector<16x512xf32> to vector<16x512xbf16>
    %c1_159 = arith.constant 1 : index
    %c1024_160 = arith.constant 1024 : index
    %c0_161 = arith.constant 0 : index
    %347 = vector.load %arg7[%c1_159, %c1024_160, %c0_161] : memref<2x2048x64xbf16, #tpu.memory_space<vmem>>, vector<1x512x64xbf16>
    %348 = vector.shape_cast %347 : vector<1x512x64xbf16> to vector<512x64xbf16>
    %cst_162 = arith.constant dense<0.000000e+00> : vector<16x64xf32>
    %349 = tpu.matmul %346, %348, %cst_162 {dimension_numbers = #tpu.dot_dimension_numbers<[1], [0], [0], [1], [0, 0, 1, 1], [], []>} : vector<16x512xbf16>, vector<512x64xbf16>, vector<16x64xf32> -> vector<16x64xf32>
    %350 = arith.addf %336, %349 : vector<16x64xf32>
    %c1_163 = arith.constant 1 : index
    %c0_164 = arith.constant 0 : index
    %c1536_165 = arith.constant 1536 : index
    %351 = vector.load %arg6[%c1_163, %c0_164, %c1536_165] : memref<2x64x2048xbf16, #tpu.memory_space<vmem>>, vector<1x64x512xbf16>
    %352 = vector.shape_cast %351 : vector<1x64x512xbf16> to vector<64x512xbf16>
    %cst_166 = arith.constant dense<0.000000e+00> : vector<16x512xf32>
    %353 = tpu.matmul %307, %352, %cst_166 {dimension_numbers = #tpu.dot_dimension_numbers<[1], [0], [0], [1], [0, 0, 1, 1], [], []>} : vector<16x64xbf16>, vector<64x512xbf16>, vector<16x512xf32> -> vector<16x512xf32>
    %c1_167 = arith.constant 1 : index
    %c0_168 = arith.constant 0 : index
    %c1536_169 = arith.constant 1536 : index
    %354 = vector.load %arg10[%c1_167, %c0_168, %c1536_169] : memref<2x1x2048xf32, #tpu.memory_space<vmem>>, vector<1x1x512xf32>
    %355 = vector.shape_cast %354 : vector<1x1x512xf32> to vector<1x512xf32>
    %356 = vector.broadcast %355 : vector<1x512xf32> to vector<16x512xf32>
    %357 = arith.addf %353, %356 : vector<16x512xf32>
    %cst_170 = arith.constant 0.000000e+00 : f32
    %358 = vector.broadcast %cst_170 : f32 to vector<16x512xf32>
    %359 = arith.maximumf %357, %358 : vector<16x512xf32>
    %360 = arith.truncf %359 : vector<16x512xf32> to vector<16x512xbf16>
    %c1_171 = arith.constant 1 : index
    %c1536_172 = arith.constant 1536 : index
    %c0_173 = arith.constant 0 : index
    %361 = vector.load %arg7[%c1_171, %c1536_172, %c0_173] : memref<2x2048x64xbf16, #tpu.memory_space<vmem>>, vector<1x512x64xbf16>
    %362 = vector.shape_cast %361 : vector<1x512x64xbf16> to vector<512x64xbf16>
    %cst_174 = arith.constant dense<0.000000e+00> : vector<16x64xf32>
    %363 = tpu.matmul %360, %362, %cst_174 {dimension_numbers = #tpu.dot_dimension_numbers<[1], [0], [0], [1], [0, 0, 1, 1], [], []>} : vector<16x512xbf16>, vector<512x64xbf16>, vector<16x64xf32> -> vector<16x64xf32>
    %364 = arith.addf %350, %363 : vector<16x64xf32>
    %c1_175 = arith.constant 1 : index
    %c0_176 = arith.constant 0 : index
    %c0_177 = arith.constant 0 : index
    %365 = vector.load %arg11[%c1_175, %c0_176, %c0_177] : memref<2x1x64xf32, #tpu.memory_space<vmem>>, vector<1x1x64xf32>
    %366 = vector.shape_cast %365 : vector<1x1x64xf32> to vector<1x64xf32>
    %367 = vector.broadcast %366 : vector<1x64xf32> to vector<16x64xf32>
    %368 = arith.addf %364, %367 : vector<16x64xf32>
    %369 = arith.addf %306, %368 : vector<16x64xf32>
    %cst_178 = arith.constant dense<0.000000e+00> : vector<16xf32>
    %370 = vector.multi_reduction <add>, %369, %cst_178 [1] : vector<16x64xf32> to vector<16xf32>
    %371 = vector.shape_cast %370 : vector<16xf32> to vector<16x1xf32>
    %cst_179 = arith.constant 6.400000e+01 : f32
    %372 = vector.broadcast %cst_179 : f32 to vector<16x1xf32>
    %373 = arith.divf %371, %372 : vector<16x1xf32>
    %374 = vector.broadcast %373 : vector<16x1xf32> to vector<16x64xf32>
    %375 = arith.subf %369, %374 : vector<16x64xf32>
    %376 = arith.mulf %375, %375 : vector<16x64xf32>
    %cst_180 = arith.constant dense<0.000000e+00> : vector<16xf32>
    %377 = vector.multi_reduction <add>, %376, %cst_180 [1] : vector<16x64xf32> to vector<16xf32>
    %378 = vector.shape_cast %377 : vector<16xf32> to vector<16x1xf32>
    %cst_181 = arith.constant 6.400000e+01 : f32
    %379 = vector.broadcast %cst_181 : f32 to vector<16x1xf32>
    %380 = arith.divf %378, %379 : vector<16x1xf32>
    %381 = vector.broadcast %373 : vector<16x1xf32> to vector<16x64xf32>
    %382 = arith.subf %369, %381 : vector<16x64xf32>
    %cst_182 = arith.constant 9.99999974E-6 : f32
    %383 = vector.broadcast %cst_182 : f32 to vector<16x1xf32>
    %384 = arith.addf %380, %383 : vector<16x1xf32>
    %385 = math.rsqrt %384 : vector<16x1xf32>
    %386 = vector.broadcast %385 : vector<16x1xf32> to vector<16x64xf32>
    %387 = arith.mulf %382, %386 : vector<16x64xf32>
    %c1_183 = arith.constant 1 : index
    %c0_184 = arith.constant 0 : index
    %c0_185 = arith.constant 0 : index
    %388 = vector.load %arg14[%c1_183, %c0_184, %c0_185] : memref<2x1x64xf32, #tpu.memory_space<vmem>>, vector<1x1x64xf32>
    %389 = vector.shape_cast %388 : vector<1x1x64xf32> to vector<1x64xf32>
    %390 = vector.broadcast %389 : vector<1x64xf32> to vector<16x64xf32>
    %391 = arith.mulf %387, %390 : vector<16x64xf32>
    %c1_186 = arith.constant 1 : index
    %c0_187 = arith.constant 0 : index
    %c0_188 = arith.constant 0 : index
    %392 = vector.load %arg15[%c1_186, %c0_187, %c0_188] : memref<2x1x64xf32, #tpu.memory_space<vmem>>, vector<1x1x64xf32>
    %393 = vector.shape_cast %392 : vector<1x1x64xf32> to vector<1x64xf32>
    %394 = vector.broadcast %393 : vector<1x64xf32> to vector<16x64xf32>
    %395 = arith.addf %391, %394 : vector<16x64xf32>
    %c0_189 = arith.constant 0 : index
    %c0_190 = arith.constant 0 : index
    %c0_191 = arith.constant 0 : index
    %396 = vector.load %arg16[%c0_189, %c0_190, %c0_191] : memref<1x16x64xf32, #tpu.memory_space<vmem>>, vector<1x16x64xf32>
    %397 = vector.shape_cast %396 : vector<1x16x64xf32> to vector<16x64xf32>
    %398 = vector.shape_cast %395 : vector<16x64xf32> to vector<1x16x64xf32>
    tpu.vector_store %arg16[%c0_189, %c0_190, %c0_191], %398 {strides = array<i32>} : memref<1x16x64xf32, #tpu.memory_space<vmem>>, vector<1x16x64xf32>,
    return
  }
  func.func @transform_0(%arg0: i32) -> (i32, i32, i32) {
    %c0_i32 = arith.constant 0 : i32
    %c0_i32_0 = arith.constant 0 : i32
    %c0_i32_1 = arith.constant 0 : i32
    return %arg0, %c0_i32, %c0_i32_0 : i32, i32, i32
  }
  func.func @transform_1(%arg0: i32) -> (i32, i32, i32) {
    %c0_i32 = arith.constant 0 : i32
    %c0_i32_0 = arith.constant 0 : i32
    %c0_i32_1 = arith.constant 0 : i32
    return %arg0, %c0_i32, %c0_i32_0 : i32, i32, i32
  }
  func.func @transform_2(%arg0: i32) -> (i32, i32, i32) {
    %c0_i32 = arith.constant 0 : i32
    %c0_i32_0 = arith.constant 0 : i32
    %c0_i32_1 = arith.constant 0 : i32
    return %arg0, %c0_i32, %c0_i32_0 : i32, i32, i32
  }
  func.func @transform_3(%arg0: i32) -> (i32, i32, i32) {
    %c0_i32 = arith.constant 0 : i32
    %c0_i32_0 = arith.constant 0 : i32
    %c0_i32_1 = arith.constant 0 : i32
    %c0_i32_2 = arith.constant 0 : i32
    return %c0_i32, %c0_i32_0, %c0_i32_1 : i32, i32, i32
  }
  func.func @transform_4(%arg0: i32) -> (i32, i32, i32) {
    %c0_i32 = arith.constant 0 : i32
    %c0_i32_0 = arith.constant 0 : i32
    %c0_i32_1 = arith.constant 0 : i32
    %c0_i32_2 = arith.constant 0 : i32
    return %c0_i32, %c0_i32_0, %c0_i32_1 : i32, i32, i32
  }
  func.func @transform_5(%arg0: i32) -> (i32, i32, i32) {
    %c0_i32 = arith.constant 0 : i32
    %c0_i32_0 = arith.constant 0 : i32
    %c0_i32_1 = arith.constant 0 : i32
    %c0_i32_2 = arith.constant 0 : i32
    return %c0_i32, %c0_i32_0, %c0_i32_1 : i32, i32, i32
  }
  func.func @transform_6(%arg0: i32) -> (i32, i32, i32) {
    %c0_i32 = arith.constant 0 : i32
    %c0_i32_0 = arith.constant 0 : i32
    %c0_i32_1 = arith.constant 0 : i32
    %c0_i32_2 = arith.constant 0 : i32
    return %c0_i32, %c0_i32_0, %c0_i32_1 : i32, i32, i32
  }
  func.func @transform_7(%arg0: i32) -> (i32, i32, i32) {
    %c0_i32 = arith.constant 0 : i32
    %c0_i32_0 = arith.constant 0 : i32
    %c0_i32_1 = arith.constant 0 : i32
    %c0_i32_2 = arith.constant 0 : i32
    return %c0_i32, %c0_i32_0, %c0_i32_1 : i32, i32, i32
  }
  func.func @transform_8(%arg0: i32) -> (i32, i32, i32) {
    %c0_i32 = arith.constant 0 : i32
    %c0_i32_0 = arith.constant 0 : i32
    %c0_i32_1 = arith.constant 0 : i32
    %c0_i32_2 = arith.constant 0 : i32
    return %c0_i32, %c0_i32_0, %c0_i32_1 : i32, i32, i32
  }
  func.func @transform_9(%arg0: i32) -> (i32, i32, i32) {
    %c0_i32 = arith.constant 0 : i32
    %c0_i32_0 = arith.constant 0 : i32
    %c0_i32_1 = arith.constant 0 : i32
    %c0_i32_2 = arith.constant 0 : i32
    return %c0_i32, %c0_i32_0, %c0_i32_1 : i32, i32, i32
  }
  func.func @transform_10(%arg0: i32) -> (i32, i32, i32) {
    %c0_i32 = arith.constant 0 : i32
    %c0_i32_0 = arith.constant 0 : i32
    %c0_i32_1 = arith.constant 0 : i32
    %c0_i32_2 = arith.constant 0 : i32
    return %c0_i32, %c0_i32_0, %c0_i32_1 : i32, i32, i32
  }
  func.func @transform_11(%arg0: i32) -> (i32, i32, i32) {
    %c0_i32 = arith.constant 0 : i32
    %c0_i32_0 = arith.constant 0 : i32
    %c0_i32_1 = arith.constant 0 : i32
    %c0_i32_2 = arith.constant 0 : i32
    return %c0_i32, %c0_i32_0, %c0_i32_1 : i32, i32, i32
  }
  func.func @transform_12(%arg0: i32) -> (i32, i32, i32) {
    %c0_i32 = arith.constant 0 : i32
    %c0_i32_0 = arith.constant 0 : i32
    %c0_i32_1 = arith.constant 0 : i32
    %c0_i32_2 = arith.constant 0 : i32
    return %c0_i32, %c0_i32_0, %c0_i32_1 : i32, i32, i32
  }
  func.func @transform_13(%arg0: i32) -> (i32, i32, i32) {
    %c0_i32 = arith.constant 0 : i32
    %c0_i32_0 = arith.constant 0 : i32
    %c0_i32_1 = arith.constant 0 : i32
    %c0_i32_2 = arith.constant 0 : i32
    return %c0_i32, %c0_i32_0, %c0_i32_1 : i32, i32, i32
  }
  func.func @transform_14(%arg0: i32) -> (i32, i32, i32) {
    %c0_i32 = arith.constant 0 : i32
    %c0_i32_0 = arith.constant 0 : i32
    %c0_i32_1 = arith.constant 0 : i32
    %c0_i32_2 = arith.constant 0 : i32
    return %c0_i32, %c0_i32_0, %c0_i32_1 : i32, i32, i32
  }
  func.func @transform_15(%arg0: i32) -> (i32, i32, i32) {
    %c0_i32 = arith.constant 0 : i32
    %c0_i32_0 = arith.constant 0 : i32
    %c0_i32_1 = arith.constant 0 : i32
    return %arg0, %c0_i32, %c0_i32_0 : i32, i32, i32
  }
}

</mosaic_0001>

<bundles_post_ra>
// kernel: tpu_custom_call.1
= control target key start
LH: loop header
LB: loop body
LE: loop exit
PB: predicated region body
PF: predicated region fallthrough
CT: control target
= control target key end

     0   :  { %20 = vsyncpa [#allocation3], 0  ;;  %s13089_s0 = inlined_call_operand.vmem [shape: f32[2,16,64], index: 0, kind: input, shape index: {}]   ;;  %s13090_s1 = inlined_call_operand.vmem [shape: s32[2,16,1], index: 1, kind: input, shape index: {}]   ;;  %s13091_s2 = inlined_call_operand.vmem [shape: s32[2,1,16], index: 2, kind: input, shape index: {}]   ;;  %s13092_s3 = inlined_call_operand.vmem [shape: bf16[2,64,192], index: 3, kind: input, shape index: {}]   ;;  %s13093_s4 = inlined_call_operand.vmem [shape: bf16[2,64,64], index: 4, kind: input, shape index: {}]   ;;  %s13094_s5 = inlined_call_operand.vmem [shape: bf16[2,64,2048], index: 5, kind: input, shape index: {}]   ;;  %s13095_s6 = inlined_call_operand.vmem [shape: bf16[2,2048,64], index: 6, kind: input, shape index: {}]   ;;  %s13096_s7 = inlined_call_operand.vmem [shape: f32[2,1,192], index: 7, kind: input, shape index: {}]   ;;  %s13097_s8 = inlined_call_operand.vmem [shape: f32[2,1,64], index: 8, kind: input, shape index: {}]   ;;  %s13098_s9 = inlined_call_operand.vmem [shape: f32[2,1,2048], index: 9, kind: input, shape index: {}]   ;;  %s13099_s10 = inlined_call_operand.vmem [shape: f32[2,1,64], index: 10, kind: input, shape index: {}]   ;;  %s13100_s11 = inlined_call_operand.vmem [shape: f32[2,1,64], index: 11, kind: input, shape index: {}]   ;;  %s13101_s12 = inlined_call_operand.vmem [shape: f32[2,1,64], index: 12, kind: input, shape index: {}]   ;;  %s13102_s13 = inlined_call_operand.vmem [shape: f32[2,1,64], index: 13, kind: input, shape index: {}]   ;;  %s13103_s14 = inlined_call_operand.vmem [shape: f32[2,1,64], index: 14, kind: input, shape index: {}]   ;;  %s13104_s15 = inlined_call_operand.hbm [shape: f32[2,16,64], index: 15, kind: output, shape index: {}]  }
   0x1   :  { %22 = vsyncpa [#allocation3 + $0x1], 0  ;;  %s10822_s18 = smov 0   ;;  %s10824_s19 = smov 0  }
   0x2   :  { %s10826_s20 = smov 0   ;;  %s10828_s21 = smov 0  }
   0x3 LB: > { %13122 = sst [smem:[#allocation5_spill]] %s10712_s18  ;;  %s10843_s22 = sadd.s32 4294967295, %s10724_s21   ;;  %s10724_s21 = sphi %s10828_s21, %s13140_s21   ;;  %s10720_s20 = sphi %s10826_s20, %s13142_s20   ;;  %s10716_s19 = sphi %s10824_s19, %s13144_s19   ;;  %s10712_s18 = sphi %s10822_s18, %s13143_s18  }
   0x4   : > { %13123 = sst [smem:[#allocation6_spill]] %s10720_s20  ;;  %s8842_s23 = sadd.s32 4294967294, %s10724_s21  }
   0x5   : > { %13124 = sst [smem:[#allocation7_spill]] %s10724_s21  ;;  %s10847_s24 = sadd.s32 1, %s10724_s21  }
   0x6   : > { %13125 = sst [smem:[#allocation8_spill]] %s10847_s24  ;;  %s365_s25 = sadd.s32 1, %s10720_s20 }
   0x7   : > { %s362_s26 = ssub.s32 %s10724_s21, %s10847_s24  ;;  %p375_p0 = scmp.ne.s32.totalorder %s10720_s20, %s10716_s19 }
   0x8   : > { %p363_p1 = scmp.eq.s32.totalorder %s362_s26, 0  ;;  %p376_p2 = scmp.eq.s32.totalorder %s10843_s22, 1 }
   0x9   : > { %p381_p3 = scmp.ne.s32.totalorder %s10716_s19, %s10712_s18  ;;  %p382_p4 = scmp.eq.s32.totalorder %s8842_s23, 1 }
   0xa   : > { %s10858_s27 = scalar_select %p363_p1, %s10720_s20, %s365_s25  }
   0xb   : > { %p10860_p5 = por %p376_p2, %p375_p0  ;;  %p10864_p6 = por %p382_p4, %p381_p3 }
   0xc   : > { %13126 = sst [smem:[#allocation9_spill]] %s10858_s27  ;;  %p8845_p7 = scmp.ge.s32.totalorder %s10724_s21, 1 }
   0xd   : > { %s13128_s29 = scalar_select %p10864_p6, 1, 0 }
   0xe   : > { %p458_p8 = scmp.lt.s32.totalorder %s10724_s21, 3 }
   0xf   : > { %13129 = sst [smem:[#allocation10_spill]] %s13128_s29 }
  0x10   : > { %p459_p9 = pnand %p8845_p7, %p458_p8 }
  0x11   : > { %p514_p10 = scmp.lt.s32.totalorder (!%p459_p9), %s10843_s22, 1  ;;  %s13116_s24 = smov (!%p459_p9), 80  }
  0x12   : > { %462 = sbr.rel (%p459_p9) target bundleno = 6238 (0x185e), region = 80  ;;  %s13118_s29 = smov (!%p459_p9), 112  }
  0x13   : > { %s13114_s23 = smov (!%p459_p9), 64   ;;  %s13120_s25 = smov (!%p459_p9), 96  }
  0x14   : > { %s13113_s26 = smov (!%p459_p9), 32   ;;  %s13112_s16 = smov (!%p459_p9), 16  }
  0x15   : > { %s511_s18 = sand.u32 (!%p459_p9), 1, %s10716_s19  }
  0x17   : > { %v10294_v0 = vld [vmem:[%s13092_s3 + $0x34] ss:$8 sps:$4 sm:$0xff]   ;;  %v10296_v1 = vld [vmem:[%s13092_s3 + $0x30] ss:$8 sps:$4 sm:$0xff]   ;;  %v10726_v2 = vmov 0   ;;  %s10883_s27 = scalar_select %p514_p10, %s10843_s22, 1  ;;  %v539_v12 = vlaneseq }
  0x18   : > { %653 = vmatprep.mubr.bf16.mxu0 %v10726_v2  ;;  %10262 = vset.pattern.permute.xlu1 %v10726_v2  ;;  %v10297_v3 = vld [vmem:[%s13092_s3 + $0x24] ss:$8 sps:$4 sm:$0xff]   ;;  %v10299_v4 = vld [vmem:[%s13092_s3 + $0x20] ss:$8 sps:$4 sm:$0xff]   ;;  %v10300_v5 = vld [vmem:[%s13092_s3 + $0x14] ss:$8 sps:$4 sm:$0xff]   ;;  %v10932_v29 = vpack.i.b16 %v10726_v2, %v10726_v2 }
  0x19   : > { %629 = vmatprep.subr.bf16.mxu0 %v10294_v0  ;;  %10263 = vset.pattern.permute.xlu0 %v10726_v2  ;;  %s9691_s20 = sshll.u32 %s10883_s27, 4  ;;  %v10302_v6 = vld [vmem:[%s13092_s3 + $0x10] ss:$8 sps:$4 sm:$0xff]   ;;  %v10303_v7 = vld [vmem:[%s13092_s3 + $0x4] ss:$8 sps:$4 sm:$0xff]   ;;  %vm617_vm0 = vcmask 523264   ;;  %s526_s21 = scalar_lea.vmem %s13091_s2, %s10883_s27 }
  0x1a   : > { %630 = vmatpush1.bf16.msra.mxu0 %v10296_v1  ;;  %s10904_s30 = scalar_lea.vmem %s13089_s0, %s9691_s20  ;;  %v10305_v8 = vld [vmem:[%s13092_s3] ss:$8 sps:$4 sm:$0xff]   ;;  %v10912_v13 = vshrl.u32 %v539_v12, 7  ;;  %v10731_v23 = vmov 1983009808   ;;  %v10733_v42 = vmov 0.0   ;;  %s523_s17 = scalar_lea.vmem %s13090_s1, %s9691_s20 }
  0x1b   : > { %631 = vmatprep.subr.bf16.mxu0 %v10297_v3  ;;  %v528_v9 = vld [vmem:[%s10904_s30] sm:$0xff]  ;;  %v529_v10 = vld [vmem:[%s10904_s30 + $0x8] sm:$0xff]  ;;  %v696_v24 = vunpack.c.l.s4 %v10731_v23  ;;  %v10732_v25 = vmov 1934713408   ;;  %10088 = vmatprep.subr.bf16.mxu1 %v10733_v42  ;;  %vm10734_vm1 = vmmov 0   ;;  %vm1478_vm2 = vcmask 130048  }
  0x1c   : > { %v556_v11 = vpack.c.bf16 %v529_v10, %v528_v9  ;;  %v10915_v14 = vsub.s32 0, %v10912_v13  ;;  %v10920_v15 = vld [vmem:[%s13096_s7] sm:$0x3]  ;;  %v727_v26 = vunpack.c.l.s4 %v10732_v25  ;;  %10090 = vmatprep.mubr.msk.bf16.mxu1 %vm10734_vm1, %v10733_v42  ;;  %vm2233_vm9 = vcmask 261120   ;;  %s13130_s27 = smov 96   ;;  %s13131_s20 = smov 112  }
  0x1d   : > { %v697_v27 = vunpack.c.0.s8 %v696_v24  ;;  %vm2236_vm10 = vcmask 392192  }
  0x1e   : > { %632 = vmatpush1.bf16.msra.mxu0 %v10299_v4  ;;  %v570_v17 = vrot.slane %v10920_v15, %v10915_v14  ;;  %v728_v32 = vunpack.c.0.s8 %v727_v26 }
  0x1f   : > { %633 = vmatprep.subr.bf16.mxu0 %v10300_v5  ;;  %v10936_v35 = vsub.s32 %v697_v27, %v10912_v13 }
  0x20   : > { %v10944_v43 = vsub.s32 %v728_v32, %v10912_v13 }
  0x22   : > { %634 = vmatpush1.bf16.msra.mxu0 %v10302_v6 }
  0x23   : > { %635 = vmatprep.subr.bf16.mxu0 %v10303_v7 }
  0x26   : > { %636 = vmatpush1.bf16.msra.mxu0 %v10305_v8 }
  0x27   : > { %10112 = vmatprep.subr.bf16.mxu0 %v10733_v42 }
  0x29   : > { %8859 = vmatmul.mubr.msk.bf16.vlgmr.msra.gmra.mxu0 %vm617_vm0, %v556_v11 }
  0x2a   : > { %10114 = vmatprep.mubr.msk.bf16.mxu0 %vm10734_vm1, %v10733_v42 }
  0xe9   : > { %v655_v16 = vpop.f32.mrf.mxu0 }
  0xea   : > { %v656_v20 = vadd.f32 %v655_v16, %v570_v17 }
  0xeb   : > { %v10924_v18 = vpop.f32.mrf.mxu0 }
  0xed   : > { %v659_v19 = vpop.f32.mrf.mxu0 }
  0xee   : > { %v660_v21 = vadd.f32 %v659_v19, %v570_v17 }
  0xf0   : > { %v664_v22 = vpack.c.bf16 %v660_v21, %v656_v20 }
  0xf2   : > { %670 = vrot.lane.b32.xlu1 %v664_v22, %s13116_s24  ;;  %666 = vrot.lane.b32.xlu0 %v664_v22, %s13118_s29  ;;  %v676_v34 = vshrl.u32 %v664_v22, 16 }
  0xf6   : > { %938 = vrot.lane.b32.xlu1 %v664_v22, %s13114_s23  ;;  %668 = vrot.lane.b32.xlu0 %v664_v22, %s13120_s25 }
 0x164   : > { %v667_v28 = vpop.permute.xlu0 %666  ;;  %v671_v33 = vpop.permute.xlu1 %670 }
 0x165   : > { %v674_v30 = vpack.i.b16 %v667_v28, %v664_v22  ;;  %v677_v31 = vshrl.u32 %v667_v28, 16  ;;  %940 = vrot.lane.b32.xlu0 %v667_v28, %s13114_s23  ;;  %v685_v39 = vshrl.u32 %v671_v33, 16 }
 0x167   : > { %v678_v37 = vpack.i.b16 %v677_v31, %v676_v34  ;;  %v694_v38 = vcombine.high %v674_v30, %v10932_v29  ;;  %v701_v44 = vrot.slane %v674_v30, %v10936_v35 }
 0x168   : > { %v669_v36 = vpop.permute.xlu0 %668 }
 0x169   : > { %944 = vrot.lane.b32.xlu0 %v671_v33, %s13114_s23  ;;  %942 = vrot.lane.b32.xlu1 %v669_v36, %s13114_s23  ;;  %v682_v40 = vpack.i.b16 %v671_v33, %v669_v36  ;;  %v684_v41 = vshrl.u32 %v669_v36, 16  ;;  %v708_v48 = vrot.slane %v694_v38, %v10936_v35  ;;  %v760_v49 = vcombine.high %v678_v37, %v10932_v29  ;;  %s13132_s23 = smov 80  }
 0x16a   : > { %v767_v54 = vrot.slane %v678_v37, %v10936_v35 }
 0x16b   : > { %v686_v45 = vpack.i.b16 %v685_v39, %v684_v41  ;;  %v709_v46 = vcombine.high %v682_v40, %v10932_v29  ;;  %v716_v47 = vrot.slane %v682_v40, %v10936_v35  ;;  %v774_v60 = vrot.slane %v760_v49, %v10936_v35 }
 0x16d   : > { %v723_v50 = vrot.slane %v709_v46, %v10936_v35  ;;  %v724_v51 = vcombine.low %v701_v44, %v716_v47  ;;  %v725_v52 = vcombine.high %v701_v44, %v716_v47  ;;  %v775_v53 = vcombine.high %v686_v45, %v10932_v29 }
 0x16e   : > { %v782_v55 = vrot.slane %v686_v45, %v10936_v35 }
 0x16f   : > { %v732_v56 = vrot.slane %v724_v51, %v10944_v43  ;;  %v739_v57 = vrot.slane %v725_v52, %v10944_v43  ;;  %v740_v58 = vcombine.low %v708_v48, %v723_v50  ;;  %v741_v59 = vcombine.high %v708_v48, %v723_v50 }
 0x170   : > { %v789_v61 = vrot.slane %v775_v53, %v10936_v35  ;;  %v790_v62 = vcombine.low %v767_v54, %v782_v55  ;;  %v791_v63 = vcombine.high %v767_v54, %v782_v55  ;;  %v530_v53 = vld [vmem:[%s523_s17] sm:$0xff]  ;;  %v531_v54 = vld [vmem:[%s523_s17 + $0x8] sm:$0xff]  ;;  %v939_v55 = vpop.permute.xlu1 %938  ;;  %s13111_s17 = smov 48  }
 0x171   : > { %v748_v0 = vrot.slane %v740_v58, %v10944_v43  ;;  %v755_v1 = vrot.slane %v741_v59, %v10944_v43  ;;  %v826_v3 = vcombine.low %v732_v56, %v739_v57  ;;  %v8860_v4 = vcombine.high %v732_v56, %v739_v57  ;;  %534 = vperm.xlu1 %10262, %v530_v53  }
 0x172   : > { %v798_v5 = vrot.slane %v790_v62, %v10944_v43  ;;  %v805_v6 = vrot.slane %v791_v63, %v10944_v43  ;;  %v806_v7 = vcombine.low %v774_v60, %v789_v61  ;;  %v807_v8 = vcombine.high %v774_v60, %v789_v61  ;;  %537 = vperm.xlu0 %10263, %v531_v54  }
 0x173   : > { %v833_v9 = vrot.slane %v826_v3, %v10936_v35  ;;  %v841_v10 = vrot.slane %v8860_v4, %v10936_v35  ;;  %v842_v11 = vcombine.low %v748_v0, %v755_v1  ;;  %v8861_v12 = vcombine.high %v748_v0, %v755_v1 }
 0x174   : > { %v814_v16 = vrot.slane %v806_v7, %v10944_v43  ;;  %v821_v17 = vrot.slane %v807_v8, %v10944_v43  ;;  %v876_v19 = vcombine.low %v798_v5, %v805_v6  ;;  %v8862_v20 = vcombine.high %v798_v5, %v805_v6 }
 0x175   : > { %v849_v21 = vrot.slane %v842_v11, %v10936_v35  ;;  %v857_v22 = vrot.slane %v8861_v12, %v10936_v35  ;;  %v858_v23 = vcombine.low %v833_v9, %v841_v10  ;;  %v950_v59 = vshrl.u32 %v939_v55, 16 }
 0x176   : > { %v892_v24 = vcombine.low %v814_v16, %v821_v17  ;;  %v8863_v25 = vcombine.high %v814_v16, %v821_v17  ;;  %v883_v26 = vrot.slane %v876_v19, %v10936_v35  ;;  %v891_v28 = vrot.slane %v8862_v20, %v10936_v35 }
 0x177   : > { %v866_v27 = vcombine.low %v849_v21, %v857_v22  ;;  %v865_v32 = vrot.slane %v858_v23, %v10944_v43 }
 0x178   : > { %v899_v30 = vrot.slane %v892_v24, %v10936_v35  ;;  %v907_v31 = vrot.slane %v8863_v25, %v10936_v35  ;;  %v908_v34 = vcombine.low %v883_v26, %v891_v28 }
 0x179   : > { %v873_v33 = vrot.slane %v866_v27, %v10944_v43 }
 0x17a   : > { %v916_v36 = vcombine.low %v899_v30, %v907_v31  ;;  %v915_v39 = vrot.slane %v908_v34, %v10944_v43 }
 0x17b   : > { %v10979_v37 = vcombine.low %v865_v32, %v873_v33  ;;  %v10981_v38 = vcombine.high %v865_v32, %v873_v33 }
 0x17c   : > { %v923_v40 = vrot.slane %v916_v36, %v10944_v43 }
 0x17d   : > { %v929_v45 = vshrl.u32 %v10979_v37, 16  ;;  %v935_v46 = vshrl.u32 %v10981_v38, 16 }
 0x17e   : > { %v10985_v41 = vcombine.low %v915_v39, %v923_v40  ;;  %v10987_v44 = vcombine.high %v915_v39, %v923_v40 }
 0x180   : > { %v928_v47 = vpack.i.b16 %v10985_v41, %v10979_v37  ;;  %v930_v48 = vshrl.u32 %v10985_v41, 16  ;;  %v934_v49 = vpack.i.b16 %v10987_v44, %v10981_v38  ;;  %v936_v50 = vshrl.u32 %v10987_v44, 16  ;;  %v532_v38 = vld [vmem:[%s526_s21] sm:$0x1] }
 0x181   : > { %vm545_vm3 = vcmp.ge.s32.totalorder %v532_v38, 0 }
 0x182   : > { %v10997_v51 = vpack.i.b16 %v930_v48, %v929_v45  ;;  %v10999_v52 = vpack.i.b16 %v936_v50, %v935_v46  ;;  %v546_v44 = vsel %vm545_vm3, 1, %v10726_v2 }
 0x1d7   : > { %v941_v56 = vpop.permute.xlu0 %940 }
 0x1d8   : > { %v948_v57 = vpack.i.b16 %v941_v56, %v939_v55  ;;  %v951_v58 = vshrl.u32 %v941_v56, 16 }
 0x1da   : > { %v952_v62 = vpack.i.b16 %v951_v58, %v950_v59  ;;  %v962_v63 = vcombine.high %v948_v57, %v10932_v29  ;;  %v969_v4 = vrot.slane %v948_v57, %v10936_v35 }
 0x1db   : > { %v943_v60 = vpop.permute.xlu1 %942  ;;  %v945_v61 = vpop.permute.xlu0 %944 }
 0x1dc   : > { %v958_v0 = vshrl.u32 %v943_v60, 16  ;;  %v956_v1 = vpack.i.b16 %v945_v61, %v943_v60  ;;  %v959_v3 = vshrl.u32 %v945_v61, 16  ;;  %v976_v8 = vrot.slane %v962_v63, %v10936_v35 }
 0x1dd   : > { %v1028_v9 = vcombine.high %v952_v62, %v10932_v29  ;;  %v1035_v17 = vrot.slane %v952_v62, %v10936_v35 }
 0x1de   : > { %v960_v5 = vpack.i.b16 %v959_v3, %v958_v0  ;;  %v977_v6 = vcombine.high %v956_v1, %v10932_v29  ;;  %v984_v7 = vrot.slane %v956_v1, %v10936_v35 }
 0x1df   : > { %v1042_v24 = vrot.slane %v1028_v9, %v10936_v35 }
 0x1e0   : > { %v991_v10 = vrot.slane %v977_v6, %v10936_v35  ;;  %v992_v11 = vcombine.low %v969_v4, %v984_v7  ;;  %v993_v12 = vcombine.high %v969_v4, %v984_v7  ;;  %v1043_v16 = vcombine.high %v960_v5, %v10932_v29 }
 0x1e1   : > { %v1050_v19 = vrot.slane %v960_v5, %v10936_v35 }
 0x1e2   : > { %v1000_v20 = vrot.slane %v992_v11, %v10944_v43  ;;  %v1007_v21 = vrot.slane %v993_v12, %v10944_v43  ;;  %v1008_v22 = vcombine.low %v976_v8, %v991_v10  ;;  %v1009_v23 = vcombine.high %v976_v8, %v991_v10 }
 0x1e3   : > { %v1057_v25 = vrot.slane %v1043_v16, %v10936_v35  ;;  %v1058_v26 = vcombine.low %v1035_v17, %v1050_v19  ;;  %v1059_v27 = vcombine.high %v1035_v17, %v1050_v19 }
 0x1e4   : > { %v1016_v28 = vrot.slane %v1008_v22, %v10944_v43  ;;  %v1023_v30 = vrot.slane %v1009_v23, %v10944_v43  ;;  %v1094_v31 = vcombine.low %v1000_v20, %v1007_v21  ;;  %v8864_v32 = vcombine.high %v1000_v20, %v1007_v21 }
 0x1e5   : > { %v1066_v33 = vrot.slane %v1058_v26, %v10944_v43  ;;  %v1073_v34 = vrot.slane %v1059_v27, %v10944_v43  ;;  %v1074_v36 = vcombine.low %v1042_v24, %v1057_v25  ;;  %v1075_v39 = vcombine.high %v1042_v24, %v1057_v25 }
 0x1e6   : > { %v1110_v40 = vcombine.low %v1016_v28, %v1023_v30  ;;  %v8865_v45 = vcombine.high %v1016_v28, %v1023_v30  ;;  %v1101_v46 = vrot.slane %v1094_v31, %v10936_v35  ;;  %v1109_v48 = vrot.slane %v8864_v32, %v10936_v35 }
 0x1e7   : > { %v1082_v50 = vrot.slane %v1074_v36, %v10944_v43  ;;  %v1089_v53 = vrot.slane %v1075_v39, %v10944_v43  ;;  %v1144_v54 = vcombine.low %v1066_v33, %v1073_v34  ;;  %v8866_v55 = vcombine.high %v1066_v33, %v1073_v34 }
 0x1e8   : > { %v1117_v56 = vrot.slane %v1110_v40, %v10936_v35  ;;  %v1125_v57 = vrot.slane %v8865_v45, %v10936_v35  ;;  %v1126_v63 = vcombine.low %v1101_v46, %v1109_v48 }
 0x1e9   : > { %v1151_v58 = vrot.slane %v1144_v54, %v10936_v35  ;;  %v1159_v59 = vrot.slane %v8866_v55, %v10936_v35  ;;  %v1160_v60 = vcombine.low %v1082_v50, %v1089_v53  ;;  %v8867_v61 = vcombine.high %v1082_v50, %v1089_v53 }
 0x1ea   : > { %v1134_v62 = vcombine.low %v1117_v56, %v1125_v57  ;;  %v1133_v6 = vrot.slane %v1126_v63, %v10944_v43 }
 0x1eb   : > { %v1167_v0 = vrot.slane %v1160_v60, %v10936_v35  ;;  %v1175_v1 = vrot.slane %v8867_v61, %v10936_v35  ;;  %v1176_v3 = vcombine.low %v1151_v58, %v1159_v59 }
 0x1ec   : > { %v1141_v4 = vrot.slane %v1134_v62, %v10944_v43  ;;  %v535_v26 = vpop.permute.xlu1 %534 }
 0x1ed   : > { %v1184_v5 = vcombine.low %v1167_v0, %v1175_v1  ;;  %v1183_v7 = vrot.slane %v1176_v3, %v10944_v43  ;;  %v538_v27 = vpop.permute.xlu0 %537 }
 0x1ee   : > { %v1142_v9 = vcombine.low %v1133_v6, %v1141_v4  ;;  %v1143_v22 = vcombine.high %v1133_v6, %v1141_v4 }
 0x1ef   : > { %v1191_v8 = vrot.slane %v1184_v5, %v10944_v43 }
 0x1f0   : > { %v1197_v17 = vshrl.u32 %v1142_v9, 16  ;;  %v1203_v41 = vshrl.u32 %v1143_v22, 16 }
 0x1f1   : > { %v1192_v10 = vcombine.low %v1183_v7, %v1191_v8  ;;  %v1193_v21 = vcombine.high %v1183_v7, %v1191_v8 }
 0x1f3   : > { %v1196_v11 = vpack.i.b16 %v1192_v10, %v1142_v9  ;;  %v1198_v12 = vshrl.u32 %v1192_v10, 16  ;;  %v1202_v23 = vpack.i.b16 %v1193_v21, %v1143_v22  ;;  %v1204_v37 = vshrl.u32 %v1193_v21, 16 }
 0x1f5   : > { %v1483_v16 = vsel %vm1478_vm2, %v1196_v11, 0  ;;  %v1199_v19 = vpack.i.b16 %v1198_v12, %v1197_v17  ;;  %v1577_v24 = vsel %vm1478_vm2, %v1202_v23, 0  ;;  %v11094_v11 = vsub.s32 1, %v10912_v13  ;;  %v661_v12 = vpop.f32.mrf.mxu0 }
 0x1f6   : > { %10089 = vmatpush3.bf16.xpose.msra.mxu1 %v1483_v16 }
 0x1f7   : > { %10094 = vmatprep.subr.bf16.mxu1 %v10733_v42  ;;  %v1530_v20 = vsel %vm1478_vm2, %v1199_v19, 0  ;;  %v574_v16 = vrot.slane %v10920_v15, %v11094_v11 }
 0x1f9   : > { %v662_v17 = vadd.f32 %v661_v12, %v574_v16  ;;  %v658_v19 = vadd.f32 %v10924_v18, %v574_v16 }
 0x1fd   : > { %10091 = vmatmul.mubr.msk.bf16.vlgmr.msra.gmra.mxu1 %vm1478_vm2, %v928_v47  ;;  %v1205_v47 = vpack.i.b16 %v1204_v37, %v1203_v41 }
 0x1fe   : > { %10095 = vmatpush3.bf16.xpose.msra.mxu1 %v1530_v20  ;;  %10096 = vmatprep.mubr.msk.bf16.mxu1 %vm10734_vm1, %v10733_v42  ;;  %v1206_v20 = vpack.c.bf16 %v662_v17, %v658_v19 }
 0x1ff   : > { %10100 = vmatprep.subr.bf16.mxu1 %v10733_v42  ;;  %v1624_v25 = vsel %vm1478_vm2, %v1205_v47, 0 }
 0x205   : > { %10097 = vmatmul.mubr.msk.bf16.vlgmr.msra.gmra.mxu1 %vm1478_vm2, %v10997_v51  ;;  %v550_v51 = vrot.slane %v546_v44, %v10915_v14 }
 0x206   : > { %10101 = vmatpush3.bf16.xpose.msra.mxu1 %v1577_v24  ;;  %10102 = vmatprep.mubr.msk.bf16.mxu1 %vm10734_vm1, %v10733_v42 }
 0x207   : > { %10106 = vmatprep.subr.bf16.mxu1 %v10733_v42  ;;  %vm551_vm4 = vcmp.eq.s32.totalorder %v550_v51, 1 }
 0x20d   : > { %10103 = vmatmul.mubr.msk.bf16.vlgmr.msra.gmra.mxu1 %vm1478_vm2, %v934_v49  ;;  %v542_v49 = vrot.slane %v532_v38, %v10915_v14 }
 0x20e   : > { %10107 = vmatpush3.bf16.xpose.msra.mxu1 %v1624_v25  ;;  %10108 = vmatprep.mubr.msk.bf16.mxu1 %vm10734_vm1, %v10733_v42 }
 0x20f   : > { %10118 = vmatprep.subr.bf16.mxu1 %v10733_v42  ;;  %vm543_vm5 = vcmp.eq.s32.totalorder %v535_v26, %v542_v49  ;;  %vm544_vm7 = vcmp.eq.s32.totalorder %v538_v27, %v542_v49 }
 0x210   : > { %vm552_vm6 = vmand %vm543_vm5, %vm551_vm4 }
 0x211   : > { %vm553_vm8 = vmand %vm544_vm7, %vm551_vm4 }
 0x215   : > { %10109 = vmatmul.mubr.msk.bf16.vlgmr.msra.gmra.mxu1 %vm1478_vm2, %v10999_v52  ;;  %v10735_v52 = vmov -1e+30  }
 0x216   : > { %10120 = vmatprep.mubr.msk.bf16.mxu1 %vm10734_vm1, %v10733_v42  ;;  %v11073_v28 = vsel %vm552_vm6, 0.0, %v10735_v52  ;;  %v11076_v32 = vsel %vm553_vm8, 0.0, %v10735_v52 }
 0x2bd   : > { %v1519_v30 = vpop.f32.mrf.mxu1 }
 0x2be   : > { %v1520_v31 = vadd.f32 %v1519_v30, %v11073_v28 }
 0x2bf   : > { %v10092_v33 = vpop.f32.mrf.mxu1 }
 0x2c0   : > { %v1667_v34 = vsel %vm1478_vm2, %v1520_v31, -inf }
 0x2c1   : > { %1668 = vmax.xlane.f32.xlu1 %v1667_v34  ;;  %v1522_v36 = vpop.f32.mrf.mxu1 }
 0x2c2   : > { %v1523_v39 = vadd.f32 %v1522_v36, %v11076_v32 }
 0x2c3   : > { %v10093_v40 = vpop.f32.mrf.mxu1 }
 0x2c4   : > { %v1670_v45 = vsel %vm1478_vm2, %v1523_v39, -inf }
 0x2c5   : > { %1671 = vmax.xlane.f32.xlu0 %v1670_v45  ;;  %v1566_v46 = vpop.f32.mrf.mxu1 }
 0x2c6   : > { %v1567_v48 = vadd.f32 %v1566_v46, %v11073_v28 }
 0x2c7   : > { %v10098_v50 = vpop.f32.mrf.mxu1 }
 0x2c8   : > { %v1673_v53 = vsel %vm1478_vm2, %v1567_v48, -inf }
 0x2c9   : > { %1674 = vmax.xlane.f32.xlu1 %v1673_v53  ;;  %v1569_v54 = vpop.f32.mrf.mxu1 }
 0x2ca   : > { %v1570_v55 = vadd.f32 %v1569_v54, %v11076_v32 }
 0x2cb   : > { %v10099_v56 = vpop.f32.mrf.mxu1 }
 0x2cc   : > { %v1676_v57 = vsel %vm1478_vm2, %v1570_v55, -inf }
 0x2cd   : > { %1677 = vmax.xlane.f32.xlu0 %v1676_v57  ;;  %v1613_v58 = vpop.f32.mrf.mxu1 }
 0x2ce   : > { %v1614_v59 = vadd.f32 %v1613_v58, %v11073_v28  ;;  %v1218_v58 = vshrl.u32 %v1206_v20, 16 }
 0x2cf   : > { %v10104_v60 = vpop.f32.mrf.mxu1 }
 0x2d0   : > { %v1679_v61 = vsel %vm1478_vm2, %v1614_v59, -inf }
 0x2d1   : > { %1680 = vmax.xlane.f32.xlu1 %v1679_v61  ;;  %v1616_v62 = vpop.f32.mrf.mxu1 }
 0x2d2   : > { %v1617_v63 = vadd.f32 %v1616_v62, %v11076_v32 }
 0x2d3   : > { %v10105_v0 = vpop.f32.mrf.mxu1 }
 0x2d4   : > { %v1682_v1 = vsel %vm1478_vm2, %v1617_v63, -inf }
 0x2d5   : > { %1683 = vmax.xlane.f32.xlu0 %v1682_v1  ;;  %v1660_v3 = vpop.f32.mrf.mxu1 }
 0x2d6   : > { %v1661_v4 = vadd.f32 %v1660_v3, %v11073_v28 }
 0x2d7   : > { %v10110_v5 = vpop.f32.mrf.mxu1 }
 0x2d8   : > { %v1685_v6 = vsel %vm1478_vm2, %v1661_v4, -inf }
 0x2d9   : > { %1686 = vmax.xlane.f32.xlu1 %v1685_v6  ;;  %v1663_v7 = vpop.f32.mrf.mxu1 }
 0x2da   : > { %v1664_v8 = vadd.f32 %v1663_v7, %v11076_v32 }
 0x2db   : > { %v10111_v9 = vpop.f32.mrf.mxu1 }
 0x2dc   : > { %v1688_v10 = vsel %vm1478_vm2, %v1664_v8, -inf }
 0x2dd   : > { %1689 = vmax.xlane.f32.xlu0 %v1688_v10 }
 0x2ea   : > { %1208 = vrot.lane.b32.xlu1 %v1206_v20, %s13118_s29 }
 0x2ee   : > { %1212 = vrot.lane.b32.xlu1 %v1206_v20, %s13116_s24 }
 0x2f3   : > { %1210 = vrot.lane.b32.xlu0 %v1206_v20, %s13120_s25 }
 0x34a   : > { %v1669_v21 = vpop.xlane.xlu1 %1668 }
 0x34b   : > { %v1691_v22 = vsub.f32 %v1520_v31, %v1669_v21 }
 0x34d   : > { %v1699_v23 = vmul.f32 1.442695, %v1691_v22 }
 0x34e   : > { %v1672_v24 = vpop.xlane.xlu0 %1671 }
 0x34f   : > { %10582 = vpow2.f32 %v1699_v23  ;;  %v1692_v37 = vsub.f32 %v1523_v39, %v1672_v24 }
 0x351   : > { %v1701_v41 = vmul.f32 1.442695, %v1692_v37 }
 0x352   : > { %v1675_v47 = vpop.xlane.xlu1 %1674 }
 0x353   : > { %10584 = vpow2.f32 %v1701_v41  ;;  %v1693_v15 = vsub.f32 %v1567_v48, %v1675_v47 }
 0x355   : > { %v1703_v25 = vmul.f32 1.442695, %v1693_v15 }
 0x356   : > { %v1678_v38 = vpop.xlane.xlu0 %1677 }
 0x357   : > { %10586 = vpow2.f32 %v1703_v25  ;;  %v1694_v18 = vsub.f32 %v1570_v55, %v1678_v38 }
 0x359   : > { %v1705_v44 = vmul.f32 1.442695, %v1694_v18 }
 0x35a   : > { %v1681_v49 = vpop.xlane.xlu1 %1680 }
 0x35b   : > { %10588 = vpow2.f32 %v1705_v44  ;;  %v1695_v51 = vsub.f32 %v1614_v59, %v1681_v49 }
 0x35c   : > { %v11102_v26 = vpop.eup %10582 }
 0x35d   : > { %v1707_v27 = vmul.f32 1.442695, %v1695_v51  ;;  %v1715_v52 = vsel %vm1478_vm2, %v11102_v26, 0.0 }
 0x35e   : > { %v1684_v30 = vpop.xlane.xlu0 %1683  ;;  %1716 = vadd.xlane.f32.xlu1 %v1715_v52 }
 0x35f   : > { %10590 = vpow2.f32 %v1707_v27  ;;  %v1696_v31 = vsub.f32 %v1617_v63, %v1684_v30 }
 0x360   : > { %v11106_v33 = vpop.eup %10584 }
 0x361   : > { %v1709_v34 = vmul.f32 1.442695, %v1696_v31  ;;  %v1718_v36 = vsel %vm1478_vm2, %v11106_v33, 0.0 }
 0x362   : > { %v1687_v39 = vpop.xlane.xlu1 %1686  ;;  %1719 = vadd.xlane.f32.xlu0 %v1718_v36 }
 0x363   : > { %10592 = vpow2.f32 %v1709_v34  ;;  %v1697_v40 = vsub.f32 %v1661_v4, %v1687_v39 }
 0x364   : > { %v11110_v45 = vpop.eup %10586 }
 0x365   : > { %v1711_v46 = vmul.f32 1.442695, %v1697_v40  ;;  %v1721_v48 = vsel %vm1478_vm2, %v11110_v45, 0.0 }
 0x366   : > { %1722 = vadd.xlane.f32.xlu1 %v1721_v48  ;;  %v1209_v50 = vpop.permute.xlu1 %1208  ;;  %v1690_v53 = vpop.xlane.xlu0 %1689 }
 0x367   : > { %v1216_v54 = vpack.i.b16 %v1209_v50, %v1206_v20  ;;  %v1219_v55 = vshrl.u32 %v1209_v50, 16  ;;  %v1698_v56 = vsub.f32 %v1664_v8, %v1690_v53  ;;  %10594 = vpow2.f32 %v1711_v46 }
 0x368   : > { %v11114_v57 = vpop.eup %10588 }
 0x369   : > { %v1713_v59 = vmul.f32 1.442695, %v1698_v56  ;;  %v1724_v61 = vsel %vm1478_vm2, %v11114_v57, 0.0  ;;  %v1220_v63 = vpack.i.b16 %v1219_v55, %v1218_v58  ;;  %v1230_v0 = vcombine.high %v1216_v54, %v10932_v29 }
 0x36a   : > { %v1213_v60 = vpop.permute.xlu1 %1212  ;;  %v1211_v62 = vpop.permute.xlu0 %1210  ;;  %1725 = vadd.xlane.f32.xlu0 %v1724_v61  ;;  %v1237_v7 = vrot.slane %v1216_v54, %v10936_v35 }
 0x36b   : > { %10596 = vpow2.f32 %v1713_v59  ;;  %v1227_v3 = vshrl.u32 %v1213_v60, 16  ;;  %v1224_v4 = vpack.i.b16 %v1213_v60, %v1211_v62  ;;  %v1226_v5 = vshrl.u32 %v1211_v62, 16 }
 0x36c   : > { %v11119_v1 = vpop.eup %10590  ;;  %v1244_v12 = vrot.slane %v1230_v0, %v10936_v35  ;;  %v1296_v16 = vcombine.high %v1220_v63, %v10932_v29  ;;  %v1303_v23 = vrot.slane %v1220_v63, %v10936_v35 }
 0x36d   : > { %v1727_v6 = vsel %vm1478_vm2, %v11119_v1, 0.0  ;;  %v1228_v8 = vpack.i.b16 %v1227_v3, %v1226_v5  ;;  %v1245_v9 = vcombine.high %v1224_v4, %v10932_v29  ;;  %v1252_v10 = vrot.slane %v1224_v4, %v10936_v35 }
 0x36e   : > { %1728 = vadd.xlane.f32.xlu1 %v1727_v6  ;;  %v1310_v38 = vrot.slane %v1296_v16, %v10936_v35 }
 0x36f   : > { %v1259_v19 = vrot.slane %v1245_v9, %v10936_v35  ;;  %v1260_v20 = vcombine.low %v1237_v7, %v1252_v10  ;;  %v1261_v21 = vcombine.high %v1237_v7, %v1252_v10  ;;  %v1311_v22 = vcombine.high %v1228_v8, %v10932_v29 }
 0x370   : > { %v11128_v17 = vpop.eup %10592  ;;  %v1318_v24 = vrot.slane %v1228_v8, %v10936_v35 }
 0x371   : > { %v1730_v37 = vsel %vm1478_vm2, %v11128_v17, 0.0  ;;  %v1268_v41 = vrot.slane %v1260_v20, %v10944_v43  ;;  %v1275_v47 = vrot.slane %v1261_v21, %v10944_v43  ;;  %v1276_v15 = vcombine.low %v1244_v12, %v1259_v19 }
 0x372   : > { %v1277_v25 = vcombine.high %v1244_v12, %v1259_v19  ;;  %1731 = vadd.xlane.f32.xlu0 %v1730_v37  ;;  %v1325_v18 = vrot.slane %v1311_v22, %v10936_v35  ;;  %v1326_v44 = vcombine.low %v1303_v23, %v1318_v24  ;;  %v1327_v49 = vcombine.high %v1303_v23, %v1318_v24 }
 0x373   : > { %v1284_v51 = vrot.slane %v1276_v15, %v10944_v43  ;;  %v1362_v52 = vcombine.low %v1268_v41, %v1275_v47  ;;  %v8868_v30 = vcombine.high %v1268_v41, %v1275_v47 }
 0x374   : > { %v1291_v27 = vrot.slane %v1277_v25, %v10944_v43  ;;  %v11142_v31 = vpop.eup %10594  ;;  %v1334_v34 = vrot.slane %v1326_v44, %v10944_v43  ;;  %v1341_v36 = vrot.slane %v1327_v49, %v10944_v43  ;;  %v1342_v39 = vcombine.low %v1310_v38, %v1325_v18 }
 0x375   : > { %v1343_v40 = vcombine.high %v1310_v38, %v1325_v18  ;;  %v1369_v46 = vrot.slane %v1362_v52, %v10936_v35  ;;  %v1377_v48 = vrot.slane %v8868_v30, %v10936_v35  ;;  %v1733_v62 = vsel %vm1478_vm2, %v11142_v31, 0.0 }
 0x376   : > { %v1378_v50 = vcombine.low %v1284_v51, %v1291_v27  ;;  %v8869_v53 = vcombine.high %v1284_v51, %v1291_v27  ;;  %v1350_v54 = vrot.slane %v1342_v39, %v10944_v43  ;;  %v1412_v56 = vcombine.low %v1334_v34, %v1341_v36  ;;  %1734 = vadd.xlane.f32.xlu0 %v1733_v62 }
 0x377   : > { %v1357_v55 = vrot.slane %v1343_v40, %v10944_v43  ;;  %v8870_v58 = vcombine.high %v1334_v34, %v1341_v36  ;;  %v1394_v63 = vcombine.low %v1369_v46, %v1377_v48 }
 0x378   : > { %v11150_v59 = vpop.eup %10596  ;;  %v1385_v60 = vrot.slane %v1378_v50, %v10936_v35  ;;  %v1393_v61 = vrot.slane %v8869_v53, %v10936_v35  ;;  %v1419_v0 = vrot.slane %v1412_v56, %v10936_v35 }
 0x379   : > { %v1427_v3 = vrot.slane %v8870_v58, %v10936_v35  ;;  %v1428_v4 = vcombine.low %v1350_v54, %v1357_v55  ;;  %v8871_v5 = vcombine.high %v1350_v54, %v1357_v55  ;;  %v1736_v6 = vsel %vm1478_vm2, %v11150_v59, 0.0 }
 0x37a   : > { %v1402_v7 = vcombine.low %v1385_v60, %v1393_v61  ;;  %1737 = vadd.xlane.f32.xlu1 %v1736_v6  ;;  %v1401_v12 = vrot.slane %v1394_v63, %v10944_v43 }
 0x37b   : > { %v1435_v8 = vrot.slane %v1428_v4, %v10936_v35  ;;  %v1443_v9 = vrot.slane %v8871_v5, %v10936_v35  ;;  %v1444_v10 = vcombine.low %v1419_v0, %v1427_v3 }
 0x37c   : > { %v1409_v16 = vrot.slane %v1402_v7, %v10944_v43 }
 0x37d   : > { %v1452_v19 = vcombine.low %v1435_v8, %v1443_v9  ;;  %v1451_v22 = vrot.slane %v1444_v10, %v10944_v43 }
 0x37e   : > { %v1410_v20 = vcombine.low %v1401_v12, %v1409_v16  ;;  %v1411_v21 = vcombine.high %v1401_v12, %v1409_v16 }
 0x37f   : > { %v1459_v23 = vrot.slane %v1452_v19, %v10944_v43 }
 0x380   : > { %v1466_v41 = vshrl.u32 %v1410_v20, 16  ;;  %v1474_v47 = vshrl.u32 %v1411_v21, 16 }
 0x381   : > { %v1460_v24 = vcombine.low %v1451_v22, %v1459_v23  ;;  %v1461_v37 = vcombine.high %v1451_v22, %v1459_v23 }
 0x383   : > { %v1464_v15 = vpack.i.b16 %v1460_v24, %v1410_v20  ;;  %v1467_v25 = vshrl.u32 %v1460_v24, 16  ;;  %v1472_v38 = vpack.i.b16 %v1461_v37, %v1411_v21  ;;  %v1475_v18 = vshrl.u32 %v1461_v37, 16 }
 0x385   : > { %10113 = vmatpush3.bf16.msra.mxu0 %v1464_v15  ;;  %v1468_v44 = vpack.i.b16 %v1467_v25, %v1466_v41  ;;  %v1476_v49 = vpack.i.b16 %v1475_v18, %v1474_v47 }
 0x386   : > { %10124 = vmatprep.subr.bf16.mxu0 %v10733_v42 }
 0x387   : > { %10119 = vmatpush3.bf16.msra.mxu1 %v1468_v44 }
 0x388   : > { %10130 = vmatprep.subr.bf16.mxu1 %v10733_v42 }
 0x3e7   : > { %v1717_v51 = vpop.xlane.xlu1 %1716 }
 0x3e8   : > { %10598 = vrcp.f32 %v1717_v51 }
 0x3eb   : > { %v1720_v27 = vpop.xlane.xlu0 %1719 }
 0x3ec   : > { %10600 = vrcp.f32 %v1720_v27 }
 0x3ef   : > { %v1723_v52 = vpop.xlane.xlu1 %1722 }
 0x3f0   : > { %10602 = vrcp.f32 %v1723_v52 }
 0x3f3   : > { %v1726_v30 = vpop.xlane.xlu0 %1725 }
 0x3f4   : > { %10604 = vrcp.f32 %v1726_v30 }
 0x3f5   : > { %v10599_v34 = vpop.eup %10598 }
 0x3f6   : > { %v1747_v40 = vmul.f32 %v10599_v34, %v11102_v26 }
 0x3f7   : > { %v1729_v36 = vpop.xlane.xlu1 %1728 }
 0x3f8   : > { %10606 = vrcp.f32 %v1729_v36 }
 0x3f9   : > { %v10601_v39 = vpop.eup %10600 }
 0x3fa   : > { %v1748_v46 = vmul.f32 %v10601_v39, %v11106_v33 }
 0x3fb   : > { %v1732_v48 = vpop.xlane.xlu0 %1731 }
 0x3fc   : > { %10608 = vrcp.f32 %v1732_v48  ;;  %v1755_v50 = vpack.c.bf16 %v1748_v46, %v1747_v40 }
 0x3fd   : > { %v10603_v53 = vpop.eup %10602 }
 0x3fe   : > { %10115 = vmatmul.mubr.msk.bf16.vlgmr.msra.gmra.mxu0 %vm1478_vm2, %v1755_v50  ;;  %v1749_v56 = vmul.f32 %v10603_v53, %v11110_v45 }
 0x3ff   : > { %10125 = vmatpush3.bf16.msra.mxu0 %v1472_v38  ;;  %10126 = vmatprep.mubr.msk.bf16.mxu0 %vm10734_vm1, %v10733_v42  ;;  %v1735_v55 = vpop.xlane.xlu0 %1734 }
 0x400   : > { %10136 = vmatprep.subr.bf16.mxu0 %v10733_v42  ;;  %10610 = vrcp.f32 %v1735_v55 }
 0x401   : > { %v10605_v54 = vpop.eup %10604 }
 0x402   : > { %v1750_v26 = vmul.f32 %v10605_v54, %v11114_v57 }
 0x403   : > { %v1738_v33 = vpop.xlane.xlu1 %1737 }
 0x404   : > { %10612 = vrcp.f32 %v1738_v33  ;;  %v1756_v58 = vpack.c.bf16 %v1750_v26, %v1749_v56 }
 0x405   : > { %v10607_v60 = vpop.eup %10606 }
 0x406   : > { %10121 = vmatmul.mubr.msk.bf16.vlgmr.msra.gmra.mxu1 %vm1478_vm2, %v1756_v58  ;;  %v1751_v62 = vmul.f32 %v10607_v60, %v11119_v1  ;;  %v10306_v1 = vld [vmem:[%s13093_s4 + $0x18] sm:$0xff]  }
 0x407   : > { %10131 = vmatpush3.bf16.msra.mxu1 %v1476_v49  ;;  %10132 = vmatprep.mubr.msk.bf16.mxu1 %vm10734_vm1, %v10733_v42 }
 0x409   : > { %v10609_v61 = vpop.eup %10608 }
 0x40a   : > { %v1752_v63 = vmul.f32 %v10609_v61, %v11128_v17  ;;  %v10307_v17 = vld [vmem:[%s13093_s4 + $0x10] sm:$0xff]  }
 0x40c   : > { %v1757_v0 = vpack.c.bf16 %v1752_v63, %v1751_v62 }
 0x40d   : > { %v10611_v45 = vpop.eup %10610 }
 0x40e   : > { %10127 = vmatmul.mubr.msk.bf16.vlgmr.msra.gmra.mxu0 %vm1478_vm2, %v1757_v0  ;;  %v1753_v3 = vmul.f32 %v10611_v45, %v11142_v31 }
 0x40f   : > { %10144 = vmatprep.mubr.msk.bf16.mxu0 %vm10734_vm1, %v10733_v42  ;;  %10137 = vmatpush3.bf16.msra.mxu0 %v10306_v1 }
 0x410   : > { %10138 = vmatprep.subr.bf16.mxu0 %v10733_v42 }
 0x411   : > { %v10613_v57 = vpop.eup %10612 }
 0x412   : > { %v1754_v4 = vmul.f32 %v10613_v57, %v11150_v59 }
 0x413   : > { %10139 = vmatpush3.bf16.msra.mxu0 %v10307_v17 }
 0x414   : > { %v1758_v5 = vpack.c.bf16 %v1754_v4, %v1753_v3  ;;  %10140 = vmatprep.subr.bf16.mxu0 %v10733_v42 }
 0x416   : > { %10133 = vmatmul.mubr.msk.bf16.vlgmr.msra.gmra.mxu1 %vm1478_vm2, %v1758_v5 }
 0x417   : > { %2524 = vmatprep.mubr.bf16.mxu1 %v10726_v2 }
 0x4be   : > { %v1796_v31 = vpop.f32.mrf.mxu0 }
 0x4c0   : > { %v10116_v59 = vpop.f32.mrf.mxu0 }
 0x4c2   : > { %v1799_v6 = vpop.f32.mrf.mxu0 }
 0x4c4   : > { %v10117_v7 = vpop.f32.mrf.mxu0 }
 0x4c6   : > { %v1840_v8 = vpop.f32.mrf.mxu1 }
 0x4c8   : > { %v10122_v9 = vpop.f32.mrf.mxu1 }
 0x4ca   : > { %v1843_v10 = vpop.f32.mrf.mxu1 }
 0x4cc   : > { %v10123_v12 = vpop.f32.mrf.mxu1 }
 0x4ce   : > { %v1884_v16 = vpop.f32.mrf.mxu0 }
 0x4cf   : > { %v1935_v22 = vcombine.low %v1796_v31, %v1884_v16  ;;  %v1936_v23 = vcombine.high %v1796_v31, %v1884_v16 }
 0x4d0   : > { %v10128_v19 = vpop.f32.mrf.mxu0 }
 0x4d1   : > { %v1943_v15 = vrot.slane %v1935_v22, %v10936_v35  ;;  %v1950_v25 = vrot.slane %v1936_v23, %v10936_v35 }
 0x4d2   : > { %v1887_v20 = vpop.f32.mrf.mxu0 }
 0x4d3   : > { %v2003_v44 = vcombine.low %v1799_v6, %v1887_v20  ;;  %v2004_v49 = vcombine.high %v1799_v6, %v1887_v20  ;;  %v10308_v20 = vld [vmem:[%s13093_s4 + $0x8] sm:$0xff]  }
 0x4d4   : > { %v10129_v21 = vpop.f32.mrf.mxu0  ;;  %10141 = vmatpush3.bf16.msra.mxu0 %v10308_v20 }
 0x4d5   : > { %v2011_v54 = vrot.slane %v2003_v44, %v10936_v35  ;;  %v2018_v55 = vrot.slane %v2004_v49, %v10936_v35  ;;  %10142 = vmatprep.subr.bf16.mxu0 %v10733_v42 }
 0x4d6   : > { %v1928_v24 = vpop.f32.mrf.mxu1 }
 0x4d7   : > { %v1951_v37 = vcombine.low %v1840_v8, %v1928_v24  ;;  %v1952_v41 = vcombine.high %v1840_v8, %v1928_v24 }
 0x4d8   : > { %v10134_v47 = vpop.f32.mrf.mxu1 }
 0x4d9   : > { %v1959_v38 = vrot.slane %v1951_v37, %v10936_v35  ;;  %v1966_v18 = vrot.slane %v1952_v41, %v10936_v35 }
 0x4da   : > { %v1931_v51 = vpop.f32.mrf.mxu1 }
 0x4db   : > { %v1967_v27 = vcombine.low %v1943_v15, %v1959_v38  ;;  %v1968_v52 = vcombine.high %v1943_v15, %v1959_v38  ;;  %v1983_v30 = vcombine.low %v1950_v25, %v1966_v18  ;;  %v1984_v34 = vcombine.high %v1950_v25, %v1966_v18 }
 0x4dc   : > { %v2019_v36 = vcombine.low %v1843_v10, %v1931_v51  ;;  %v2020_v39 = vcombine.high %v1843_v10, %v1931_v51  ;;  %v10135_v40 = vpop.f32.mrf.mxu1  ;;  %v10309_v51 = vld [vmem:[%s13093_s4] sm:$0xff]  }
 0x4dd   : > { %v1975_v46 = vrot.slane %v1967_v27, %v10944_v43  ;;  %v1982_v48 = vrot.slane %v1968_v52, %v10944_v43  ;;  %v1991_v50 = vrot.slane %v1983_v30, %v10944_v43  ;;  %v1998_v53 = vrot.slane %v1984_v34, %v10944_v43  ;;  %10143 = vmatpush3.bf16.msra.mxu0 %v10309_v51  ;;  %v2383_v51 = vld [vmem:[%s13094_s5 + $0x180] sm:$0xff] }
 0x4de   : > { %v2027_v56 = vrot.slane %v2019_v36, %v10936_v35  ;;  %v2034_v26 = vrot.slane %v2020_v39, %v10936_v35 }
 0x4df   : > { %v2071_v33 = vcombine.low %v1975_v46, %v1982_v48  ;;  %v8880_v58 = vcombine.high %v1975_v46, %v1982_v48  ;;  %v2087_v60 = vcombine.low %v1991_v50, %v1998_v53  ;;  %v8881_v61 = vcombine.high %v1991_v50, %v1998_v53 }
 0x4e0   : > { %v2035_v62 = vcombine.low %v2011_v54, %v2027_v56  ;;  %v2036_v63 = vcombine.high %v2011_v54, %v2027_v56  ;;  %v2051_v0 = vcombine.low %v2018_v55, %v2034_v26  ;;  %v2052_v45 = vcombine.high %v2018_v55, %v2034_v26 }
 0x4e1   : > { %v2078_v57 = vrot.slane %v2071_v33, %v10936_v35  ;;  %v2086_v3 = vrot.slane %v8880_v58, %v10936_v35  ;;  %v2094_v4 = vrot.slane %v2087_v60, %v10936_v35  ;;  %v2102_v5 = vrot.slane %v8881_v61, %v10936_v35 }
 0x4e2   : > { %v2043_v1 = vrot.slane %v2035_v62, %v10944_v43  ;;  %v2050_v17 = vrot.slane %v2036_v63, %v10944_v43  ;;  %v2059_v31 = vrot.slane %v2051_v0, %v10944_v43  ;;  %v2066_v59 = vrot.slane %v2052_v45, %v10944_v43 }
 0x4e3   : > { %v2104_v6 = vcombine.high %v2078_v57, %v2086_v3  ;;  %v2120_v7 = vcombine.high %v2094_v4, %v2102_v5  ;;  %v2103_v8 = vcombine.low %v2078_v57, %v2086_v3  ;;  %v2119_v9 = vcombine.low %v2094_v4, %v2102_v5 }
 0x4e4   : > { %v2139_v10 = vcombine.low %v2043_v1, %v2050_v17  ;;  %v8882_v12 = vcombine.high %v2043_v1, %v2050_v17  ;;  %v2155_v16 = vcombine.low %v2059_v31, %v2066_v59  ;;  %v8883_v19 = vcombine.high %v2059_v31, %v2066_v59  ;;  %v8884_v59 = vld [vmem:[%s13097_s8] ss:$0 sm:$0xff] }
 0x4e5   : > { %v2111_v21 = vrot.slane %v2103_v8, %v10944_v43  ;;  %v2127_v22 = vrot.slane %v2119_v9, %v10944_v43  ;;  %v2118_v47 = vrot.slane %v2104_v6, %v10944_v43  ;;  %v2134_v15 = vrot.slane %v2120_v7, %v10944_v43  ;;  %v10662_v9 = vld [vmem:[%s10904_s30] sm:$0xff] }
 0x4e6   : > { %v2146_v23 = vrot.slane %v2139_v10, %v10936_v35  ;;  %v2154_v24 = vrot.slane %v8882_v12, %v10936_v35  ;;  %v2162_v37 = vrot.slane %v2155_v16, %v10936_v35  ;;  %v2170_v41 = vrot.slane %v8883_v19, %v10936_v35 }
 0x4e7   : > { %v2135_v25 = vcombine.low %v2111_v21, %v2127_v22  ;;  %v2137_v36 = vcombine.low %v2118_v47, %v2134_v15  ;;  %v2136_v40 = vcombine.high %v2111_v21, %v2127_v22  ;;  %v2138_v55 = vcombine.high %v2118_v47, %v2134_v15  ;;  %v10663_v21 = vld [vmem:[%s10904_s30 + $0x8] sm:$0xff]  ;;  %s8846_s30 = sshll.u32 %s511_s18, 4 }
 0x4e8   : > { %v2172_v38 = vcombine.high %v2146_v23, %v2154_v24  ;;  %v2188_v18 = vcombine.high %v2162_v37, %v2170_v41  ;;  %v2171_v44 = vcombine.low %v2146_v23, %v2154_v24  ;;  %v2187_v49 = vcombine.low %v2162_v37, %v2170_v41 }
 0x4ea   : > { %v2186_v27 = vrot.slane %v2172_v38, %v10944_v43  ;;  %v2202_v52 = vrot.slane %v2188_v18, %v10944_v43  ;;  %v2179_v30 = vrot.slane %v2171_v44, %v10944_v43  ;;  %v2195_v34 = vrot.slane %v2187_v49, %v10944_v43 }
 0x4ec   : > { %v2205_v39 = vcombine.low %v2186_v27, %v2202_v52  ;;  %v2204_v46 = vcombine.high %v2179_v30, %v2195_v34  ;;  %v2203_v48 = vcombine.low %v2179_v30, %v2195_v34  ;;  %v2206_v54 = vcombine.high %v2186_v27, %v2202_v52  ;;  %v2385_v27 = vld [vmem:[%s13094_s5 + $0x1c0] sm:$0xff]  ;;  %v2384_v52 = vld [vmem:[%s13094_s5 + $0x188] sm:$0xff] }
 0x4ed   : > { %v8905_v30 = vcombine.high %v2383_v51, %v2385_v27  ;;  %v2386_v34 = vld [vmem:[%s13094_s5 + $0x1c8] sm:$0xff] }
 0x4ee   : > { %v10269_v50 = vpack.i.bf16 %v2205_v39, %v2137_v36  ;;  %v10264_v53 = vpack.i.bf16 %v2204_v46, %v2136_v40  ;;  %v10274_v56 = vpack.i.bf16 %v2206_v54, %v2138_v55  ;;  %v8904_v36 = vcombine.low %v2383_v51, %v2385_v27  ;;  %v2379_v46 = vld [vmem:[%s13094_s5 + $0x100] sm:$0xff]  ;;  %v2382_v54 = vld [vmem:[%s13094_s5 + $0x148] sm:$0xff] }
 0x4ef   : > { %v8906_v39 = vcombine.low %v2384_v52, %v2386_v34  ;;  %v8907_v40 = vcombine.high %v2384_v52, %v2386_v34  ;;  %2500 = vmatprep.subr.bf16.mxu1 %v8905_v30  ;;  %v8891_v51 = vld [vmem:[%s13101_s12] ss:$0 sm:$0xff]  ;;  %v2662_v52 = vld [vmem:[%s13094_s5 + $0x110] sm:$0xff]  ;;  %v2663_v30 = vld [vmem:[%s13094_s5 + $0x118] sm:$0xff] }
 0x4f0   : > { %10270 = vrot.lane.b32.xlu1 %v10269_v50, %s13113_s26  ;;  %10265 = vrot.lane.b32.xlu0 %v10264_v53, %s13112_s16  ;;  %v2380_v50 = vld [vmem:[%s13094_s5 + $0x108] sm:$0xff]  ;;  %s13049_s26 = scalar_lea.sflag [#allocation3], %s511_s18  ;;  %s10739_s16 = smov [#allocation2]  }
 0x4f1   : > { %2543 = vmatprep.subr.bf16.mxu0 %v8907_v40  ;;  %2501 = vmatpush1.bf16.msra.mxu1 %v8904_v36 }
 0x4f4   : > { %10275 = vrot.lane.b32.xlu1 %v10274_v56, %s13111_s17  ;;  %v8902_v56 = vcombine.low %v2380_v50, %v2382_v54  ;;  %s13133_s17 = smov 64  }
 0x562   : > { %v10271_v26 = vpop.permute.xlu1 %10270  ;;  %v10266_v33 = vpop.permute.xlu0 %10265 }
 0x563   : > { %v10268_v58 = vunpack.i.h.bf16 %v10266_v33  ;;  %v10267_v60 = vunpack.i.l.bf16 %v10266_v33  ;;  %v10273_v61 = vunpack.i.h.bf16 %v10271_v26  ;;  %v10272_v62 = vunpack.i.l.bf16 %v10271_v26  ;;  %v2375_v33 = vld [vmem:[%s13094_s5 + $0x80] sm:$0xff] }
 0x564   : > { %v8903_v26 = vcombine.high %v2380_v50, %v2382_v54  ;;  %v2660_v50 = vld [vmem:[%s13094_s5 + $0xd0] sm:$0xff]  ;;  %v2661_v54 = vld [vmem:[%s13094_s5 + $0xd8] sm:$0xff] }
 0x565   : > { %v2231_v63 = vsel %vm1478_vm2, %v2135_v25, %v10267_v60  ;;  %v2232_v0 = vsel %vm1478_vm2, %v2203_v48, %v10268_v58  ;;  %v2381_v48 = vld [vmem:[%s13094_s5 + $0x140] sm:$0xff]  ;;  %v2376_v60 = vld [vmem:[%s13094_s5 + $0x88] sm:$0xff] }
 0x566   : > { %v10276_v45 = vpop.permute.xlu1 %10275  ;;  %v2234_v4 = vsel %vm2233_vm9, %v2231_v63, %v10272_v62  ;;  %v2235_v5 = vsel %vm2233_vm9, %v2232_v0, %v10273_v61  ;;  %v8901_v53 = vcombine.high %v2379_v46, %v2381_v48  ;;  %v8900_v55 = vcombine.low %v2379_v46, %v2381_v48  ;;  %v2377_v58 = vld [vmem:[%s13094_s5 + $0xc0] sm:$0xff]  ;;  %v2378_v62 = vld [vmem:[%s13094_s5 + $0xc8] sm:$0xff]  ;;  %v2658_v48 = vld [vmem:[%s13094_s5 + $0x90] sm:$0xff] }
 0x567   : > { %v10278_v57 = vunpack.i.h.bf16 %v10276_v45  ;;  %v10277_v3 = vunpack.i.l.bf16 %v10276_v45  ;;  %v8897_v61 = vcombine.high %v2375_v33, %v2377_v58  ;;  %v8896_v63 = vcombine.low %v2375_v33, %v2377_v58  ;;  %v2654_v58 = vld [vmem:[%s13094_s5 + $0x10] sm:$0xff] }
 0x568   : > { %2502 = vmatprep.subr.bf16.mxu1 %v8901_v53  ;;  %v8898_v0 = vcombine.low %v2376_v60, %v2378_v62  ;;  %v8899_v45 = vcombine.high %v2376_v60, %v2378_v62  ;;  %v2659_v53 = vld [vmem:[%s13094_s5 + $0x98] sm:$0xff]  ;;  %v2656_v60 = vld [vmem:[%s13094_s5 + $0x50] sm:$0xff] }
 0x569   : > { %v2237_v1 = vsel %vm2236_vm10, %v2234_v4, %v10277_v3  ;;  %v2238_v17 = vsel %vm2236_vm10, %v2235_v5, %v10278_v57  ;;  %2503 = vmatpush1.bf16.msra.mxu1 %v8900_v55  ;;  %v2371_v57 = vld [vmem:[%s13094_s5] sm:$0xff]  ;;  %v2372_v4 = vld [vmem:[%s13094_s5 + $0x8] sm:$0xff]  ;;  %v8917_v33 = vcombine.high %v2659_v53, %v2661_v54  ;;  %v2657_v62 = vld [vmem:[%s13094_s5 + $0x58] sm:$0xff] }
 0x56a   : > { %v2239_v31 = vpack.c.bf16 %v2238_v17, %v2237_v1  ;;  %2504 = vmatprep.subr.bf16.mxu1 %v8897_v61  ;;  %v2373_v3 = vld [vmem:[%s13094_s5 + $0x40] sm:$0xff]  ;;  %v2374_v1 = vld [vmem:[%s13094_s5 + $0x48] sm:$0xff]  ;;  %v2655_v61 = vld [vmem:[%s13094_s5 + $0x18] sm:$0xff] }
 0x56b   : > { %v8893_v5 = vcombine.high %v2371_v57, %v2373_v3  ;;  %v8892_v17 = vcombine.low %v2371_v57, %v2373_v3  ;;  %v8913_v57 = vcombine.high %v2655_v61, %v2657_v62  ;;  %v8910_v3 = vcombine.low %v2654_v58, %v2656_v60 }
 0x56c   : > { %10145 = vmatmul.mubr.msk.bf16.vlgmr.msra.gmra.mxu0 %vm617_vm0, %v2239_v31  ;;  %v8894_v31 = vcombine.low %v2372_v4, %v2374_v1 }
 0x56d   : > { %2567 = vmatprep.mubr.bf16.mxu0 %v10726_v2  ;;  %2544 = vmatpush1.bf16.msra.mxu0 %v8906_v39 }
 0x56e   : > { %2545 = vmatprep.subr.bf16.mxu0 %v8903_v26  ;;  %2505 = vmatpush1.bf16.msra.mxu1 %v8896_v63  ;;  %v8915_v26 = vcombine.high %v2658_v48, %v2660_v50  ;;  %v8914_v63 = vcombine.low %v2658_v48, %v2660_v50  ;;  %v10343_v48 = vld [vmem:[%s13095_s6 + $0xf8] sm:$0xff]  }
 0x56f   : > { %2506 = vmatprep.subr.bf16.mxu1 %v8893_v5  ;;  %v10310_v5 = vld [vmem:[%s13095_s6 + $0x178] sm:$0xff]  }
 0x571   : > { %2546 = vmatpush1.bf16.msra.mxu0 %v8902_v56 }
 0x572   : > { %2547 = vmatprep.subr.bf16.mxu0 %v8899_v45  ;;  %2507 = vmatpush1.bf16.msra.mxu1 %v8892_v17  ;;  %v8911_v45 = vcombine.high %v2654_v58, %v2656_v60  ;;  %v10312_v17 = vld [vmem:[%s13095_s6 + $0x138] sm:$0xff]   ;;  %v11496_v60 = vsub.s32 3, %v10912_v13 }
 0x575   : > { %2548 = vmatpush1.bf16.msra.mxu0 %v8898_v0  ;;  %v8916_v0 = vcombine.low %v2659_v53, %v2661_v54 }
 0x62c   : > { %v2316_v6 = vpop.f32.mrf.mxu0 }
 0x62d   : > { %v2317_v7 = vadd.f32 %v8884_v59, %v2316_v6  ;;  %v2666_v6 = vld [vmem:[%s13094_s5 + $0x190] sm:$0xff] }
 0x62e   : > { %v10146_v8 = vpop.f32.mrf.mxu0 }
 0x62f   : > { %v2323_v10 = vadd.f32 %v10662_v9, %v2317_v7  ;;  %v2668_v7 = vld [vmem:[%s13094_s5 + $0x1d0] sm:$0xff]  ;;  %v2667_v8 = vld [vmem:[%s13094_s5 + $0x198] sm:$0xff] }
 0x630   : > { %v2319_v12 = vpop.f32.mrf.mxu0  ;;  %v8922_v9 = vcombine.low %v2666_v6, %v2668_v7 }
 0x631   : > { %v2320_v16 = vadd.f32 %v8884_v59, %v2319_v12  ;;  %v2325_v19 = vsel %vm617_vm0, %v2323_v10, 0.0  ;;  %v8895_v59 = vcombine.high %v2372_v4, %v2374_v1  ;;  %v2669_v12 = vld [vmem:[%s13094_s5 + $0x1d8] sm:$0xff]  ;;  %v8912_v4 = vcombine.low %v2655_v61, %v2657_v62  ;;  %v2670_v61 = vld [vmem:[%s13098_s9 + $0x4] sm:$0xf] }
 0x632   : > { %2326 = vadd.xlane.f32.xlu0 %v2325_v19  ;;  %v10147_v20 = vpop.f32.mrf.mxu0  ;;  %v8925_v19 = vcombine.high %v2667_v8, %v2669_v12  ;;  %v10311_v1 = vld [vmem:[%s13095_s6 + $0x1f8] sm:$0xff]   ;;  %v11502_v62 = vsub.s32 2, %v10912_v13 }
 0x633   : > { %v2324_v22 = vadd.f32 %v10663_v21, %v2320_v16  ;;  %2549 = vmatprep.subr.bf16.mxu0 %v8895_v59  ;;  %v8924_v16 = vcombine.low %v2667_v8, %v2669_v12  ;;  %v10314_v59 = vld [vmem:[%s13095_s6 + $0x170] sm:$0xff]   ;;  %v10320_v12 = vld [vmem:[%s13095_s6 + $0x128] sm:$0xff]  }
 0x634   : > { %2550 = vmatpush1.bf16.msra.mxu0 %v8894_v31  ;;  %v10313_v31 = vld [vmem:[%s13095_s6 + $0x1b8] sm:$0xff]   ;;  %v10317_v8 = vld [vmem:[%s13095_s6 + $0x1b0] sm:$0xff]  }
 0x635   : > { %v2328_v23 = vsel %vm617_vm0, %v2324_v22, 0.0  ;;  %2823 = vmatprep.subr.bf16.mxu0 %v8925_v19  ;;  %v10322_v19 = vld [vmem:[%s13095_s6 + $0x160] sm:$0xff]  }
 0x636   : > { %2329 = vadd.xlane.f32.xlu1 %v2328_v23 }
 0x6bb   : > { %v2327_v24 = vpop.xlane.xlu0 %2326 }
 0x6bc   : > { %v2332_v37 = vmul.f32 0.015625, %v2327_v24 }
 0x6be   : > { %v11253_v41 = vsub.f32 %v2323_v10, %v2332_v37  ;;  %v8923_v10 = vcombine.high %v2666_v6, %v2668_v7  ;;  %v10315_v6 = vld [vmem:[%s13095_s6 + $0x1f0] sm:$0xff]  }
 0x6bf   : > { %v2330_v47 = vpop.xlane.xlu1 %2329  ;;  %v10316_v7 = vld [vmem:[%s13095_s6 + $0x130] sm:$0xff]  }
 0x6c0   : > { %v2333_v15 = vmul.f32 0.015625, %v2330_v47  ;;  %v2336_v25 = vmul.f32 %v11253_v41, %v11253_v41  ;;  %2780 = vmatprep.subr.bf16.mxu1 %v8923_v10  ;;  %v10319_v10 = vld [vmem:[%s13095_s6 + $0x1e8] sm:$0xff]  }
 0x6c2   : > { %v11257_v38 = vsub.f32 %v2324_v22, %v2333_v15  ;;  %v2338_v18 = vsel %vm617_vm0, %v2336_v25, 0.0  ;;  %v8890_v25 = vld [vmem:[%s13100_s11] ss:$0 sm:$0xff] }
 0x6c3   : > { %2339 = vadd.xlane.f32.xlu0 %v2338_v18 }
 0x6c4   : > { %v2337_v44 = vmul.f32 %v11257_v38, %v11257_v38 }
 0x6c6   : > { %v2341_v49 = vsel %vm617_vm0, %v2337_v44, 0.0 }
 0x6c7   : > { %2342 = vadd.xlane.f32.xlu0 %v2341_v49 }
 0x74c   : > { %v2340_v20 = vpop.xlane.xlu0 %2339 }
 0x74d   : > { %v2344_v21 = vmul.f32 0.015625, %v2340_v20  ;;  %v10323_v20 = vld [vmem:[%s13095_s6 + $0x1e0] sm:$0xff]  }
 0x74f   : > { %v2346_v22 = vadd.f32 1e-05, %v2344_v21  ;;  %v10324_v21 = vld [vmem:[%s13095_s6 + $0x120] sm:$0xff]  }
 0x750   : > { %v2343_v23 = vpop.xlane.xlu0 %2342 }
 0x751   : > { %10614 = vrsqrt.f32 %v2346_v22  ;;  %v2345_v24 = vmul.f32 0.015625, %v2343_v23  ;;  %v10325_v22 = vld [vmem:[%s13095_s6 + $0x1a0] sm:$0xff]   ;;  %v10326_v23 = vld [vmem:[%s13095_s6 + $0x158] sm:$0xff]  }
 0x753   : > { %v2347_v37 = vadd.f32 1e-05, %v2345_v24  ;;  %v10327_v24 = vld [vmem:[%s13095_s6 + $0x1d8] sm:$0xff]  }
 0x755   : > { %10616 = vrsqrt.f32 %v2347_v37  ;;  %v10328_v37 = vld [vmem:[%s13095_s6 + $0x118] sm:$0xff]  }
 0x75e   : > { %v10615_v47 = vpop.eup %10614 }
 0x75f   : > { %v2350_v15 = vmul.f32 %v10615_v47, %v11253_v41  ;;  %v2664_v41 = vld [vmem:[%s13094_s5 + $0x150] sm:$0xff]  ;;  %v10329_v47 = vld [vmem:[%s13095_s6 + $0x198] sm:$0xff]  }
 0x760   : > { %v8919_v40 = vcombine.high %v2662_v52, %v2664_v41  ;;  %v8918_v55 = vcombine.low %v2662_v52, %v2664_v41  ;;  %v10337_v52 = vld [vmem:[%s13095_s6 + $0x188] sm:$0xff]   ;;  %v10338_v41 = vld [vmem:[%s13095_s6 + $0x140] sm:$0xff]  }
 0x761   : > { %v2359_v44 = vmul.f32 %v8890_v25, %v2350_v15  ;;  %v10330_v15 = vld [vmem:[%s13095_s6 + $0x150] sm:$0xff]  }
 0x762   : > { %v10617_v18 = vpop.eup %10616 }
 0x763   : > { %v2351_v49 = vmul.f32 %v10617_v18, %v11257_v38  ;;  %v2665_v38 = vld [vmem:[%s13094_s5 + $0x158] sm:$0xff]  ;;  %v11343_v34 = vadd.f32 %v8891_v51, %v2359_v44  ;;  %v10332_v18 = vld [vmem:[%s13095_s6 + $0x110] sm:$0xff]  }
 0x764   : > { %v8921_v46 = vcombine.high %v2663_v30, %v2665_v38  ;;  %v8920_v56 = vcombine.low %v2663_v30, %v2665_v38  ;;  %v10333_v44 = vld [vmem:[%s13095_s6 + $0x190] sm:$0xff]   ;;  %v10339_v30 = vld [vmem:[%s13095_s6 + $0x1c0] sm:$0xff]  }
 0x765   : > { %v2360_v27 = vmul.f32 %v8890_v25, %v2351_v49  ;;  %v10331_v25 = vld [vmem:[%s13095_s6 + $0x1d0] sm:$0xff]   ;;  %v10334_v49 = vld [vmem:[%s13095_s6 + $0x148] sm:$0xff]   ;;  %v10340_v38 = vld [vmem:[%s13095_s6 + $0x100] sm:$0xff]  }
 0x767   : > { %v11345_v36 = vadd.f32 %v8891_v51, %v2360_v27  ;;  %v10335_v51 = vld [vmem:[%s13095_s6 + $0x1c8] sm:$0xff]  }
 0x768   : > { %v10336_v27 = vld [vmem:[%s13095_s6 + $0x108] sm:$0xff]  }
 0x769   : > { %v11349_v39 = vpack.c.bf16 %v11345_v36, %v11343_v34 }
 0x76b   : > { %8908 = vmatmul.mubr.msk.bf16.vlgmr.msra.gmra.mxu1 %vm617_vm0, %v11349_v39  ;;  %8909 = vmatmul.mubr.msk.bf16.vlgmr.msra.gmra.mxu0 %vm617_vm0, %v11349_v39 }
 0x76c   : > { %2781 = vmatpush1.bf16.msra.mxu1 %v8922_v9  ;;  %2824 = vmatpush1.bf16.msra.mxu0 %v8924_v16  ;;  %v10318_v9 = vld [vmem:[%s13095_s6 + $0x168] sm:$0xff]  }
 0x76d   : > { %2782 = vmatprep.subr.bf16.mxu1 %v8919_v40  ;;  %2825 = vmatprep.subr.bf16.mxu0 %v8921_v46  ;;  %v10321_v16 = vld [vmem:[%s13095_s6 + $0x1a8] sm:$0xff]   ;;  %v10341_v40 = vld [vmem:[%s13095_s6 + $0x180] sm:$0xff]   ;;  %v10342_v46 = vld [vmem:[%s13095_s6 + $0x78] sm:$0xff]  }
 0x76e   : > { %2804 = vmatprep.mubr.bf16.mxu1 %v10726_v2  ;;  %2847 = vmatprep.mubr.bf16.mxu0 %v10726_v2 }
 0x770   : > { %2783 = vmatpush1.bf16.msra.mxu1 %v8918_v55  ;;  %2826 = vmatpush1.bf16.msra.mxu0 %v8920_v56 }
 0x771   : > { %2784 = vmatprep.subr.bf16.mxu1 %v8915_v26  ;;  %2827 = vmatprep.subr.bf16.mxu0 %v8917_v33 }
 0x774   : > { %2785 = vmatpush1.bf16.msra.mxu1 %v8914_v63  ;;  %2828 = vmatpush1.bf16.msra.mxu0 %v8916_v0 }
 0x775   : > { %2786 = vmatprep.subr.bf16.mxu1 %v8911_v45  ;;  %2829 = vmatprep.subr.bf16.mxu0 %v8913_v57  ;;  %v2679_v45 = vrot.slane %v2670_v61, %v11094_v11  ;;  %v2687_v57 = vrot.slane %v2670_v61, %v11496_v60 }
 0x778   : > { %2787 = vmatpush1.bf16.msra.mxu1 %v8910_v3  ;;  %2830 = vmatpush1.bf16.msra.mxu0 %v8912_v4  ;;  %v2675_v3 = vrot.slane %v2670_v61, %v10915_v14  ;;  %v2683_v4 = vrot.slane %v2670_v61, %v11502_v62  ;;  %v10346_v61 = vld [vmem:[%s13095_s6 + $0x70] sm:$0xff]  }
 0x779   : > { %9715 = vmatprep.subr.bf16.mxu1 %v10310_v5  ;;  %9737 = vmatprep.subr.bf16.mxu0 %v10311_v1 }
 0x77b   : > { %8926 = vmatmul.mubr.msk.bf16.vlgmr.msra.gmra.mxu1 %vm617_vm0, %v11349_v39  ;;  %8927 = vmatmul.mubr.msk.bf16.vlgmr.msra.gmra.mxu0 %vm617_vm0, %v11349_v39 }
 0x77c   : > { %9716 = vmatpush3.bf16.msra.mxu1 %v10312_v17  ;;  %9738 = vmatpush3.bf16.msra.mxu0 %v10313_v31  ;;  %v11511_v17 = vld [vmem:[%s13098_s9] sm:$0xf] }
 0x77d   : > { %9717 = vmatprep.subr.bf16.mxu1 %v10314_v59  ;;  %9739 = vmatprep.subr.bf16.mxu0 %v10315_v6  ;;  %v2396_v13 = vrot.slane %v11511_v17, %v11094_v11  ;;  %v2404_v31 = vrot.slane %v11511_v17, %v11496_v60 }
 0x780   : > { %9718 = vmatpush3.bf16.msra.mxu1 %v10316_v7  ;;  %9740 = vmatpush3.bf16.msra.mxu0 %v10317_v8 }
 0x781   : > { %9719 = vmatprep.subr.bf16.mxu1 %v10318_v9  ;;  %9741 = vmatprep.subr.bf16.mxu0 %v10319_v10 }
 0x784   : > { %9720 = vmatpush3.bf16.msra.mxu1 %v10320_v12  ;;  %9742 = vmatpush3.bf16.msra.mxu0 %v10321_v16 }
 0x785   : > { %9721 = vmatprep.subr.bf16.mxu1 %v10322_v19  ;;  %9743 = vmatprep.subr.bf16.mxu0 %v10323_v20 }
 0x788   : > { %9722 = vmatpush3.bf16.msra.mxu1 %v10324_v21  ;;  %9744 = vmatpush3.bf16.msra.mxu0 %v10325_v22 }
 0x789   : > { %9723 = vmatprep.subr.bf16.mxu1 %v10326_v23  ;;  %9745 = vmatprep.subr.bf16.mxu0 %v10327_v24 }
 0x78c   : > { %9724 = vmatpush3.bf16.msra.mxu1 %v10328_v37  ;;  %9746 = vmatpush3.bf16.msra.mxu0 %v10329_v47 }
 0x78d   : > { %9725 = vmatprep.subr.bf16.mxu1 %v10330_v15  ;;  %9747 = vmatprep.subr.bf16.mxu0 %v10331_v25 }
 0x790   : > { %9726 = vmatpush3.bf16.msra.mxu1 %v10332_v18  ;;  %9748 = vmatpush3.bf16.msra.mxu0 %v10333_v44 }
 0x791   : > { %9727 = vmatprep.subr.bf16.mxu1 %v10334_v49  ;;  %9749 = vmatprep.subr.bf16.mxu0 %v10335_v51 }
 0x794   : > { %9728 = vmatpush3.bf16.msra.mxu1 %v10336_v27  ;;  %9750 = vmatpush3.bf16.msra.mxu0 %v10337_v52 }
 0x795   : > { %9729 = vmatprep.subr.bf16.mxu1 %v10338_v41  ;;  %9751 = vmatprep.subr.bf16.mxu0 %v10339_v30 }
 0x798   : > { %9730 = vmatpush3.bf16.msra.mxu1 %v10340_v38  ;;  %9752 = vmatpush3.bf16.msra.mxu0 %v10341_v40 }
 0x799   : > { %9759 = vmatprep.subr.bf16.mxu1 %v10342_v46  ;;  %9781 = vmatprep.subr.bf16.mxu0 %v10343_v48  ;;  %v10344_v46 = vld [vmem:[%s13095_s6 + $0x38] sm:$0xff]  }
 0x79a   : > { %v10345_v48 = vld [vmem:[%s13095_s6 + $0xb8] sm:$0xff]  }
 0x82b   : > { %v11487_v50 = vpop.f32.mrf.mxu1  ;;  %v11489_v53 = vpop.f32.mrf.mxu0 }
 0x82d   : > { %v2528_v54 = vpop.f32.mrf.mxu1  ;;  %v2571_v55 = vpop.f32.mrf.mxu0 }
 0x82e   : > { %v2529_v37 = vadd.f32 %v2528_v54, %v2396_v13  ;;  %v2572_v47 = vadd.f32 %v2571_v55, %v2404_v31 }
 0x82f   : > { %v11491_v56 = vpop.f32.mrf.mxu1  ;;  %v11493_v26 = vpop.f32.mrf.mxu0 }
 0x830   : > { %v2579_v54 = vmax.f32 %v2529_v37, 0.0  ;;  %v2581_v55 = vmax.f32 %v2572_v47, 0.0  ;;  %v2400_v37 = vrot.slane %v11511_v17, %v11502_v62  ;;  %v10368_v47 = vld [vmem:[%s13095_s6 + $0x8] sm:$0xff]  }
 0x831   : > { %v2532_v33 = vpop.f32.mrf.mxu1  ;;  %v2575_v58 = vpop.f32.mrf.mxu0 }
 0x832   : > { %v2533_v12 = vadd.f32 %v2532_v33, %v2396_v13  ;;  %v2576_v16 = vadd.f32 %v2575_v58, %v2404_v31  ;;  %v10353_v13 = vld [vmem:[%s13095_s6 + $0xa8] sm:$0xff]   ;;  %v10354_v31 = vld [vmem:[%s13095_s6 + $0x60] sm:$0xff]  }
 0x834   : > { %v2583_v27 = vmax.f32 %v2533_v12, 0.0  ;;  %v2585_v52 = vmax.f32 %v2576_v16, 0.0  ;;  %v10361_v12 = vld [vmem:[%s13095_s6 + $0x98] sm:$0xff]   ;;  %v10362_v16 = vld [vmem:[%s13095_s6 + $0x50] sm:$0xff]  }
 0x83b   : > { %v2806_v63 = vpop.f32.mrf.mxu1  ;;  %v2849_v0 = vpop.f32.mrf.mxu0 }
 0x83c   : > { %v2807_v19 = vadd.f32 %v2806_v63, %v2675_v3  ;;  %v2850_v20 = vadd.f32 %v2849_v0, %v2683_v4  ;;  %v10347_v63 = vld [vmem:[%s13095_s6 + $0xf0] sm:$0xff]   ;;  %v2587_v0 = vpack.c.bf16 %v2583_v27, %v2579_v54  ;;  %v3491_v54 = vld [vmem:[%s13094_s5 + $0x128] sm:$0xff] }
 0x83d   : > { %v2808_v5 = vpop.f32.mrf.mxu1  ;;  %v2851_v1 = vpop.f32.mrf.mxu0 }
 0x83e   : > { %v2809_v7 = vadd.f32 %v2808_v5, %v2679_v45  ;;  %v2852_v8 = vadd.f32 %v2851_v1, %v2687_v57  ;;  %v2858_v41 = vmax.f32 %v2807_v19, 0.0  ;;  %v2860_v30 = vmax.f32 %v2850_v20, 0.0  ;;  %v10351_v5 = vld [vmem:[%s13095_s6 + $0xe8] sm:$0xff]   ;;  %v10363_v19 = vld [vmem:[%s13095_s6 + $0xd0] sm:$0xff]  }
 0x83f   : > { %v2810_v59 = vpop.f32.mrf.mxu1  ;;  %v2853_v6 = vpop.f32.mrf.mxu0  ;;  %v10352_v1 = vld [vmem:[%s13095_s6 + $0x28] sm:$0xff]   ;;  %v10364_v20 = vld [vmem:[%s13095_s6 + $0x10] sm:$0xff]  }
 0x840   : > { %v2811_v9 = vadd.f32 %v2810_v59, %v2675_v3  ;;  %v2854_v10 = vadd.f32 %v2853_v6, %v2683_v4  ;;  %v2859_v18 = vmax.f32 %v2809_v7, 0.0  ;;  %v2861_v44 = vmax.f32 %v2852_v8, 0.0  ;;  %v10349_v3 = vld [vmem:[%s13095_s6 + $0xb0] sm:$0xff]   ;;  %v10350_v4 = vld [vmem:[%s13095_s6 + $0x68] sm:$0xff]   ;;  %v10355_v59 = vld [vmem:[%s13095_s6 + $0xe0] sm:$0xff]  }
 0x841   : > { %v2812_v21 = vpop.f32.mrf.mxu1  ;;  %v2855_v22 = vpop.f32.mrf.mxu0  ;;  %v10356_v6 = vld [vmem:[%s13095_s6 + $0x20] sm:$0xff]   ;;  %v10358_v8 = vld [vmem:[%s13095_s6 + $0x58] sm:$0xff]  }
 0x842   : > { %v2813_v23 = vadd.f32 %v2812_v21, %v2679_v45  ;;  %v2856_v24 = vadd.f32 %v2855_v22, %v2687_v57  ;;  %v2862_v15 = vmax.f32 %v2811_v9, 0.0  ;;  %v2864_v25 = vmax.f32 %v2854_v10, 0.0  ;;  %v10348_v57 = vld [vmem:[%s13095_s6 + $0x30] sm:$0xff]   ;;  %v10357_v7 = vld [vmem:[%s13095_s6 + $0xa0] sm:$0xff]   ;;  %v10359_v9 = vld [vmem:[%s13095_s6 + $0xd8] sm:$0xff]  }
 0x843   : > { %v2589_v45 = vpack.c.bf16 %v2585_v52, %v2581_v55  ;;  %v10360_v10 = vld [vmem:[%s13095_s6 + $0x18] sm:$0xff]   ;;  %v10365_v21 = vld [vmem:[%s13095_s6 + $0x90] sm:$0xff]   ;;  %v10366_v22 = vld [vmem:[%s13095_s6 + $0x48] sm:$0xff]   ;;  %v2570_v52 = vadd.f32 %v11489_v53, %v2400_v37 }
 0x844   : > { %v2863_v49 = vmax.f32 %v2813_v23, 0.0  ;;  %v2865_v51 = vmax.f32 %v2856_v24, 0.0  ;;  %v2866_v33 = vpack.c.bf16 %v2862_v15, %v2858_v41  ;;  %v2868_v58 = vpack.c.bf16 %v2864_v25, %v2860_v30  ;;  %v10367_v23 = vld [vmem:[%s13095_s6 + $0xc8] sm:$0xff]   ;;  %v10372_v41 = vld [vmem:[%s13095_s6] sm:$0xff]  }
 0x845   : > { %v2392_v24 = vrot.slane %v11511_v17, %v10915_v14  ;;  %v10369_v15 = vld [vmem:[%s13095_s6 + $0x88] sm:$0xff]   ;;  %v10370_v17 = vld [vmem:[%s13095_s6 + $0x40] sm:$0xff]  }
 0x846   : > { %v2867_v38 = vpack.c.bf16 %v2863_v49, %v2859_v18  ;;  %v2869_v40 = vpack.c.bf16 %v2865_v51, %v2861_v44  ;;  %v2574_v18 = vadd.f32 %v11493_v26, %v2400_v37  ;;  %v10371_v44 = vld [vmem:[%s13095_s6 + $0xc0] sm:$0xff]   ;;  %v3495_v26 = vld [vmem:[%s13094_s5 + $0x1a8] sm:$0xff]  ;;  %v10375_v37 = vld [vmem:[%s13095_s6 + $0x2f8] sm:$0xff]  }
 0x847   : > { %v2531_v25 = vadd.f32 %v11491_v56, %v2392_v24  ;;  %v3494_v49 = vld [vmem:[%s13094_s5 + $0x1a0] sm:$0xff]  ;;  %v3497_v51 = vld [vmem:[%s13094_s5 + $0x1e8] sm:$0xff]  ;;  %v2527_v27 = vadd.f32 %v11487_v50, %v2392_v24  ;;  %v10374_v24 = vld [vmem:[%s13095_s6 + $0x278] sm:$0xff]  }
 0x848   : > { %3158 = vmatprep.mubr.bf16.mxu1 %v2867_v38  ;;  %3199 = vmatprep.mubr.bf16.mxu0 %v2869_v40  ;;  %v3496_v56 = vld [vmem:[%s13094_s5 + $0x1e0] sm:$0xff]  ;;  %v2584_v40 = vmax.f32 %v2574_v18, 0.0  ;;  %v3493_v55 = vld [vmem:[%s13094_s5 + $0x168] sm:$0xff]  ;;  %v10379_v18 = vld [vmem:[%s13095_s6 + $0x2f0] sm:$0xff]  }
 0x849   : > { %3159 = vmatmul.mubr.bf16.vlgmr.msra.gmra.mxu1 %v2866_v33  ;;  %3200 = vmatmul.mubr.bf16.vlgmr.msra.gmra.mxu0 %v2868_v58  ;;  %v10373_v30 = vld [vmem:[%s13095_s6 + $0x80] sm:$0xff]   ;;  %v2582_v38 = vmax.f32 %v2531_v25, 0.0  ;;  %v2578_v33 = vmax.f32 %v2527_v27, 0.0  ;;  %v2580_v58 = vmax.f32 %v2570_v52, 0.0  ;;  %v10378_v25 = vld [vmem:[%s13095_s6 + $0x270] sm:$0xff]  }
 0x84a   : > { %9760 = vmatpush3.bf16.msra.mxu1 %v10344_v46  ;;  %9782 = vmatpush3.bf16.msra.mxu0 %v10345_v48  ;;  %v9005_v46 = vcombine.high %v3494_v49, %v3496_v56  ;;  %v9007_v48 = vcombine.high %v3495_v26, %v3497_v51  ;;  %v3490_v50 = vld [vmem:[%s13094_s5 + $0x120] sm:$0xff] }
 0x84b   : > { %3432 = vmatprep.mubr.bf16.mxu1 %v2587_v0  ;;  %3473 = vmatprep.mubr.bf16.mxu0 %v2589_v45  ;;  %v3492_v53 = vld [vmem:[%s13094_s5 + $0x160] sm:$0xff]  ;;  %v2586_v45 = vpack.c.bf16 %v2582_v38, %v2578_v33  ;;  %v10390_v38 = vld [vmem:[%s13095_s6 + $0x258] sm:$0xff]   ;;  %v10398_v33 = vld [vmem:[%s13095_s6 + $0x248] sm:$0xff]  }
 0x84c   : > { %9761 = vmatprep.subr.bf16.mxu1 %v10346_v61  ;;  %9783 = vmatprep.subr.bf16.mxu0 %v10347_v63  ;;  %v9004_v61 = vcombine.low %v3494_v49, %v3496_v56  ;;  %v9006_v63 = vcombine.low %v3495_v26, %v3497_v51  ;;  %v9001_v0 = vcombine.high %v3490_v50, %v3492_v53  ;;  %v10382_v49 = vld [vmem:[%s13095_s6 + $0x268] sm:$0xff]   ;;  %v10386_v27 = vld [vmem:[%s13095_s6 + $0x260] sm:$0xff]  }
 0x84d   : > { %v10383_v56 = vld [vmem:[%s13095_s6 + $0x2e8] sm:$0xff]   ;;  %v10387_v52 = vld [vmem:[%s13095_s6 + $0x2e0] sm:$0xff]  }
 0x84e   : > { %9762 = vmatpush3.bf16.msra.mxu1 %v10348_v57  ;;  %9784 = vmatpush3.bf16.msra.mxu0 %v10349_v3  ;;  %v2588_v57 = vpack.c.bf16 %v2584_v40, %v2580_v58  ;;  %v9003_v3 = vcombine.high %v3491_v54, %v3493_v55  ;;  %v10384_v26 = vld [vmem:[%s13095_s6 + $0x228] sm:$0xff]   ;;  %v10391_v40 = vld [vmem:[%s13095_s6 + $0x2d8] sm:$0xff]  }
 0x84f   : > { %9763 = vmatprep.subr.bf16.mxu1 %v10350_v4  ;;  %9785 = vmatprep.subr.bf16.mxu0 %v10351_v5  ;;  %v3486_v4 = vld [vmem:[%s13094_s5 + $0xa0] sm:$0xff]  ;;  %v10385_v51 = vld [vmem:[%s13095_s6 + $0x2a8] sm:$0xff]  }
 0x850   : > { %v3488_v5 = vld [vmem:[%s13094_s5 + $0xe0] sm:$0xff]  ;;  %v10399_v58 = vld [vmem:[%s13095_s6 + $0x2c8] sm:$0xff]  }
 0x852   : > { %9764 = vmatpush3.bf16.msra.mxu1 %v10352_v1  ;;  %9786 = vmatpush3.bf16.msra.mxu0 %v10353_v13  ;;  %v3487_v1 = vld [vmem:[%s13094_s5 + $0xa8] sm:$0xff] }
 0x853   : > { %9765 = vmatprep.subr.bf16.mxu1 %v10354_v31  ;;  %9787 = vmatprep.subr.bf16.mxu0 %v10355_v59  ;;  %v3489_v13 = vld [vmem:[%s13094_s5 + $0xe8] sm:$0xff]  ;;  %v9000_v31 = vcombine.low %v3490_v50, %v3492_v53  ;;  %v9002_v59 = vcombine.low %v3491_v54, %v3493_v55  ;;  %v10394_v50 = vld [vmem:[%s13095_s6 + $0x250] sm:$0xff]  }
 0x854   : > { %v10395_v53 = vld [vmem:[%s13095_s6 + $0x2d0] sm:$0xff]  }
 0x855   : > { %v10396_v54 = vld [vmem:[%s13095_s6 + $0x210] sm:$0xff]  }
 0x856   : > { %9766 = vmatpush3.bf16.msra.mxu1 %v10356_v6  ;;  %9788 = vmatpush3.bf16.msra.mxu0 %v10357_v7  ;;  %v8997_v6 = vcombine.high %v3486_v4, %v3488_v5  ;;  %v8999_v7 = vcombine.high %v3487_v1, %v3489_v13  ;;  %v10397_v55 = vld [vmem:[%s13095_s6 + $0x290] sm:$0xff]  }
 0x857   : > { %9767 = vmatprep.subr.bf16.mxu1 %v10358_v8  ;;  %9789 = vmatprep.subr.bf16.mxu0 %v10359_v9  ;;  %v3482_v8 = vld [vmem:[%s13094_s5 + $0x20] sm:$0xff] }
 0x858   : > { %v3484_v9 = vld [vmem:[%s13094_s5 + $0x60] sm:$0xff] }
 0x85a   : > { %9768 = vmatpush3.bf16.msra.mxu1 %v10360_v10  ;;  %9790 = vmatpush3.bf16.msra.mxu0 %v10361_v12  ;;  %v3483_v10 = vld [vmem:[%s13094_s5 + $0x28] sm:$0xff] }
 0x85b   : > { %9769 = vmatprep.subr.bf16.mxu1 %v10362_v16  ;;  %9791 = vmatprep.subr.bf16.mxu0 %v10363_v19  ;;  %v3485_v12 = vld [vmem:[%s13094_s5 + $0x68] sm:$0xff]  ;;  %v8996_v16 = vcombine.low %v3486_v4, %v3488_v5  ;;  %v8998_v19 = vcombine.low %v3487_v1, %v3489_v13  ;;  %v11768_v4 = vld [vmem:[%s13094_s5 + $0x1b0] sm:$0xff]  ;;  %v11778_v1 = vld [vmem:[%s13094_s5 + $0x1b8] sm:$0xff] }
 0x85c   : > { %v11773_v5 = vld [vmem:[%s13094_s5 + $0x1f0] sm:$0xff] }
 0x85d   : > { %v9055_v13 = vcombine.high %v11768_v4, %v11773_v5 }
 0x85e   : > { %9770 = vmatpush3.bf16.msra.mxu1 %v10364_v20  ;;  %9792 = vmatpush3.bf16.msra.mxu0 %v10365_v21  ;;  %v8993_v20 = vcombine.high %v3482_v8, %v3484_v9  ;;  %v8995_v21 = vcombine.high %v3483_v10, %v3485_v12 }
 0x85f   : > { %9771 = vmatprep.subr.bf16.mxu1 %v10366_v22  ;;  %9793 = vmatprep.subr.bf16.mxu0 %v10367_v23  ;;  %v8992_v22 = vcombine.low %v3482_v8, %v3484_v9  ;;  %v8994_v23 = vcombine.low %v3483_v10, %v3485_v12 }
 0x862   : > { %9772 = vmatpush3.bf16.msra.mxu1 %v10368_v47  ;;  %9794 = vmatpush3.bf16.msra.mxu0 %v10369_v15  ;;  %v10376_v47 = vld [vmem:[%s13095_s6 + $0x238] sm:$0xff]  }
 0x863   : > { %9773 = vmatprep.subr.bf16.mxu1 %v10370_v17  ;;  %9795 = vmatprep.subr.bf16.mxu0 %v10371_v44  ;;  %v10377_v15 = vld [vmem:[%s13095_s6 + $0x2b8] sm:$0xff]   ;;  %v10380_v17 = vld [vmem:[%s13095_s6 + $0x230] sm:$0xff]  }
 0x864   : > { %v10381_v44 = vld [vmem:[%s13095_s6 + $0x2b0] sm:$0xff]  }
 0x866   : > { %9774 = vmatpush3.bf16.msra.mxu1 %v10372_v41  ;;  %9796 = vmatpush3.bf16.msra.mxu0 %v10373_v30  ;;  %v10388_v41 = vld [vmem:[%s13095_s6 + $0x220] sm:$0xff]  }
 0x867   : > { %3608 = vmatprep.subr.bf16.mxu1 %v9005_v46  ;;  %3651 = vmatprep.subr.bf16.mxu0 %v9007_v48  ;;  %v10389_v30 = vld [vmem:[%s13095_s6 + $0x2a0] sm:$0xff]   ;;  %v10392_v46 = vld [vmem:[%s13095_s6 + $0x218] sm:$0xff]  }
 0x868   : > { %v10393_v48 = vld [vmem:[%s13095_s6 + $0x298] sm:$0xff]  }
 0x869   : > { %3433 = vmatmul.mubr.bf16.vlgmr.msra.gmra.mxu1 %v2586_v45  ;;  %3474 = vmatmul.mubr.bf16.vlgmr.msra.gmra.mxu0 %v2588_v57  ;;  %v10403_v45 = vld [vmem:[%s13095_s6 + $0x2c0] sm:$0xff]  }
 0x86a   : > { %3609 = vmatpush1.bf16.msra.mxu1 %v9004_v61  ;;  %3652 = vmatpush1.bf16.msra.mxu0 %v9006_v63  ;;  %v10400_v61 = vld [vmem:[%s13095_s6 + $0x208] sm:$0xff]   ;;  %v10404_v57 = vld [vmem:[%s13095_s6 + $0x200] sm:$0xff]  }
 0x86b   : > { %3610 = vmatprep.subr.bf16.mxu1 %v9001_v0  ;;  %3653 = vmatprep.subr.bf16.mxu0 %v9003_v3  ;;  %v10401_v63 = vld [vmem:[%s13095_s6 + $0x288] sm:$0xff]   ;;  %v10402_v0 = vld [vmem:[%s13095_s6 + $0x240] sm:$0xff]  }
 0x86c   : > { %3632 = vmatprep.mubr.bf16.mxu1 %v10726_v2  ;;  %3675 = vmatprep.mubr.bf16.mxu0 %v10726_v2  ;;  %v10405_v3 = vld [vmem:[%s13095_s6 + $0x280] sm:$0xff]  }
 0x86e   : > { %3611 = vmatpush1.bf16.msra.mxu1 %v9000_v31  ;;  %3654 = vmatpush1.bf16.msra.mxu0 %v9002_v59  ;;  %v11785_v31 = vld [vmem:[%s13094_s5 + $0x1f8] sm:$0xff]  ;;  %v9054_v59 = vcombine.low %v11768_v4, %v11773_v5 }
 0x86f   : > { %3612 = vmatprep.subr.bf16.mxu1 %v8997_v6  ;;  %3655 = vmatprep.subr.bf16.mxu0 %v8999_v7  ;;  %v9056_v6 = vcombine.low %v11778_v1, %v11785_v31  ;;  %v9057_v7 = vcombine.high %v11778_v1, %v11785_v31  ;;  %v4039_v4 = vld [vmem:[%s13094_s5 + $0x38] sm:$0xff] }
 0x870   : > { %v4041_v5 = vld [vmem:[%s13094_s5 + $0x78] sm:$0xff] }
 0x872   : > { %3613 = vmatpush1.bf16.msra.mxu1 %v8996_v16  ;;  %3656 = vmatpush1.bf16.msra.mxu0 %v8998_v19 }
 0x873   : > { %3614 = vmatprep.subr.bf16.mxu1 %v8993_v20  ;;  %3657 = vmatprep.subr.bf16.mxu0 %v8995_v21 }
 0x876   : > { %3615 = vmatpush1.bf16.msra.mxu1 %v8992_v22  ;;  %3658 = vmatpush1.bf16.msra.mxu0 %v8994_v23 }
 0x877   : > { %9803 = vmatprep.subr.bf16.mxu1 %v10374_v24  ;;  %9825 = vmatprep.subr.bf16.mxu0 %v10375_v37 }
 0x879   : > { %9008 = vmatmul.mubr.msk.bf16.vlgmr.msra.gmra.mxu1 %vm617_vm0, %v11349_v39  ;;  %9009 = vmatmul.mubr.msk.bf16.vlgmr.msra.gmra.mxu0 %vm617_vm0, %v11349_v39 }
 0x87a   : > { %9804 = vmatpush3.bf16.msra.mxu1 %v10376_v47  ;;  %9826 = vmatpush3.bf16.msra.mxu0 %v10377_v15 }
 0x87b   : > { %9805 = vmatprep.subr.bf16.mxu1 %v10378_v25  ;;  %9827 = vmatprep.subr.bf16.mxu0 %v10379_v18 }
 0x87e   : > { %9806 = vmatpush3.bf16.msra.mxu1 %v10380_v17  ;;  %9828 = vmatpush3.bf16.msra.mxu0 %v10381_v44 }
 0x87f   : > { %9807 = vmatprep.subr.bf16.mxu1 %v10382_v49  ;;  %9829 = vmatprep.subr.bf16.mxu0 %v10383_v56 }
 0x882   : > { %9808 = vmatpush3.bf16.msra.mxu1 %v10384_v26  ;;  %9830 = vmatpush3.bf16.msra.mxu0 %v10385_v51 }
 0x883   : > { %9809 = vmatprep.subr.bf16.mxu1 %v10386_v27  ;;  %9831 = vmatprep.subr.bf16.mxu0 %v10387_v52 }
 0x886   : > { %9810 = vmatpush3.bf16.msra.mxu1 %v10388_v41  ;;  %9832 = vmatpush3.bf16.msra.mxu0 %v10389_v30 }
 0x887   : > { %9811 = vmatprep.subr.bf16.mxu1 %v10390_v38  ;;  %9833 = vmatprep.subr.bf16.mxu0 %v10391_v40 }
 0x88a   : > { %9812 = vmatpush3.bf16.msra.mxu1 %v10392_v46  ;;  %9834 = vmatpush3.bf16.msra.mxu0 %v10393_v48 }
 0x88b   : > { %9813 = vmatprep.subr.bf16.mxu1 %v10394_v50  ;;  %9835 = vmatprep.subr.bf16.mxu0 %v10395_v53  ;;  %v3498_v50 = vld [vmem:[%s13098_s9 + $0x8] sm:$0xf] }
 0x88e   : > { %9814 = vmatpush3.bf16.msra.mxu1 %v10396_v54  ;;  %9836 = vmatpush3.bf16.msra.mxu0 %v10397_v55  ;;  %v3507_v55 = vrot.slane %v3498_v50, %v11094_v11 }
 0x88f   : > { %9815 = vmatprep.subr.bf16.mxu1 %v10398_v33  ;;  %9837 = vmatprep.subr.bf16.mxu0 %v10399_v58  ;;  %v3515_v33 = vrot.slane %v3498_v50, %v11496_v60  ;;  %v3503_v58 = vrot.slane %v3498_v50, %v10915_v14 }
 0x892   : > { %9816 = vmatpush3.bf16.msra.mxu1 %v10400_v61  ;;  %9838 = vmatpush3.bf16.msra.mxu0 %v10401_v63  ;;  %v3511_v61 = vrot.slane %v3498_v50, %v11502_v62  ;;  %v4045_v50 = vld [vmem:[%s13094_s5 + $0xf8] sm:$0xff] }
 0x893   : > { %9817 = vmatprep.subr.bf16.mxu1 %v10402_v0  ;;  %9839 = vmatprep.subr.bf16.mxu0 %v10403_v45 }
 0x896   : > { %9818 = vmatpush3.bf16.msra.mxu1 %v10404_v57  ;;  %9840 = vmatpush3.bf16.msra.mxu0 %v10405_v3 }
 0x897   : > { %4164 = vmatprep.subr.bf16.mxu1 %v9055_v13  ;;  %4207 = vmatprep.subr.bf16.mxu0 %v9057_v7 }
 0x909   : > { %v9731_v8 = vpop.f32.mrf.mxu1  ;;  %v9753_v9 = vpop.f32.mrf.mxu0 }
 0x90b   : > { %v9732_v10 = vpop.f32.mrf.mxu1  ;;  %v9754_v12 = vpop.f32.mrf.mxu0 }
 0x90c   : > { %v9733_v16 = vadd.f32 %v9732_v10, %v9731_v8  ;;  %v9755_v19 = vadd.f32 %v9754_v12, %v9753_v9 }
 0x90d   : > { %v9734_v20 = vpop.f32.mrf.mxu1  ;;  %v9756_v21 = vpop.f32.mrf.mxu0 }
 0x90e   : > { %v3202_v22 = vadd.f32 %v9755_v19, %v9733_v16 }
 0x90f   : > { %v9735_v23 = vpop.f32.mrf.mxu1  ;;  %v9757_v24 = vpop.f32.mrf.mxu0 }
 0x910   : > { %v9736_v37 = vadd.f32 %v9735_v23, %v9734_v20  ;;  %v9758_v47 = vadd.f32 %v9757_v24, %v9756_v21  ;;  %v4046_v23 = vld [vmem:[%s13094_s5 + $0x130] sm:$0xff] }
 0x911   : > { %v4048_v24 = vld [vmem:[%s13094_s5 + $0x170] sm:$0xff] }
 0x912   : > { %v3205_v15 = vadd.f32 %v9758_v47, %v9736_v37 }
 0x929   : > { %v9775_v25 = vpop.f32.mrf.mxu1  ;;  %v9797_v18 = vpop.f32.mrf.mxu0 }
 0x92b   : > { %v9776_v17 = vpop.f32.mrf.mxu1  ;;  %v9798_v44 = vpop.f32.mrf.mxu0 }
 0x92c   : > { %v9777_v49 = vadd.f32 %v9776_v17, %v9775_v25  ;;  %v9799_v56 = vadd.f32 %v9798_v44, %v9797_v18  ;;  %v4047_v18 = vld [vmem:[%s13094_s5 + $0x138] sm:$0xff] }
 0x92d   : > { %v9778_v26 = vpop.f32.mrf.mxu1  ;;  %v9800_v51 = vpop.f32.mrf.mxu0  ;;  %v4049_v17 = vld [vmem:[%s13094_s5 + $0x178] sm:$0xff] }
 0x92e   : > { %v3435_v27 = vadd.f32 %v9777_v49, %v3202_v22 }
 0x92f   : > { %v9779_v52 = vpop.f32.mrf.mxu1  ;;  %v9801_v41 = vpop.f32.mrf.mxu0 }
 0x930   : > { %v11793_v30 = vadd.f32 %v9799_v56, %v3435_v27  ;;  %v9780_v38 = vadd.f32 %v9779_v52, %v9778_v26  ;;  %v9802_v40 = vadd.f32 %v9801_v41, %v9800_v51  ;;  %v9051_v52 = vcombine.high %v4046_v23, %v4048_v24 }
 0x931   : > { %v9053_v41 = vcombine.high %v4047_v18, %v4049_v17 }
 0x932   : > { %v3438_v46 = vadd.f32 %v9780_v38, %v3205_v15  ;;  %v4042_v38 = vld [vmem:[%s13094_s5 + $0xb0] sm:$0xff] }
 0x934   : > { %v11795_v48 = vadd.f32 %v9802_v40, %v3438_v46  ;;  %v4044_v40 = vld [vmem:[%s13094_s5 + $0xf0] sm:$0xff]  ;;  %v4043_v46 = vld [vmem:[%s13094_s5 + $0xb8] sm:$0xff] }
 0x935   : > { %v9046_v1 = vcombine.low %v4042_v38, %v4044_v40  ;;  %v9048_v31 = vcombine.low %v4043_v46, %v4045_v50 }
 0x939   : > { %v3634_v53 = vpop.f32.mrf.mxu1  ;;  %v3677_v54 = vpop.f32.mrf.mxu0 }
 0x93a   : > { %v3635_v9 = vadd.f32 %v3634_v53, %v3503_v58  ;;  %v3678_v10 = vadd.f32 %v3677_v54, %v3511_v61  ;;  %v9050_v53 = vcombine.low %v4046_v23, %v4048_v24  ;;  %v9052_v54 = vcombine.low %v4047_v18, %v4049_v17  ;;  %v10421_v23 = vld [vmem:[%s13095_s6 + $0x3a0] sm:$0xff]   ;;  %v10422_v24 = vld [vmem:[%s13095_s6 + $0x358] sm:$0xff]   ;;  %v10427_v18 = vld [vmem:[%s13095_s6 + $0x3d0] sm:$0xff]  }
 0x93b   : > { %v3636_v63 = vpop.f32.mrf.mxu1  ;;  %v3679_v0 = vpop.f32.mrf.mxu0  ;;  %v10428_v17 = vld [vmem:[%s13095_s6 + $0x310] sm:$0xff]  }
 0x93c   : > { %v3637_v3 = vadd.f32 %v3636_v63, %v3507_v55  ;;  %v3680_v13 = vadd.f32 %v3679_v0, %v3515_v33  ;;  %v3686_v44 = vmax.f32 %v3635_v9, 0.0  ;;  %v3688_v49 = vmax.f32 %v3678_v10, 0.0  ;;  %v10412_v9 = vld [vmem:[%s13095_s6 + $0x330] sm:$0xff]  }
 0x93d   : > { %v3638_v45 = vpop.f32.mrf.mxu1  ;;  %v3681_v57 = vpop.f32.mrf.mxu0  ;;  %v9044_v0 = vcombine.low %v4039_v4, %v4041_v5  ;;  %v10413_v10 = vld [vmem:[%s13095_s6 + $0x3b0] sm:$0xff]  }
 0x93e   : > { %v3639_v7 = vadd.f32 %v3638_v45, %v3503_v58  ;;  %v3682_v8 = vadd.f32 %v3681_v57, %v3511_v61  ;;  %v3687_v37 = vmax.f32 %v3637_v3, 0.0  ;;  %v3689_v47 = vmax.f32 %v3680_v13, 0.0  ;;  %v4038_v58 = vld [vmem:[%s13094_s5 + $0x30] sm:$0xff]  ;;  %v10406_v45 = vld [vmem:[%s13095_s6 + $0x378] sm:$0xff]  }
 0x93f   : > { %v3640_v12 = vpop.f32.mrf.mxu1  ;;  %v3683_v16 = vpop.f32.mrf.mxu0  ;;  %v4040_v61 = vld [vmem:[%s13094_s5 + $0x70] sm:$0xff]  ;;  %v10407_v57 = vld [vmem:[%s13095_s6 + $0x3f8] sm:$0xff]  }
 0x940   : > { %v3641_v19 = vadd.f32 %v3640_v12, %v3507_v55  ;;  %v3684_v20 = vadd.f32 %v3683_v16, %v3515_v33  ;;  %v3690_v21 = vmax.f32 %v3639_v7, 0.0  ;;  %v3692_v22 = vmax.f32 %v3682_v8, 0.0  ;;  %v10408_v3 = vld [vmem:[%s13095_s6 + $0x338] sm:$0xff]   ;;  %v10410_v7 = vld [vmem:[%s13095_s6 + $0x370] sm:$0xff]   ;;  %v10415_v12 = vld [vmem:[%s13095_s6 + $0x3e8] sm:$0xff]  }
 0x941   : > { %v9047_v55 = vcombine.high %v4042_v38, %v4044_v40  ;;  %v9049_v33 = vcombine.high %v4043_v46, %v4045_v50  ;;  %v9042_v63 = vcombine.low %v4038_v58, %v4040_v61  ;;  %v10409_v13 = vld [vmem:[%s13095_s6 + $0x3b8] sm:$0xff]   ;;  %v10411_v8 = vld [vmem:[%s13095_s6 + $0x3f0] sm:$0xff]   ;;  %v10416_v16 = vld [vmem:[%s13095_s6 + $0x328] sm:$0xff]  }
 0x942   : > { %v3691_v15 = vmax.f32 %v3641_v19, 0.0  ;;  %v3693_v25 = vmax.f32 %v3684_v20, 0.0  ;;  %v3694_v51 = vpack.c.bf16 %v3690_v21, %v3686_v44  ;;  %v3696_v27 = vpack.c.bf16 %v3692_v22, %v3688_v49  ;;  %v10417_v19 = vld [vmem:[%s13095_s6 + $0x3a8] sm:$0xff]   ;;  %v10418_v20 = vld [vmem:[%s13095_s6 + $0x360] sm:$0xff]   ;;  %v10429_v44 = vld [vmem:[%s13095_s6 + $0x390] sm:$0xff]  }
 0x943   : > { %v10419_v21 = vld [vmem:[%s13095_s6 + $0x3e0] sm:$0xff]   ;;  %v10430_v49 = vld [vmem:[%s13095_s6 + $0x348] sm:$0xff]  }
 0x944   : > { %v3695_v56 = vpack.c.bf16 %v3691_v15, %v3687_v37  ;;  %v3697_v26 = vpack.c.bf16 %v3693_v25, %v3689_v47  ;;  %v10420_v22 = vld [vmem:[%s13095_s6 + $0x320] sm:$0xff]   ;;  %v10423_v37 = vld [vmem:[%s13095_s6 + $0x3d8] sm:$0xff]   ;;  %v10426_v25 = vld [vmem:[%s13095_s6 + $0x350] sm:$0xff]  }
 0x945   : > { %v10424_v47 = vld [vmem:[%s13095_s6 + $0x318] sm:$0xff]   ;;  %v10437_v38 = vld [vmem:[%s13095_s6 + $0x380] sm:$0xff]  }
 0x946   : > { %3986 = vmatprep.mubr.bf16.mxu1 %v3695_v56  ;;  %4027 = vmatprep.mubr.bf16.mxu0 %v3697_v26  ;;  %v10425_v15 = vld [vmem:[%s13095_s6 + $0x398] sm:$0xff]   ;;  %v10431_v56 = vld [vmem:[%s13095_s6 + $0x3c8] sm:$0xff]  }
 0x947   : > { %3987 = vmatmul.mubr.bf16.vlgmr.msra.gmra.mxu1 %v3694_v51  ;;  %4028 = vmatmul.mubr.bf16.vlgmr.msra.gmra.mxu0 %v3696_v27  ;;  %v10432_v26 = vld [vmem:[%s13095_s6 + $0x308] sm:$0xff]   ;;  %v10434_v27 = vld [vmem:[%s13095_s6 + $0x340] sm:$0xff]  }
 0x948   : > { %4165 = vmatpush1.bf16.msra.mxu1 %v9054_v59  ;;  %4208 = vmatpush1.bf16.msra.mxu0 %v9056_v6  ;;  %v9043_v59 = vcombine.high %v4038_v58, %v4040_v61  ;;  %v9045_v6 = vcombine.high %v4039_v4, %v4041_v5  ;;  %v10433_v51 = vld [vmem:[%s13095_s6 + $0x388] sm:$0xff]  }
 0x949   : > { %4166 = vmatprep.subr.bf16.mxu1 %v9051_v52  ;;  %4209 = vmatprep.subr.bf16.mxu0 %v9053_v41  ;;  %v10435_v52 = vld [vmem:[%s13095_s6 + $0x3c0] sm:$0xff]  }
 0x94a   : > { %4188 = vmatprep.mubr.bf16.mxu1 %v10726_v2  ;;  %4231 = vmatprep.mubr.bf16.mxu0 %v10726_v2  ;;  %v10436_v41 = vld [vmem:[%s13095_s6 + $0x300] sm:$0xff]  }
 0x94c   : > { %4167 = vmatpush1.bf16.msra.mxu1 %v9050_v53  ;;  %4210 = vmatpush1.bf16.msra.mxu0 %v9052_v54 }
 0x94d   : > { %4168 = vmatprep.subr.bf16.mxu1 %v9047_v55  ;;  %4211 = vmatprep.subr.bf16.mxu0 %v9049_v33 }
 0x950   : > { %4169 = vmatpush1.bf16.msra.mxu1 %v9046_v1  ;;  %4212 = vmatpush1.bf16.msra.mxu0 %v9048_v31 }
 0x951   : > { %4170 = vmatprep.subr.bf16.mxu1 %v9043_v59  ;;  %4213 = vmatprep.subr.bf16.mxu0 %v9045_v6 }
 0x954   : > { %4171 = vmatpush1.bf16.msra.mxu1 %v9042_v63  ;;  %4214 = vmatpush1.bf16.msra.mxu0 %v9044_v0  ;;  %v4054_v0 = vld [vmem:[%s13098_s9 + $0xc] sm:$0xf] }
 0x955   : > { %9847 = vmatprep.subr.bf16.mxu1 %v10406_v45  ;;  %9869 = vmatprep.subr.bf16.mxu0 %v10407_v57 }
 0x957   : > { %9058 = vmatmul.mubr.msk.bf16.vlgmr.msra.gmra.mxu1 %vm617_vm0, %v11349_v39  ;;  %9059 = vmatmul.mubr.msk.bf16.vlgmr.msra.gmra.mxu0 %vm617_vm0, %v11349_v39  ;;  %v10414_v39 = vld [vmem:[%s13095_s6 + $0x368] sm:$0xff]  }
 0x958   : > { %9848 = vmatpush3.bf16.msra.mxu1 %v10408_v3  ;;  %9870 = vmatpush3.bf16.msra.mxu0 %v10409_v13  ;;  %v4063_v3 = vrot.slane %v4054_v0, %v11094_v11  ;;  %v4071_v13 = vrot.slane %v4054_v0, %v11496_v60 }
 0x959   : > { %9849 = vmatprep.subr.bf16.mxu1 %v10410_v7  ;;  %9871 = vmatprep.subr.bf16.mxu0 %v10411_v8  ;;  %v4059_v7 = vrot.slane %v4054_v0, %v10915_v14  ;;  %v4067_v8 = vrot.slane %v4054_v0, %v11502_v62 }
 0x95c   : > { %9850 = vmatpush3.bf16.msra.mxu1 %v10412_v9  ;;  %9872 = vmatpush3.bf16.msra.mxu0 %v10413_v10 }
 0x95d   : > { %9851 = vmatprep.subr.bf16.mxu1 %v10414_v39  ;;  %9873 = vmatprep.subr.bf16.mxu0 %v10415_v12 }
 0x960   : > { %9852 = vmatpush3.bf16.msra.mxu1 %v10416_v16  ;;  %9874 = vmatpush3.bf16.msra.mxu0 %v10417_v19 }
 0x961   : > { %9853 = vmatprep.subr.bf16.mxu1 %v10418_v20  ;;  %9875 = vmatprep.subr.bf16.mxu0 %v10419_v21 }
 0x964   : > { %9854 = vmatpush3.bf16.msra.mxu1 %v10420_v22  ;;  %9876 = vmatpush3.bf16.msra.mxu0 %v10421_v23 }
 0x965   : > { %9855 = vmatprep.subr.bf16.mxu1 %v10422_v24  ;;  %9877 = vmatprep.subr.bf16.mxu0 %v10423_v37 }
 0x968   : > { %9856 = vmatpush3.bf16.msra.mxu1 %v10424_v47  ;;  %9878 = vmatpush3.bf16.msra.mxu0 %v10425_v15 }
 0x969   : > { %9857 = vmatprep.subr.bf16.mxu1 %v10426_v25  ;;  %9879 = vmatprep.subr.bf16.mxu0 %v10427_v18 }
 0x96c   : > { %9858 = vmatpush3.bf16.msra.mxu1 %v10428_v17  ;;  %9880 = vmatpush3.bf16.msra.mxu0 %v10429_v44 }
 0x96d   : > { %9859 = vmatprep.subr.bf16.mxu1 %v10430_v49  ;;  %9881 = vmatprep.subr.bf16.mxu0 %v10431_v56 }
 0x970   : > { %9860 = vmatpush3.bf16.msra.mxu1 %v10432_v26  ;;  %9882 = vmatpush3.bf16.msra.mxu0 %v10433_v51 }
 0x971   : > { %9861 = vmatprep.subr.bf16.mxu1 %v10434_v27  ;;  %9883 = vmatprep.subr.bf16.mxu0 %v10435_v52 }
 0x974   : > { %9862 = vmatpush3.bf16.msra.mxu1 %v10436_v41  ;;  %9884 = vmatpush3.bf16.msra.mxu0 %v10437_v38 }
 0x975   : > { %10148 = vmatprep.subr.bf16.mxu0 %v10733_v42 }
 0xa07   : > { %v9819_v40 = vpop.f32.mrf.mxu1  ;;  %v9841_v46 = vpop.f32.mrf.mxu0 }
 0xa09   : > { %v9820_v50 = vpop.f32.mrf.mxu1  ;;  %v9842_v53 = vpop.f32.mrf.mxu0 }
 0xa0a   : > { %v9821_v54 = vadd.f32 %v9820_v50, %v9819_v40  ;;  %v9843_v55 = vadd.f32 %v9842_v53, %v9841_v46 }
 0xa0b   : > { %v9822_v33 = vpop.f32.mrf.mxu1  ;;  %v9844_v58 = vpop.f32.mrf.mxu0 }
 0xa0c   : > { %v4030_v61 = vadd.f32 %v9843_v55, %v9821_v54 }
 0xa0d   : > { %v9823_v4 = vpop.f32.mrf.mxu1  ;;  %v9845_v5 = vpop.f32.mrf.mxu0 }
 0xa0e   : > { %v4036_v1 = vadd.f32 %v4030_v61, %v11793_v30  ;;  %v9824_v31 = vadd.f32 %v9823_v4, %v9822_v33  ;;  %v9846_v59 = vadd.f32 %v9845_v5, %v9844_v58  ;;  %v9092_v4 = vld [vmem:[%s13099_s10] ss:$0 sm:$0xff] }
 0xa10   : > { %v4033_v6 = vadd.f32 %v9846_v59, %v9824_v31 }
 0xa12   : > { %v4037_v63 = vadd.f32 %v4033_v6, %v11795_v48 }
 0xa17   : > { %v4190_v45 = vpop.f32.mrf.mxu1  ;;  %v4233_v57 = vpop.f32.mrf.mxu0 }
 0xa18   : > { %v4191_v20 = vadd.f32 %v4190_v45, %v4059_v7  ;;  %v4234_v21 = vadd.f32 %v4233_v57, %v4067_v8 }
 0xa19   : > { %v4192_v30 = vpop.f32.mrf.mxu1  ;;  %v4235_v9 = vpop.f32.mrf.mxu0 }
 0xa1a   : > { %v4193_v12 = vadd.f32 %v4192_v30, %v4063_v3  ;;  %v4236_v48 = vadd.f32 %v4235_v9, %v4071_v13  ;;  %v4242_v49 = vmax.f32 %v4191_v20, 0.0  ;;  %v4244_v56 = vmax.f32 %v4234_v21, 0.0  ;;  %v10443_v20 = vld [vmem:[%s13092_s3 + $0x64] ss:$8 sps:$4 sm:$0xff]   ;;  %v10441_v21 = vld [vmem:[%s13092_s3 + $0x60] ss:$8 sps:$4 sm:$0xff]  }
 0xa1b   : > { %v4194_v10 = vpop.f32.mrf.mxu1  ;;  %v4237_v39 = vpop.f32.mrf.mxu0 }
 0xa1c   : > { %v4195_v16 = vadd.f32 %v4194_v10, %v4059_v7  ;;  %v4238_v19 = vadd.f32 %v4237_v39, %v4067_v8  ;;  %v4243_v25 = vmax.f32 %v4193_v12, 0.0  ;;  %v4245_v18 = vmax.f32 %v4236_v48, 0.0 }
 0xa1d   : > { %v4196_v22 = vpop.f32.mrf.mxu1  ;;  %v4239_v23 = vpop.f32.mrf.mxu0 }
 0xa1e   : > { %v4197_v24 = vadd.f32 %v4196_v22, %v4063_v3  ;;  %v4240_v37 = vadd.f32 %v4239_v23, %v4071_v13  ;;  %v4246_v47 = vmax.f32 %v4195_v16, 0.0  ;;  %v4248_v15 = vmax.f32 %v4238_v19, 0.0  ;;  %v10438_v19 = vld [vmem:[%s13092_s3 + $0x70] ss:$8 sps:$4 sm:$0xff]   ;;  %v10446_v22 = vld [vmem:[%s13092_s3 + $0x54] ss:$8 sps:$4 sm:$0xff]  }
 0xa1f   : > { %v10444_v23 = vld [vmem:[%s13092_s3 + $0x50] ss:$8 sps:$4 sm:$0xff]  }
 0xa20   : > { %v4247_v17 = vmax.f32 %v4197_v24, 0.0  ;;  %v4249_v44 = vmax.f32 %v4240_v37, 0.0  ;;  %v4250_v27 = vpack.c.bf16 %v4246_v47, %v4242_v49  ;;  %v4252_v52 = vpack.c.bf16 %v4248_v15, %v4244_v56  ;;  %v10449_v24 = vld [vmem:[%s13092_s3 + $0x44] ss:$8 sps:$4 sm:$0xff]   ;;  %v10447_v37 = vld [vmem:[%s13092_s3 + $0x40] ss:$8 sps:$4 sm:$0xff]  }
 0xa22   : > { %v4251_v26 = vpack.c.bf16 %v4247_v17, %v4243_v25  ;;  %v4253_v51 = vpack.c.bf16 %v4249_v44, %v4245_v18 }
 0xa24   : > { %4542 = vmatprep.mubr.bf16.mxu1 %v4251_v26  ;;  %4583 = vmatprep.mubr.bf16.mxu0 %v4253_v51  ;;  %v9093_v26 = vld [vmem:[%s13102_s13] ss:$0 sm:$0xff] }
 0xa25   : > { %4543 = vmatmul.mubr.bf16.vlgmr.msra.gmra.mxu1 %v4250_v27  ;;  %4584 = vmatmul.mubr.bf16.vlgmr.msra.gmra.mxu0 %v4252_v52 }
 0xa26   : > { %4747 = vmatprep.mubr.bf16.mxu1 %v10726_v2  ;;  %10150 = vmatprep.mubr.msk.bf16.mxu0 %vm10734_vm1, %v10733_v42 }
 0xae5   : > { %v9863_v41 = vpop.f32.mrf.mxu1  ;;  %v9885_v38 = vpop.f32.mrf.mxu0 }
 0xae7   : > { %v9864_v40 = vpop.f32.mrf.mxu1  ;;  %v9886_v46 = vpop.f32.mrf.mxu0 }
 0xae8   : > { %v9865_v50 = vadd.f32 %v9864_v40, %v9863_v41  ;;  %v9887_v53 = vadd.f32 %v9886_v46, %v9885_v38  ;;  %v9094_v41 = vld [vmem:[%s13103_s14] ss:$0 sm:$0xff] }
 0xae9   : > { %v9866_v54 = vpop.f32.mrf.mxu1  ;;  %v9888_v55 = vpop.f32.mrf.mxu0 }
 0xaea   : > { %v4586_v33 = vadd.f32 %v9887_v53, %v9865_v50  ;;  %v12013_v53 = vld [vmem:[%s13096_s7 + $0x2] sm:$0x3] }
 0xaeb   : > { %v9867_v58 = vpop.f32.mrf.mxu1  ;;  %v9889_v61 = vpop.f32.mrf.mxu0 }
 0xaec   : > { %v4592_v5 = vadd.f32 %v4586_v33, %v4036_v1  ;;  %v9868_v31 = vadd.f32 %v9867_v58, %v9866_v54  ;;  %v9890_v59 = vadd.f32 %v9889_v61, %v9888_v55  ;;  %v4665_v55 = vrot.slane %v12013_v53, %v10915_v14 }
 0xaee   : > { %v4589_v6 = vadd.f32 %v9890_v59, %v9868_v31  ;;  %v4601_v0 = vadd.f32 %v9092_v4, %v4592_v5 }
 0xaf0   : > { %v4593_v45 = vadd.f32 %v4589_v6, %v4037_v63  ;;  %v4603_v57 = vadd.f32 %v4601_v0, %v11343_v34 }
 0xaf2   : > { %v4605_v3 = vsel %vm617_vm0, %v4603_v57, 0.0  ;;  %v4602_v13 = vadd.f32 %v9092_v4, %v4593_v45 }
 0xaf3   : > { %4606 = vadd.xlane.f32.xlu1 %v4605_v3 }
 0xaf4   : > { %v4604_v7 = vadd.f32 %v4602_v13, %v11345_v36  ;;  %v10440_v36 = vld [vmem:[%s13092_s3 + $0x74] ss:$8 sps:$4 sm:$0xff]  }
 0xaf5   : > { %4723 = vmatprep.subr.bf16.mxu1 %v10440_v36 }
 0xaf6   : > { %v4608_v8 = vsel %vm617_vm0, %v4604_v7, 0.0  ;;  %4724 = vmatpush1.bf16.msra.mxu1 %v10438_v19 }
 0xaf7   : > { %4609 = vadd.xlane.f32.xlu0 %v4608_v8  ;;  %4725 = vmatprep.subr.bf16.mxu1 %v10443_v20 }
 0xafa   : > { %4726 = vmatpush1.bf16.msra.mxu1 %v10441_v21 }
 0xafb   : > { %4727 = vmatprep.subr.bf16.mxu1 %v10446_v22 }
 0xafe   : > { %4728 = vmatpush1.bf16.msra.mxu1 %v10444_v23 }
 0xaff   : > { %4729 = vmatprep.subr.bf16.mxu1 %v10449_v24 }
 0xb02   : > { %4730 = vmatpush1.bf16.msra.mxu1 %v10447_v37 }
 0xb03   : > { %10154 = vmatprep.subr.bf16.mxu1 %v10733_v42 }
 0xb7c   : > { %v4607_v30 = vpop.xlane.xlu1 %4606 }
 0xb7d   : > { %v4611_v9 = vmul.f32 0.015625, %v4607_v30 }
 0xb7f   : > { %v4613_v10 = vsub.f32 %v4603_v57, %v4611_v9 }
 0xb80   : > { %v4610_v1 = vpop.xlane.xlu0 %4609 }
 0xb81   : > { %v4612_v39 = vmul.f32 0.015625, %v4610_v1  ;;  %v4615_v12 = vmul.f32 %v4613_v10, %v4613_v10 }
 0xb83   : > { %v4614_v48 = vsub.f32 %v4604_v7, %v4612_v39  ;;  %v4617_v63 = vsel %vm617_vm0, %v4615_v12, 0.0 }
 0xb84   : > { %4618 = vadd.xlane.f32.xlu1 %v4617_v63 }
 0xb85   : > { %v4616_v34 = vmul.f32 %v4614_v48, %v4614_v48 }
 0xb87   : > { %v4620_v16 = vsel %vm617_vm0, %v4616_v34, 0.0 }
 0xb88   : > { %4621 = vadd.xlane.f32.xlu0 %v4620_v16 }
 0xc0d   : > { %v4619_v47 = vpop.xlane.xlu1 %4618 }
 0xc0e   : > { %v4623_v15 = vmul.f32 0.015625, %v4619_v47 }
 0xc10   : > { %v4625_v25 = vadd.f32 1e-05, %v4623_v15 }
 0xc11   : > { %v4622_v18 = vpop.xlane.xlu0 %4621 }
 0xc12   : > { %10618 = vrsqrt.f32 %v4625_v25  ;;  %v4624_v17 = vmul.f32 0.015625, %v4622_v18 }
 0xc14   : > { %v4626_v44 = vadd.f32 1e-05, %v4624_v17 }
 0xc16   : > { %10620 = vrsqrt.f32 %v4626_v44 }
 0xc1f   : > { %v10619_v49 = vpop.eup %10618 }
 0xc20   : > { %v4629_v56 = vmul.f32 %v10619_v49, %v4613_v10 }
 0xc22   : > { %v4638_v52 = vmul.f32 %v9093_v26, %v4629_v56 }
 0xc23   : > { %v10621_v51 = vpop.eup %10620 }
 0xc24   : > { %v4630_v27 = vmul.f32 %v10621_v51, %v4614_v48  ;;  %v12001_v40 = vadd.f32 %v9094_v41, %v4638_v52 }
 0xc26   : > { %v4639_v38 = vmul.f32 %v9093_v26, %v4630_v27 }
 0xc28   : > { %v12003_v46 = vadd.f32 %v9094_v41, %v4639_v38 }
 0xc2a   : > { %v4649_v50 = vpack.c.bf16 %v12003_v46, %v12001_v40 }
 0xc2c   : > { %9112 = vmatmul.mubr.msk.bf16.vlgmr.msra.gmra.mxu1 %vm617_vm0, %v4649_v50 }
 0xc2d   : > { %10156 = vmatprep.mubr.msk.bf16.mxu1 %vm10734_vm1, %v10733_v42 }
 0xcec   : > { %v4749_v54 = vpop.f32.mrf.mxu1 }
 0xced   : > { %v4750_v61 = vadd.f32 %v4749_v54, %v4665_v55 }
 0xcee   : > { %v12017_v33 = vpop.f32.mrf.mxu1 }
 0xcf0   : > { %v4753_v58 = vpop.f32.mrf.mxu1 }
 0xcf1   : > { %v4754_v4 = vadd.f32 %v4753_v58, %v4665_v55 }
 0xcf3   : > { %v4758_v5 = vpack.c.bf16 %v4754_v4, %v4750_v61 }
 0xcf5   : > { %4762 = vrot.lane.b32.xlu0 %v4758_v5, %s13130_s27  ;;  %4760 = vrot.lane.b32.xlu1 %v4758_v5, %s13131_s20  ;;  %v4770_v45 = vshrl.u32 %v4758_v5, 16 }
 0xcf9   : > { %4764 = vrot.lane.b32.xlu1 %v4758_v5, %s13132_s23 }
 0xcfd   : > { %5026 = vrot.lane.b32.xlu1 %v4758_v5, %s13133_s17 }
 0xd67   : > { %v4763_v31 = vpop.permute.xlu0 %4762  ;;  %v4761_v59 = vpop.permute.xlu1 %4760 }
 0xd68   : > { %v4768_v6 = vpack.i.b16 %v4761_v59, %v4758_v5  ;;  %v4771_v0 = vshrl.u32 %v4761_v59, 16  ;;  %5030 = vrot.lane.b32.xlu1 %v4763_v31, %s13133_s17  ;;  %5028 = vrot.lane.b32.xlu0 %v4761_v59, %s13133_s17  ;;  %v4778_v8 = vshrl.u32 %v4763_v31, 16 }
 0xd6a   : > { %v4772_v57 = vpack.i.b16 %v4771_v0, %v4770_v45  ;;  %v4782_v13 = vcombine.high %v4768_v6, %v10932_v29  ;;  %v4789_v9 = vrot.slane %v4768_v6, %v10936_v35 }
 0xd6b   : > { %v4765_v3 = vpop.permute.xlu1 %4764 }
 0xd6c   : > { %v4776_v7 = vpack.i.b16 %v4765_v3, %v4763_v31  ;;  %5032 = vrot.lane.b32.xlu0 %v4765_v3, %s13133_s17  ;;  %v4779_v30 = vshrl.u32 %v4765_v3, 16  ;;  %v4848_v39 = vcombine.high %v4772_v57, %v10932_v29  ;;  %v4796_v48 = vrot.slane %v4782_v13, %v10936_v35 }
 0xd6d   : > { %v4855_v36 = vrot.slane %v4772_v57, %v10936_v35 }
 0xd6e   : > { %v4797_v10 = vcombine.high %v4776_v7, %v10932_v29  ;;  %v4804_v1 = vrot.slane %v4776_v7, %v10936_v35  ;;  %v4780_v12 = vpack.i.b16 %v4779_v30, %v4778_v8  ;;  %v4862_v37 = vrot.slane %v4848_v39, %v10936_v35 }
 0xd70   : > { %v4811_v63 = vrot.slane %v4797_v10, %v10936_v35  ;;  %v4812_v34 = vcombine.low %v4789_v9, %v4804_v1  ;;  %v4813_v16 = vcombine.high %v4789_v9, %v4804_v1  ;;  %v4863_v19 = vcombine.high %v4780_v12, %v10932_v29 }
 0xd71   : > { %v4870_v20 = vrot.slane %v4780_v12, %v10936_v35 }
 0xd72   : > { %v4820_v21 = vrot.slane %v4812_v34, %v10944_v43  ;;  %v4827_v22 = vrot.slane %v4813_v16, %v10944_v43  ;;  %v4828_v23 = vcombine.low %v4796_v48, %v4811_v63  ;;  %v4829_v24 = vcombine.high %v4796_v48, %v4811_v63 }
 0xd73   : > { %v4877_v47 = vrot.slane %v4863_v19, %v10936_v35  ;;  %v4878_v15 = vcombine.low %v4855_v36, %v4870_v20  ;;  %v4879_v25 = vcombine.high %v4855_v36, %v4870_v20 }
 0xd74   : > { %v4836_v18 = vrot.slane %v4828_v23, %v10944_v43  ;;  %v4843_v17 = vrot.slane %v4829_v24, %v10944_v43  ;;  %v4914_v44 = vcombine.low %v4820_v21, %v4827_v22  ;;  %v9113_v49 = vcombine.high %v4820_v21, %v4827_v22  ;;  %v5027_v24 = vpop.permute.xlu1 %5026 }
 0xd75   : > { %v4886_v56 = vrot.slane %v4878_v15, %v10944_v43  ;;  %v4893_v26 = vrot.slane %v4879_v25, %v10944_v43  ;;  %v4894_v51 = vcombine.low %v4862_v37, %v4877_v47  ;;  %v4895_v27 = vcombine.high %v4862_v37, %v4877_v47 }
 0xd76   : > { %v4921_v52 = vrot.slane %v4914_v44, %v10936_v35  ;;  %v4929_v41 = vrot.slane %v9113_v49, %v10936_v35  ;;  %v4930_v38 = vcombine.low %v4836_v18, %v4843_v17  ;;  %v9114_v50 = vcombine.high %v4836_v18, %v4843_v17 }
 0xd77   : > { %v4902_v54 = vrot.slane %v4894_v51, %v10944_v43  ;;  %v4909_v55 = vrot.slane %v4895_v27, %v10944_v43  ;;  %v4964_v58 = vcombine.low %v4886_v56, %v4893_v26  ;;  %v9115_v61 = vcombine.high %v4886_v56, %v4893_v26 }
 0xd78   : > { %v4937_v4 = vrot.slane %v4930_v38, %v10936_v35  ;;  %v4945_v5 = vrot.slane %v9114_v50, %v10936_v35  ;;  %v4946_v31 = vcombine.low %v4921_v52, %v4929_v41  ;;  %v5038_v25 = vshrl.u32 %v5027_v24, 16 }
 0xd79   : > { %v4971_v59 = vrot.slane %v4964_v58, %v10936_v35  ;;  %v4979_v6 = vrot.slane %v9115_v61, %v10936_v35  ;;  %v4980_v0 = vcombine.low %v4902_v54, %v4909_v55  ;;  %v9116_v45 = vcombine.high %v4902_v54, %v4909_v55 }
 0xd7a   : > { %v4954_v57 = vcombine.low %v4937_v4, %v4945_v5  ;;  %v4953_v8 = vrot.slane %v4946_v31, %v10944_v43 }
 0xd7b   : > { %v4987_v3 = vrot.slane %v4980_v0, %v10936_v35  ;;  %v4995_v13 = vrot.slane %v9116_v45, %v10936_v35  ;;  %v4996_v7 = vcombine.low %v4971_v59, %v4979_v6 }
 0xd7c   : > { %v4961_v30 = vrot.slane %v4954_v57, %v10944_v43 }
 0xd7d   : > { %v5004_v9 = vcombine.low %v4987_v3, %v4995_v13  ;;  %v5003_v39 = vrot.slane %v4996_v7, %v10944_v43 }
 0xd7e   : > { %v12056_v10 = vcombine.low %v4953_v8, %v4961_v30  ;;  %v12058_v1 = vcombine.high %v4953_v8, %v4961_v30 }
 0xd7f   : > { %v5011_v12 = vrot.slane %v5004_v9, %v10944_v43 }
 0xd80   : > { %v5017_v34 = vshrl.u32 %v12056_v10, 16  ;;  %v5023_v16 = vshrl.u32 %v12058_v1, 16 }
 0xd81   : > { %v12062_v48 = vcombine.low %v5003_v39, %v5011_v12  ;;  %v12064_v63 = vcombine.high %v5003_v39, %v5011_v12 }
 0xd83   : > { %v5016_v36 = vpack.i.b16 %v12062_v48, %v12056_v10  ;;  %v5018_v19 = vshrl.u32 %v12062_v48, 16  ;;  %v5022_v20 = vpack.i.b16 %v12064_v63, %v12058_v1  ;;  %v5024_v21 = vshrl.u32 %v12064_v63, 16  ;;  %v4755_v10 = vpop.f32.mrf.mxu1 }
 0xd85   : > { %v12074_v22 = vpack.i.b16 %v5018_v19, %v5017_v34  ;;  %v12076_v23 = vpack.i.b16 %v5024_v21, %v5023_v16 }
 0xdda   : > { %v5029_v37 = vpop.permute.xlu0 %5028  ;;  %v5031_v18 = vpop.permute.xlu1 %5030 }
 0xddb   : > { %v5036_v47 = vpack.i.b16 %v5029_v37, %v5027_v24  ;;  %v5039_v15 = vshrl.u32 %v5029_v37, 16  ;;  %v5046_v26 = vshrl.u32 %v5031_v18, 16 }
 0xddd   : > { %v5040_v17 = vpack.i.b16 %v5039_v15, %v5038_v25  ;;  %v5050_v49 = vcombine.high %v5036_v47, %v10932_v29  ;;  %v5057_v27 = vrot.slane %v5036_v47, %v10936_v35 }
 0xdde   : > { %v5033_v44 = vpop.permute.xlu0 %5032 }
 0xddf   : > { %v5044_v56 = vpack.i.b16 %v5033_v44, %v5031_v18  ;;  %v5047_v51 = vshrl.u32 %v5033_v44, 16  ;;  %v5116_v38 = vcombine.high %v5040_v17, %v10932_v29  ;;  %v5064_v54 = vrot.slane %v5050_v49, %v10936_v35 }
 0xde0   : > { %v5123_v4 = vrot.slane %v5040_v17, %v10936_v35 }
 0xde1   : > { %v5065_v52 = vcombine.high %v5044_v56, %v10932_v29  ;;  %v5072_v41 = vrot.slane %v5044_v56, %v10936_v35  ;;  %v5048_v50 = vpack.i.b16 %v5047_v51, %v5046_v26  ;;  %v5130_v57 = vrot.slane %v5116_v38, %v10936_v35 }
 0xde3   : > { %v5079_v55 = vrot.slane %v5065_v52, %v10936_v35  ;;  %v5080_v58 = vcombine.low %v5057_v27, %v5072_v41  ;;  %v5081_v61 = vcombine.high %v5057_v27, %v5072_v41  ;;  %v5131_v5 = vcombine.high %v5048_v50, %v10932_v29 }
 0xde4   : > { %v5138_v31 = vrot.slane %v5048_v50, %v10936_v35 }
 0xde5   : > { %v5088_v59 = vrot.slane %v5080_v58, %v10944_v43  ;;  %v5095_v6 = vrot.slane %v5081_v61, %v10944_v43  ;;  %v5096_v0 = vcombine.low %v5064_v54, %v5079_v55  ;;  %v5097_v45 = vcombine.high %v5064_v54, %v5079_v55 }
 0xde6   : > { %v5145_v3 = vrot.slane %v5131_v5, %v10936_v35  ;;  %v5146_v13 = vcombine.low %v5123_v4, %v5138_v31  ;;  %v5147_v7 = vcombine.high %v5123_v4, %v5138_v31 }
 0xde7   : > { %v5104_v8 = vrot.slane %v5096_v0, %v10944_v43  ;;  %v5111_v30 = vrot.slane %v5097_v45, %v10944_v43  ;;  %v5182_v9 = vcombine.low %v5088_v59, %v5095_v6  ;;  %v9117_v39 = vcombine.high %v5088_v59, %v5095_v6 }
 0xde8   : > { %v5154_v12 = vrot.slane %v5146_v13, %v10944_v43  ;;  %v5161_v34 = vrot.slane %v5147_v7, %v10944_v43  ;;  %v5162_v16 = vcombine.low %v5130_v57, %v5145_v3  ;;  %v5163_v19 = vcombine.high %v5130_v57, %v5145_v3 }
 0xde9   : > { %v5189_v21 = vrot.slane %v5182_v9, %v10936_v35  ;;  %v5197_v24 = vrot.slane %v9117_v39, %v10936_v35  ;;  %v5198_v37 = vcombine.low %v5104_v8, %v5111_v30  ;;  %v9118_v47 = vcombine.high %v5104_v8, %v5111_v30 }
 0xdea   : > { %v5170_v15 = vrot.slane %v5162_v16, %v10944_v43  ;;  %v5177_v25 = vrot.slane %v5163_v19, %v10944_v43  ;;  %v5232_v18 = vcombine.low %v5154_v12, %v5161_v34  ;;  %v9119_v17 = vcombine.high %v5154_v12, %v5161_v34 }
 0xdeb   : > { %v5205_v44 = vrot.slane %v5198_v37, %v10936_v35  ;;  %v5213_v49 = vrot.slane %v9118_v47, %v10936_v35  ;;  %v5214_v56 = vcombine.low %v5189_v21, %v5197_v24 }
 0xdec   : > { %v5248_v26 = vcombine.low %v5170_v15, %v5177_v25  ;;  %v9120_v51 = vcombine.high %v5170_v15, %v5177_v25  ;;  %v5239_v27 = vrot.slane %v5232_v18, %v10936_v35  ;;  %v5247_v52 = vrot.slane %v9119_v17, %v10936_v35 }
 0xded   : > { %v5222_v41 = vcombine.low %v5205_v44, %v5213_v49  ;;  %v5221_v58 = vrot.slane %v5214_v56, %v10944_v43 }
 0xdee   : > { %v5255_v38 = vrot.slane %v5248_v26, %v10936_v35  ;;  %v5263_v50 = vrot.slane %v9120_v51, %v10936_v35  ;;  %v5264_v54 = vcombine.low %v5239_v27, %v5247_v52 }
 0xdef   : > { %v5229_v55 = vrot.slane %v5222_v41, %v10944_v43 }
 0xdf0   : > { %v5272_v61 = vcombine.low %v5255_v38, %v5263_v50  ;;  %v5271_v5 = vrot.slane %v5264_v54, %v10944_v43 }
 0xdf1   : > { %v5230_v4 = vcombine.low %v5221_v58, %v5229_v55  ;;  %v5231_v7 = vcombine.high %v5221_v58, %v5229_v55 }
 0xdf2   : > { %v5279_v31 = vrot.slane %v5272_v61, %v10944_v43 }
 0xdf3   : > { %v5285_v0 = vshrl.u32 %v5230_v4, 16  ;;  %v5291_v39 = vshrl.u32 %v5231_v7, 16 }
 0xdf4   : > { %v5280_v59 = vcombine.low %v5271_v5, %v5279_v31  ;;  %v5281_v57 = vcombine.high %v5271_v5, %v5279_v31  ;;  %v4669_v5 = vrot.slane %v12013_v53, %v11094_v11 }
 0xdf6   : > { %v5284_v6 = vpack.i.b16 %v5280_v59, %v5230_v4  ;;  %v5286_v45 = vshrl.u32 %v5280_v59, 16  ;;  %v5292_v30 = vshrl.u32 %v5281_v57, 16  ;;  %v5290_v9 = vpack.i.b16 %v5281_v57, %v5231_v7 }
 0xdf7   : > { %v4756_v31 = vadd.f32 %v4755_v10, %v4669_v5  ;;  %v4752_v59 = vadd.f32 %v12017_v33, %v4669_v5 }
 0xdf8   : > { %v5570_v3 = vsel %vm1478_vm2, %v5284_v6, 0  ;;  %v5287_v13 = vpack.i.b16 %v5286_v45, %v5285_v0  ;;  %v5293_v12 = vpack.i.b16 %v5292_v30, %v5291_v39  ;;  %v5664_v34 = vsel %vm1478_vm2, %v5290_v9, 0 }
 0xdf9   : > { %10149 = vmatpush3.bf16.xpose.msra.mxu0 %v5570_v3  ;;  %v12160_v6 = vpack.c.bf16 %v4756_v31, %v4752_v59 }
 0xdfa   : > { %v5617_v8 = vsel %vm1478_vm2, %v5287_v13, 0  ;;  %10160 = vmatprep.subr.bf16.mxu0 %v10733_v42  ;;  %v5711_v16 = vsel %vm1478_vm2, %v5293_v12, 0 }
 0xdfb   : > { %10155 = vmatpush3.bf16.xpose.msra.mxu1 %v5617_v8 }
 0xdfc   : > { %10166 = vmatprep.subr.bf16.mxu1 %v10733_v42 }
 0xe00   : > { %10151 = vmatmul.mubr.msk.bf16.vlgmr.msra.gmra.mxu0 %vm1478_vm2, %v5016_v36 }
 0xe01   : > { %10161 = vmatpush3.bf16.xpose.msra.mxu0 %v5664_v34  ;;  %10162 = vmatprep.mubr.msk.bf16.mxu0 %vm10734_vm1, %v10733_v42 }
 0xe02   : > { %10157 = vmatmul.mubr.msk.bf16.vlgmr.msra.gmra.mxu1 %vm1478_vm2, %v12074_v22  ;;  %10172 = vmatprep.subr.bf16.mxu0 %v10733_v42 }
 0xe03   : > { %10167 = vmatpush3.bf16.xpose.msra.mxu1 %v5711_v16  ;;  %10168 = vmatprep.mubr.msk.bf16.mxu1 %vm10734_vm1, %v10733_v42 }
 0xe04   : > { %10178 = vmatprep.subr.bf16.mxu1 %v10733_v42 }
 0xe08   : > { %10163 = vmatmul.mubr.msk.bf16.vlgmr.msra.gmra.mxu0 %vm1478_vm2, %v5022_v20 }
 0xe09   : > { %10174 = vmatprep.mubr.msk.bf16.mxu0 %vm10734_vm1, %v10733_v42 }
 0xe0a   : > { %10169 = vmatmul.mubr.msk.bf16.vlgmr.msra.gmra.mxu1 %vm1478_vm2, %v12076_v23 }
 0xe0b   : > { %10180 = vmatprep.mubr.msk.bf16.mxu1 %vm10734_vm1, %v10733_v42 }
 0xec0   : > { %v5606_v48 = vpop.f32.mrf.mxu0 }
 0xec1   : > { %v5607_v36 = vadd.f32 %v5606_v48, %v11073_v28 }
 0xec2   : > { %v10152_v22 = vpop.f32.mrf.mxu0  ;;  %v5653_v19 = vpop.f32.mrf.mxu1 }
 0xec3   : > { %v5654_v21 = vadd.f32 %v5653_v19, %v11073_v28  ;;  %v5754_v1 = vsel %vm1478_vm2, %v5607_v36, -inf }
 0xec4   : > { %v10158_v63 = vpop.f32.mrf.mxu1  ;;  %5755 = vmax.xlane.f32.xlu1 %v5754_v1  ;;  %v5609_v20 = vpop.f32.mrf.mxu0 }
 0xec5   : > { %v5610_v24 = vadd.f32 %v5609_v20, %v11076_v32  ;;  %v5760_v23 = vsel %vm1478_vm2, %v5654_v21, -inf }
 0xec6   : > { %5761 = vmax.xlane.f32.xlu0 %v5760_v23  ;;  %v10153_v37 = vpop.f32.mrf.mxu0  ;;  %v5656_v47 = vpop.f32.mrf.mxu1 }
 0xec7   : > { %v5657_v15 = vadd.f32 %v5656_v47, %v11076_v32  ;;  %v5757_v49 = vsel %vm1478_vm2, %v5610_v24, -inf }
 0xec8   : > { %v10159_v25 = vpop.f32.mrf.mxu1  ;;  %v5700_v18 = vpop.f32.mrf.mxu0 }
 0xec9   : > { %v5701_v17 = vadd.f32 %v5700_v18, %v11073_v28  ;;  %v5763_v44 = vsel %vm1478_vm2, %v5657_v15, -inf }
 0xeca   : > { %v5747_v56 = vpop.f32.mrf.mxu1  ;;  %5764 = vmax.xlane.f32.xlu1 %v5763_v44  ;;  %5758 = vmax.xlane.f32.xlu0 %v5757_v49  ;;  %v10164_v26 = vpop.f32.mrf.mxu0 }
 0xecb   : > { %v5748_v52 = vadd.f32 %v5747_v56, %v11073_v28  ;;  %v5766_v38 = vsel %vm1478_vm2, %v5701_v17, -inf }
 0xecc   : > { %v5703_v51 = vpop.f32.mrf.mxu0  ;;  %v10170_v27 = vpop.f32.mrf.mxu1 }
 0xecd   : > { %v12149_v41 = vadd.f32 %v5703_v51, %v11076_v32  ;;  %v5772_v4 = vsel %vm1478_vm2, %v5748_v52, -inf }
 0xece   : > { %v5750_v50 = vpop.f32.mrf.mxu1  ;;  %5767 = vmax.xlane.f32.xlu0 %v5766_v38  ;;  %v10165_v54 = vpop.f32.mrf.mxu0 }
 0xecf   : > { %v5751_v55 = vadd.f32 %v5750_v50, %v11076_v32  ;;  %v5769_v58 = vsel %vm1478_vm2, %v12149_v41, -inf }
 0xed0   : > { %v10171_v61 = vpop.f32.mrf.mxu1  ;;  %5770 = vmax.xlane.f32.xlu1 %v5769_v58 }
 0xed1   : > { %v5775_v28 = vsel %vm1478_vm2, %v5751_v55, -inf  ;;  %v5306_v61 = vshrl.u32 %v12160_v6, 16 }
 0xed2   : > { %5773 = vmax.xlane.f32.xlu0 %v5772_v4 }
 0xed4   : > { %5776 = vmax.xlane.f32.xlu1 %v5775_v28 }
 0xee5   : > { %5298 = vrot.lane.b32.xlu1 %v12160_v6, %s13130_s27  ;;  %s13134_s27 = smov 32  }
 0xee8   : > { %5296 = vrot.lane.b32.xlu0 %v12160_v6, %s13131_s20  ;;  %s13135_s20 = smov 16  }
 0xf4d   : > { %v5756_v32 = vpop.xlane.xlu1 %5755 }
 0xf4e   : > { %v5778_v0 = vsub.f32 %v5607_v36, %v5756_v32 }
 0xf4f   : > { %v5762_v45 = vpop.xlane.xlu0 %5761 }
 0xf50   : > { %v5786_v57 = vmul.f32 1.442695, %v5778_v0  ;;  %v5780_v3 = vsub.f32 %v5654_v21, %v5762_v45 }
 0xf52   : > { %10622 = vpow2.f32 %v5786_v57  ;;  %v5790_v13 = vmul.f32 1.442695, %v5780_v3 }
 0xf53   : > { %v5765_v7 = vpop.xlane.xlu1 %5764  ;;  %v5759_v53 = vpop.xlane.xlu0 %5758 }
 0xf54   : > { %v5781_v8 = vsub.f32 %v5657_v15, %v5765_v7  ;;  %v5779_v30 = vsub.f32 %v5610_v24, %v5759_v53  ;;  %10624 = vpow2.f32 %v5790_v13 }
 0xf56   : > { %v5788_v33 = vmul.f32 1.442695, %v5779_v30  ;;  %v5792_v9 = vmul.f32 1.442695, %v5781_v8 }
 0xf57   : > { %v5768_v39 = vpop.xlane.xlu0 %5767 }
 0xf58   : > { %v5782_v12 = vsub.f32 %v5701_v17, %v5768_v39  ;;  %10626 = vpow2.f32 %v5788_v33 }
 0xf59   : > { %v5771_v34 = vpop.xlane.xlu1 %5770  ;;  %10628 = vpow2.f32 %v5792_v9 }
 0xf5a   : > { %v5794_v16 = vmul.f32 1.442695, %v5782_v12  ;;  %v5783_v26 = vsub.f32 %v12149_v41, %v5771_v34 }
 0xf5b   : > { %v5774_v10 = vpop.xlane.xlu0 %5773 }
 0xf5c   : > { %10630 = vpow2.f32 %v5794_v16  ;;  %v5784_v48 = vsub.f32 %v5748_v52, %v5774_v10  ;;  %v5796_v51 = vmul.f32 1.442695, %v5783_v26 }
 0xf5d   : > { %v5777_v36 = vpop.xlane.xlu1 %5776 }
 0xf5e   : > { %v5798_v22 = vmul.f32 1.442695, %v5784_v48  ;;  %v5785_v19 = vsub.f32 %v5751_v55, %v5777_v36 }
 0xf5f   : > { %v12166_v21 = vpop.eup %10622  ;;  %v5297_v38 = vpop.permute.xlu0 %5296 }
 0xf60   : > { %10632 = vpow2.f32 %v5798_v22  ;;  %v5800_v1 = vmul.f32 1.442695, %v5785_v19  ;;  %v5802_v63 = vsel %vm1478_vm2, %v12166_v21, 0.0  ;;  %v5307_v58 = vshrl.u32 %v5297_v38, 16 }
 0xf61   : > { %v12170_v20 = vpop.eup %10624  ;;  %5803 = vadd.xlane.f32.xlu0 %v5802_v63  ;;  %v5299_v50 = vpop.permute.xlu1 %5298  ;;  %v5304_v4 = vpack.i.b16 %v5297_v38, %v12160_v6 }
 0xf62   : > { %10634 = vpow2.f32 %v5800_v1  ;;  %v5808_v24 = vsel %vm1478_vm2, %v12170_v20, 0.0  ;;  %v5308_v5 = vpack.i.b16 %v5307_v58, %v5306_v61  ;;  %v5314_v32 = vshrl.u32 %v5299_v50, 16 }
 0xf63   : > { %10636 = vpow2.f32 %v5796_v51  ;;  %v5318_v31 = vcombine.high %v5304_v4, %v10932_v29  ;;  %v5325_v57 = vrot.slane %v5304_v4, %v10936_v35 }
 0xf64   : > { %v5384_v3 = vcombine.high %v5308_v5, %v10932_v29  ;;  %v5391_v12 = vrot.slane %v5308_v5, %v10936_v35 }
 0xf65   : > { %v12174_v23 = vpop.eup %10626  ;;  %5809 = vadd.xlane.f32.xlu0 %v5808_v24  ;;  %v5332_v8 = vrot.slane %v5318_v31, %v10936_v35 }
 0xf66   : > { %v5805_v37 = vsel %vm1478_vm2, %v12174_v23, 0.0  ;;  %v12178_v47 = vpop.eup %10628  ;;  %v5398_v34 = vrot.slane %v5384_v3, %v10936_v35 }
 0xf67   : > { %5806 = vadd.xlane.f32.xlu1 %v5805_v37  ;;  %v5811_v18 = vsel %vm1478_vm2, %v12178_v47, 0.0 }
 0xf69   : > { %v12180_v15 = vpop.eup %10630 }
 0xf6a   : > { %v5814_v25 = vsel %vm1478_vm2, %v12180_v15, 0.0 }
 0xf6b   : > { %5815 = vadd.xlane.f32.xlu0 %v5814_v25  ;;  %5812 = vadd.xlane.f32.xlu1 %v5811_v18 }
 0xf6d   : > { %v12186_v17 = vpop.eup %10632 }
 0xf6e   : > { %v5820_v44 = vsel %vm1478_vm2, %v12186_v17, 0.0 }
 0xf6f   : > { %v12190_v49 = vpop.eup %10634  ;;  %5821 = vadd.xlane.f32.xlu0 %v5820_v44 }
 0xf70   : > { %v5823_v56 = vsel %vm1478_vm2, %v12190_v49, 0.0  ;;  %v12197_v27 = vpop.eup %10636 }
 0xf71   : > { %v5817_v52 = vsel %vm1478_vm2, %v12197_v27, 0.0 }
 0xf73   : > { %5824 = vadd.xlane.f32.xlu0 %v5823_v56 }
 0xf7c   : > { %5300 = vrot.lane.b32.xlu1 %v12160_v6, %s13132_s23  ;;  %s13136_s23 = smov 48  }
 0xfa0   : > { %5818 = vadd.xlane.f32.xlu1 %v5817_v52 }
 0xfea   : > { %v5804_v54 = vpop.xlane.xlu0 %5803 }
 0xfeb   : > { %10638 = vrcp.f32 %v5804_v54 }
 0xfee   : > { %v5810_v41 = vpop.xlane.xlu0 %5809 }
 0xfef   : > { %10640 = vrcp.f32 %v5810_v41 }
 0xff0   : > { %v5807_v55 = vpop.xlane.xlu1 %5806 }
 0xff1   : > { %10642 = vrcp.f32 %v5807_v55 }
 0xff4   : > { %v5813_v28 = vpop.xlane.xlu1 %5812  ;;  %v12206_v13 = vpop.xlane.xlu0 %5815 }
 0xff5   : > { %10644 = vrcp.f32 %v5813_v28 }
 0xff8   : > { %v5301_v59 = vpop.permute.xlu1 %5300  ;;  %v5822_v19 = vpop.xlane.xlu0 %5821 }
 0xff9   : > { %v5312_v0 = vpack.i.b16 %v5301_v59, %v5299_v50  ;;  %v5315_v45 = vshrl.u32 %v5301_v59, 16  ;;  %v10639_v3 = vpop.eup %10638 }
 0xffb   : > { %v5316_v7 = vpack.i.b16 %v5315_v45, %v5314_v32  ;;  %v5333_v53 = vcombine.high %v5312_v0, %v10932_v29  ;;  %v5340_v6 = vrot.slane %v5312_v0, %v10936_v35 }
 0xffc   : > { %v5825_v45 = vpop.xlane.xlu0 %5824 }
 0xffd   : > { %v5347_v30 = vrot.slane %v5333_v53, %v10936_v35  ;;  %v5348_v33 = vcombine.low %v5325_v57, %v5340_v6  ;;  %v5349_v9 = vcombine.high %v5325_v57, %v5340_v6  ;;  %v5399_v39 = vcombine.high %v5316_v7, %v10932_v29 }
 0xffe   : > { %v5406_v16 = vrot.slane %v5316_v7, %v10936_v35  ;;  %10646 = vrcp.f32 %v5825_v45 }
 0xfff   : > { %v5356_v10 = vrot.slane %v5348_v33, %v10944_v43  ;;  %v5363_v48 = vrot.slane %v5349_v9, %v10944_v43  ;;  %v5364_v36 = vcombine.low %v5332_v8, %v5347_v30  ;;  %v5365_v22 = vcombine.high %v5332_v8, %v5347_v30  ;;  %v10641_v8 = vpop.eup %10640 }
0x1000   : > { %v5413_v1 = vrot.slane %v5399_v39, %v10936_v35  ;;  %v5414_v63 = vcombine.low %v5391_v12, %v5406_v16  ;;  %v5415_v24 = vcombine.high %v5391_v12, %v5406_v16  ;;  %v10643_v39 = vpop.eup %10642  ;;  %10648 = vrcp.f32 %v5822_v19 }
0x1001   : > { %v5372_v29 = vrot.slane %v5364_v36, %v10944_v43  ;;  %v5379_v37 = vrot.slane %v5365_v22, %v10944_v43  ;;  %v5450_v25 = vcombine.low %v5356_v10, %v5363_v48  ;;  %v9121_v18 = vcombine.high %v5356_v10, %v5363_v48 }
0x1002   : > { %v5422_v44 = vrot.slane %v5414_v63, %v10944_v43  ;;  %v5429_v56 = vrot.slane %v5415_v24, %v10944_v43  ;;  %v5430_v26 = vcombine.low %v5398_v34, %v5413_v1  ;;  %v5431_v51 = vcombine.high %v5398_v34, %v5413_v1  ;;  %v10645_v10 = vpop.eup %10644 }
0x1003   : > { %v5457_v52 = vrot.slane %v5450_v25, %v10936_v35  ;;  %v5465_v38 = vrot.slane %v9121_v18, %v10936_v35  ;;  %v5466_v50 = vcombine.low %v5372_v29, %v5379_v37  ;;  %v9122_v54 = vcombine.high %v5372_v29, %v5379_v37 }
0x1004   : > { %v5438_v55 = vrot.slane %v5430_v26, %v10944_v43  ;;  %v5445_v58 = vrot.slane %v5431_v51, %v10944_v43  ;;  %v5500_v61 = vcombine.low %v5422_v44, %v5429_v56  ;;  %v9123_v4 = vcombine.high %v5422_v44, %v5429_v56 }
0x1005   : > { %v5473_v28 = vrot.slane %v5466_v50, %v10936_v35  ;;  %v5481_v5 = vrot.slane %v9122_v54, %v10936_v35  ;;  %v5482_v41 = vcombine.low %v5457_v52, %v5465_v38  ;;  %v5835_v22 = vmul.f32 %v10643_v39, %v12174_v23 }
0x1006   : > { %v5507_v31 = vrot.slane %v5500_v61, %v10936_v35  ;;  %v5515_v59 = vrot.slane %v9123_v4, %v10936_v35  ;;  %v5516_v32 = vcombine.low %v5438_v55, %v5445_v58  ;;  %v9124_v0 = vcombine.high %v5438_v55, %v5445_v58 }
0x1007   : > { %v5490_v57 = vcombine.low %v5473_v28, %v5481_v5  ;;  %v5489_v33 = vrot.slane %v5482_v41, %v10944_v43  ;;  %v5834_v37 = vmul.f32 %v10639_v3, %v12166_v21  ;;  %v5837_v25 = vmul.f32 %v10645_v10, %v12178_v47 }
0x1008   : > { %v5523_v7 = vrot.slane %v5516_v32, %v10936_v35  ;;  %v5531_v53 = vrot.slane %v9124_v0, %v10936_v35  ;;  %v5532_v6 = vcombine.low %v5507_v31, %v5515_v59  ;;  %v5836_v56 = vmul.f32 %v10641_v8, %v12170_v20 }
0x1009   : > { %v5497_v30 = vrot.slane %v5490_v57, %v10944_v43  ;;  %v5842_v44 = vpack.c.bf16 %v5835_v22, %v5834_v37  ;;  %10650 = vrcp.f32 %v12206_v13 }
0x100a   : > { %v5540_v9 = vcombine.low %v5523_v7, %v5531_v53  ;;  %v5539_v34 = vrot.slane %v5532_v6, %v10944_v43  ;;  %v5843_v23 = vpack.c.bf16 %v5837_v25, %v5836_v56 }
0x100b   : > { %v5498_v12 = vcombine.low %v5489_v33, %v5497_v30  ;;  %v5499_v29 = vcombine.high %v5489_v33, %v5497_v30  ;;  %v10647_v52 = vpop.eup %10646 }
0x100c   : > { %v5547_v16 = vrot.slane %v5540_v9, %v10944_v43  ;;  %v5841_v20 = vmul.f32 %v10647_v52, %v12190_v49  ;;  %v10451_v49 = vld [vmem:[%s13093_s4 + $0x30] sm:$0xff]  }
0x100d   : > { %v5554_v63 = vshrl.u32 %v5498_v12, 16  ;;  %v5562_v51 = vshrl.u32 %v5499_v29, 16  ;;  %v10649_v47 = vpop.eup %10648 }
0x100e   : > { %v5548_v48 = vcombine.low %v5539_v34, %v5547_v16  ;;  %v5549_v36 = vcombine.high %v5539_v34, %v5547_v16  ;;  %v5840_v38 = vmul.f32 %v10649_v47, %v12186_v17  ;;  %v10450_v17 = vld [vmem:[%s13093_s4 + $0x38] sm:$0xff]  }
0x1010   : > { %v5552_v1 = vpack.i.b16 %v5548_v48, %v5498_v12  ;;  %v5555_v24 = vshrl.u32 %v5548_v48, 16  ;;  %v5563_v18 = vshrl.u32 %v5549_v36, 16  ;;  %v5560_v26 = vpack.i.b16 %v5549_v36, %v5499_v29 }
0x1011   : > { %v5845_v50 = vpack.c.bf16 %v5841_v20, %v5840_v38 }
0x1012   : > { %10173 = vmatpush3.bf16.msra.mxu0 %v5552_v1  ;;  %v5556_v19 = vpack.i.b16 %v5555_v24, %v5554_v63  ;;  %v5564_v21 = vpack.i.b16 %v5563_v18, %v5562_v51 }
0x1013   : > { %10184 = vmatprep.subr.bf16.mxu0 %v10733_v42 }
0x1014   : > { %10179 = vmatpush3.bf16.msra.mxu1 %v5556_v19 }
0x1015   : > { %10175 = vmatmul.mubr.msk.bf16.vlgmr.msra.gmra.mxu0 %vm1478_vm2, %v5842_v44  ;;  %10190 = vmatprep.subr.bf16.mxu1 %v10733_v42 }
0x1016   : > { %10185 = vmatpush3.bf16.msra.mxu0 %v5560_v26  ;;  %10186 = vmatprep.mubr.msk.bf16.mxu0 %vm10734_vm1, %v10733_v42  ;;  %v10651_v55 = vpop.eup %10650 }
0x1017   : > { %10181 = vmatmul.mubr.msk.bf16.vlgmr.msra.gmra.mxu1 %vm1478_vm2, %v5843_v23  ;;  %10196 = vmatprep.subr.bf16.mxu0 %v10733_v42  ;;  %v5838_v61 = vmul.f32 %v10651_v55, %v12180_v15 }
0x1018   : > { %10191 = vmatpush3.bf16.msra.mxu1 %v5564_v21  ;;  %10192 = vmatprep.mubr.msk.bf16.mxu1 %vm10734_vm1, %v10733_v42 }
0x101f   : > { %10193 = vmatmul.mubr.msk.bf16.vlgmr.msra.gmra.mxu1 %vm1478_vm2, %v5845_v50 }
0x1020   : > { %6614 = vmatprep.mubr.bf16.mxu1 %v10726_v2 }
0x1029   : > { %v5819_v54 = vpop.xlane.xlu1 %5818 }
0x102a   : > { %10652 = vrcp.f32 %v5819_v54 }
0x1037   : > { %v10653_v58 = vpop.eup %10652 }
0x1038   : > { %v5839_v4 = vmul.f32 %v10653_v58, %v12197_v27 }
0x103a   : > { %v5844_v28 = vpack.c.bf16 %v5839_v4, %v5838_v61 }
0x103c   : > { %10187 = vmatmul.mubr.msk.bf16.vlgmr.msra.gmra.mxu0 %vm1478_vm2, %v5844_v28 }
0x103d   : > { %10204 = vmatprep.mubr.msk.bf16.mxu0 %vm10734_vm1, %v10733_v42  ;;  %10197 = vmatpush3.bf16.msra.mxu0 %v10450_v17 }
0x103e   : > { %10198 = vmatprep.subr.bf16.mxu0 %v10733_v42 }
0x1041   : > { %10199 = vmatpush3.bf16.msra.mxu0 %v10451_v49 }
0x1042   : > { %10200 = vmatprep.subr.bf16.mxu0 %v10733_v42 }
0x10d5   : > { %v5883_v15 = vpop.f32.mrf.mxu0 }
0x10d7   : > { %v10176_v27 = vpop.f32.mrf.mxu0  ;;  %v5927_v13 = vpop.f32.mrf.mxu1 }
0x10d9   : > { %v5886_v5 = vpop.f32.mrf.mxu0  ;;  %v10182_v41 = vpop.f32.mrf.mxu1 }
0x10db   : > { %v10177_v31 = vpop.f32.mrf.mxu0  ;;  %v5930_v59 = vpop.f32.mrf.mxu1 }
0x10dd   : > { %v10183_v32 = vpop.f32.mrf.mxu1 }
0x10df   : > { %v6015_v0 = vpop.f32.mrf.mxu1 }
0x10e0   : > { %v6038_v7 = vcombine.low %v5927_v13, %v6015_v0  ;;  %v6039_v53 = vcombine.high %v5927_v13, %v6015_v0 }
0x10e1   : > { %v10194_v45 = vpop.f32.mrf.mxu1 }
0x10e2   : > { %v6046_v9 = vrot.slane %v6038_v7, %v10936_v35  ;;  %v6053_v39 = vrot.slane %v6039_v53, %v10936_v35  ;;  %v10452_v7 = vld [vmem:[%s13093_s4 + $0x28] sm:$0xff]  }
0x10e3   : > { %v6018_v57 = vpop.f32.mrf.mxu1  ;;  %10201 = vmatpush3.bf16.msra.mxu0 %v10452_v7 }
0x10e4   : > { %v6106_v16 = vcombine.low %v5930_v59, %v6018_v57  ;;  %v6107_v10 = vcombine.high %v5930_v59, %v6018_v57  ;;  %10202 = vmatprep.subr.bf16.mxu0 %v10733_v42 }
0x10e5   : > { %v10195_v3 = vpop.f32.mrf.mxu1 }
0x10e6   : > { %v6114_v56 = vrot.slane %v6106_v16, %v10936_v35  ;;  %v6121_v26 = vrot.slane %v6107_v10, %v10936_v35 }
0x10fc   : > { %v5971_v6 = vpop.f32.mrf.mxu0 }
0x10fd   : > { %v6022_v8 = vcombine.low %v5883_v15, %v5971_v6  ;;  %v6023_v30 = vcombine.high %v5883_v15, %v5971_v6 }
0x10fe   : > { %v10188_v33 = vpop.f32.mrf.mxu0 }
0x10ff   : > { %v6030_v12 = vrot.slane %v6022_v8, %v10936_v35  ;;  %v6037_v34 = vrot.slane %v6023_v30, %v10936_v35 }
0x1100   : > { %v5974_v48 = vpop.f32.mrf.mxu0 }
0x1101   : > { %v6054_v36 = vcombine.low %v6030_v12, %v6046_v9  ;;  %v6055_v22 = vcombine.high %v6030_v12, %v6046_v9  ;;  %v6070_v1 = vcombine.low %v6037_v34, %v6053_v39  ;;  %v6071_v63 = vcombine.high %v6037_v34, %v6053_v39 }
0x1102   : > { %v6090_v24 = vcombine.low %v5886_v5, %v5974_v48  ;;  %v6091_v29 = vcombine.high %v5886_v5, %v5974_v48  ;;  %v10189_v37 = vpop.f32.mrf.mxu0 }
0x1103   : > { %v6062_v25 = vrot.slane %v6054_v36, %v10944_v43  ;;  %v6069_v19 = vrot.slane %v6055_v22, %v10944_v43  ;;  %v6078_v18 = vrot.slane %v6070_v1, %v10944_v43  ;;  %v6085_v44 = vrot.slane %v6071_v63, %v10944_v43  ;;  %v10453_v1 = vld [vmem:[%s13093_s4 + $0x20] sm:$0xff]  }
0x1104   : > { %v6098_v51 = vrot.slane %v6090_v24, %v10936_v35  ;;  %v6105_v23 = vrot.slane %v6091_v29, %v10936_v35  ;;  %10203 = vmatpush3.bf16.msra.mxu0 %v10453_v1 }
0x1105   : > { %v6158_v52 = vcombine.low %v6062_v25, %v6069_v19  ;;  %v9133_v21 = vcombine.high %v6062_v25, %v6069_v19  ;;  %v6174_v47 = vcombine.low %v6078_v18, %v6085_v44  ;;  %v9134_v20 = vcombine.high %v6078_v18, %v6085_v44 }
0x1106   : > { %v6122_v38 = vcombine.low %v6098_v51, %v6114_v56  ;;  %v6123_v50 = vcombine.high %v6098_v51, %v6114_v56  ;;  %v6138_v54 = vcombine.low %v6105_v23, %v6121_v26  ;;  %v6139_v55 = vcombine.high %v6105_v23, %v6121_v26 }
0x1107   : > { %v6165_v58 = vrot.slane %v6158_v52, %v10936_v35  ;;  %v6173_v61 = vrot.slane %v9133_v21, %v10936_v35  ;;  %v6181_v4 = vrot.slane %v6174_v47, %v10936_v35  ;;  %v6189_v28 = vrot.slane %v9134_v20, %v10936_v35 }
0x1108   : > { %v6130_v17 = vrot.slane %v6122_v38, %v10944_v43  ;;  %v6137_v49 = vrot.slane %v6123_v50, %v10944_v43  ;;  %v6146_v15 = vrot.slane %v6138_v54, %v10944_v43  ;;  %v6153_v27 = vrot.slane %v6139_v55, %v10944_v43 }
0x1109   : > { %v6191_v13 = vcombine.high %v6165_v58, %v6173_v61  ;;  %v6207_v5 = vcombine.high %v6181_v4, %v6189_v28  ;;  %v6190_v41 = vcombine.low %v6165_v58, %v6173_v61  ;;  %v6206_v31 = vcombine.low %v6181_v4, %v6189_v28 }
0x110a   : > { %v6226_v59 = vcombine.low %v6130_v17, %v6137_v49  ;;  %v9135_v32 = vcombine.high %v6130_v17, %v6137_v49  ;;  %v6242_v0 = vcombine.low %v6146_v15, %v6153_v27  ;;  %v9136_v45 = vcombine.high %v6146_v15, %v6153_v27  ;;  %v9146_v17 = vld [vmem:[%s13097_s8 + $0x1] ss:$0 sm:$0xff] }
0x110b   : > { %v6198_v57 = vrot.slane %v6190_v41, %v10944_v43  ;;  %v6214_v3 = vrot.slane %v6206_v31, %v10944_v43  ;;  %v6205_v33 = vrot.slane %v6191_v13, %v10944_v43  ;;  %v6221_v9 = vrot.slane %v6207_v5, %v10944_v43 }
0x110c   : > { %v6233_v53 = vrot.slane %v6226_v59, %v10936_v35  ;;  %v6241_v6 = vrot.slane %v9135_v32, %v10936_v35  ;;  %v6249_v8 = vrot.slane %v6242_v0, %v10936_v35  ;;  %v6257_v30 = vrot.slane %v9136_v45, %v10936_v35 }
0x110d   : > { %v6222_v39 = vcombine.low %v6198_v57, %v6214_v3  ;;  %v6224_v63 = vcombine.low %v6205_v33, %v6221_v9  ;;  %v6223_v29 = vcombine.high %v6198_v57, %v6214_v3  ;;  %v6225_v44 = vcombine.high %v6205_v33, %v6221_v9  ;;  %v9168_v33 = vld [vmem:[%s13094_s5 + $0x380] sm:$0xff] }
0x110e   : > { %v6259_v12 = vcombine.high %v6233_v53, %v6241_v6  ;;  %v6275_v34 = vcombine.high %v6249_v8, %v6257_v30  ;;  %v6258_v16 = vcombine.low %v6233_v53, %v6241_v6  ;;  %v6274_v10 = vcombine.low %v6249_v8, %v6257_v30  ;;  %v9170_v9 = vld [vmem:[%s13094_s5 + $0x3c0] sm:$0xff] }
0x1110   : > { %v6273_v48 = vrot.slane %v6259_v12, %v10944_v43  ;;  %v6289_v36 = vrot.slane %v6275_v34, %v10944_v43  ;;  %v6266_v22 = vrot.slane %v6258_v16, %v10944_v43  ;;  %v6282_v35 = vrot.slane %v6274_v10, %v10944_v43  ;;  %v9171_v34 = vld [vmem:[%s13094_s5 + $0x3c8] sm:$0xff] }
0x1111   : > { %v9186_v12 = vcombine.high %v9168_v33, %v9170_v9  ;;  %v9185_v16 = vcombine.low %v9168_v33, %v9170_v9 }
0x1112   : > { %v6292_v24 = vcombine.low %v6273_v48, %v6289_v36  ;;  %v6291_v37 = vcombine.high %v6266_v22, %v6282_v35  ;;  %v6290_v25 = vcombine.low %v6266_v22, %v6282_v35  ;;  %v6293_v18 = vcombine.high %v6273_v48, %v6289_v36  ;;  %v9164_v36 = vld [vmem:[%s13094_s5 + $0x300] sm:$0xff]  ;;  %v9165_v35 = vld [vmem:[%s13094_s5 + $0x308] sm:$0xff] }
0x1113   : > { %6590 = vmatprep.subr.bf16.mxu1 %v9186_v12  ;;  %v9166_v22 = vld [vmem:[%s13094_s5 + $0x340] sm:$0xff] }
0x1114   : > { %v10284_v19 = vpack.i.bf16 %v6292_v24, %v6224_v63  ;;  %v10279_v42 = vpack.i.bf16 %v6291_v37, %v6223_v29  ;;  %v10289_v56 = vpack.i.bf16 %v6293_v18, %v6225_v44  ;;  %6591 = vmatpush1.bf16.msra.mxu1 %v9185_v16  ;;  %v9182_v1 = vcombine.high %v9164_v36, %v9166_v22  ;;  %v9167_v63 = vld [vmem:[%s13094_s5 + $0x348] sm:$0xff]  ;;  %v9261_v16 = vld [vmem:[%s13094_s5 + $0x2d0] sm:$0xff] }
0x1115   : > { %v9181_v24 = vcombine.low %v9164_v36, %v9166_v22  ;;  %v9183_v29 = vcombine.low %v9165_v35, %v9167_v63  ;;  %v9184_v37 = vcombine.high %v9165_v35, %v9167_v63  ;;  %v9163_v44 = vld [vmem:[%s13094_s5 + $0x2c8] sm:$0xff]  ;;  %v9255_v63 = vld [vmem:[%s13094_s5 + $0x210] sm:$0xff] }
0x1116   : > { %10285 = vrot.lane.b32.xlu0 %v10284_v19, %s13134_s27  ;;  %10280 = vrot.lane.b32.xlu1 %v10279_v42, %s13135_s20  ;;  %v9162_v19 = vld [vmem:[%s13094_s5 + $0x2c0] sm:$0xff]  ;;  %v9161_v42 = vld [vmem:[%s13094_s5 + $0x288] sm:$0xff]  ;;  %s9693_s20 = sshll.u32 %s10843_s22, 8 }
0x1117   : > { %6592 = vmatprep.subr.bf16.mxu1 %v9182_v1  ;;  %s13044_s24 = scalar_lea.hbm %s13104_s15, %s9693_s20 }
0x1118   : > { %6593 = vmatpush1.bf16.msra.mxu1 %v9181_v24  ;;  %v9257_v24 = vld [vmem:[%s13094_s5 + $0x250] sm:$0xff] }
0x111a   : > { %10290 = vrot.lane.b32.xlu1 %v10289_v56, %s13136_s23  ;;  %s513_s23 = scalar_lea.vmem [#allocation2], %s8846_s30  ;;  %s10668_s30 = sshll.u32 %s10739_s16, 4  ;;  %s10669_s30 = int_to_ptr.vmem [resolvable:$false] %s10668_s30 }
0x111b   : > { %s8759_s17 = sshll.u32 %s513_s23, 4  ;;  %s10670_s21 = scalar_lea.vmem %s10669_s30, 512  ;;  %s13046_s17 = int_to_ptr.vmem [resolvable:$true] %s8759_s17 }
0x111c   : > { %s10664_s22 = scalar_lea.vmem %s13046_s17, 256  ;;  %p10671_p0 = scmp.lt.s32.totalorder %s13046_s17, %s10669_s30 }
0x111d   : > { %p10665_p11 = scmp.ne.s32.totalorder %s13046_s17, %s10664_s22  ;;  %p10672_p1 = scmp.lt.s32.totalorder %s10670_s21, %s10664_s22 }
0x111f   : > { %p10666_p12 = pnand %p10665_p11, %p10860_p5  ;;  %p10673_p2 = por %p10672_p1, %p10671_p0 }
0x1121   : > { %p10667_p13 = pneg %p10666_p12 }
0x1123   : > { %p10674_p3 = pnand %p10673_p2, %p10667_p13 }
0x1188   : > { %v10286_v43 = vpop.permute.xlu0 %10285  ;;  %v10281_v26 = vpop.permute.xlu1 %10280 }
0x1189   : > { %v10283_v51 = vunpack.i.h.bf16 %v10281_v26  ;;  %v10282_v23 = vunpack.i.l.bf16 %v10281_v26  ;;  %v10288_v52 = vunpack.i.h.bf16 %v10286_v43  ;;  %v10287_v21 = vunpack.i.l.bf16 %v10286_v43 }
0x118a   : > { %v9179_v43 = vcombine.low %v9161_v42, %v9163_v44  ;;  %v9180_v26 = vcombine.high %v9161_v42, %v9163_v44  ;;  %v9273_v42 = vcombine.high %v9255_v63, %v9257_v24  ;;  %v9272_v44 = vcombine.low %v9255_v63, %v9257_v24 }
0x118b   : > { %v6318_v47 = vsel %vm1478_vm2, %v6222_v39, %v10282_v23  ;;  %v6319_v20 = vsel %vm1478_vm2, %v6290_v25, %v10283_v51  ;;  %v9169_v39 = vld [vmem:[%s13094_s5 + $0x388] sm:$0xff]  ;;  %v9160_v25 = vld [vmem:[%s13094_s5 + $0x280] sm:$0xff] }
0x118c   : > { %v10291_v38 = vpop.permute.xlu1 %10290  ;;  %v6320_v55 = vsel %vm2233_vm9, %v6318_v47, %v10287_v21  ;;  %v6321_v58 = vsel %vm2233_vm9, %v6319_v20, %v10288_v52  ;;  %v9187_v10 = vcombine.low %v9169_v39, %v9171_v34  ;;  %v9188_v48 = vcombine.high %v9169_v39, %v9171_v34  ;;  %v9156_v51 = vld [vmem:[%s13094_s5 + $0x200] sm:$0xff]  ;;  %v9157_v52 = vld [vmem:[%s13094_s5 + $0x208] sm:$0xff]  ;;  %v9259_v34 = vld [vmem:[%s13094_s5 + $0x290] sm:$0xff] }
0x118d   : > { %v10293_v50 = vunpack.i.h.bf16 %v10291_v38  ;;  %v10292_v54 = vunpack.i.l.bf16 %v10291_v38  ;;  %v9178_v18 = vcombine.high %v9160_v25, %v9162_v19  ;;  %v9177_v56 = vcombine.low %v9160_v25, %v9162_v19  ;;  %v9158_v23 = vld [vmem:[%s13094_s5 + $0x240] sm:$0xff]  ;;  %v9159_v47 = vld [vmem:[%s13094_s5 + $0x248] sm:$0xff] }
0x118e   : > { %6633 = vmatprep.subr.bf16.mxu0 %v9188_v48  ;;  %v9174_v21 = vcombine.high %v9156_v51, %v9158_v23  ;;  %v9173_v20 = vcombine.low %v9156_v51, %v9158_v23  ;;  %v9175_v38 = vcombine.low %v9157_v52, %v9159_v47  ;;  %v9262_v48 = vld [vmem:[%s13094_s5 + $0x2d8] sm:$0xff]  ;;  %v9277_v35 = vcombine.high %v9259_v34, %v9261_v16 }
0x118f   : > { %v6322_v61 = vsel %vm2236_vm10, %v6320_v55, %v10292_v54  ;;  %v6323_v4 = vsel %vm2236_vm10, %v6321_v58, %v10293_v50  ;;  %6594 = vmatprep.subr.bf16.mxu1 %v9178_v18  ;;  %v9176_v50 = vcombine.high %v9157_v52, %v9159_v47  ;;  %v9267_v54 = vld [vmem:[%s13094_s5 + $0x390] sm:$0xff]  ;;  %v9268_v58 = vld [vmem:[%s13094_s5 + $0x398] sm:$0xff]  ;;  %v9276_v25 = vcombine.low %v9259_v34, %v9261_v16 }
0x1190   : > { %v6324_v28 = vpack.c.bf16 %v6323_v4, %v6322_v61  ;;  %6595 = vmatpush1.bf16.msra.mxu1 %v9177_v56  ;;  %v9269_v55 = vld [vmem:[%s13094_s5 + $0x3d0] sm:$0xff]  ;;  %v10456_v51 = vld [vmem:[%s13095_s6 + $0x538] sm:$0xff]  }
0x1191   : > { %6596 = vmatprep.subr.bf16.mxu1 %v9174_v21  ;;  %v9284_v61 = vcombine.low %v9267_v54, %v9269_v55  ;;  %v9285_v4 = vcombine.high %v9267_v54, %v9269_v55  ;;  %v10457_v23 = vld [vmem:[%s13095_s6 + $0x5b8] sm:$0xff]   ;;  %v10458_v52 = vld [vmem:[%s13095_s6 + $0x570] sm:$0xff]   ;;  %v10464_v54 = vld [vmem:[%s13095_s6 + $0x528] sm:$0xff]  }
0x1192   : > { %10205 = vmatmul.mubr.msk.bf16.vlgmr.msra.gmra.mxu0 %vm617_vm0, %v6324_v28  ;;  %v9270_v28 = vld [vmem:[%s13094_s5 + $0x3d8] sm:$0xff]  ;;  %v10459_v21 = vld [vmem:[%s13095_s6 + $0x5f0] sm:$0xff]   ;;  %v10465_v55 = vld [vmem:[%s13095_s6 + $0x5a8] sm:$0xff]  }
0x1193   : > { %6657 = vmatprep.mubr.bf16.mxu0 %v10726_v2  ;;  %6634 = vmatpush1.bf16.msra.mxu0 %v9187_v10  ;;  %v9260_v10 = vld [vmem:[%s13094_s5 + $0x298] sm:$0xff]  ;;  %v10460_v47 = vld [vmem:[%s13095_s6 + $0x530] sm:$0xff]  }
0x1194   : > { %6635 = vmatprep.subr.bf16.mxu0 %v9184_v37  ;;  %6597 = vmatpush1.bf16.msra.mxu1 %v9173_v20  ;;  %v9279_v1 = vcombine.high %v9260_v10, %v9262_v48  ;;  %v9258_v37 = vld [vmem:[%s13094_s5 + $0x258] sm:$0xff]  ;;  %v9278_v19 = vcombine.low %v9260_v10, %v9262_v48  ;;  %v10461_v20 = vld [vmem:[%s13095_s6 + $0x5b0] sm:$0xff]  }
0x1195   : > { %6871 = vmatprep.subr.bf16.mxu1 %v9285_v4  ;;  %v10468_v4 = vld [vmem:[%s13095_s6 + $0x520] sm:$0xff]  }
0x1197   : > { %6636 = vmatpush1.bf16.msra.mxu0 %v9183_v29  ;;  %v9256_v29 = vld [vmem:[%s13094_s5 + $0x218] sm:$0xff] }
0x1198   : > { %6637 = vmatprep.subr.bf16.mxu0 %v9180_v26  ;;  %v9275_v18 = vcombine.high %v9256_v29, %v9258_v37  ;;  %v9274_v56 = vcombine.low %v9256_v29, %v9258_v37  ;;  %v10455_v26 = vld [vmem:[%s13095_s6 + $0x5f8] sm:$0xff]  }
0x119b   : > { %6638 = vmatpush1.bf16.msra.mxu0 %v9179_v43  ;;  %v10454_v43 = vld [vmem:[%s13095_s6 + $0x578] sm:$0xff]  }
0x119c   : > { %6639 = vmatprep.subr.bf16.mxu0 %v9176_v50  ;;  %v10463_v50 = vld [vmem:[%s13095_s6 + $0x5e8] sm:$0xff]  }
0x119f   : > { %6640 = vmatpush1.bf16.msra.mxu0 %v9175_v38  ;;  %v10462_v38 = vld [vmem:[%s13095_s6 + $0x568] sm:$0xff]  }
0x1252   : > { %v6403_v49 = vpop.f32.mrf.mxu0 }
0x1253   : > { %v6404_v15 = vadd.f32 %v9146_v17, %v6403_v49  ;;  %v9287_v49 = vcombine.high %v9268_v58, %v9270_v28 }
0x1254   : > { %v10206_v27 = vpop.f32.mrf.mxu0 }
0x1255   : > { %v6410_v13 = vadd.f32 %v6404_v15, %v12001_v40  ;;  %6914 = vmatprep.subr.bf16.mxu0 %v9287_v49  ;;  %v10471_v49 = vld [vmem:[%s13095_s6 + $0x5d8] sm:$0xff]  }
0x1256   : > { %v6406_v5 = vpop.f32.mrf.mxu0 }
0x1257   : > { %v6407_v41 = vadd.f32 %v9146_v17, %v6406_v5  ;;  %v6412_v31 = vsel %vm617_vm0, %v6410_v13, 0.0  ;;  %v9286_v17 = vcombine.low %v9268_v58, %v9270_v28  ;;  %v10466_v58 = vld [vmem:[%s13095_s6 + $0x560] sm:$0xff]  }
0x1258   : > { %6413 = vadd.xlane.f32.xlu1 %v6412_v31  ;;  %v10207_v59 = vpop.f32.mrf.mxu0  ;;  %v10469_v28 = vld [vmem:[%s13095_s6 + $0x5a0] sm:$0xff]  }
0x1259   : > { %v6411_v32 = vadd.f32 %v6407_v41, %v12003_v46 }
0x125b   : > { %v6415_v0 = vsel %vm617_vm0, %v6411_v32, 0.0 }
0x125c   : > { %6416 = vadd.xlane.f32.xlu0 %v6415_v0  ;;  %v9153_v0 = vld [vmem:[%s13100_s11 + $0x1] ss:$0 sm:$0xff] }
0x12e1   : > { %v6414_v45 = vpop.xlane.xlu1 %6413 }
0x12e2   : > { %v6418_v57 = vmul.f32 0.015625, %v6414_v45 }
0x12e4   : > { %v12325_v3 = vsub.f32 %v6410_v13, %v6418_v57 }
0x12e5   : > { %v6417_v7 = vpop.xlane.xlu0 %6416 }
0x12e6   : > { %v6419_v53 = vmul.f32 0.015625, %v6417_v7  ;;  %v6422_v40 = vmul.f32 %v12325_v3, %v12325_v3 }
0x12e8   : > { %v12329_v6 = vsub.f32 %v6411_v32, %v6419_v53  ;;  %v6424_v8 = vsel %vm617_vm0, %v6422_v40, 0.0  ;;  %v9155_v53 = vld [vmem:[%s13101_s12 + $0x1] ss:$0 sm:$0xff] }
0x12e9   : > { %6425 = vadd.xlane.f32.xlu0 %v6424_v8  ;;  %v9263_v8 = vld [vmem:[%s13094_s5 + $0x310] sm:$0xff] }
0x12ea   : > { %v6423_v46 = vmul.f32 %v12329_v6, %v12329_v6 }
0x12ec   : > { %v6427_v30 = vsel %vm617_vm0, %v6423_v46, 0.0  ;;  %v9264_v46 = vld [vmem:[%s13094_s5 + $0x318] sm:$0xff] }
0x12ed   : > { %6428 = vadd.xlane.f32.xlu1 %v6427_v30 }
0x1372   : > { %v6426_v15 = vpop.xlane.xlu0 %6425 }
0x1373   : > { %v6430_v27 = vmul.f32 0.015625, %v6426_v15  ;;  %v10472_v15 = vld [vmem:[%s13095_s6 + $0x518] sm:$0xff]  }
0x1375   : > { %v6432_v13 = vadd.f32 1e-05, %v6430_v27  ;;  %v10473_v27 = vld [vmem:[%s13095_s6 + $0x598] sm:$0xff]  }
0x1376   : > { %v6429_v5 = vpop.xlane.xlu1 %6428 }
0x1377   : > { %10654 = vrsqrt.f32 %v6432_v13  ;;  %v6431_v41 = vmul.f32 0.015625, %v6429_v5  ;;  %v10474_v13 = vld [vmem:[%s13095_s6 + $0x550] sm:$0xff]  }
0x1378   : > { %v10475_v5 = vld [vmem:[%s13095_s6 + $0x5d0] sm:$0xff]  }
0x1379   : > { %v6433_v31 = vadd.f32 1e-05, %v6431_v41  ;;  %v10476_v41 = vld [vmem:[%s13095_s6 + $0x510] sm:$0xff]  }
0x137b   : > { %10656 = vrsqrt.f32 %v6433_v31  ;;  %v10477_v31 = vld [vmem:[%s13095_s6 + $0x590] sm:$0xff]  }
0x1384   : > { %v10655_v59 = vpop.eup %10654 }
0x1385   : > { %v6436_v32 = vmul.f32 %v10655_v59, %v12325_v3  ;;  %v9265_v3 = vld [vmem:[%s13094_s5 + $0x350] sm:$0xff]  ;;  %v10478_v59 = vld [vmem:[%s13095_s6 + $0x548] sm:$0xff]  }
0x1386   : > { %v9281_v39 = vcombine.high %v9263_v8, %v9265_v3  ;;  %v9280_v36 = vcombine.low %v9263_v8, %v9265_v3  ;;  %v10486_v8 = vld [vmem:[%s13095_s6 + $0x478] sm:$0xff]  }
0x1387   : > { %v6446_v57 = vmul.f32 %v9153_v0, %v6436_v32  ;;  %v10479_v32 = vld [vmem:[%s13095_s6 + $0x5c8] sm:$0xff]   ;;  %v10487_v3 = vld [vmem:[%s13095_s6 + $0x4f8] sm:$0xff]  }
0x1388   : > { %v10657_v45 = vpop.eup %10656 }
0x1389   : > { %v6437_v7 = vmul.f32 %v10657_v45, %v12329_v6  ;;  %v9266_v6 = vld [vmem:[%s13094_s5 + $0x358] sm:$0xff]  ;;  %v12415_v30 = vadd.f32 %v9155_v53, %v6446_v57  ;;  %v10481_v45 = vld [vmem:[%s13095_s6 + $0x588] sm:$0xff]   ;;  %v10482_v57 = vld [vmem:[%s13095_s6 + $0x540] sm:$0xff]  }
0x138a   : > { %v9283_v12 = vcombine.high %v9264_v46, %v9266_v6  ;;  %v9282_v22 = vcombine.low %v9264_v46, %v9266_v6 }
0x138b   : > { %v6447_v40 = vmul.f32 %v9153_v0, %v6437_v7  ;;  %v10480_v0 = vld [vmem:[%s13095_s6 + $0x508] sm:$0xff]   ;;  %v10483_v7 = vld [vmem:[%s13095_s6 + $0x5c0] sm:$0xff]  }
0x138d   : > { %v12417_v33 = vadd.f32 %v9155_v53, %v6447_v40  ;;  %v10484_v53 = vld [vmem:[%s13095_s6 + $0x500] sm:$0xff]  }
0x138e   : > { %v10485_v40 = vld [vmem:[%s13095_s6 + $0x580] sm:$0xff]  }
0x138f   : > { %v12421_v9 = vpack.c.bf16 %v12417_v33, %v12415_v30 }
0x1391   : > { %9189 = vmatmul.mubr.msk.bf16.vlgmr.msra.gmra.mxu1 %vm617_vm0, %v12421_v9  ;;  %9190 = vmatmul.mubr.msk.bf16.vlgmr.msra.gmra.mxu0 %vm617_vm0, %v12421_v9 }
0x1392   : > { %6872 = vmatpush1.bf16.msra.mxu1 %v9284_v61  ;;  %6915 = vmatpush1.bf16.msra.mxu0 %v9286_v17  ;;  %v10467_v61 = vld [vmem:[%s13095_s6 + $0x5e0] sm:$0xff]   ;;  %v10470_v17 = vld [vmem:[%s13095_s6 + $0x558] sm:$0xff]  }
0x1393   : > { %6873 = vmatprep.subr.bf16.mxu1 %v9281_v39  ;;  %6916 = vmatprep.subr.bf16.mxu0 %v9283_v12 }
0x1394   : > { %6895 = vmatprep.mubr.bf16.mxu1 %v10726_v2  ;;  %6938 = vmatprep.mubr.bf16.mxu0 %v10726_v2 }
0x1396   : > { %6874 = vmatpush1.bf16.msra.mxu1 %v9280_v36  ;;  %6917 = vmatpush1.bf16.msra.mxu0 %v9282_v22  ;;  %v9271_v36 = vld [vmem:[%s13098_s9 + $0x14] sm:$0xf] }
0x1397   : > { %6875 = vmatprep.subr.bf16.mxu1 %v9277_v35  ;;  %6918 = vmatprep.subr.bf16.mxu0 %v9279_v1  ;;  %v6770_v1 = vrot.slane %v9271_v36, %v11094_v11  ;;  %v6778_v63 = vrot.slane %v9271_v36, %v11496_v60  ;;  %v6766_v24 = vrot.slane %v9271_v36, %v10915_v14 }
0x1398   : > { %v6774_v29 = vrot.slane %v9271_v36, %v11502_v62  ;;  %v10494_v36 = vld [vmem:[%s13095_s6 + $0x468] sm:$0xff]  }
0x139a   : > { %6876 = vmatpush1.bf16.msra.mxu1 %v9276_v25  ;;  %6919 = vmatpush1.bf16.msra.mxu0 %v9278_v19  ;;  %v12577_v19 = vld [vmem:[%s13098_s9 + $0x10] sm:$0xf] }
0x139b   : > { %6877 = vmatprep.subr.bf16.mxu1 %v9273_v42  ;;  %6920 = vmatprep.subr.bf16.mxu0 %v9275_v18  ;;  %v6486_v42 = vrot.slane %v12577_v19, %v11094_v11  ;;  %v6494_v18 = vrot.slane %v12577_v19, %v11496_v60 }
0x139e   : > { %6878 = vmatpush1.bf16.msra.mxu1 %v9272_v44  ;;  %6921 = vmatpush1.bf16.msra.mxu0 %v9274_v56 }
0x139f   : > { %9912 = vmatprep.subr.bf16.mxu1 %v10454_v43  ;;  %9934 = vmatprep.subr.bf16.mxu0 %v10455_v26 }
0x13a1   : > { %9288 = vmatmul.mubr.msk.bf16.vlgmr.msra.gmra.mxu1 %vm617_vm0, %v12421_v9  ;;  %9289 = vmatmul.mubr.msk.bf16.vlgmr.msra.gmra.mxu0 %vm617_vm0, %v12421_v9 }
0x13a2   : > { %9913 = vmatpush3.bf16.msra.mxu1 %v10456_v51  ;;  %9935 = vmatpush3.bf16.msra.mxu0 %v10457_v23 }
0x13a3   : > { %9914 = vmatprep.subr.bf16.mxu1 %v10458_v52  ;;  %9936 = vmatprep.subr.bf16.mxu0 %v10459_v21 }
0x13a6   : > { %9915 = vmatpush3.bf16.msra.mxu1 %v10460_v47  ;;  %9937 = vmatpush3.bf16.msra.mxu0 %v10461_v20 }
0x13a7   : > { %9916 = vmatprep.subr.bf16.mxu1 %v10462_v38  ;;  %9938 = vmatprep.subr.bf16.mxu0 %v10463_v50 }
0x13aa   : > { %9917 = vmatpush3.bf16.msra.mxu1 %v10464_v54  ;;  %9939 = vmatpush3.bf16.msra.mxu0 %v10465_v55 }
0x13ab   : > { %9918 = vmatprep.subr.bf16.mxu1 %v10466_v58  ;;  %9940 = vmatprep.subr.bf16.mxu0 %v10467_v61 }
0x13ae   : > { %9919 = vmatpush3.bf16.msra.mxu1 %v10468_v4  ;;  %9941 = vmatpush3.bf16.msra.mxu0 %v10469_v28 }
0x13af   : > { %9920 = vmatprep.subr.bf16.mxu1 %v10470_v17  ;;  %9942 = vmatprep.subr.bf16.mxu0 %v10471_v49 }
0x13b2   : > { %9921 = vmatpush3.bf16.msra.mxu1 %v10472_v15  ;;  %9943 = vmatpush3.bf16.msra.mxu0 %v10473_v27 }
0x13b3   : > { %9922 = vmatprep.subr.bf16.mxu1 %v10474_v13  ;;  %9944 = vmatprep.subr.bf16.mxu0 %v10475_v5 }
0x13b6   : > { %9923 = vmatpush3.bf16.msra.mxu1 %v10476_v41  ;;  %9945 = vmatpush3.bf16.msra.mxu0 %v10477_v31 }
0x13b7   : > { %9924 = vmatprep.subr.bf16.mxu1 %v10478_v59  ;;  %9946 = vmatprep.subr.bf16.mxu0 %v10479_v32 }
0x13ba   : > { %9925 = vmatpush3.bf16.msra.mxu1 %v10480_v0  ;;  %9947 = vmatpush3.bf16.msra.mxu0 %v10481_v45  ;;  %v10488_v0 = vld [vmem:[%s13095_s6 + $0x438] sm:$0xff]  }
0x13bb   : > { %9926 = vmatprep.subr.bf16.mxu1 %v10482_v57  ;;  %9948 = vmatprep.subr.bf16.mxu0 %v10483_v7  ;;  %v10489_v45 = vld [vmem:[%s13095_s6 + $0x4b8] sm:$0xff]  }
0x13be   : > { %9927 = vmatpush3.bf16.msra.mxu1 %v10484_v53  ;;  %9949 = vmatpush3.bf16.msra.mxu0 %v10485_v40 }
0x13bf   : > { %9956 = vmatprep.subr.bf16.mxu1 %v10486_v8  ;;  %9978 = vmatprep.subr.bf16.mxu0 %v10487_v3  ;;  %v10490_v8 = vld [vmem:[%s13095_s6 + $0x470] sm:$0xff]  }
0x13c0   : > { %v10491_v3 = vld [vmem:[%s13095_s6 + $0x4f0] sm:$0xff]  }
0x1451   : > { %v12559_v46 = vpop.f32.mrf.mxu1  ;;  %v12561_v6 = vpop.f32.mrf.mxu0 }
0x1453   : > { %v6618_v39 = vpop.f32.mrf.mxu1  ;;  %v6661_v12 = vpop.f32.mrf.mxu0 }
0x1454   : > { %v6619_v58 = vadd.f32 %v6618_v39, %v6486_v42  ;;  %v6662_v61 = vadd.f32 %v6661_v12, %v6494_v18 }
0x1455   : > { %v12563_v34 = vpop.f32.mrf.mxu1  ;;  %v12565_v16 = vpop.f32.mrf.mxu0 }
0x1456   : > { %v6669_v57 = vmax.f32 %v6619_v58, 0.0  ;;  %v6671_v7 = vmax.f32 %v6662_v61, 0.0  ;;  %v9430_v58 = vld [vmem:[%s13094_s5 + $0x3a0] sm:$0xff]  ;;  %v9433_v61 = vld [vmem:[%s13094_s5 + $0x3e8] sm:$0xff] }
0x1457   : > { %v6622_v10 = vpop.f32.mrf.mxu1  ;;  %v6665_v48 = vpop.f32.mrf.mxu0 }
0x1458   : > { %v6623_v52 = vadd.f32 %v6622_v10, %v6486_v42  ;;  %v6666_v21 = vadd.f32 %v6665_v48, %v6494_v18  ;;  %v10492_v10 = vld [vmem:[%s13095_s6 + $0x430] sm:$0xff]   ;;  %v10503_v42 = vld [vmem:[%s13095_s6 + $0x4d8] sm:$0xff]  }
0x1459   : > { %v10493_v48 = vld [vmem:[%s13095_s6 + $0x4b0] sm:$0xff]   ;;  %v10504_v18 = vld [vmem:[%s13095_s6 + $0x418] sm:$0xff]  }
0x145a   : > { %v6673_v13 = vmax.f32 %v6623_v52, 0.0  ;;  %v6675_v5 = vmax.f32 %v6666_v21, 0.0  ;;  %v10511_v52 = vld [vmem:[%s13095_s6 + $0x4c8] sm:$0xff]   ;;  %v6482_v21 = vrot.slane %v12577_v19, %v10915_v14 }
0x145c   : > { %v6677_v39 = vpack.c.bf16 %v6673_v13, %v6669_v57  ;;  %v6679_v12 = vpack.c.bf16 %v6675_v5, %v6671_v7 }
0x1461   : > { %v6897_v22 = vpop.f32.mrf.mxu1  ;;  %v6940_v35 = vpop.f32.mrf.mxu0 }
0x1462   : > { %v6898_v47 = vadd.f32 %v6897_v22, %v6766_v24  ;;  %v6941_v20 = vadd.f32 %v6940_v35, %v6774_v29  ;;  %v10495_v22 = vld [vmem:[%s13095_s6 + $0x4e8] sm:$0xff]  }
0x1463   : > { %v6899_v37 = vpop.f32.mrf.mxu1  ;;  %v6942_v25 = vpop.f32.mrf.mxu0  ;;  %v10496_v35 = vld [vmem:[%s13095_s6 + $0x428] sm:$0xff]  }
0x1464   : > { %v6900_v43 = vadd.f32 %v6899_v37, %v6770_v1  ;;  %v6943_v26 = vadd.f32 %v6942_v25, %v6778_v63  ;;  %v6949_v41 = vmax.f32 %v6898_v47, 0.0  ;;  %v6951_v31 = vmax.f32 %v6941_v20, 0.0  ;;  %v10501_v37 = vld [vmem:[%s13095_s6 + $0x4a0] sm:$0xff]   ;;  %v10502_v25 = vld [vmem:[%s13095_s6 + $0x458] sm:$0xff]   ;;  %v10512_v20 = vld [vmem:[%s13095_s6 + $0x408] sm:$0xff]  }
0x1465   : > { %v6901_v44 = vpop.f32.mrf.mxu1  ;;  %v6944_v56 = vpop.f32.mrf.mxu0  ;;  %v6490_v47 = vrot.slane %v12577_v19, %v11502_v62  ;;  %v10514_v19 = vld [vmem:[%s13095_s6 + $0x440] sm:$0xff]  }
0x1466   : > { %v6902_v51 = vadd.f32 %v6901_v44, %v6766_v24  ;;  %v6945_v23 = vadd.f32 %v6944_v56, %v6774_v29  ;;  %v6950_v17 = vmax.f32 %v6900_v43, 0.0  ;;  %v6952_v49 = vmax.f32 %v6943_v26, 0.0  ;;  %v10499_v24 = vld [vmem:[%s13095_s6 + $0x4e0] sm:$0xff]   ;;  %v10505_v44 = vld [vmem:[%s13095_s6 + $0x498] sm:$0xff]   ;;  %v10506_v56 = vld [vmem:[%s13095_s6 + $0x450] sm:$0xff]  }
0x1467   : > { %v6903_v38 = vpop.f32.mrf.mxu1  ;;  %v6946_v50 = vpop.f32.mrf.mxu0  ;;  %v10500_v29 = vld [vmem:[%s13095_s6 + $0x420] sm:$0xff]   ;;  %v10507_v43 = vld [vmem:[%s13095_s6 + $0x4d0] sm:$0xff]  }
0x1468   : > { %v6904_v54 = vadd.f32 %v6903_v38, %v6770_v1  ;;  %v6947_v55 = vadd.f32 %v6946_v50, %v6778_v63  ;;  %v6953_v4 = vmax.f32 %v6902_v51, 0.0  ;;  %v6955_v28 = vmax.f32 %v6945_v23, 0.0  ;;  %v10497_v1 = vld [vmem:[%s13095_s6 + $0x4a8] sm:$0xff]   ;;  %v10498_v63 = vld [vmem:[%s13095_s6 + $0x460] sm:$0xff]   ;;  %v10508_v26 = vld [vmem:[%s13095_s6 + $0x410] sm:$0xff]  }
0x1469   : > { %v10509_v51 = vld [vmem:[%s13095_s6 + $0x490] sm:$0xff]   ;;  %v10510_v23 = vld [vmem:[%s13095_s6 + $0x448] sm:$0xff]   ;;  %v6621_v50 = vadd.f32 %v12563_v34, %v6482_v21  ;;  %v9432_v34 = vld [vmem:[%s13094_s5 + $0x3e0] sm:$0xff] }
0x146a   : > { %v6954_v15 = vmax.f32 %v6904_v54, 0.0  ;;  %v6956_v27 = vmax.f32 %v6947_v55, 0.0  ;;  %v6957_v53 = vpack.c.bf16 %v6953_v4, %v6949_v41  ;;  %v6959_v40 = vpack.c.bf16 %v6955_v28, %v6951_v31  ;;  %v10513_v38 = vld [vmem:[%s13095_s6 + $0x488] sm:$0xff]   ;;  %v10515_v55 = vld [vmem:[%s13095_s6 + $0x4c0] sm:$0xff]  }
0x146b   : > { %v6664_v54 = vadd.f32 %v12565_v16, %v6490_v47  ;;  %v9431_v16 = vld [vmem:[%s13094_s5 + $0x3a8] sm:$0xff]  ;;  %v6617_v4 = vadd.f32 %v12559_v46, %v6482_v21  ;;  %v6660_v28 = vadd.f32 %v12561_v6, %v6490_v47  ;;  %v9448_v13 = vcombine.high %v9430_v58, %v9432_v34  ;;  %v9426_v46 = vld [vmem:[%s13094_s5 + $0x320] sm:$0xff]  ;;  %v10524_v21 = vld [vmem:[%s13095_s6 + $0x630] sm:$0xff]  }
0x146c   : > { %v6958_v59 = vpack.c.bf16 %v6954_v15, %v6950_v17  ;;  %v6960_v32 = vpack.c.bf16 %v6956_v27, %v6952_v49  ;;  %v10516_v17 = vld [vmem:[%s13095_s6 + $0x400] sm:$0xff]   ;;  %v6672_v15 = vmax.f32 %v6621_v50, 0.0  ;;  %v9450_v5 = vcombine.high %v9431_v16, %v9433_v61  ;;  %v9427_v41 = vld [vmem:[%s13094_s5 + $0x328] sm:$0xff]  ;;  %v10525_v47 = vld [vmem:[%s13095_s6 + $0x6b0] sm:$0xff]  }
0x146d   : > { %v10517_v49 = vld [vmem:[%s13095_s6 + $0x480] sm:$0xff]   ;;  %v6674_v27 = vmax.f32 %v6664_v54, 0.0  ;;  %v9429_v31 = vld [vmem:[%s13094_s5 + $0x368] sm:$0xff] }
0x146e   : > { %7249 = vmatprep.mubr.bf16.mxu1 %v6958_v59  ;;  %7290 = vmatprep.mubr.bf16.mxu0 %v6960_v32  ;;  %v9428_v6 = vld [vmem:[%s13094_s5 + $0x360] sm:$0xff]  ;;  %v6668_v59 = vmax.f32 %v6617_v4, 0.0  ;;  %v6670_v32 = vmax.f32 %v6660_v28, 0.0  ;;  %v10528_v50 = vld [vmem:[%s13095_s6 + $0x628] sm:$0xff]   ;;  %v10536_v4 = vld [vmem:[%s13095_s6 + $0x618] sm:$0xff]  }
0x146f   : > { %7250 = vmatmul.mubr.bf16.vlgmr.msra.gmra.mxu1 %v6957_v53  ;;  %7291 = vmatmul.mubr.bf16.vlgmr.msra.gmra.mxu0 %v6959_v40  ;;  %v9444_v57 = vcombine.high %v9426_v46, %v9428_v6  ;;  %v9446_v40 = vcombine.high %v9427_v41, %v9429_v31  ;;  %v10529_v54 = vld [vmem:[%s13095_s6 + $0x6a8] sm:$0xff]   ;;  %v10537_v28 = vld [vmem:[%s13095_s6 + $0x698] sm:$0xff]  }
0x1470   : > { %9957 = vmatpush3.bf16.msra.mxu1 %v10488_v0  ;;  %9979 = vmatpush3.bf16.msra.mxu0 %v10489_v45  ;;  %v9447_v0 = vcombine.low %v9430_v58, %v9432_v34  ;;  %v9449_v45 = vcombine.low %v9431_v16, %v9433_v61  ;;  %v6676_v7 = vpack.c.bf16 %v6672_v15, %v6668_v59  ;;  %v10532_v58 = vld [vmem:[%s13095_s6 + $0x620] sm:$0xff]   ;;  %v10534_v16 = vld [vmem:[%s13095_s6 + $0x658] sm:$0xff]   ;;  %v10540_v15 = vld [vmem:[%s13095_s6 + $0x610] sm:$0xff]  }
0x1471   : > { %7523 = vmatprep.mubr.bf16.mxu1 %v6677_v39  ;;  %7564 = vmatprep.mubr.bf16.mxu0 %v6679_v12  ;;  %v6678_v53 = vpack.c.bf16 %v6674_v27, %v6670_v32  ;;  %v9423_v39 = vld [vmem:[%s13094_s5 + $0x2a8] sm:$0xff]  ;;  %v10533_v34 = vld [vmem:[%s13095_s6 + $0x6a0] sm:$0xff]   ;;  %v10535_v61 = vld [vmem:[%s13095_s6 + $0x6d8] sm:$0xff]  }
0x1472   : > { %9958 = vmatprep.subr.bf16.mxu1 %v10490_v8  ;;  %9980 = vmatprep.subr.bf16.mxu0 %v10491_v3  ;;  %v9422_v8 = vld [vmem:[%s13094_s5 + $0x2a0] sm:$0xff]  ;;  %v9425_v12 = vld [vmem:[%s13094_s5 + $0x2e8] sm:$0xff]  ;;  %v10541_v27 = vld [vmem:[%s13095_s6 + $0x690] sm:$0xff]  }
0x1473   : > { %v9424_v3 = vld [vmem:[%s13094_s5 + $0x2e0] sm:$0xff] }
0x1474   : > { %9959 = vmatpush3.bf16.msra.mxu1 %v10492_v10  ;;  %9981 = vmatpush3.bf16.msra.mxu0 %v10493_v48  ;;  %v9443_v10 = vcombine.low %v9426_v46, %v9428_v6  ;;  %v9445_v48 = vcombine.low %v9427_v41, %v9429_v31  ;;  %v10544_v46 = vld [vmem:[%s13095_s6 + $0x608] sm:$0xff]   ;;  %v10546_v41 = vld [vmem:[%s13095_s6 + $0x640] sm:$0xff]  }
0x1475   : > { %9960 = vmatprep.subr.bf16.mxu1 %v10494_v36  ;;  %9982 = vmatprep.subr.bf16.mxu0 %v10495_v22  ;;  %v9440_v36 = vcombine.high %v9422_v8, %v9424_v3  ;;  %v9442_v22 = vcombine.high %v9423_v39, %v9425_v12  ;;  %v10545_v6 = vld [vmem:[%s13095_s6 + $0x688] sm:$0xff]   ;;  %v10547_v31 = vld [vmem:[%s13095_s6 + $0x6c0] sm:$0xff]  }
0x1476   : > { %v10548_v59 = vld [vmem:[%s13095_s6 + $0x600] sm:$0xff]  }
0x1477   : > { %v10549_v32 = vld [vmem:[%s13095_s6 + $0x680] sm:$0xff]  }
0x1478   : > { %9961 = vmatpush3.bf16.msra.mxu1 %v10496_v35  ;;  %9983 = vmatpush3.bf16.msra.mxu0 %v10497_v1  ;;  %v9418_v35 = vld [vmem:[%s13094_s5 + $0x220] sm:$0xff] }
0x1479   : > { %9962 = vmatprep.subr.bf16.mxu1 %v10498_v63  ;;  %9984 = vmatprep.subr.bf16.mxu0 %v10499_v24  ;;  %v9420_v1 = vld [vmem:[%s13094_s5 + $0x260] sm:$0xff]  ;;  %v9419_v63 = vld [vmem:[%s13094_s5 + $0x228] sm:$0xff] }
0x147a   : > { %v9421_v24 = vld [vmem:[%s13094_s5 + $0x268] sm:$0xff] }
0x147c   : > { %9963 = vmatpush3.bf16.msra.mxu1 %v10500_v29  ;;  %9985 = vmatpush3.bf16.msra.mxu0 %v10501_v37  ;;  %v9439_v29 = vcombine.low %v9422_v8, %v9424_v3  ;;  %v9441_v37 = vcombine.low %v9423_v39, %v9425_v12 }
0x147d   : > { %9964 = vmatprep.subr.bf16.mxu1 %v10502_v25  ;;  %9986 = vmatprep.subr.bf16.mxu0 %v10503_v42  ;;  %v9436_v25 = vcombine.high %v9418_v35, %v9420_v1  ;;  %v9438_v42 = vcombine.high %v9419_v63, %v9421_v24 }
0x1480   : > { %9965 = vmatpush3.bf16.msra.mxu1 %v10504_v18  ;;  %9987 = vmatpush3.bf16.msra.mxu0 %v10505_v44  ;;  %v9435_v18 = vcombine.low %v9418_v35, %v9420_v1  ;;  %v9437_v44 = vcombine.low %v9419_v63, %v9421_v24 }
0x1481   : > { %9966 = vmatprep.subr.bf16.mxu1 %v10506_v56  ;;  %9988 = vmatprep.subr.bf16.mxu0 %v10507_v43  ;;  %v10518_v56 = vld [vmem:[%s13095_s6 + $0x678] sm:$0xff]  }
0x1482   : > { %v10519_v43 = vld [vmem:[%s13095_s6 + $0x6f8] sm:$0xff]  }
0x1484   : > { %9967 = vmatpush3.bf16.msra.mxu1 %v10508_v26  ;;  %9989 = vmatpush3.bf16.msra.mxu0 %v10509_v51  ;;  %v10520_v26 = vld [vmem:[%s13095_s6 + $0x638] sm:$0xff]  }
0x1485   : > { %9968 = vmatprep.subr.bf16.mxu1 %v10510_v23  ;;  %9990 = vmatprep.subr.bf16.mxu0 %v10511_v52  ;;  %v10521_v51 = vld [vmem:[%s13095_s6 + $0x6b8] sm:$0xff]   ;;  %v10522_v23 = vld [vmem:[%s13095_s6 + $0x670] sm:$0xff]  }
0x1486   : > { %v10523_v52 = vld [vmem:[%s13095_s6 + $0x6f0] sm:$0xff]  }
0x1488   : > { %9969 = vmatpush3.bf16.msra.mxu1 %v10512_v20  ;;  %9991 = vmatpush3.bf16.msra.mxu0 %v10513_v38  ;;  %v10526_v20 = vld [vmem:[%s13095_s6 + $0x668] sm:$0xff]  }
0x1489   : > { %9970 = vmatprep.subr.bf16.mxu1 %v10514_v19  ;;  %9992 = vmatprep.subr.bf16.mxu0 %v10515_v55  ;;  %v10527_v38 = vld [vmem:[%s13095_s6 + $0x6e8] sm:$0xff]   ;;  %v10530_v19 = vld [vmem:[%s13095_s6 + $0x660] sm:$0xff]  }
0x148a   : > { %v10531_v55 = vld [vmem:[%s13095_s6 + $0x6e0] sm:$0xff]  }
0x148c   : > { %9971 = vmatpush3.bf16.msra.mxu1 %v10516_v17  ;;  %9993 = vmatpush3.bf16.msra.mxu0 %v10517_v49  ;;  %v10538_v17 = vld [vmem:[%s13095_s6 + $0x650] sm:$0xff]  }
0x148d   : > { %7699 = vmatprep.subr.bf16.mxu1 %v9448_v13  ;;  %7742 = vmatprep.subr.bf16.mxu0 %v9450_v5  ;;  %v10539_v49 = vld [vmem:[%s13095_s6 + $0x6d0] sm:$0xff]   ;;  %v10542_v13 = vld [vmem:[%s13095_s6 + $0x648] sm:$0xff]  }
0x148e   : > { %v10543_v5 = vld [vmem:[%s13095_s6 + $0x6c8] sm:$0xff]  }
0x148f   : > { %7524 = vmatmul.mubr.bf16.vlgmr.msra.gmra.mxu1 %v6676_v7  ;;  %7565 = vmatmul.mubr.bf16.vlgmr.msra.gmra.mxu0 %v6678_v53 }
0x1490   : > { %7700 = vmatpush1.bf16.msra.mxu1 %v9447_v0  ;;  %7743 = vmatpush1.bf16.msra.mxu0 %v9449_v45  ;;  %v12834_v0 = vld [vmem:[%s13094_s5 + $0x3b0] sm:$0xff] }
0x1491   : > { %7701 = vmatprep.subr.bf16.mxu1 %v9444_v57  ;;  %7744 = vmatprep.subr.bf16.mxu0 %v9446_v40  ;;  %v12839_v45 = vld [vmem:[%s13094_s5 + $0x3f0] sm:$0xff]  ;;  %v12844_v57 = vld [vmem:[%s13094_s5 + $0x3b8] sm:$0xff] }
0x1492   : > { %7723 = vmatprep.mubr.bf16.mxu1 %v10726_v2  ;;  %7766 = vmatprep.mubr.bf16.mxu0 %v10726_v2  ;;  %v9578_v7 = vcombine.low %v12834_v0, %v12839_v45  ;;  %v9579_v53 = vcombine.high %v12834_v0, %v12839_v45  ;;  %v12853_v40 = vld [vmem:[%s13094_s5 + $0x3f8] sm:$0xff] }
0x1493   : > { %v9580_v8 = vcombine.low %v12844_v57, %v12853_v40  ;;  %v9581_v3 = vcombine.high %v12844_v57, %v12853_v40  ;;  %v9550_v0 = vld [vmem:[%s13094_s5 + $0x238] sm:$0xff] }
0x1494   : > { %7702 = vmatpush1.bf16.msra.mxu1 %v9443_v10  ;;  %7745 = vmatpush1.bf16.msra.mxu0 %v9445_v48  ;;  %v9552_v45 = vld [vmem:[%s13094_s5 + $0x278] sm:$0xff] }
0x1495   : > { %7703 = vmatprep.subr.bf16.mxu1 %v9440_v36  ;;  %7746 = vmatprep.subr.bf16.mxu0 %v9442_v22 }
0x1498   : > { %7704 = vmatpush1.bf16.msra.mxu1 %v9439_v29  ;;  %7747 = vmatpush1.bf16.msra.mxu0 %v9441_v37 }
0x1499   : > { %7705 = vmatprep.subr.bf16.mxu1 %v9436_v25  ;;  %7748 = vmatprep.subr.bf16.mxu0 %v9438_v42 }
0x149c   : > { %7706 = vmatpush1.bf16.msra.mxu1 %v9435_v18  ;;  %7749 = vmatpush1.bf16.msra.mxu0 %v9437_v44 }
0x149d   : > { %10000 = vmatprep.subr.bf16.mxu1 %v10518_v56  ;;  %10022 = vmatprep.subr.bf16.mxu0 %v10519_v43 }
0x149f   : > { %9451 = vmatmul.mubr.msk.bf16.vlgmr.msra.gmra.mxu1 %vm617_vm0, %v12421_v9  ;;  %9452 = vmatmul.mubr.msk.bf16.vlgmr.msra.gmra.mxu0 %vm617_vm0, %v12421_v9 }
0x14a0   : > { %10001 = vmatpush3.bf16.msra.mxu1 %v10520_v26  ;;  %10023 = vmatpush3.bf16.msra.mxu0 %v10521_v51 }
0x14a1   : > { %10002 = vmatprep.subr.bf16.mxu1 %v10522_v23  ;;  %10024 = vmatprep.subr.bf16.mxu0 %v10523_v52 }
0x14a4   : > { %10003 = vmatpush3.bf16.msra.mxu1 %v10524_v21  ;;  %10025 = vmatpush3.bf16.msra.mxu0 %v10525_v47 }
0x14a5   : > { %10004 = vmatprep.subr.bf16.mxu1 %v10526_v20  ;;  %10026 = vmatprep.subr.bf16.mxu0 %v10527_v38 }
0x14a8   : > { %10005 = vmatpush3.bf16.msra.mxu1 %v10528_v50  ;;  %10027 = vmatpush3.bf16.msra.mxu0 %v10529_v54 }
0x14a9   : > { %10006 = vmatprep.subr.bf16.mxu1 %v10530_v19  ;;  %10028 = vmatprep.subr.bf16.mxu0 %v10531_v55 }
0x14ac   : > { %10007 = vmatpush3.bf16.msra.mxu1 %v10532_v58  ;;  %10029 = vmatpush3.bf16.msra.mxu0 %v10533_v34  ;;  %v9434_v58 = vld [vmem:[%s13098_s9 + $0x18] sm:$0xf] }
0x14ad   : > { %10008 = vmatprep.subr.bf16.mxu1 %v10534_v16  ;;  %10030 = vmatprep.subr.bf16.mxu0 %v10535_v61  ;;  %v7598_v61 = vrot.slane %v9434_v58, %v11094_v11 }
0x14b0   : > { %10009 = vmatpush3.bf16.msra.mxu1 %v10536_v4  ;;  %10031 = vmatpush3.bf16.msra.mxu0 %v10537_v28  ;;  %v7606_v4 = vrot.slane %v9434_v58, %v11496_v60  ;;  %v7594_v28 = vrot.slane %v9434_v58, %v10915_v14 }
0x14b1   : > { %10010 = vmatprep.subr.bf16.mxu1 %v10538_v17  ;;  %10032 = vmatprep.subr.bf16.mxu0 %v10539_v49  ;;  %v7602_v17 = vrot.slane %v9434_v58, %v11502_v62  ;;  %v9551_v58 = vld [vmem:[%s13094_s5 + $0x270] sm:$0xff] }
0x14b4   : > { %10011 = vmatpush3.bf16.msra.mxu1 %v10540_v15  ;;  %10033 = vmatpush3.bf16.msra.mxu0 %v10541_v27 }
0x14b5   : > { %10012 = vmatprep.subr.bf16.mxu1 %v10542_v13  ;;  %10034 = vmatprep.subr.bf16.mxu0 %v10543_v5 }
0x14b8   : > { %10013 = vmatpush3.bf16.msra.mxu1 %v10544_v46  ;;  %10035 = vmatpush3.bf16.msra.mxu0 %v10545_v6 }
0x14b9   : > { %10014 = vmatprep.subr.bf16.mxu1 %v10546_v41  ;;  %10036 = vmatprep.subr.bf16.mxu0 %v10547_v31 }
0x14bc   : > { %10015 = vmatpush3.bf16.msra.mxu1 %v10548_v59  ;;  %10037 = vmatpush3.bf16.msra.mxu0 %v10549_v32 }
0x14bd   : > { %8255 = vmatprep.subr.bf16.mxu1 %v9579_v53  ;;  %8298 = vmatprep.subr.bf16.mxu0 %v9581_v3 }
0x152f   : > { %v9928_v39 = vpop.f32.mrf.mxu1  ;;  %v9950_v12 = vpop.f32.mrf.mxu0 }
0x1531   : > { %v9929_v10 = vpop.f32.mrf.mxu1  ;;  %v9951_v48 = vpop.f32.mrf.mxu0 }
0x1532   : > { %v9930_v36 = vadd.f32 %v9929_v10, %v9928_v39  ;;  %v9952_v22 = vadd.f32 %v9951_v48, %v9950_v12  ;;  %v9557_v48 = vld [vmem:[%s13094_s5 + $0x330] sm:$0xff] }
0x1533   : > { %v9931_v35 = vpop.f32.mrf.mxu1  ;;  %v9953_v1 = vpop.f32.mrf.mxu0 }
0x1534   : > { %v7293_v63 = vadd.f32 %v9952_v22, %v9930_v36  ;;  %v9559_v36 = vld [vmem:[%s13094_s5 + $0x370] sm:$0xff] }
0x1535   : > { %v9932_v24 = vpop.f32.mrf.mxu1  ;;  %v9954_v29 = vpop.f32.mrf.mxu0 }
0x1536   : > { %v9933_v37 = vadd.f32 %v9932_v24, %v9931_v35  ;;  %v9955_v25 = vadd.f32 %v9954_v29, %v9953_v1  ;;  %v9558_v24 = vld [vmem:[%s13094_s5 + $0x338] sm:$0xff] }
0x1537   : > { %v9560_v29 = vld [vmem:[%s13094_s5 + $0x378] sm:$0xff] }
0x1538   : > { %v7296_v42 = vadd.f32 %v9955_v25, %v9933_v37 }
0x154f   : > { %v9972_v18 = vpop.f32.mrf.mxu1  ;;  %v9994_v44 = vpop.f32.mrf.mxu0 }
0x1551   : > { %v9973_v56 = vpop.f32.mrf.mxu1  ;;  %v9995_v43 = vpop.f32.mrf.mxu0 }
0x1552   : > { %v9974_v26 = vadd.f32 %v9973_v56, %v9972_v18  ;;  %v9996_v51 = vadd.f32 %v9995_v43, %v9994_v44  ;;  %v9575_v43 = vcombine.high %v9557_v48, %v9559_v36 }
0x1553   : > { %v9975_v23 = vpop.f32.mrf.mxu1  ;;  %v9997_v52 = vpop.f32.mrf.mxu0 }
0x1554   : > { %v7526_v21 = vadd.f32 %v9974_v26, %v7293_v63  ;;  %v9577_v26 = vcombine.high %v9558_v24, %v9560_v29 }
0x1555   : > { %v9976_v47 = vpop.f32.mrf.mxu1  ;;  %v9998_v20 = vpop.f32.mrf.mxu0 }
0x1556   : > { %v12859_v38 = vadd.f32 %v9996_v51, %v7526_v21  ;;  %v9977_v50 = vadd.f32 %v9976_v47, %v9975_v23  ;;  %v9999_v54 = vadd.f32 %v9998_v20, %v9997_v52  ;;  %v9553_v51 = vld [vmem:[%s13094_s5 + $0x2b0] sm:$0xff]  ;;  %v9554_v52 = vld [vmem:[%s13094_s5 + $0x2b8] sm:$0xff]  ;;  %v9574_v47 = vcombine.low %v9557_v48, %v9559_v36 }
0x1557   : > { %v9555_v23 = vld [vmem:[%s13094_s5 + $0x2f0] sm:$0xff]  ;;  %v9556_v21 = vld [vmem:[%s13094_s5 + $0x2f8] sm:$0xff]  ;;  %v9576_v20 = vcombine.low %v9558_v24, %v9560_v29  ;;  %v10578_v24 = vld [vmem:[%s13095_s6 + $0x740] sm:$0xff]  }
0x1558   : > { %v7529_v19 = vadd.f32 %v9977_v50, %v7296_v42  ;;  %v9571_v50 = vcombine.high %v9553_v51, %v9555_v23  ;;  %v9570_v57 = vcombine.low %v9553_v51, %v9555_v23  ;;  %v10572_v48 = vld [vmem:[%s13095_s6 + $0x710] sm:$0xff]   ;;  %v10579_v29 = vld [vmem:[%s13095_s6 + $0x7c0] sm:$0xff]  }
0x1559   : > { %v10573_v36 = vld [vmem:[%s13095_s6 + $0x790] sm:$0xff]  }
0x155a   : > { %v12861_v55 = vadd.f32 %v9999_v54, %v7529_v19  ;;  %v9573_v54 = vcombine.high %v9554_v52, %v9556_v21  ;;  %v9549_v19 = vld [vmem:[%s13094_s5 + $0x230] sm:$0xff] }
0x155b   : > { %v9567_v40 = vcombine.high %v9549_v19, %v9551_v58 }
0x155f   : > { %v7725_v34 = vpop.f32.mrf.mxu1  ;;  %v7768_v16 = vpop.f32.mrf.mxu0 }
0x1560   : > { %v7726_v31 = vadd.f32 %v7725_v34, %v7594_v28  ;;  %v7769_v59 = vadd.f32 %v7768_v16, %v7602_v17  ;;  %v9566_v34 = vcombine.low %v9549_v19, %v9551_v58  ;;  %v9568_v16 = vcombine.low %v9550_v0, %v9552_v45 }
0x1561   : > { %v7727_v49 = vpop.f32.mrf.mxu1  ;;  %v7770_v15 = vpop.f32.mrf.mxu0 }
0x1562   : > { %v7728_v5 = vadd.f32 %v7727_v49, %v7598_v61  ;;  %v7771_v46 = vadd.f32 %v7770_v15, %v7606_v4  ;;  %v7777_v37 = vmax.f32 %v7726_v31, 0.0  ;;  %v7779_v25 = vmax.f32 %v7769_v59, 0.0  ;;  %v10555_v49 = vld [vmem:[%s13095_s6 + $0x7f0] sm:$0xff]   ;;  %v10564_v31 = vld [vmem:[%s13095_s6 + $0x720] sm:$0xff]  }
0x1563   : > { %v7729_v27 = vpop.f32.mrf.mxu1  ;;  %v7772_v13 = vpop.f32.mrf.mxu0  ;;  %v10556_v15 = vld [vmem:[%s13095_s6 + $0x730] sm:$0xff]   ;;  %v10565_v59 = vld [vmem:[%s13095_s6 + $0x7a0] sm:$0xff]  }
0x1564   : > { %v7730_v6 = vadd.f32 %v7729_v27, %v7594_v28  ;;  %v7773_v41 = vadd.f32 %v7772_v13, %v7602_v17  ;;  %v7778_v22 = vmax.f32 %v7728_v5, 0.0  ;;  %v7780_v35 = vmax.f32 %v7771_v46, 0.0  ;;  %v10553_v28 = vld [vmem:[%s13095_s6 + $0x7b8] sm:$0xff]   ;;  %v10554_v17 = vld [vmem:[%s13095_s6 + $0x770] sm:$0xff]   ;;  %v10558_v27 = vld [vmem:[%s13095_s6 + $0x768] sm:$0xff]  }
0x1565   : > { %v7731_v32 = vpop.f32.mrf.mxu1  ;;  %v7774_v53 = vpop.f32.mrf.mxu0  ;;  %v10559_v13 = vld [vmem:[%s13095_s6 + $0x7e8] sm:$0xff]  }
0x1566   : > { %v7732_v3 = vadd.f32 %v7731_v32, %v7598_v61  ;;  %v7775_v39 = vadd.f32 %v7774_v53, %v7606_v4  ;;  %v7781_v12 = vmax.f32 %v7730_v6, 0.0  ;;  %v7783_v10 = vmax.f32 %v7773_v41, 0.0  ;;  %v10550_v61 = vld [vmem:[%s13095_s6 + $0x778] sm:$0xff]   ;;  %v10560_v5 = vld [vmem:[%s13095_s6 + $0x728] sm:$0xff]   ;;  %v10562_v6 = vld [vmem:[%s13095_s6 + $0x760] sm:$0xff]  }
0x1567   : > { %v10552_v4 = vld [vmem:[%s13095_s6 + $0x738] sm:$0xff]   ;;  %v10561_v46 = vld [vmem:[%s13095_s6 + $0x7a8] sm:$0xff]   ;;  %v10563_v41 = vld [vmem:[%s13095_s6 + $0x7e0] sm:$0xff]  }
0x1568   : > { %v7782_v1 = vmax.f32 %v7732_v3, 0.0  ;;  %v7784_v63 = vmax.f32 %v7775_v39, 0.0  ;;  %v7785_v44 = vpack.c.bf16 %v7781_v12, %v7777_v37  ;;  %v7787_v56 = vpack.c.bf16 %v7783_v10, %v7779_v25  ;;  %v10566_v32 = vld [vmem:[%s13095_s6 + $0x758] sm:$0xff]   ;;  %v10570_v12 = vld [vmem:[%s13095_s6 + $0x750] sm:$0xff]   ;;  %v10580_v37 = vld [vmem:[%s13095_s6 + $0x700] sm:$0xff]  }
0x1569   : > { %v10567_v53 = vld [vmem:[%s13095_s6 + $0x7d8] sm:$0xff]   ;;  %v10571_v10 = vld [vmem:[%s13095_s6 + $0x7d0] sm:$0xff]   ;;  %v10581_v25 = vld [vmem:[%s13095_s6 + $0x780] sm:$0xff]  }
0x156a   : > { %v7786_v42 = vpack.c.bf16 %v7782_v1, %v7778_v22  ;;  %v7788_v18 = vpack.c.bf16 %v7784_v63, %v7780_v35  ;;  %v10568_v3 = vld [vmem:[%s13095_s6 + $0x718] sm:$0xff]   ;;  %v10574_v22 = vld [vmem:[%s13095_s6 + $0x748] sm:$0xff]  }
0x156b   : > { %v10569_v39 = vld [vmem:[%s13095_s6 + $0x798] sm:$0xff]   ;;  %v10575_v35 = vld [vmem:[%s13095_s6 + $0x7c8] sm:$0xff]  }
0x156c   : > { %8077 = vmatprep.mubr.bf16.mxu1 %v7786_v42  ;;  %8118 = vmatprep.mubr.bf16.mxu0 %v7788_v18  ;;  %v10576_v1 = vld [vmem:[%s13095_s6 + $0x708] sm:$0xff]  }
0x156d   : > { %8078 = vmatmul.mubr.bf16.vlgmr.msra.gmra.mxu1 %v7785_v44  ;;  %8119 = vmatmul.mubr.bf16.vlgmr.msra.gmra.mxu0 %v7787_v56  ;;  %v10577_v63 = vld [vmem:[%s13095_s6 + $0x788] sm:$0xff]  }
0x156e   : > { %8256 = vmatpush1.bf16.msra.mxu1 %v9578_v7  ;;  %8299 = vmatpush1.bf16.msra.mxu0 %v9580_v8  ;;  %v9572_v7 = vcombine.low %v9554_v52, %v9556_v21  ;;  %v9569_v8 = vcombine.high %v9550_v0, %v9552_v45  ;;  %v9565_v0 = vld [vmem:[%s13098_s9 + $0x1c] sm:$0xf] }
0x156f   : > { %8257 = vmatprep.subr.bf16.mxu1 %v9575_v43  ;;  %8300 = vmatprep.subr.bf16.mxu0 %v9577_v26 }
0x1570   : > { %8279 = vmatprep.mubr.bf16.mxu1 %v10726_v2  ;;  %8322 = vmatprep.mubr.bf16.mxu0 %v10726_v2  ;;  %v10551_v2 = vld [vmem:[%s13095_s6 + $0x7f8] sm:$0xff]  }
0x1572   : > { %8258 = vmatpush1.bf16.msra.mxu1 %v9574_v47  ;;  %8301 = vmatpush1.bf16.msra.mxu0 %v9576_v20 }
0x1573   : > { %8259 = vmatprep.subr.bf16.mxu1 %v9571_v50  ;;  %8302 = vmatprep.subr.bf16.mxu0 %v9573_v54 }
0x1576   : > { %8260 = vmatpush1.bf16.msra.mxu1 %v9570_v57  ;;  %8303 = vmatpush1.bf16.msra.mxu0 %v9572_v7  ;;  %v8154_v7 = vrot.slane %v9565_v0, %v11094_v11 }
0x1577   : > { %8261 = vmatprep.subr.bf16.mxu1 %v9567_v40  ;;  %8304 = vmatprep.subr.bf16.mxu0 %v9569_v8  ;;  %v8162_v40 = vrot.slane %v9565_v0, %v11496_v60  ;;  %v8150_v8 = vrot.slane %v9565_v0, %v10915_v14 }
0x157a   : > { %8262 = vmatpush1.bf16.msra.mxu1 %v9566_v34  ;;  %8305 = vmatpush1.bf16.msra.mxu0 %v9568_v16  ;;  %v8158_v34 = vrot.slane %v9565_v0, %v11502_v62 }
0x157b   : > { %10044 = vmatprep.subr.bf16.mxu1 %v10550_v61  ;;  %10066 = vmatprep.subr.bf16.mxu0 %v10551_v2 }
0x157d   : > { %9582 = vmatmul.mubr.msk.bf16.vlgmr.msra.gmra.mxu1 %vm617_vm0, %v12421_v9  ;;  %9583 = vmatmul.mubr.msk.bf16.vlgmr.msra.gmra.mxu0 %vm617_vm0, %v12421_v9  ;;  %v10557_v9 = vld [vmem:[%s13095_s6 + $0x7b0] sm:$0xff]  }
0x157e   : > { %10045 = vmatpush3.bf16.msra.mxu1 %v10552_v4  ;;  %10067 = vmatpush3.bf16.msra.mxu0 %v10553_v28 }
0x157f   : > { %10046 = vmatprep.subr.bf16.mxu1 %v10554_v17  ;;  %10068 = vmatprep.subr.bf16.mxu0 %v10555_v49 }
0x1582   : > { %10047 = vmatpush3.bf16.msra.mxu1 %v10556_v15  ;;  %10069 = vmatpush3.bf16.msra.mxu0 %v10557_v9 }
0x1583   : > { %10048 = vmatprep.subr.bf16.mxu1 %v10558_v27  ;;  %10070 = vmatprep.subr.bf16.mxu0 %v10559_v13 }
0x1586   : > { %10049 = vmatpush3.bf16.msra.mxu1 %v10560_v5  ;;  %10071 = vmatpush3.bf16.msra.mxu0 %v10561_v46 }
0x1587   : > { %10050 = vmatprep.subr.bf16.mxu1 %v10562_v6  ;;  %10072 = vmatprep.subr.bf16.mxu0 %v10563_v41 }
0x158a   : > { %10051 = vmatpush3.bf16.msra.mxu1 %v10564_v31  ;;  %10073 = vmatpush3.bf16.msra.mxu0 %v10565_v59 }
0x158b   : > { %10052 = vmatprep.subr.bf16.mxu1 %v10566_v32  ;;  %10074 = vmatprep.subr.bf16.mxu0 %v10567_v53 }
0x158e   : > { %10053 = vmatpush3.bf16.msra.mxu1 %v10568_v3  ;;  %10075 = vmatpush3.bf16.msra.mxu0 %v10569_v39 }
0x158f   : > { %10054 = vmatprep.subr.bf16.mxu1 %v10570_v12  ;;  %10076 = vmatprep.subr.bf16.mxu0 %v10571_v10 }
0x1592   : > { %10055 = vmatpush3.bf16.msra.mxu1 %v10572_v48  ;;  %10077 = vmatpush3.bf16.msra.mxu0 %v10573_v36 }
0x1593   : > { %10056 = vmatprep.subr.bf16.mxu1 %v10574_v22  ;;  %10078 = vmatprep.subr.bf16.mxu0 %v10575_v35 }
0x1596   : > { %10057 = vmatpush3.bf16.msra.mxu1 %v10576_v1  ;;  %10079 = vmatpush3.bf16.msra.mxu0 %v10577_v63 }
0x1597   : > { %10058 = vmatprep.subr.bf16.mxu1 %v10578_v24  ;;  %10080 = vmatprep.subr.bf16.mxu0 %v10579_v29 }
0x159a   : > { %10059 = vmatpush3.bf16.msra.mxu1 %v10580_v37  ;;  %10081 = vmatpush3.bf16.msra.mxu0 %v10581_v25  ;;  %v9681_v37 = vld [vmem:[%s13099_s10 + $0x1] ss:$0 sm:$0xff] }
0x162d   : > { %v10016_v42 = vpop.f32.mrf.mxu1  ;;  %v10038_v18 = vpop.f32.mrf.mxu0 }
0x162f   : > { %v10017_v44 = vpop.f32.mrf.mxu1  ;;  %v10039_v56 = vpop.f32.mrf.mxu0 }
0x1630   : > { %v10018_v43 = vadd.f32 %v10017_v44, %v10016_v42  ;;  %v10040_v26 = vadd.f32 %v10039_v56, %v10038_v18 }
0x1631   : > { %v10019_v51 = vpop.f32.mrf.mxu1  ;;  %v10041_v23 = vpop.f32.mrf.mxu0 }
0x1632   : > { %v8121_v52 = vadd.f32 %v10040_v26, %v10018_v43 }
0x1633   : > { %v10020_v21 = vpop.f32.mrf.mxu1  ;;  %v10042_v47 = vpop.f32.mrf.mxu0 }
0x1634   : > { %v8127_v20 = vadd.f32 %v8121_v52, %v12859_v38  ;;  %v10021_v50 = vadd.f32 %v10020_v21, %v10019_v51  ;;  %v10043_v54 = vadd.f32 %v10042_v47, %v10041_v23 }
0x1636   : > { %v8124_v19 = vadd.f32 %v10043_v54, %v10021_v50 }
0x1638   : > { %v8128_v58 = vadd.f32 %v8124_v19, %v12861_v55 }
0x163d   : > { %v8281_v45 = vpop.f32.mrf.mxu1  ;;  %v8324_v57 = vpop.f32.mrf.mxu0 }
0x163e   : > { %v8282_v49 = vadd.f32 %v8281_v45, %v8150_v8  ;;  %v8325_v15 = vadd.f32 %v8324_v57, %v8158_v34 }
0x163f   : > { %v8283_v38 = vpop.f32.mrf.mxu1  ;;  %v8326_v16 = vpop.f32.mrf.mxu0 }
0x1640   : > { %v8284_v4 = vadd.f32 %v8283_v38, %v8154_v7  ;;  %v8327_v55 = vadd.f32 %v8326_v16, %v8162_v40  ;;  %v8333_v41 = vmax.f32 %v8282_v49, 0.0  ;;  %v8335_v31 = vmax.f32 %v8325_v15, 0.0 }
0x1641   : > { %v8285_v61 = vpop.f32.mrf.mxu1  ;;  %v8328_v2 = vpop.f32.mrf.mxu0 }
0x1642   : > { %v8286_v28 = vadd.f32 %v8285_v61, %v8150_v8  ;;  %v8329_v17 = vadd.f32 %v8328_v2, %v8158_v34  ;;  %v8334_v46 = vmax.f32 %v8284_v4, 0.0  ;;  %v8336_v14 = vmax.f32 %v8327_v55, 0.0  ;;  %v9683_v61 = vld [vmem:[%s13102_s13 + $0x1] ss:$0 sm:$0xff] }
0x1643   : > { %v8287_v9 = vpop.f32.mrf.mxu1  ;;  %v8330_v27 = vpop.f32.mrf.mxu0  ;;  %v9685_v4 = vld [vmem:[%s13103_s14 + $0x1] ss:$0 sm:$0xff] }
0x1644   : > { %v8288_v13 = vadd.f32 %v8287_v9, %v8154_v7  ;;  %v8331_v11 = vadd.f32 %v8330_v27, %v8162_v40  ;;  %v8337_v5 = vmax.f32 %v8286_v28, 0.0  ;;  %v8339_v60 = vmax.f32 %v8329_v17, 0.0 }
0x1646   : > { %v8338_v6 = vmax.f32 %v8288_v13, 0.0  ;;  %v8340_v62 = vmax.f32 %v8331_v11, 0.0  ;;  %v8341_v53 = vpack.c.bf16 %v8337_v5, %v8333_v41  ;;  %v8343_v3 = vpack.c.bf16 %v8339_v60, %v8335_v31 }
0x1648   : > { %v8342_v59 = vpack.c.bf16 %v8338_v6, %v8334_v46  ;;  %v8344_v32 = vpack.c.bf16 %v8340_v62, %v8336_v14 }
0x164a   : > { %8633 = vmatprep.mubr.bf16.mxu1 %v8342_v59  ;;  %8674 = vmatprep.mubr.bf16.mxu0 %v8344_v32 }
0x164b   : > { %8634 = vmatmul.mubr.bf16.vlgmr.msra.gmra.mxu1 %v8341_v53  ;;  %8675 = vmatmul.mubr.bf16.vlgmr.msra.gmra.mxu0 %v8343_v3 }
0x170b   : > { %v10060_v39 = vpop.f32.mrf.mxu1  ;;  %v10082_v12 = vpop.f32.mrf.mxu0 }
0x170d   : > { %v10061_v10 = vpop.f32.mrf.mxu1  ;;  %v10083_v48 = vpop.f32.mrf.mxu0 }
0x170e   : > { %v10062_v36 = vadd.f32 %v10061_v10, %v10060_v39  ;;  %v10084_v22 = vadd.f32 %v10083_v48, %v10082_v12 }
0x170f   : > { %v10063_v35 = vpop.f32.mrf.mxu1  ;;  %v10085_v1 = vpop.f32.mrf.mxu0 }
0x1710   : > { %v8677_v63 = vadd.f32 %v10084_v22, %v10062_v36 }
0x1711   : > { %v10064_v24 = vpop.f32.mrf.mxu1  ;;  %v10086_v29 = vpop.f32.mrf.mxu0 }
0x1712   : > { %v8683_v25 = vadd.f32 %v8677_v63, %v8127_v20  ;;  %v10065_v42 = vadd.f32 %v10064_v24, %v10063_v35  ;;  %v10087_v18 = vadd.f32 %v10086_v29, %v10085_v1 }
0x1714   : > { %v8680_v44 = vadd.f32 %v10087_v18, %v10065_v42  ;;  %v8693_v56 = vadd.f32 %v9681_v37, %v8683_v25 }
0x1716   : > { %v8684_v43 = vadd.f32 %v8680_v44, %v8128_v58  ;;  %v8695_v26 = vadd.f32 %v8693_v56, %v12415_v30 }
0x1718   : > { %v8697_v51 = vsel %vm617_vm0, %v8695_v26, 0.0  ;;  %v8694_v23 = vadd.f32 %v9681_v37, %v8684_v43 }
0x1719   : > { %8698 = vadd.xlane.f32.xlu0 %v8697_v51 }
0x171a   : > { %v8696_v52 = vadd.f32 %v8694_v23, %v12417_v33 }
0x171c   : > { %v8700_v21 = vsel %vm617_vm0, %v8696_v52, 0.0 }
0x171d   : > { %8701 = vadd.xlane.f32.xlu1 %v8700_v21 }
0x17a2   : > { %v8699_v47 = vpop.xlane.xlu0 %8698 }
0x17a3   : > { %v8703_v50 = vmul.f32 0.015625, %v8699_v47 }
0x17a5   : > { %v8705_v54 = vsub.f32 %v8695_v26, %v8703_v50 }
0x17a6   : > { %v8702_v20 = vpop.xlane.xlu1 %8701 }
0x17a7   : > { %v8704_v19 = vmul.f32 0.015625, %v8702_v20  ;;  %v8707_v0 = vmul.f32 %v8705_v54, %v8705_v54 }
0x17a9   : > { %v8706_v45 = vsub.f32 %v8696_v52, %v8704_v19  ;;  %v8709_v58 = vsel %vm617_vm0, %v8707_v0, 0.0 }
0x17aa   : > { %8710 = vadd.xlane.f32.xlu0 %v8709_v58 }
0x17ab   : > { %v8708_v30 = vmul.f32 %v8706_v45, %v8706_v45 }
0x17ad   : > { %v8712_v57 = vsel %vm617_vm0, %v8708_v30, 0.0 }
0x17ae   : > { %8713 = vadd.xlane.f32.xlu1 %v8712_v57 }
0x1833   : > { %v8711_v7 = vpop.xlane.xlu0 %8710 }
0x1834   : > { %v8715_v33 = vmul.f32 0.015625, %v8711_v7 }
0x1836   : > { %v8717_v40 = vadd.f32 1e-05, %v8715_v33 }
0x1837   : > { %v8714_v8 = vpop.xlane.xlu1 %8713 }
0x1838   : > { %10658 = vrsqrt.f32 %v8717_v40  ;;  %v8716_v34 = vmul.f32 0.015625, %v8714_v8 }
0x183a   : > { %v8718_v38 = vadd.f32 1e-05, %v8716_v34 }
0x183c   : > { %10660 = vrsqrt.f32 %v8718_v38 }
0x1845   : > { %v10659_v16 = vpop.eup %10658 }
0x1846   : > { %v8721_v2 = vmul.f32 %v10659_v16, %v8705_v54 }
0x1848   : > { %v8731_v55 = vmul.f32 %v9683_v61, %v8721_v2 }
0x1849   : > { %v10661_v28 = vpop.eup %10660 }
0x184a   : > { %v8722_v17 = vmul.f32 %v10661_v28, %v8706_v45  ;;  %v8741_v49 = vadd.f32 %v9685_v4, %v8731_v55 }
0x184c   : > { %v8732_v15 = vmul.f32 %v9683_v61, %v8722_v17  ;;  %8743 = vst.msk [vmem:[%s513_s23] sm:$0xff] %vm617_vm0, %v8741_v49 }
0x184e   : > { %v8742_v9 = vadd.f32 %v9685_v4, %v8732_v15 }
0x1850   : > { %8744 = vst.msk [vmem:[%s513_s23 + $0x8] sm:$0xff] %vm617_vm0, %v8742_v9 }
0x1851   : > { %10677 = shalt.err (!%p10674_p3)
}
0x1852   : > { %s10678_s18 = scalar_lea.hbm %s13044_s24, 256  ;;  %s10682_s23 = scalar_lea.hbm %s13104_s15, 512 }
0x1853   : > { %p10679_p4 = scmp.ne.s32.totalorder %s13044_s24, %s10678_s18  ;;  %p10683_p9 = scmp.lt.s32.totalorder %s13044_s24, %s13104_s15 }
0x1854   : > { %p10684_p10 = scmp.lt.s32.totalorder %s10682_s23, %s10678_s18 }
0x1855   : > { %p10680_p7 = pnand %p10679_p4, %p10860_p5 }
0x1856   : > { %p10685_p11 = por %p10684_p10, %p10683_p9 }
0x1857   : > { %p10681_p8 = pneg %p10680_p7 }
0x1859   : > { %p10686_p12 = pnand %p10685_p11, %p10681_p8 }
0x185b   : > { %10689 = shalt.err (!%p10686_p12)
}
0x185c   : > { %s10740_s22 = smov 128   ;;  %s10741_s16 = smov 8  }
0x185d   : > { %10208 = dma.vmem_to_hbm [thread:$0]  (%p10860_p5), %s13046_s17, 256, %s13044_s24, %s13049_s26, %s10740_s22, %s10740_s22, %s10741_s16  }
0x185e PF: > { %s13137_s30 = sld [smem:[#allocation7_spill]] }
0x185f   : > { %s13138_s21 = sld [smem:[#allocation5_spill]] }
0x1864   : > { %p10214_p13 = scmp.ge.s32.totalorder %s13137_s30, 2 }
0x1865   : > { %s8774_s20 = sand.u32 1, %s13138_s21  }
0x1866   : > { %p10211_p0 = pnand %p10214_p13, %p10864_p6  ;;  %s8775_s18 = scalar_lea.sflag [#allocation3], %s8774_s20 }
0x1868   : > { %p10212_p1 = pneg %p10211_p0 }
0x186a   : > { %10707 = dma.done.wait (%p10212_p1), %s8775_s18, 256  }
0x186b   : > { %10709 = vsyncadd (%p10212_p1), %s8775_s18, 4294967040  ;;  %s13140_s21 = sld [smem:[#allocation8_spill]]  ;;  %s13143_s18 = smov %s10716_s19 }
0x186c   : > { %s13141_s23 = sld [smem:[#allocation6_spill]] }
0x186d   : > { %s13142_s20 = sld [smem:[#allocation9_spill]] }
0x1871   : > { %p25_p2 = scmp.ge.s32.totalorder %s13140_s21, 4  }
0x1872   : > { %s13144_s19 = smov %s13141_s23 }
0x1873   :  { %27 = sbr.rel (!%p25_p2) target bundleno = 3 (0x3), region = 133 }
0x1878   :  { %8780 = vsyncpa [#allocation3], 1 }
0x1879   :  { %8782 = vsyncpa [#allocation3 + $0x1], 1 }

// kernel: tpu_custom_call.1
= control target key start
LH: loop header
LB: loop body
LE: loop exit
PB: predicated region body
PF: predicated region fallthrough
CT: control target
= control target key end

     0   :  { %20 = vsyncpa [#allocation3], 0  ;;  %s10543_s0 = inlined_call_operand.vmem [shape: f32[2,16,64], index: 0, kind: input, shape index: {}]   ;;  %s10544_s1 = inlined_call_operand.vmem [shape: s32[2,16,1], index: 1, kind: input, shape index: {}]   ;;  %s10545_s2 = inlined_call_operand.vmem [shape: s32[2,1,16], index: 2, kind: input, shape index: {}]   ;;  %s10546_s3 = inlined_call_operand.vmem [shape: bf16[2,64,192], index: 3, kind: input, shape index: {}]   ;;  %s10547_s4 = inlined_call_operand.vmem [shape: bf16[2,64,64], index: 4, kind: input, shape index: {}]   ;;  %s10548_s5 = inlined_call_operand.vmem [shape: bf16[2,64,2048], index: 5, kind: input, shape index: {}]   ;;  %s10549_s6 = inlined_call_operand.vmem [shape: bf16[2,2048,64], index: 6, kind: input, shape index: {}]   ;;  %s10550_s7 = inlined_call_operand.vmem [shape: f32[2,1,192], index: 7, kind: input, shape index: {}]   ;;  %s10551_s8 = inlined_call_operand.vmem [shape: f32[2,1,64], index: 8, kind: input, shape index: {}]   ;;  %s10552_s9 = inlined_call_operand.vmem [shape: f32[2,1,2048], index: 9, kind: input, shape index: {}]   ;;  %s10553_s10 = inlined_call_operand.vmem [shape: f32[2,1,64], index: 10, kind: input, shape index: {}]   ;;  %s10554_s11 = inlined_call_operand.vmem [shape: f32[2,1,64], index: 11, kind: input, shape index: {}]   ;;  %s10555_s12 = inlined_call_operand.vmem [shape: f32[2,1,64], index: 12, kind: input, shape index: {}]   ;;  %s10556_s13 = inlined_call_operand.vmem [shape: f32[2,1,64], index: 13, kind: input, shape index: {}]   ;;  %s10557_s14 = inlined_call_operand.vmem [shape: f32[2,1,64], index: 14, kind: input, shape index: {}]   ;;  %s10558_s15 = inlined_call_operand.hbm [shape: f32[2,16,64], index: 15, kind: output, shape index: {}]  }
   0x1   :  { %22 = vsyncpa [#allocation3 + $0x1], 0  ;;  %s8674_s18 = smov 0   ;;  %s8676_s19 = smov 0  }
   0x2   :  { %s8678_s20 = smov 0   ;;  %s8680_s21 = smov 0  }
   0x3 LB: > { %10576 = sst [smem:[#allocation5_spill]] %s8566_s18  ;;  %s8695_s22 = sadd.s32 4294967295, %s8578_s21   ;;  %s8578_s21 = sphi %s8680_s21, %s10594_s21   ;;  %s8574_s20 = sphi %s8678_s20, %s10596_s20   ;;  %s8570_s19 = sphi %s8676_s19, %s10598_s19   ;;  %s8566_s18 = sphi %s8674_s18, %s10597_s18  }
   0x4   : > { %10577 = sst [smem:[#allocation6_spill]] %s8574_s20  ;;  %s6730_s23 = sadd.s32 4294967294, %s8578_s21  }
   0x5   : > { %10578 = sst [smem:[#allocation7_spill]] %s8578_s21  ;;  %s8699_s24 = sadd.s32 1, %s8578_s21  }
   0x6   : > { %10579 = sst [smem:[#allocation8_spill]] %s8699_s24  ;;  %s365_s25 = sadd.s32 1, %s8574_s20 }
   0x7   : > { %s362_s26 = ssub.s32 %s8578_s21, %s8699_s24  ;;  %p375_p0 = scmp.ne.s32.totalorder %s8574_s20, %s8570_s19 }
   0x8   : > { %p363_p1 = scmp.eq.s32.totalorder %s362_s26, 0  ;;  %p376_p2 = scmp.eq.s32.totalorder %s8695_s22, 1 }
   0x9   : > { %p381_p3 = scmp.ne.s32.totalorder %s8570_s19, %s8566_s18  ;;  %p382_p4 = scmp.eq.s32.totalorder %s6730_s23, 1 }
   0xa   : > { %s8710_s27 = scalar_select %p363_p1, %s8574_s20, %s365_s25  }
   0xb   : > { %p8712_p5 = por %p376_p2, %p375_p0  ;;  %p8716_p6 = por %p382_p4, %p381_p3 }
   0xc   : > { %10580 = sst [smem:[#allocation9_spill]] %s8710_s27  ;;  %p6733_p7 = scmp.ge.s32.totalorder %s8578_s21, 1 }
   0xd   : > { %s10582_s29 = scalar_select %p8716_p6, 1, 0 }
   0xe   : > { %p458_p8 = scmp.lt.s32.totalorder %s8578_s21, 3 }
   0xf   : > { %10583 = sst [smem:[#allocation10_spill]] %s10582_s29 }
  0x10   : > { %p459_p9 = pnand %p6733_p7, %p458_p8 }
  0x11   : > { %p514_p10 = scmp.lt.s32.totalorder (!%p459_p9), %s8695_s22, 1  ;;  %s10570_s24 = smov (!%p459_p9), 80  }
  0x12   : > { %462 = sbr.rel (%p459_p9) target bundleno = 6125 (0x17ed), region = 80  ;;  %s10572_s29 = smov (!%p459_p9), 112  }
  0x13   : > { %s10568_s23 = smov (!%p459_p9), 64   ;;  %s10574_s25 = smov (!%p459_p9), 96  }
  0x14   : > { %s10566_s16 = smov (!%p459_p9), 32   ;;  %s10584_s26 = smov (!%p459_p9), 96  }
  0x15   : > { %s511_s18 = sand.u32 (!%p459_p9), 1, %s8570_s19  }
  0x17   : > { %v8148_v0 = vld [vmem:[%s10546_s3 + $0x34] ss:$8 sps:$4 sm:$0xff]   ;;  %v8150_v1 = vld [vmem:[%s10546_s3 + $0x30] ss:$8 sps:$4 sm:$0xff]   ;;  %v8580_v2 = vmov 0   ;;  %s8735_s27 = scalar_select %p514_p10, %s8695_s22, 1  ;;  %v539_v13 = vlaneseq }
  0x18   : > { %653 = vmatprep.mubr.bf16.mxu0 %v8580_v2  ;;  %8116 = vset.pattern.permute.xlu1 %v8580_v2  ;;  %v8151_v3 = vld [vmem:[%s10546_s3 + $0x24] ss:$8 sps:$4 sm:$0xff]   ;;  %v8153_v4 = vld [vmem:[%s10546_s3 + $0x20] ss:$8 sps:$4 sm:$0xff]   ;;  %v8154_v5 = vld [vmem:[%s10546_s3 + $0x14] ss:$8 sps:$4 sm:$0xff]  }
  0x19   : > { %629 = vmatprep.subr.bf16.mxu0 %v8148_v0  ;;  %8117 = vset.pattern.permute.xlu0 %v8580_v2  ;;  %s7547_s20 = sshll.u32 %s8735_s27, 4  ;;  %v8156_v6 = vld [vmem:[%s10546_s3 + $0x10] ss:$8 sps:$4 sm:$0xff]   ;;  %v8157_v7 = vld [vmem:[%s10546_s3 + $0x4] ss:$8 sps:$4 sm:$0xff]   ;;  %vm617_vm0 = vcmask 523264   ;;  %s526_s21 = scalar_lea.vmem %s10545_s2, %s8735_s27 }
  0x1a   : > { %630 = vmatpush1.bf16.msra.mxu0 %v8150_v1  ;;  %s8756_s30 = scalar_lea.vmem %s10543_s0, %s7547_s20  ;;  %v8159_v8 = vld [vmem:[%s10546_s3] ss:$8 sps:$4 sm:$0xff]   ;;  %v8581_v12 = vmov 0.0   ;;  %v8766_v14 = vshrl.u32 %v539_v13, 7  ;;  %vm8582_vm1 = vmmov 0   ;;  %vm685_vm2 = vcmask 130048   ;;  %s523_s17 = scalar_lea.vmem %s10544_s1, %s7547_s20 }
  0x1b   : > { %631 = vmatprep.subr.bf16.mxu0 %v8151_v3  ;;  %v528_v9 = vld [vmem:[%s8756_s30] sm:$0xff]  ;;  %v529_v10 = vld [vmem:[%s8756_s30 + $0x8] sm:$0xff]  ;;  %7944 = vmatprep.subr.bf16.mxu1 %v8581_v12  ;;  %v8587_v49 = vmov -1e+30   ;;  %vm1174_vm9 = vcmask 261120   ;;  %vm1177_vm10 = vcmask 392192  }
  0x1c   : > { %v556_v11 = vpack.c.bf16 %v529_v10, %v528_v9  ;;  %v8769_v15 = vsub.s32 0, %v8766_v14  ;;  %v565_v16 = vld [vmem:[%s10550_s7] sm:$0x3]  ;;  %v8775_v17 = vsub.s32 1, %v8766_v14  ;;  %7946 = vmatprep.mubr.msk.bf16.mxu1 %vm8582_vm1, %v8581_v12  ;;  %v531_v36 = vld [vmem:[%s523_s17 + $0x8] sm:$0xff]  ;;  %s10585_s20 = smov 112  }
  0x1d   : > { %v530_v35 = vld [vmem:[%s523_s17] sm:$0xff]  ;;  %s10565_s17 = smov 48   ;;  %s10589_s27 = smov 32  }
  0x1e   : > { %632 = vmatpush1.bf16.msra.mxu0 %v8153_v4  ;;  %v570_v19 = vrot.slane %v565_v16, %v8769_v15  ;;  %v574_v21 = vrot.slane %v565_v16, %v8775_v17  ;;  %v532_v43 = vld [vmem:[%s526_s21] sm:$0x1]  ;;  %s10567_s21 = smov 16  }
  0x1f   : > { %633 = vmatprep.subr.bf16.mxu0 %v8154_v5  ;;  %vm545_vm3 = vcmp.ge.s32.totalorder %v532_v43, 0  ;;  %v542_v45 = vrot.slane %v532_v43, %v8769_v15 }
  0x20   : > { %v546_v44 = vsel %vm545_vm3, 1, %v8580_v2 }
  0x21   : > { %v550_v46 = vrot.slane %v546_v44, %v8769_v15 }
  0x22   : > { %634 = vmatpush1.bf16.msra.mxu0 %v8156_v6 }
  0x23   : > { %635 = vmatprep.subr.bf16.mxu0 %v8157_v7  ;;  %vm551_vm4 = vcmp.eq.s32.totalorder %v550_v46, 1 }
  0x26   : > { %636 = vmatpush1.bf16.msra.mxu0 %v8159_v8 }
  0x27   : > { %7968 = vmatprep.subr.bf16.mxu0 %v8581_v12 }
  0x29   : > { %6747 = vmatmul.mubr.msk.bf16.vlgmr.msra.gmra.mxu0 %vm617_vm0, %v556_v11 }
  0x2a   : > { %7970 = vmatprep.mubr.msk.bf16.mxu0 %vm8582_vm1, %v8581_v12 }
  0xe9   : > { %v655_v18 = vpop.f32.mrf.mxu0 }
  0xea   : > { %v656_v23 = vadd.f32 %v655_v18, %v570_v19 }
  0xeb   : > { %v657_v20 = vpop.f32.mrf.mxu0 }
  0xec   : > { %v658_v26 = vadd.f32 %v657_v20, %v574_v21 }
  0xed   : > { %v659_v22 = vpop.f32.mrf.mxu0 }
  0xee   : > { %v660_v24 = vadd.f32 %v659_v22, %v570_v19 }
  0xef   : > { %v661_v25 = vpop.f32.mrf.mxu0 }
  0xf0   : > { %v664_v27 = vpack.c.bf16 %v660_v24, %v656_v23  ;;  %v662_v28 = vadd.f32 %v661_v25, %v574_v21 }
  0xf2   : > { %v8783_v29 = vpack.c.bf16 %v662_v28, %v658_v26  ;;  %670 = vrot.lane.b32.xlu1 %v664_v27, %s10570_s24  ;;  %666 = vrot.lane.b32.xlu0 %v664_v27, %s10572_s29 }
  0xf4   : > { %7969 = vmatpush3.bf16.msra.mxu0 %v8783_v29 }
  0xf5   : > { %7980 = vmatprep.subr.bf16.mxu0 %v8581_v12 }
  0xf6   : > { %683 = vrot.lane.b32.xlu1 %v664_v27, %s10568_s23  ;;  %668 = vrot.lane.b32.xlu0 %v664_v27, %s10574_s25 }
 0x164   : > { %v671_v30 = vpop.permute.xlu1 %670  ;;  %v667_v31 = vpop.permute.xlu0 %666 }
 0x165   : > { %733 = vrot.lane.b32.xlu0 %v667_v31, %s10568_s23 }
 0x168   : > { %v684_v32 = vpop.permute.xlu1 %683  ;;  %v669_v33 = vpop.permute.xlu0 %668 }
 0x169   : > { %831 = vrot.lane.b32.xlu0 %v671_v30, %s10568_s23  ;;  %782 = vrot.lane.b32.xlu1 %v669_v33, %s10568_s23  ;;  %v690_v34 = vsel %vm685_vm2, %v684_v32, 0  ;;  %s10586_s23 = smov 80  }
 0x16a   : > { %7945 = vmatpush3.bf16.xpose.msra.mxu1 %v690_v34 }
 0x16b   : > { %7950 = vmatprep.subr.bf16.mxu1 %v8581_v12 }
 0x16d   : > { %534 = vperm.xlu1 %8116, %v530_v35   ;;  %537 = vperm.xlu0 %8117, %v531_v36  }
 0x171   : > { %7947 = vmatmul.mubr.msk.bf16.vlgmr.msra.gmra.mxu1 %vm685_vm2, %v664_v27 }
 0x172   : > { %7952 = vmatprep.mubr.msk.bf16.mxu1 %vm8582_vm1, %v8581_v12 }
 0x1d7   : > { %v734_v37 = vpop.permute.xlu0 %733 }
 0x1d8   : > { %v739_v38 = vsel %vm685_vm2, %v734_v37, 0 }
 0x1d9   : > { %7951 = vmatpush3.bf16.xpose.msra.mxu1 %v739_v38 }
 0x1da   : > { %7956 = vmatprep.subr.bf16.mxu1 %v8581_v12 }
 0x1db   : > { %v783_v39 = vpop.permute.xlu1 %782  ;;  %v832_v41 = vpop.permute.xlu0 %831 }
 0x1dc   : > { %v788_v40 = vsel %vm685_vm2, %v783_v39, 0  ;;  %v837_v42 = vsel %vm685_vm2, %v832_v41, 0 }
 0x1e0   : > { %7953 = vmatmul.mubr.msk.bf16.vlgmr.msra.gmra.mxu1 %vm685_vm2, %v667_v31 }
 0x1e1   : > { %7957 = vmatpush3.bf16.xpose.msra.mxu1 %v788_v40  ;;  %7958 = vmatprep.mubr.msk.bf16.mxu1 %vm8582_vm1, %v8581_v12 }
 0x1e2   : > { %7962 = vmatprep.subr.bf16.mxu1 %v8581_v12 }
 0x1e8   : > { %7959 = vmatmul.mubr.msk.bf16.vlgmr.msra.gmra.mxu1 %vm685_vm2, %v669_v33  ;;  %v535_v47 = vpop.permute.xlu1 %534  ;;  %v538_v48 = vpop.permute.xlu0 %537 }
 0x1e9   : > { %7963 = vmatpush3.bf16.xpose.msra.mxu1 %v837_v42  ;;  %7964 = vmatprep.mubr.msk.bf16.mxu1 %vm8582_vm1, %v8581_v12  ;;  %vm543_vm5 = vcmp.eq.s32.totalorder %v535_v47, %v542_v45  ;;  %vm544_vm7 = vcmp.eq.s32.totalorder %v538_v48, %v542_v45 }
 0x1ea   : > { %7974 = vmatprep.subr.bf16.mxu1 %v8581_v12  ;;  %vm552_vm6 = vmand %vm543_vm5, %vm551_vm4 }
 0x1eb   : > { %v8826_v50 = vsel %vm552_vm6, 0.0, %v8587_v49  ;;  %vm553_vm8 = vmand %vm544_vm7, %vm551_vm4 }
 0x1ec   : > { %v8829_v53 = vsel %vm553_vm8, 0.0, %v8587_v49 }
 0x1f0   : > { %7965 = vmatmul.mubr.msk.bf16.vlgmr.msra.gmra.mxu1 %vm685_vm2, %v671_v30 }
 0x1f1   : > { %7976 = vmatprep.mubr.msk.bf16.mxu1 %vm8582_vm1, %v8581_v12 }
 0x231   : > { %v726_v51 = vpop.f32.mrf.mxu1 }
 0x232   : > { %v727_v52 = vadd.f32 %v726_v51, %v8826_v50 }
 0x233   : > { %v7948_v54 = vpop.f32.mrf.mxu1 }
 0x234   : > { %v880_v55 = vsel %vm685_vm2, %v727_v52, -inf }
 0x235   : > { %v729_v56 = vpop.f32.mrf.mxu1  ;;  %881 = vmax.xlane.f32.xlu1 %v880_v55 }
 0x236   : > { %v730_v57 = vadd.f32 %v729_v56, %v8829_v53 }
 0x237   : > { %v7949_v58 = vpop.f32.mrf.mxu1 }
 0x238   : > { %v883_v59 = vsel %vm685_vm2, %v730_v57, -inf }
 0x239   : > { %884 = vmax.xlane.f32.xlu0 %v883_v59 }
 0x2a0   : > { %v775_v60 = vpop.f32.mrf.mxu1 }
 0x2a1   : > { %v776_v61 = vadd.f32 %v775_v60, %v8826_v50 }
 0x2a2   : > { %v7954_v62 = vpop.f32.mrf.mxu1 }
 0x2a3   : > { %v886_v63 = vsel %vm685_vm2, %v776_v61, -inf }
 0x2a4   : > { %887 = vmax.xlane.f32.xlu1 %v886_v63  ;;  %v778_v0 = vpop.f32.mrf.mxu1 }
 0x2a5   : > { %v779_v1 = vadd.f32 %v778_v0, %v8829_v53 }
 0x2a6   : > { %v7955_v3 = vpop.f32.mrf.mxu1 }
 0x2a7   : > { %v889_v4 = vsel %vm685_vm2, %v779_v1, -inf }
 0x2a8   : > { %v824_v5 = vpop.f32.mrf.mxu1  ;;  %890 = vmax.xlane.f32.xlu0 %v889_v4 }
 0x2a9   : > { %v825_v6 = vadd.f32 %v824_v5, %v8826_v50 }
 0x2aa   : > { %v7960_v7 = vpop.f32.mrf.mxu1 }
 0x2ab   : > { %v892_v8 = vsel %vm685_vm2, %v825_v6, -inf }
 0x2ac   : > { %893 = vmax.xlane.f32.xlu1 %v892_v8  ;;  %v827_v9 = vpop.f32.mrf.mxu1 }
 0x2ad   : > { %v828_v10 = vadd.f32 %v827_v9, %v8829_v53 }
 0x2ae   : > { %v7961_v11 = vpop.f32.mrf.mxu1 }
 0x2af   : > { %v895_v13 = vsel %vm685_vm2, %v828_v10, -inf }
 0x2b0   : > { %v873_v16 = vpop.f32.mrf.mxu1  ;;  %896 = vmax.xlane.f32.xlu0 %v895_v13 }
 0x2b1   : > { %v874_v18 = vadd.f32 %v873_v16, %v8826_v50 }
 0x2b2   : > { %v7966_v19 = vpop.f32.mrf.mxu1 }
 0x2b3   : > { %v898_v20 = vsel %vm685_vm2, %v874_v18, -inf }
 0x2b4   : > { %899 = vmax.xlane.f32.xlu1 %v898_v20  ;;  %v876_v21 = vpop.f32.mrf.mxu1 }
 0x2b5   : > { %v877_v22 = vadd.f32 %v876_v21, %v8829_v53 }
 0x2b6   : > { %v7967_v23 = vpop.f32.mrf.mxu1 }
 0x2b7   : > { %v901_v24 = vsel %vm685_vm2, %v877_v22, -inf }
 0x2b8   : > { %902 = vmax.xlane.f32.xlu0 %v901_v24 }
 0x2be   : > { %v882_v28 = vpop.xlane.xlu1 %881 }
 0x2bf   : > { %v904_v30 = vsub.f32 %v727_v52, %v882_v28 }
 0x2c1   : > { %v912_v32 = vmul.f32 1.442695, %v904_v30 }
 0x2c2   : > { %v885_v25 = vpop.xlane.xlu0 %884 }
 0x2c3   : > { %v905_v26 = vsub.f32 %v730_v57, %v885_v25 }
 0x2c5   : > { %v914_v27 = vmul.f32 1.442695, %v905_v26  ;;  %674 = vrot.lane.b32.xlu1 %v8783_v29, %s10572_s29 }
 0x2c7   : > { %8436 = vpow2.f32 %v914_v27 }
 0x2c8   : > { %8438 = vpow2.f32 %v912_v32 }
 0x2d4   : > { %v8437_v31 = vpop.eup %8436 }
 0x2d5   : > { %v931_v33 = vsel %vm685_vm2, %v8437_v31, 0.0  ;;  %v8439_v34 = vpop.eup %8438 }
 0x2d6   : > { %932 = vadd.xlane.f32.xlu0 %v931_v33  ;;  %v928_v35 = vsel %vm685_vm2, %v8439_v34, 0.0 }
 0x2e9   : > { %929 = vadd.xlane.f32.xlu1 %v928_v35 }
 0x32d   : > { %v888_v36 = vpop.xlane.xlu1 %887 }
 0x32e   : > { %v906_v37 = vsub.f32 %v776_v61, %v888_v36 }
 0x330   : > { %v916_v38 = vmul.f32 1.442695, %v906_v37 }
 0x331   : > { %v891_v39 = vpop.xlane.xlu0 %890 }
 0x332   : > { %8440 = vpow2.f32 %v916_v38  ;;  %v907_v40 = vsub.f32 %v779_v1, %v891_v39 }
 0x334   : > { %v918_v41 = vmul.f32 1.442695, %v907_v40 }
 0x335   : > { %v894_v42 = vpop.xlane.xlu1 %893 }
 0x336   : > { %8442 = vpow2.f32 %v918_v41  ;;  %v908_v43 = vsub.f32 %v825_v6, %v894_v42 }
 0x338   : > { %v920_v44 = vmul.f32 1.442695, %v908_v43 }
 0x339   : > { %v897_v45 = vpop.xlane.xlu0 %896 }
 0x33a   : > { %8444 = vpow2.f32 %v920_v44  ;;  %v909_v46 = vsub.f32 %v828_v10, %v897_v45  ;;  %v8160_v44 = vld [vmem:[%s10547_s4 + $0x18] sm:$0xff]  }
 0x33c   : > { %v922_v47 = vmul.f32 1.442695, %v909_v46 }
 0x33d   : > { %v900_v48 = vpop.xlane.xlu1 %899 }
 0x33e   : > { %8446 = vpow2.f32 %v922_v47  ;;  %v910_v49 = vsub.f32 %v874_v18, %v900_v48  ;;  %v8161_v47 = vld [vmem:[%s10547_s4 + $0x10] sm:$0xff]  }
 0x33f   : > { %v8441_v51 = vpop.eup %8440 }
 0x340   : > { %v924_v52 = vmul.f32 1.442695, %v910_v49  ;;  %v934_v54 = vsel %vm685_vm2, %v8441_v51, 0.0 }
 0x341   : > { %935 = vadd.xlane.f32.xlu1 %v934_v54  ;;  %v675_v55 = vpop.permute.xlu1 %674  ;;  %v903_v56 = vpop.xlane.xlu0 %902 }
 0x342   : > { %8448 = vpow2.f32 %v924_v52  ;;  %v911_v57 = vsub.f32 %v877_v22, %v903_v56  ;;  %7975 = vmatpush3.bf16.msra.mxu1 %v675_v55  ;;  %v8163_v56 = vld [vmem:[%s10547_s4] sm:$0xff]  }
 0x343   : > { %v8443_v58 = vpop.eup %8442  ;;  %7986 = vmatprep.subr.bf16.mxu1 %v8581_v12 }
 0x344   : > { %v926_v59 = vmul.f32 1.442695, %v911_v57  ;;  %v937_v60 = vsel %vm685_vm2, %v8443_v58, 0.0 }
 0x345   : > { %938 = vadd.xlane.f32.xlu0 %v937_v60 }
 0x346   : > { %8450 = vpow2.f32 %v926_v59 }
 0x347   : > { %v8445_v61 = vpop.eup %8444 }
 0x348   : > { %v940_v62 = vsel %vm685_vm2, %v8445_v61, 0.0 }
 0x349   : > { %941 = vadd.xlane.f32.xlu1 %v940_v62 }
 0x34b   : > { %v8447_v63 = vpop.eup %8446 }
 0x34c   : > { %v943_v0 = vsel %vm685_vm2, %v8447_v63, 0.0 }
 0x34d   : > { %944 = vadd.xlane.f32.xlu0 %v943_v0 }
 0x34f   : > { %v8449_v1 = vpop.eup %8448 }
 0x350   : > { %v946_v3 = vsel %vm685_vm2, %v8449_v1, 0.0 }
 0x351   : > { %947 = vadd.xlane.f32.xlu1 %v946_v3 }
 0x353   : > { %v8451_v4 = vpop.eup %8450 }
 0x354   : > { %v949_v5 = vsel %vm685_vm2, %v8451_v4, 0.0 }
 0x355   : > { %950 = vadd.xlane.f32.xlu0 %v949_v5 }
 0x35f   : > { %v933_v6 = vpop.xlane.xlu0 %932 }
 0x360   : > { %8452 = vrcp.f32 %v933_v6 }
 0x362   : > { %680 = vrot.lane.b32.xlu1 %v8783_v29, %s10570_s24 }
 0x36b   : > { %677 = vrot.lane.b32.xlu0 %v8783_v29, %s10574_s25 }
 0x36d   : > { %v8453_v8 = vpop.eup %8452 }
 0x36e   : > { %v961_v11 = vmul.f32 %v8453_v8, %v8437_v31 }
 0x372   : > { %v930_v7 = vpop.xlane.xlu1 %929 }
 0x373   : > { %8454 = vrcp.f32 %v930_v7 }
 0x380   : > { %v8455_v9 = vpop.eup %8454 }
 0x381   : > { %v960_v10 = vmul.f32 %v8455_v9, %v8439_v34 }
 0x383   : > { %v968_v13 = vpack.c.bf16 %v961_v11, %v960_v10 }
 0x385   : > { %7971 = vmatmul.mubr.msk.bf16.vlgmr.msra.gmra.mxu0 %vm685_vm2, %v968_v13 }
 0x386   : > { %7982 = vmatprep.mubr.msk.bf16.mxu0 %vm8582_vm1, %v8581_v12 }
 0x3ca   : > { %v936_v16 = vpop.xlane.xlu1 %935 }
 0x3cb   : > { %8456 = vrcp.f32 %v936_v16 }
 0x3ce   : > { %v939_v18 = vpop.xlane.xlu0 %938 }
 0x3cf   : > { %8458 = vrcp.f32 %v939_v18 }
 0x3d2   : > { %v942_v19 = vpop.xlane.xlu1 %941 }
 0x3d3   : > { %8460 = vrcp.f32 %v942_v19 }
 0x3d6   : > { %v945_v29 = vpop.xlane.xlu0 %944 }
 0x3d7   : > { %8462 = vrcp.f32 %v945_v29 }
 0x3d8   : > { %v8457_v20 = vpop.eup %8456 }
 0x3d9   : > { %v962_v23 = vmul.f32 %v8457_v20, %v8441_v51  ;;  %v8162_v51 = vld [vmem:[%s10547_s4 + $0x8] sm:$0xff]  }
 0x3da   : > { %v948_v21 = vpop.xlane.xlu1 %947 }
 0x3db   : > { %8464 = vrcp.f32 %v948_v21  ;;  %v6756_v21 = vld [vmem:[%s10551_s8] ss:$0 sm:$0xff] }
 0x3dc   : > { %v8459_v22 = vpop.eup %8458 }
 0x3dd   : > { %v963_v24 = vmul.f32 %v8459_v22, %v8443_v58 }
 0x3de   : > { %v951_v25 = vpop.xlane.xlu0 %950  ;;  %v681_v27 = vpop.permute.xlu1 %680 }
 0x3df   : > { %8466 = vrcp.f32 %v951_v25  ;;  %v969_v26 = vpack.c.bf16 %v963_v24, %v962_v23  ;;  %v8516_v25 = vld [vmem:[%s8756_s30] sm:$0xff] }
 0x3e0   : > { %v8461_v28 = vpop.eup %8460 }
 0x3e1   : > { %7977 = vmatmul.mubr.msk.bf16.vlgmr.msra.gmra.mxu1 %vm685_vm2, %v969_v26  ;;  %v964_v32 = vmul.f32 %v8461_v28, %v8445_v61 }
 0x3e2   : > { %7987 = vmatpush3.bf16.msra.mxu1 %v681_v27  ;;  %v678_v30 = vpop.permute.xlu0 %677  ;;  %7988 = vmatprep.mubr.msk.bf16.mxu1 %vm8582_vm1, %v8581_v12 }
 0x3e3   : > { %7981 = vmatpush3.bf16.msra.mxu0 %v678_v30 }
 0x3e4   : > { %v8463_v31 = vpop.eup %8462  ;;  %7992 = vmatprep.subr.bf16.mxu0 %v8581_v12 }
 0x3e5   : > { %v965_v33 = vmul.f32 %v8463_v31, %v8447_v63 }
 0x3e7   : > { %v970_v34 = vpack.c.bf16 %v965_v33, %v964_v32  ;;  %v8517_v32 = vld [vmem:[%s8756_s30 + $0x8] sm:$0xff]  ;;  %s10588_s30 = smov 16  }
 0x3e8   : > { %v8465_v35 = vpop.eup %8464 }
 0x3e9   : > { %7983 = vmatmul.mubr.msk.bf16.vlgmr.msra.gmra.mxu0 %vm685_vm2, %v970_v34  ;;  %v966_v37 = vmul.f32 %v8465_v35, %v8449_v1 }
 0x3ea   : > { %8000 = vmatprep.mubr.msk.bf16.mxu0 %vm8582_vm1, %v8581_v12  ;;  %7993 = vmatpush3.bf16.msra.mxu0 %v8160_v44 }
 0x3eb   : > { %7994 = vmatprep.subr.bf16.mxu0 %v8581_v12 }
 0x3ec   : > { %v8467_v36 = vpop.eup %8466 }
 0x3ed   : > { %v967_v38 = vmul.f32 %v8467_v36, %v8451_v4 }
 0x3ee   : > { %7995 = vmatpush3.bf16.msra.mxu0 %v8161_v47  ;;  %v1325_v47 = vld [vmem:[%s10548_s5 + $0x188] sm:$0xff] }
 0x3ef   : > { %v971_v39 = vpack.c.bf16 %v967_v38, %v966_v37  ;;  %7996 = vmatprep.subr.bf16.mxu0 %v8581_v12 }
 0x3f1   : > { %7989 = vmatmul.mubr.msk.bf16.vlgmr.msra.gmra.mxu1 %vm685_vm2, %v971_v39 }
 0x3f2   : > { %1465 = vmatprep.mubr.bf16.mxu1 %v8580_v2  ;;  %7997 = vmatpush3.bf16.msra.mxu0 %v8162_v51 }
 0x3f3   : > { %7998 = vmatprep.subr.bf16.mxu0 %v8581_v12 }
 0x3f6   : > { %7999 = vmatpush3.bf16.msra.mxu0 %v8163_v56  ;;  %v1322_v56 = vld [vmem:[%s10548_s5 + $0x140] sm:$0xff] }
 0x445   : > { %v1009_v40 = vpop.f32.mrf.mxu0 }
 0x447   : > { %v7972_v41 = vpop.f32.mrf.mxu0 }
 0x449   : > { %v1012_v42 = vpop.f32.mrf.mxu0 }
 0x44b   : > { %v7973_v43 = vpop.f32.mrf.mxu0 }
 0x4a1   : > { %v1053_v45 = vpop.f32.mrf.mxu1 }
 0x4a3   : > { %v7978_v46 = vpop.f32.mrf.mxu1 }
 0x4a4   : > { %v1326_v46 = vld [vmem:[%s10548_s5 + $0x1c0] sm:$0xff] }
 0x4a5   : > { %v1056_v48 = vpop.f32.mrf.mxu1 }
 0x4a6   : > { %v8118_v49 = vpack.i.bf16 %v1056_v48, %v1053_v45  ;;  %v1324_v45 = vld [vmem:[%s10548_s5 + $0x180] sm:$0xff] }
 0x4a7   : > { %v7979_v52 = vpop.f32.mrf.mxu1  ;;  %v6777_v48 = vcombine.high %v1324_v45, %v1326_v46  ;;  %v6776_v51 = vcombine.low %v1324_v45, %v1326_v46  ;;  %v1604_v45 = vld [vmem:[%s10548_s5 + $0x118] sm:$0xff] }
 0x4a8   : > { %8119 = vrot.lane.b32.xlu1 %v8118_v49, %s10567_s21  ;;  %v1327_v49 = vld [vmem:[%s10548_s5 + $0x1c8] sm:$0xff]  ;;  %s10503_s21 = scalar_lea.sflag [#allocation3], %s511_s18 }
 0x4a9   : > { %v1097_v54 = vpop.f32.mrf.mxu0  ;;  %v6778_v52 = vcombine.low %v1325_v47, %v1327_v49  ;;  %1441 = vmatprep.subr.bf16.mxu1 %v6777_v48 }
 0x4aa   : > { %1442 = vmatpush1.bf16.msra.mxu1 %v6776_v51 }
 0x4ab   : > { %v7984_v55 = vpop.f32.mrf.mxu0 }
 0x4ac   : > { %v1320_v55 = vld [vmem:[%s10548_s5 + $0x100] sm:$0xff] }
 0x4ad   : > { %v1100_v57 = vpop.f32.mrf.mxu0 }
 0x4ae   : > { %v8123_v58 = vpack.i.bf16 %v1100_v57, %v1097_v54  ;;  %v6779_v54 = vcombine.high %v1325_v47, %v1327_v49  ;;  %v1321_v57 = vld [vmem:[%s10548_s5 + $0x108] sm:$0xff] }
 0x4af   : > { %v7985_v59 = vpop.f32.mrf.mxu0 }
 0x4b0   : > { %8124 = vrot.lane.b32.xlu0 %v8123_v58, %s10566_s16  ;;  %1484 = vmatprep.subr.bf16.mxu0 %v6779_v54  ;;  %v6773_v58 = vcombine.high %v1320_v55, %v1322_v56  ;;  %v1323_v59 = vld [vmem:[%s10548_s5 + $0x148] sm:$0xff]  ;;  %v1601_v54 = vld [vmem:[%s10548_s5 + $0xd0] sm:$0xff]  ;;  %s8591_s16 = smov [#allocation2]  }
 0x4b1   : > { %v1141_v60 = vpop.f32.mrf.mxu1 }
 0x4b2   : > { %1443 = vmatprep.subr.bf16.mxu1 %v6773_v58 }
 0x4b3   : > { %v7990_v61 = vpop.f32.mrf.mxu1 }
 0x4b4   : > { %v6774_v61 = vcombine.low %v1321_v57, %v1323_v59 }
 0x4b5   : > { %v1144_v62 = vpop.f32.mrf.mxu1 }
 0x4b6   : > { %v8128_v63 = vpack.i.bf16 %v1144_v62, %v1141_v60  ;;  %v6772_v60 = vcombine.low %v1320_v55, %v1322_v56  ;;  %v6775_v62 = vcombine.high %v1321_v57, %v1323_v59  ;;  %v1600_v55 = vld [vmem:[%s10548_s5 + $0x98] sm:$0xff] }
 0x4b7   : > { %v7991_v0 = vpop.f32.mrf.mxu1  ;;  %v1602_v56 = vld [vmem:[%s10548_s5 + $0xd8] sm:$0xff] }
 0x4b8   : > { %8129 = vrot.lane.b32.xlu1 %v8128_v63, %s10565_s17  ;;  %1444 = vmatpush1.bf16.msra.mxu1 %v6772_v60  ;;  %v1316_v63 = vld [vmem:[%s10548_s5 + $0x80] sm:$0xff]  ;;  %v6789_v60 = vcombine.high %v1600_v55, %v1602_v56  ;;  %s10587_s17 = smov 64  }
 0x4b9   : > { %v1318_v0 = vld [vmem:[%s10548_s5 + $0xc0] sm:$0xff] }
 0x51a   : > { %v8120_v1 = vpop.permute.xlu1 %8119 }
 0x51b   : > { %v8122_v4 = vunpack.i.h.bf16 %v8120_v1  ;;  %v8121_v5 = vunpack.i.l.bf16 %v8120_v1  ;;  %v1317_v1 = vld [vmem:[%s10548_s5 + $0x88] sm:$0xff] }
 0x51d   : > { %v1173_v9 = vsel %vm685_vm2, %v1012_v42, %v8122_v4  ;;  %v1172_v10 = vsel %vm685_vm2, %v1009_v40, %v8121_v5  ;;  %v1319_v4 = vld [vmem:[%s10548_s5 + $0xc8] sm:$0xff]  ;;  %v6768_v5 = vcombine.low %v1316_v63, %v1318_v0 }
 0x522   : > { %v8125_v3 = vpop.permute.xlu0 %8124 }
 0x523   : > { %v8127_v6 = vunpack.i.h.bf16 %v8125_v3  ;;  %v8126_v7 = vunpack.i.l.bf16 %v8125_v3  ;;  %v6769_v3 = vcombine.high %v1316_v63, %v1318_v0  ;;  %v1596_v63 = vld [vmem:[%s10548_s5 + $0x18] sm:$0xff] }
 0x524   : > { %v1598_v0 = vld [vmem:[%s10548_s5 + $0x58] sm:$0xff] }
 0x525   : > { %v1176_v16 = vsel %vm1174_vm9, %v1173_v9, %v8127_v6  ;;  %v1175_v18 = vsel %vm1174_vm9, %v1172_v10, %v8126_v7  ;;  %v6770_v6 = vcombine.low %v1317_v1, %v1319_v4  ;;  %v6771_v7 = vcombine.high %v1317_v1, %v1319_v4  ;;  %1445 = vmatprep.subr.bf16.mxu1 %v6769_v3  ;;  %v1314_v9 = vld [vmem:[%s10548_s5 + $0x40] sm:$0xff]  ;;  %v1313_v10 = vld [vmem:[%s10548_s5 + $0x8] sm:$0xff] }
 0x526   : > { %1446 = vmatpush1.bf16.msra.mxu1 %v6768_v5  ;;  %v6788_v3 = vcombine.low %v1600_v55, %v1602_v56  ;;  %v6785_v5 = vcombine.high %v1596_v63, %v1598_v0 }
 0x52a   : > { %v8130_v8 = vpop.permute.xlu1 %8129 }
 0x52b   : > { %v8132_v11 = vunpack.i.h.bf16 %v8130_v8  ;;  %v8131_v13 = vunpack.i.l.bf16 %v8130_v8  ;;  %v1312_v8 = vld [vmem:[%s10548_s5] sm:$0xff] }
 0x52d   : > { %v1178_v19 = vsel %vm1177_vm10, %v1175_v18, %v8131_v13  ;;  %v1179_v29 = vsel %vm1177_vm10, %v1176_v16, %v8132_v11  ;;  %v6765_v11 = vcombine.high %v1312_v8, %v1314_v9  ;;  %v1315_v13 = vld [vmem:[%s10548_s5 + $0x48] sm:$0xff]  ;;  %v6764_v16 = vcombine.low %v1312_v8, %v1314_v9  ;;  %v8164_v8 = vld [vmem:[%s10549_s6 + $0x178] sm:$0xff]  }
 0x52e   : > { %v1180_v20 = vpack.c.bf16 %v1179_v29, %v1178_v19  ;;  %v6766_v18 = vcombine.low %v1313_v10, %v1315_v13  ;;  %v6767_v19 = vcombine.high %v1313_v10, %v1315_v13  ;;  %v1607_v29 = vld [vmem:[%s10548_s5 + $0x190] sm:$0xff]  ;;  %v8165_v9 = vld [vmem:[%s10549_s6 + $0x1f8] sm:$0xff]  }
 0x52f   : > { %1447 = vmatprep.subr.bf16.mxu1 %v6765_v11  ;;  %v8166_v10 = vld [vmem:[%s10549_s6 + $0x138] sm:$0xff]   ;;  %v8168_v13 = vld [vmem:[%s10549_s6 + $0x170] sm:$0xff]  }
 0x530   : > { %8001 = vmatmul.mubr.msk.bf16.vlgmr.msra.gmra.mxu0 %vm617_vm0, %v1180_v20  ;;  %1448 = vmatpush1.bf16.msra.mxu1 %v6764_v16  ;;  %v1609_v20 = vld [vmem:[%s10548_s5 + $0x1d0] sm:$0xff]  ;;  %v8167_v11 = vld [vmem:[%s10549_s6 + $0x1b8] sm:$0xff]  }
 0x531   : > { %1508 = vmatprep.mubr.bf16.mxu0 %v8580_v2  ;;  %1485 = vmatpush1.bf16.msra.mxu0 %v6778_v52  ;;  %v1599_v52 = vld [vmem:[%s10548_s5 + $0x90] sm:$0xff] }
 0x532   : > { %1486 = vmatprep.subr.bf16.mxu0 %v6775_v62  ;;  %v6787_v59 = vcombine.high %v1599_v52, %v1601_v54  ;;  %v1597_v62 = vld [vmem:[%s10548_s5 + $0x50] sm:$0xff]  ;;  %v6786_v1 = vcombine.low %v1599_v52, %v1601_v54 }
 0x533   : > { %v8169_v16 = vld [vmem:[%s10549_s6 + $0x1f0] sm:$0xff]  }
 0x535   : > { %1487 = vmatpush1.bf16.msra.mxu0 %v6774_v61  ;;  %v1595_v61 = vld [vmem:[%s10548_s5 + $0x10] sm:$0xff] }
 0x536   : > { %1488 = vmatprep.subr.bf16.mxu0 %v6771_v7  ;;  %v6783_v4 = vcombine.high %v1595_v61, %v1597_v62  ;;  %v6784_v7 = vcombine.low %v1596_v63, %v1598_v0 }
 0x539   : > { %1489 = vmatpush1.bf16.msra.mxu0 %v6770_v6  ;;  %v6782_v6 = vcombine.low %v1595_v61, %v1597_v62  ;;  %v9155_v61 = vsub.s32 2, %v8766_v14 }
 0x53a   : > { %1490 = vmatprep.subr.bf16.mxu0 %v6767_v19  ;;  %v8171_v19 = vld [vmem:[%s10549_s6 + $0x1b0] sm:$0xff]  }
 0x53d   : > { %1491 = vmatpush1.bf16.msra.mxu0 %v6766_v18  ;;  %v8170_v18 = vld [vmem:[%s10549_s6 + $0x130] sm:$0xff]  }
 0x5f0   : > { %v1257_v22 = vpop.f32.mrf.mxu0 }
 0x5f1   : > { %v1258_v23 = vadd.f32 %v6756_v21, %v1257_v22  ;;  %v6794_v22 = vcombine.low %v1607_v29, %v1609_v20 }
 0x5f2   : > { %v8002_v24 = vpop.f32.mrf.mxu0 }
 0x5f3   : > { %v1264_v26 = vadd.f32 %v8516_v25, %v1258_v23  ;;  %v6795_v23 = vcombine.high %v1607_v29, %v1609_v20  ;;  %v1610_v24 = vld [vmem:[%s10548_s5 + $0x1d8] sm:$0xff]  ;;  %v8172_v29 = vld [vmem:[%s10549_s6 + $0x168] sm:$0xff]  }
 0x5f4   : > { %v1260_v27 = vpop.f32.mrf.mxu0  ;;  %v8173_v20 = vld [vmem:[%s10549_s6 + $0x1e8] sm:$0xff]  }
 0x5f5   : > { %v1261_v28 = vadd.f32 %v6756_v21, %v1260_v27  ;;  %v1266_v30 = vsel %vm617_vm0, %v1264_v26, 0.0  ;;  %v1608_v21 = vld [vmem:[%s10548_s5 + $0x198] sm:$0xff]  ;;  %1721 = vmatprep.subr.bf16.mxu1 %v6795_v23  ;;  %v8176_v23 = vld [vmem:[%s10549_s6 + $0x160] sm:$0xff]  }
 0x5f6   : > { %1267 = vadd.xlane.f32.xlu0 %v1266_v30  ;;  %v8003_v31 = vpop.f32.mrf.mxu0  ;;  %v6796_v25 = vcombine.low %v1608_v21, %v1610_v24 }
 0x5f7   : > { %v1265_v33 = vadd.f32 %v8517_v32, %v1261_v28 }
 0x5f9   : > { %v1269_v34 = vsel %vm617_vm0, %v1265_v33, 0.0 }
 0x5fa   : > { %1270 = vadd.xlane.f32.xlu1 %v1269_v34 }
 0x67f   : > { %v1268_v35 = vpop.xlane.xlu0 %1267 }
 0x680   : > { %v1273_v36 = vmul.f32 0.015625, %v1268_v35 }
 0x682   : > { %v8906_v37 = vsub.f32 %v1264_v26, %v1273_v36  ;;  %v6797_v26 = vcombine.high %v1608_v21, %v1610_v24  ;;  %v6762_v36 = vld [vmem:[%s10554_s11] ss:$0 sm:$0xff]  ;;  %v8174_v21 = vld [vmem:[%s10549_s6 + $0x128] sm:$0xff]  }
 0x683   : > { %v1271_v38 = vpop.xlane.xlu1 %1270  ;;  %v8177_v24 = vld [vmem:[%s10549_s6 + $0x1e0] sm:$0xff]  }
 0x684   : > { %v1274_v39 = vmul.f32 0.015625, %v1271_v38  ;;  %v1277_v40 = vmul.f32 %v8906_v37, %v8906_v37  ;;  %1764 = vmatprep.subr.bf16.mxu0 %v6797_v26  ;;  %v8179_v26 = vld [vmem:[%s10549_s6 + $0x1a0] sm:$0xff]  }
 0x686   : > { %v8910_v41 = vsub.f32 %v1265_v33, %v1274_v39  ;;  %v1279_v42 = vsel %vm617_vm0, %v1277_v40, 0.0 }
 0x687   : > { %1280 = vadd.xlane.f32.xlu0 %v1279_v42  ;;  %v6763_v42 = vld [vmem:[%s10555_s12] ss:$0 sm:$0xff] }
 0x688   : > { %v1278_v43 = vmul.f32 %v8910_v41, %v8910_v41 }
 0x68a   : > { %v1282_v44 = vsel %vm617_vm0, %v1278_v43, 0.0 }
 0x68b   : > { %1283 = vadd.xlane.f32.xlu0 %v1282_v44  ;;  %v1603_v44 = vld [vmem:[%s10548_s5 + $0x110] sm:$0xff] }
 0x710   : > { %v1281_v27 = vpop.xlane.xlu0 %1280 }
 0x711   : > { %v1285_v28 = vmul.f32 0.015625, %v1281_v27  ;;  %v8180_v27 = vld [vmem:[%s10549_s6 + $0x158] sm:$0xff]  }
 0x713   : > { %v1287_v30 = vadd.f32 1e-05, %v1285_v28  ;;  %v8181_v28 = vld [vmem:[%s10549_s6 + $0x1d8] sm:$0xff]  }
 0x714   : > { %v1284_v31 = vpop.xlane.xlu0 %1283 }
 0x715   : > { %8468 = vrsqrt.f32 %v1287_v30  ;;  %v1286_v32 = vmul.f32 0.015625, %v1284_v31  ;;  %v8182_v30 = vld [vmem:[%s10549_s6 + $0x118] sm:$0xff]  }
 0x716   : > { %v8183_v31 = vld [vmem:[%s10549_s6 + $0x198] sm:$0xff]  }
 0x717   : > { %v1288_v33 = vadd.f32 1e-05, %v1286_v32  ;;  %v8184_v32 = vld [vmem:[%s10549_s6 + $0x150] sm:$0xff]  }
 0x719   : > { %8470 = vrsqrt.f32 %v1288_v33  ;;  %v8185_v33 = vld [vmem:[%s10549_s6 + $0x1d0] sm:$0xff]  }
 0x722   : > { %v8469_v34 = vpop.eup %8468 }
 0x723   : > { %v1291_v35 = vmul.f32 %v8469_v34, %v8906_v37  ;;  %v1605_v37 = vld [vmem:[%s10548_s5 + $0x150] sm:$0xff] }
 0x724   : > { %v6791_v49 = vcombine.high %v1603_v44, %v1605_v37  ;;  %v6790_v57 = vcombine.low %v1603_v44, %v1605_v37  ;;  %v8186_v34 = vld [vmem:[%s10549_s6 + $0x110] sm:$0xff]   ;;  %v8194_v44 = vld [vmem:[%s10549_s6 + $0x100] sm:$0xff]  }
 0x725   : > { %v1300_v39 = vmul.f32 %v6762_v36, %v1291_v35  ;;  %v8187_v35 = vld [vmem:[%s10549_s6 + $0x190] sm:$0xff]   ;;  %v8195_v37 = vld [vmem:[%s10549_s6 + $0x180] sm:$0xff]  }
 0x726   : > { %v8471_v38 = vpop.eup %8470 }
 0x727   : > { %v1292_v40 = vmul.f32 %v8471_v38, %v8910_v41  ;;  %v1606_v41 = vld [vmem:[%s10548_s5 + $0x158] sm:$0xff]  ;;  %v8996_v46 = vadd.f32 %v6763_v42, %v1300_v39  ;;  %v8189_v38 = vld [vmem:[%s10549_s6 + $0x1c8] sm:$0xff]  }
 0x728   : > { %v6793_v51 = vcombine.high %v1604_v45, %v1606_v41  ;;  %v6792_v58 = vcombine.low %v1604_v45, %v1606_v41  ;;  %v8190_v39 = vld [vmem:[%s10549_s6 + $0x108] sm:$0xff]   ;;  %v8196_v45 = vld [vmem:[%s10549_s6 + $0x78] sm:$0xff]  }
 0x729   : > { %v1301_v43 = vmul.f32 %v6762_v36, %v1292_v40  ;;  %v8188_v36 = vld [vmem:[%s10549_s6 + $0x148] sm:$0xff]   ;;  %v8197_v41 = vld [vmem:[%s10549_s6 + $0xf8] sm:$0xff]  }
 0x72a   : > { %v8191_v40 = vld [vmem:[%s10549_s6 + $0x188] sm:$0xff]  }
 0x72b   : > { %v8998_v47 = vadd.f32 %v6763_v42, %v1301_v43  ;;  %v8192_v42 = vld [vmem:[%s10549_s6 + $0x140] sm:$0xff]  }
 0x72c   : > { %v8193_v43 = vld [vmem:[%s10549_s6 + $0x1c0] sm:$0xff]  }
 0x72d   : > { %v9002_v48 = vpack.c.bf16 %v8998_v47, %v8996_v46 }
 0x72f   : > { %6780 = vmatmul.mubr.msk.bf16.vlgmr.msra.gmra.mxu1 %vm617_vm0, %v9002_v48  ;;  %6781 = vmatmul.mubr.msk.bf16.vlgmr.msra.gmra.mxu0 %vm617_vm0, %v9002_v48 }
 0x730   : > { %1722 = vmatpush1.bf16.msra.mxu1 %v6794_v22  ;;  %1765 = vmatpush1.bf16.msra.mxu0 %v6796_v25  ;;  %v8175_v22 = vld [vmem:[%s10549_s6 + $0x1a8] sm:$0xff]   ;;  %v8178_v25 = vld [vmem:[%s10549_s6 + $0x120] sm:$0xff]  }
 0x731   : > { %1723 = vmatprep.subr.bf16.mxu1 %v6791_v49  ;;  %1766 = vmatprep.subr.bf16.mxu0 %v6793_v51 }
 0x732   : > { %1745 = vmatprep.mubr.bf16.mxu1 %v8580_v2  ;;  %1788 = vmatprep.mubr.bf16.mxu0 %v8580_v2 }
 0x734   : > { %1724 = vmatpush1.bf16.msra.mxu1 %v6790_v57  ;;  %1767 = vmatpush1.bf16.msra.mxu0 %v6792_v58 }
 0x735   : > { %1725 = vmatprep.subr.bf16.mxu1 %v6787_v59  ;;  %1768 = vmatprep.subr.bf16.mxu0 %v6789_v60  ;;  %v9149_v59 = vsub.s32 3, %v8766_v14  ;;  %v1611_v60 = vld [vmem:[%s10552_s9 + $0x4] sm:$0xf] }
 0x736   : > { %v1620_v0 = vrot.slane %v1611_v60, %v8775_v17 }
 0x738   : > { %1726 = vmatpush1.bf16.msra.mxu1 %v6786_v1  ;;  %1769 = vmatpush1.bf16.msra.mxu0 %v6788_v3  ;;  %v1628_v1 = vrot.slane %v1611_v60, %v9149_v59  ;;  %v1616_v3 = vrot.slane %v1611_v60, %v8769_v15 }
 0x739   : > { %1727 = vmatprep.subr.bf16.mxu1 %v6783_v4  ;;  %1770 = vmatprep.subr.bf16.mxu0 %v6785_v5  ;;  %v1624_v4 = vrot.slane %v1611_v60, %v9155_v61 }
 0x73c   : > { %1728 = vmatpush1.bf16.msra.mxu1 %v6782_v6  ;;  %1771 = vmatpush1.bf16.msra.mxu0 %v6784_v7  ;;  %v9164_v7 = vld [vmem:[%s10552_s9] sm:$0xf] }
 0x73d   : > { %7571 = vmatprep.subr.bf16.mxu1 %v8164_v8  ;;  %7593 = vmatprep.subr.bf16.mxu0 %v8165_v9  ;;  %v1337_v14 = vrot.slane %v9164_v7, %v8775_v17  ;;  %v1345_v8 = vrot.slane %v9164_v7, %v9149_v59 }
 0x73f   : > { %6798 = vmatmul.mubr.msk.bf16.vlgmr.msra.gmra.mxu1 %vm617_vm0, %v9002_v48  ;;  %6799 = vmatmul.mubr.msk.bf16.vlgmr.msra.gmra.mxu0 %vm617_vm0, %v9002_v48 }
 0x740   : > { %7572 = vmatpush3.bf16.msra.mxu1 %v8166_v10  ;;  %7594 = vmatpush3.bf16.msra.mxu0 %v8167_v11 }
 0x741   : > { %7573 = vmatprep.subr.bf16.mxu1 %v8168_v13  ;;  %7595 = vmatprep.subr.bf16.mxu0 %v8169_v16 }
 0x744   : > { %7574 = vmatpush3.bf16.msra.mxu1 %v8170_v18  ;;  %7596 = vmatpush3.bf16.msra.mxu0 %v8171_v19 }
 0x745   : > { %7575 = vmatprep.subr.bf16.mxu1 %v8172_v29  ;;  %7597 = vmatprep.subr.bf16.mxu0 %v8173_v20 }
 0x748   : > { %7576 = vmatpush3.bf16.msra.mxu1 %v8174_v21  ;;  %7598 = vmatpush3.bf16.msra.mxu0 %v8175_v22 }
 0x749   : > { %7577 = vmatprep.subr.bf16.mxu1 %v8176_v23  ;;  %7599 = vmatprep.subr.bf16.mxu0 %v8177_v24 }
 0x74c   : > { %7578 = vmatpush3.bf16.msra.mxu1 %v8178_v25  ;;  %7600 = vmatpush3.bf16.msra.mxu0 %v8179_v26 }
 0x74d   : > { %7579 = vmatprep.subr.bf16.mxu1 %v8180_v27  ;;  %7601 = vmatprep.subr.bf16.mxu0 %v8181_v28 }
 0x750   : > { %7580 = vmatpush3.bf16.msra.mxu1 %v8182_v30  ;;  %7602 = vmatpush3.bf16.msra.mxu0 %v8183_v31 }
 0x751   : > { %7581 = vmatprep.subr.bf16.mxu1 %v8184_v32  ;;  %7603 = vmatprep.subr.bf16.mxu0 %v8185_v33 }
 0x754   : > { %7582 = vmatpush3.bf16.msra.mxu1 %v8186_v34  ;;  %7604 = vmatpush3.bf16.msra.mxu0 %v8187_v35 }
 0x755   : > { %7583 = vmatprep.subr.bf16.mxu1 %v8188_v36  ;;  %7605 = vmatprep.subr.bf16.mxu0 %v8189_v38 }
 0x758   : > { %7584 = vmatpush3.bf16.msra.mxu1 %v8190_v39  ;;  %7606 = vmatpush3.bf16.msra.mxu0 %v8191_v40 }
 0x759   : > { %7585 = vmatprep.subr.bf16.mxu1 %v8192_v42  ;;  %7607 = vmatprep.subr.bf16.mxu0 %v8193_v43  ;;  %v8198_v43 = vld [vmem:[%s10549_s6 + $0x38] sm:$0xff]  }
 0x75c   : > { %7586 = vmatpush3.bf16.msra.mxu1 %v8194_v44  ;;  %7608 = vmatpush3.bf16.msra.mxu0 %v8195_v37  ;;  %v8199_v44 = vld [vmem:[%s10549_s6 + $0xb8] sm:$0xff]  }
 0x75d   : > { %7615 = vmatprep.subr.bf16.mxu1 %v8196_v45  ;;  %7637 = vmatprep.subr.bf16.mxu0 %v8197_v41 }
 0x7ef   : > { %v9140_v49 = vpop.f32.mrf.mxu1  ;;  %v9142_v51 = vpop.f32.mrf.mxu0 }
 0x7f1   : > { %v1469_v52 = vpop.f32.mrf.mxu1  ;;  %v1512_v54 = vpop.f32.mrf.mxu0 }
 0x7f2   : > { %v1470_v26 = vadd.f32 %v1469_v52, %v1337_v14  ;;  %v1513_v27 = vadd.f32 %v1512_v54, %v1345_v8  ;;  %v8200_v54 = vld [vmem:[%s10549_s6 + $0x70] sm:$0xff]  }
 0x7f3   : > { %v9144_v55 = vpop.f32.mrf.mxu1  ;;  %v9146_v56 = vpop.f32.mrf.mxu0 }
 0x7f4   : > { %v1520_v37 = vmax.f32 %v1470_v26, 0.0  ;;  %v1522_v45 = vmax.f32 %v1513_v27, 0.0 }
 0x7f5   : > { %v1473_v57 = vpop.f32.mrf.mxu1  ;;  %v1516_v58 = vpop.f32.mrf.mxu0 }
 0x7f6   : > { %v1474_v19 = vadd.f32 %v1473_v57, %v1337_v14  ;;  %v1517_v29 = vadd.f32 %v1516_v58, %v1345_v8  ;;  %v8201_v57 = vld [vmem:[%s10549_s6 + $0xf0] sm:$0xff]   ;;  %v8210_v14 = vld [vmem:[%s10549_s6 + $0x20] sm:$0xff]  }
 0x7f7   : > { %v8211_v8 = vld [vmem:[%s10549_s6 + $0xa0] sm:$0xff]  }
 0x7f8   : > { %v1524_v35 = vmax.f32 %v1474_v19, 0.0  ;;  %v1526_v36 = vmax.f32 %v1517_v29, 0.0  ;;  %v8218_v19 = vld [vmem:[%s10549_s6 + $0x10] sm:$0xff]  }
 0x7f9   : > { %v8219_v29 = vld [vmem:[%s10549_s6 + $0x90] sm:$0xff]  }
 0x7fa   : > { %v1528_v58 = vpack.c.bf16 %v1524_v35, %v1520_v37  ;;  %v1530_v60 = vpack.c.bf16 %v1526_v36, %v1522_v45  ;;  %v8227_v35 = vld [vmem:[%s10549_s6 + $0x80] sm:$0xff]  }
 0x7ff   : > { %v1747_v62 = vpop.f32.mrf.mxu1  ;;  %v1790_v63 = vpop.f32.mrf.mxu0 }
 0x800   : > { %v1748_v20 = vadd.f32 %v1747_v62, %v1616_v3  ;;  %v1791_v21 = vadd.f32 %v1790_v63, %v1624_v4  ;;  %v8202_v62 = vld [vmem:[%s10549_s6 + $0x30] sm:$0xff]  }
 0x801   : > { %v1749_v5 = vpop.f32.mrf.mxu1  ;;  %v1792_v6 = vpop.f32.mrf.mxu0  ;;  %v8203_v63 = vld [vmem:[%s10549_s6 + $0xb0] sm:$0xff]  }
 0x802   : > { %v1750_v11 = vadd.f32 %v1749_v5, %v1620_v0  ;;  %v1793_v13 = vadd.f32 %v1792_v6, %v1628_v1  ;;  %v1799_v38 = vmax.f32 %v1748_v20, 0.0  ;;  %v1801_v39 = vmax.f32 %v1791_v21, 0.0  ;;  %v8208_v5 = vld [vmem:[%s10549_s6 + $0x60] sm:$0xff]   ;;  %v8220_v20 = vld [vmem:[%s10549_s6 + $0x48] sm:$0xff]  }
 0x803   : > { %v1751_v9 = vpop.f32.mrf.mxu1  ;;  %v1794_v10 = vpop.f32.mrf.mxu0  ;;  %v8209_v6 = vld [vmem:[%s10549_s6 + $0xe0] sm:$0xff]   ;;  %v8221_v21 = vld [vmem:[%s10549_s6 + $0xc8] sm:$0xff]  }
 0x804   : > { %v1752_v16 = vadd.f32 %v1751_v9, %v1616_v3  ;;  %v1795_v18 = vadd.f32 %v1794_v10, %v1624_v4  ;;  %v1800_v31 = vmax.f32 %v1750_v11, 0.0  ;;  %v1802_v32 = vmax.f32 %v1793_v13, 0.0  ;;  %v8206_v3 = vld [vmem:[%s10549_s6 + $0x28] sm:$0xff]   ;;  %v8212_v9 = vld [vmem:[%s10549_s6 + $0x58] sm:$0xff]  }
 0x805   : > { %v1753_v22 = vpop.f32.mrf.mxu1  ;;  %v1796_v23 = vpop.f32.mrf.mxu0  ;;  %v8207_v4 = vld [vmem:[%s10549_s6 + $0xa8] sm:$0xff]   ;;  %v8213_v10 = vld [vmem:[%s10549_s6 + $0xd8] sm:$0xff]  }
 0x806   : > { %v1754_v24 = vadd.f32 %v1753_v22, %v1620_v0  ;;  %v1797_v25 = vadd.f32 %v1796_v23, %v1628_v1  ;;  %v1803_v28 = vmax.f32 %v1752_v16, 0.0  ;;  %v1805_v30 = vmax.f32 %v1795_v18, 0.0  ;;  %v8204_v0 = vld [vmem:[%s10549_s6 + $0x68] sm:$0xff]   ;;  %v8214_v11 = vld [vmem:[%s10549_s6 + $0x18] sm:$0xff]   ;;  %v8216_v16 = vld [vmem:[%s10549_s6 + $0x50] sm:$0xff]  }
 0x807   : > { %v8205_v1 = vld [vmem:[%s10549_s6 + $0xe8] sm:$0xff]   ;;  %v8215_v13 = vld [vmem:[%s10549_s6 + $0x98] sm:$0xff]   ;;  %v8217_v18 = vld [vmem:[%s10549_s6 + $0xd0] sm:$0xff]   ;;  %v1333_v22 = vrot.slane %v9164_v7, %v8769_v15  ;;  %v1341_v23 = vrot.slane %v9164_v7, %v9155_v61 }
 0x808   : > { %v1804_v33 = vmax.f32 %v1754_v24, 0.0  ;;  %v1806_v34 = vmax.f32 %v1797_v25, 0.0  ;;  %v1807_v41 = vpack.c.bf16 %v1803_v28, %v1799_v38  ;;  %v1809_v52 = vpack.c.bf16 %v1805_v30, %v1801_v39  ;;  %v8222_v24 = vld [vmem:[%s10549_s6 + $0x8] sm:$0xff]   ;;  %v8224_v7 = vld [vmem:[%s10549_s6 + $0x40] sm:$0xff]  }
 0x809   : > { %v8223_v25 = vld [vmem:[%s10549_s6 + $0x88] sm:$0xff]   ;;  %v1472_v26 = vadd.f32 %v9144_v55, %v1333_v22  ;;  %v1515_v27 = vadd.f32 %v9146_v56, %v1341_v23  ;;  %v8225_v28 = vld [vmem:[%s10549_s6 + $0xc0] sm:$0xff]  }
 0x80a   : > { %v1808_v40 = vpack.c.bf16 %v1804_v33, %v1800_v31  ;;  %v1810_v42 = vpack.c.bf16 %v1806_v34, %v1802_v32  ;;  %v2435_v30 = vld [vmem:[%s10548_s5 + $0x1a0] sm:$0xff]  ;;  %v2436_v56 = vld [vmem:[%s10548_s5 + $0x1a8] sm:$0xff]  ;;  %v1468_v32 = vadd.f32 %v9140_v49, %v1333_v22  ;;  %v1511_v33 = vadd.f32 %v9142_v51, %v1341_v23  ;;  %v8231_v22 = vld [vmem:[%s10549_s6 + $0x2b8] sm:$0xff]  }
 0x80b   : > { %v2437_v55 = vld [vmem:[%s10548_s5 + $0x1e0] sm:$0xff]  ;;  %v2438_v31 = vld [vmem:[%s10548_s5 + $0x1e8] sm:$0xff]  ;;  %v1523_v36 = vmax.f32 %v1472_v26, 0.0  ;;  %v1525_v38 = vmax.f32 %v1515_v27, 0.0  ;;  %v8232_v23 = vld [vmem:[%s10549_s6 + $0x270] sm:$0xff]  }
 0x80c   : > { %2099 = vmatprep.mubr.bf16.mxu1 %v1808_v40  ;;  %2140 = vmatprep.mubr.bf16.mxu0 %v1810_v42  ;;  %v8226_v34 = vld [vmem:[%s10549_s6] sm:$0xff]   ;;  %v6877_v39 = vcombine.high %v2435_v30, %v2437_v55  ;;  %v6879_v40 = vcombine.high %v2436_v56, %v2438_v31  ;;  %v2432_v42 = vld [vmem:[%s10548_s5 + $0x128] sm:$0xff]  ;;  %v1521_v37 = vmax.f32 %v1511_v33, 0.0  ;;  %v6876_v45 = vcombine.low %v2435_v30, %v2437_v55  ;;  %v8235_v26 = vld [vmem:[%s10549_s6 + $0x2b0] sm:$0xff]  }
 0x80d   : > { %2100 = vmatmul.mubr.bf16.vlgmr.msra.gmra.mxu1 %v1807_v41  ;;  %2141 = vmatmul.mubr.bf16.vlgmr.msra.gmra.mxu0 %v1809_v52  ;;  %v2431_v49 = vld [vmem:[%s10548_s5 + $0x120] sm:$0xff]  ;;  %v6878_v41 = vcombine.low %v2436_v56, %v2438_v31  ;;  %v8236_v27 = vld [vmem:[%s10549_s6 + $0x268] sm:$0xff]   ;;  %v8244_v33 = vld [vmem:[%s10549_s6 + $0x258] sm:$0xff]  }
 0x80e   : > { %7616 = vmatpush3.bf16.msra.mxu1 %v8198_v43  ;;  %7638 = vmatpush3.bf16.msra.mxu0 %v8199_v44  ;;  %v2433_v51 = vld [vmem:[%s10548_s5 + $0x160] sm:$0xff]  ;;  %v2434_v43 = vld [vmem:[%s10548_s5 + $0x168] sm:$0xff]  ;;  %v1519_v44 = vmax.f32 %v1468_v32, 0.0 }
 0x80f   : > { %2373 = vmatprep.mubr.bf16.mxu1 %v1528_v58  ;;  %2414 = vmatprep.mubr.bf16.mxu0 %v1530_v60  ;;  %v6873_v52 = vcombine.high %v2431_v49, %v2433_v51  ;;  %v6875_v58 = vcombine.high %v2432_v42, %v2434_v43  ;;  %v2427_v60 = vld [vmem:[%s10548_s5 + $0xa0] sm:$0xff]  ;;  %v8239_v30 = vld [vmem:[%s10549_s6 + $0x2a8] sm:$0xff]  }
 0x810   : > { %7617 = vmatprep.subr.bf16.mxu1 %v8200_v54  ;;  %7639 = vmatprep.subr.bf16.mxu0 %v8201_v57  ;;  %v1527_v54 = vpack.c.bf16 %v1523_v36, %v1519_v44  ;;  %v1529_v57 = vpack.c.bf16 %v1525_v38, %v1521_v37  ;;  %v8240_v55 = vld [vmem:[%s10549_s6 + $0x260] sm:$0xff]   ;;  %v8247_v36 = vld [vmem:[%s10549_s6 + $0x298] sm:$0xff]   ;;  %v8248_v38 = vld [vmem:[%s10549_s6 + $0x250] sm:$0xff]  }
 0x811   : > { %v8241_v56 = vld [vmem:[%s10549_s6 + $0x2e0] sm:$0xff]   ;;  %v8255_v44 = vld [vmem:[%s10549_s6 + $0x288] sm:$0xff]  }
 0x812   : > { %7618 = vmatpush3.bf16.msra.mxu1 %v8202_v62  ;;  %7640 = vmatpush3.bf16.msra.mxu0 %v8203_v63  ;;  %v2429_v62 = vld [vmem:[%s10548_s5 + $0xe0] sm:$0xff]  ;;  %v2428_v63 = vld [vmem:[%s10548_s5 + $0xa8] sm:$0xff] }
 0x813   : > { %7619 = vmatprep.subr.bf16.mxu1 %v8204_v0  ;;  %7641 = vmatprep.subr.bf16.mxu0 %v8205_v1  ;;  %v2430_v0 = vld [vmem:[%s10548_s5 + $0xe8] sm:$0xff]  ;;  %v6872_v1 = vcombine.low %v2431_v49, %v2433_v51  ;;  %v8242_v31 = vld [vmem:[%s10549_s6 + $0x220] sm:$0xff]   ;;  %v8251_v49 = vld [vmem:[%s10549_s6 + $0x290] sm:$0xff]  }
 0x814   : > { %v8243_v32 = vld [vmem:[%s10549_s6 + $0x2a0] sm:$0xff]   ;;  %v8252_v51 = vld [vmem:[%s10549_s6 + $0x248] sm:$0xff]  }
 0x815   : > { %v8256_v37 = vld [vmem:[%s10549_s6 + $0x240] sm:$0xff]  }
 0x816   : > { %7620 = vmatpush3.bf16.msra.mxu1 %v8206_v3  ;;  %7642 = vmatpush3.bf16.msra.mxu0 %v8207_v4  ;;  %v6874_v3 = vcombine.low %v2432_v42, %v2434_v43  ;;  %v6869_v4 = vcombine.high %v2427_v60, %v2429_v62  ;;  %v8253_v42 = vld [vmem:[%s10549_s6 + $0x2c8] sm:$0xff]  }
 0x817   : > { %7621 = vmatprep.subr.bf16.mxu1 %v8208_v5  ;;  %7643 = vmatprep.subr.bf16.mxu0 %v8209_v6  ;;  %v6871_v5 = vcombine.high %v2428_v63, %v2430_v0  ;;  %v2423_v6 = vld [vmem:[%s10548_s5 + $0x20] sm:$0xff]  ;;  %v8254_v43 = vld [vmem:[%s10549_s6 + $0x208] sm:$0xff]  }
 0x81a   : > { %7622 = vmatpush3.bf16.msra.mxu1 %v8210_v14  ;;  %7644 = vmatpush3.bf16.msra.mxu0 %v8211_v8  ;;  %v2425_v14 = vld [vmem:[%s10548_s5 + $0x60] sm:$0xff]  ;;  %v2424_v8 = vld [vmem:[%s10548_s5 + $0x28] sm:$0xff] }
 0x81b   : > { %7623 = vmatprep.subr.bf16.mxu1 %v8212_v9  ;;  %7645 = vmatprep.subr.bf16.mxu0 %v8213_v10  ;;  %v2426_v9 = vld [vmem:[%s10548_s5 + $0x68] sm:$0xff]  ;;  %v6868_v10 = vcombine.low %v2427_v60, %v2429_v62  ;;  %v9438_v62 = vld [vmem:[%s10548_s5 + $0x1f8] sm:$0xff] }
 0x81e   : > { %7624 = vmatpush3.bf16.msra.mxu1 %v8214_v11  ;;  %7646 = vmatpush3.bf16.msra.mxu0 %v8215_v13  ;;  %v6870_v11 = vcombine.low %v2428_v63, %v2430_v0  ;;  %v6865_v13 = vcombine.high %v2423_v6, %v2425_v14 }
 0x81f   : > { %7625 = vmatprep.subr.bf16.mxu1 %v8216_v16  ;;  %7647 = vmatprep.subr.bf16.mxu0 %v8217_v18  ;;  %v6867_v16 = vcombine.high %v2424_v8, %v2426_v9  ;;  %v6864_v18 = vcombine.low %v2423_v6, %v2425_v14 }
 0x822   : > { %7626 = vmatpush3.bf16.msra.mxu1 %v8218_v19  ;;  %7648 = vmatpush3.bf16.msra.mxu0 %v8219_v29  ;;  %v6866_v19 = vcombine.low %v2424_v8, %v2426_v9  ;;  %v8228_v29 = vld [vmem:[%s10549_s6 + $0x278] sm:$0xff]  }
 0x823   : > { %7627 = vmatprep.subr.bf16.mxu1 %v8220_v20  ;;  %7649 = vmatprep.subr.bf16.mxu0 %v8221_v21  ;;  %v8229_v20 = vld [vmem:[%s10549_s6 + $0x2f8] sm:$0xff]  }
 0x824   : > { %v8230_v21 = vld [vmem:[%s10549_s6 + $0x238] sm:$0xff]  }
 0x826   : > { %7628 = vmatpush3.bf16.msra.mxu1 %v8222_v24  ;;  %7650 = vmatpush3.bf16.msra.mxu0 %v8223_v25  ;;  %v8233_v24 = vld [vmem:[%s10549_s6 + $0x2f0] sm:$0xff]  }
 0x827   : > { %7629 = vmatprep.subr.bf16.mxu1 %v8224_v7  ;;  %7651 = vmatprep.subr.bf16.mxu0 %v8225_v28  ;;  %v8234_v25 = vld [vmem:[%s10549_s6 + $0x230] sm:$0xff]   ;;  %v8237_v7 = vld [vmem:[%s10549_s6 + $0x2e8] sm:$0xff]  }
 0x828   : > { %v8238_v28 = vld [vmem:[%s10549_s6 + $0x228] sm:$0xff]  }
 0x82a   : > { %7630 = vmatpush3.bf16.msra.mxu1 %v8226_v34  ;;  %7652 = vmatpush3.bf16.msra.mxu0 %v8227_v35  ;;  %v8245_v34 = vld [vmem:[%s10549_s6 + $0x2d8] sm:$0xff]  }
 0x82b   : > { %2549 = vmatprep.subr.bf16.mxu1 %v6877_v39  ;;  %2592 = vmatprep.subr.bf16.mxu0 %v6879_v40  ;;  %v8246_v35 = vld [vmem:[%s10549_s6 + $0x218] sm:$0xff]   ;;  %v8249_v39 = vld [vmem:[%s10549_s6 + $0x2d0] sm:$0xff]  }
 0x82c   : > { %v8250_v40 = vld [vmem:[%s10549_s6 + $0x210] sm:$0xff]  }
 0x82d   : > { %2374 = vmatmul.mubr.bf16.vlgmr.msra.gmra.mxu1 %v1527_v54  ;;  %2415 = vmatmul.mubr.bf16.vlgmr.msra.gmra.mxu0 %v1529_v57  ;;  %v9421_v54 = vld [vmem:[%s10548_s5 + $0x1b0] sm:$0xff] }
 0x82e   : > { %2550 = vmatpush1.bf16.msra.mxu1 %v6876_v45  ;;  %2593 = vmatpush1.bf16.msra.mxu0 %v6878_v41  ;;  %v8257_v45 = vld [vmem:[%s10549_s6 + $0x2c0] sm:$0xff]   ;;  %v9426_v57 = vld [vmem:[%s10548_s5 + $0x1f0] sm:$0xff] }
 0x82f   : > { %2551 = vmatprep.subr.bf16.mxu1 %v6873_v52  ;;  %2594 = vmatprep.subr.bf16.mxu0 %v6875_v58  ;;  %v8258_v41 = vld [vmem:[%s10549_s6 + $0x200] sm:$0xff]   ;;  %v9431_v58 = vld [vmem:[%s10548_s5 + $0x1b8] sm:$0xff]  ;;  %v6927_v60 = vcombine.high %v9421_v54, %v9426_v57  ;;  %v6926_v63 = vcombine.low %v9421_v54, %v9426_v57 }
 0x830   : > { %2573 = vmatprep.mubr.bf16.mxu1 %v8580_v2  ;;  %2616 = vmatprep.mubr.bf16.mxu0 %v8580_v2  ;;  %v8259_v52 = vld [vmem:[%s10549_s6 + $0x280] sm:$0xff]   ;;  %v6928_v0 = vcombine.low %v9431_v58, %v9438_v62  ;;  %v2980_v54 = vld [vmem:[%s10548_s5 + $0x38] sm:$0xff] }
 0x831   : > { %v2982_v57 = vld [vmem:[%s10548_s5 + $0x78] sm:$0xff] }
 0x832   : > { %2552 = vmatpush1.bf16.msra.mxu1 %v6872_v1  ;;  %2595 = vmatpush1.bf16.msra.mxu0 %v6874_v3  ;;  %v6929_v1 = vcombine.high %v9431_v58, %v9438_v62 }
 0x833   : > { %2553 = vmatprep.subr.bf16.mxu1 %v6869_v4  ;;  %2596 = vmatprep.subr.bf16.mxu0 %v6871_v5 }
 0x836   : > { %2554 = vmatpush1.bf16.msra.mxu1 %v6868_v10  ;;  %2597 = vmatpush1.bf16.msra.mxu0 %v6870_v11 }
 0x837   : > { %2555 = vmatprep.subr.bf16.mxu1 %v6865_v13  ;;  %2598 = vmatprep.subr.bf16.mxu0 %v6867_v16 }
 0x83a   : > { %2556 = vmatpush1.bf16.msra.mxu1 %v6864_v18  ;;  %2599 = vmatpush1.bf16.msra.mxu0 %v6866_v19 }
 0x83b   : > { %7659 = vmatprep.subr.bf16.mxu1 %v8228_v29  ;;  %7681 = vmatprep.subr.bf16.mxu0 %v8229_v20 }
 0x83d   : > { %6880 = vmatmul.mubr.msk.bf16.vlgmr.msra.gmra.mxu1 %vm617_vm0, %v9002_v48  ;;  %6881 = vmatmul.mubr.msk.bf16.vlgmr.msra.gmra.mxu0 %vm617_vm0, %v9002_v48 }
 0x83e   : > { %7660 = vmatpush3.bf16.msra.mxu1 %v8230_v21  ;;  %7682 = vmatpush3.bf16.msra.mxu0 %v8231_v22 }
 0x83f   : > { %7661 = vmatprep.subr.bf16.mxu1 %v8232_v23  ;;  %7683 = vmatprep.subr.bf16.mxu0 %v8233_v24 }
 0x842   : > { %7662 = vmatpush3.bf16.msra.mxu1 %v8234_v25  ;;  %7684 = vmatpush3.bf16.msra.mxu0 %v8235_v26 }
 0x843   : > { %7663 = vmatprep.subr.bf16.mxu1 %v8236_v27  ;;  %7685 = vmatprep.subr.bf16.mxu0 %v8237_v7 }
 0x846   : > { %7664 = vmatpush3.bf16.msra.mxu1 %v8238_v28  ;;  %7686 = vmatpush3.bf16.msra.mxu0 %v8239_v30 }
 0x847   : > { %7665 = vmatprep.subr.bf16.mxu1 %v8240_v55  ;;  %7687 = vmatprep.subr.bf16.mxu0 %v8241_v56 }
 0x84a   : > { %7666 = vmatpush3.bf16.msra.mxu1 %v8242_v31  ;;  %7688 = vmatpush3.bf16.msra.mxu0 %v8243_v32 }
 0x84b   : > { %7667 = vmatprep.subr.bf16.mxu1 %v8244_v33  ;;  %7689 = vmatprep.subr.bf16.mxu0 %v8245_v34  ;;  %v2439_v34 = vld [vmem:[%s10552_s9 + $0x8] sm:$0xf] }
 0x84e   : > { %7668 = vmatpush3.bf16.msra.mxu1 %v8246_v35  ;;  %7690 = vmatpush3.bf16.msra.mxu0 %v8247_v36 }
 0x84f   : > { %7669 = vmatprep.subr.bf16.mxu1 %v8248_v38  ;;  %7691 = vmatprep.subr.bf16.mxu0 %v8249_v39  ;;  %v2448_v38 = vrot.slane %v2439_v34, %v8775_v17  ;;  %v2456_v39 = vrot.slane %v2439_v34, %v9149_v59 }
 0x852   : > { %7670 = vmatpush3.bf16.msra.mxu1 %v8250_v40  ;;  %7692 = vmatpush3.bf16.msra.mxu0 %v8251_v49  ;;  %v2444_v40 = vrot.slane %v2439_v34, %v8769_v15  ;;  %v2452_v49 = vrot.slane %v2439_v34, %v9155_v61 }
 0x853   : > { %7671 = vmatprep.subr.bf16.mxu1 %v8252_v51  ;;  %7693 = vmatprep.subr.bf16.mxu0 %v8253_v42 }
 0x856   : > { %7672 = vmatpush3.bf16.msra.mxu1 %v8254_v43  ;;  %7694 = vmatpush3.bf16.msra.mxu0 %v8255_v44 }
 0x857   : > { %7673 = vmatprep.subr.bf16.mxu1 %v8256_v37  ;;  %7695 = vmatprep.subr.bf16.mxu0 %v8257_v45 }
 0x85a   : > { %7674 = vmatpush3.bf16.msra.mxu1 %v8258_v41  ;;  %7696 = vmatpush3.bf16.msra.mxu0 %v8259_v52 }
 0x85b   : > { %3105 = vmatprep.subr.bf16.mxu1 %v6927_v60  ;;  %3148 = vmatprep.subr.bf16.mxu0 %v6929_v1 }
 0x8cd   : > { %v7587_v3 = vpop.f32.mrf.mxu1  ;;  %v7609_v4 = vpop.f32.mrf.mxu0 }
 0x8cf   : > { %v7588_v5 = vpop.f32.mrf.mxu1  ;;  %v7610_v6 = vpop.f32.mrf.mxu0 }
 0x8d0   : > { %v7589_v14 = vadd.f32 %v7588_v5, %v7587_v3  ;;  %v7611_v8 = vadd.f32 %v7610_v6, %v7609_v4 }
 0x8d1   : > { %v7590_v9 = vpop.f32.mrf.mxu1  ;;  %v7612_v10 = vpop.f32.mrf.mxu0 }
 0x8d2   : > { %v2143_v11 = vadd.f32 %v7611_v8, %v7589_v14 }
 0x8d3   : > { %v7591_v13 = vpop.f32.mrf.mxu1  ;;  %v7613_v16 = vpop.f32.mrf.mxu0 }
 0x8d4   : > { %v7592_v18 = vadd.f32 %v7591_v13, %v7590_v9  ;;  %v7614_v19 = vadd.f32 %v7613_v16, %v7612_v10  ;;  %v2987_v9 = vld [vmem:[%s10548_s5 + $0x130] sm:$0xff] }
 0x8d5   : > { %v2989_v10 = vld [vmem:[%s10548_s5 + $0x170] sm:$0xff] }
 0x8d6   : > { %v2146_v29 = vadd.f32 %v7614_v19, %v7592_v18  ;;  %v2988_v19 = vld [vmem:[%s10548_s5 + $0x138] sm:$0xff] }
 0x8ed   : > { %v7631_v20 = vpop.f32.mrf.mxu1  ;;  %v7653_v21 = vpop.f32.mrf.mxu0 }
 0x8ef   : > { %v7632_v22 = vpop.f32.mrf.mxu1  ;;  %v7654_v23 = vpop.f32.mrf.mxu0 }
 0x8f0   : > { %v7633_v24 = vadd.f32 %v7632_v22, %v7631_v20  ;;  %v7655_v25 = vadd.f32 %v7654_v23, %v7653_v21 }
 0x8f1   : > { %v7634_v26 = vpop.f32.mrf.mxu1  ;;  %v7656_v27 = vpop.f32.mrf.mxu0 }
 0x8f2   : > { %v2376_v7 = vadd.f32 %v7633_v24, %v2143_v11 }
 0x8f3   : > { %v7635_v28 = vpop.f32.mrf.mxu1  ;;  %v7657_v30 = vpop.f32.mrf.mxu0 }
 0x8f4   : > { %v9446_v55 = vadd.f32 %v7655_v25, %v2376_v7  ;;  %v7636_v56 = vadd.f32 %v7635_v28, %v7634_v26  ;;  %v7658_v31 = vadd.f32 %v7657_v30, %v7656_v27  ;;  %v6923_v26 = vcombine.high %v2987_v9, %v2989_v10  ;;  %v2983_v7 = vld [vmem:[%s10548_s5 + $0xb0] sm:$0xff]  ;;  %v2984_v30 = vld [vmem:[%s10548_s5 + $0xb8] sm:$0xff] }
 0x8f5   : > { %v2985_v28 = vld [vmem:[%s10548_s5 + $0xf0] sm:$0xff] }
 0x8f6   : > { %v2379_v32 = vadd.f32 %v7636_v56, %v2146_v29  ;;  %v2990_v29 = vld [vmem:[%s10548_s5 + $0x178] sm:$0xff]  ;;  %v6919_v34 = vcombine.high %v2983_v7, %v2985_v28  ;;  %v6918_v58 = vcombine.low %v2983_v7, %v2985_v28 }
 0x8f7   : > { %v6925_v27 = vcombine.high %v2988_v19, %v2990_v29  ;;  %v2986_v56 = vld [vmem:[%s10548_s5 + $0xf8] sm:$0xff] }
 0x8f8   : > { %v9448_v33 = vadd.f32 %v7658_v31, %v2379_v32  ;;  %v6922_v31 = vcombine.low %v2987_v9, %v2989_v10  ;;  %v6924_v32 = vcombine.low %v2988_v19, %v2990_v29  ;;  %v6920_v62 = vcombine.low %v2984_v30, %v2986_v56  ;;  %v8278_v9 = vld [vmem:[%s10549_s6 + $0x318] sm:$0xff]   ;;  %v8284_v19 = vld [vmem:[%s10549_s6 + $0x348] sm:$0xff]  }
 0x8f9   : > { %v8279_v10 = vld [vmem:[%s10549_s6 + $0x398] sm:$0xff]   ;;  %v8285_v29 = vld [vmem:[%s10549_s6 + $0x3c8] sm:$0xff]  }
 0x8fd   : > { %v2575_v35 = vpop.f32.mrf.mxu1  ;;  %v2618_v36 = vpop.f32.mrf.mxu0 }
 0x8fe   : > { %v2576_v60 = vadd.f32 %v2575_v35, %v2444_v40  ;;  %v2619_v1 = vadd.f32 %v2618_v36, %v2452_v49  ;;  %v6921_v35 = vcombine.high %v2984_v30, %v2986_v56  ;;  %v2979_v36 = vld [vmem:[%s10548_s5 + $0x30] sm:$0xff] }
 0x8ff   : > { %v2577_v51 = vpop.f32.mrf.mxu1  ;;  %v2620_v42 = vpop.f32.mrf.mxu0 }
 0x900   : > { %v2578_v37 = vadd.f32 %v2577_v51, %v2448_v38  ;;  %v2621_v45 = vadd.f32 %v2620_v42, %v2456_v39  ;;  %v2627_v20 = vmax.f32 %v2576_v60, 0.0  ;;  %v2629_v21 = vmax.f32 %v2619_v1, 0.0  ;;  %v8261_v51 = vld [vmem:[%s10549_s6 + $0x3f8] sm:$0xff]   ;;  %v8270_v60 = vld [vmem:[%s10549_s6 + $0x328] sm:$0xff]  }
 0x901   : > { %v2579_v43 = vpop.f32.mrf.mxu1  ;;  %v2622_v44 = vpop.f32.mrf.mxu0  ;;  %v8262_v42 = vld [vmem:[%s10549_s6 + $0x338] sm:$0xff]   ;;  %v8271_v1 = vld [vmem:[%s10549_s6 + $0x3a8] sm:$0xff]  }
 0x902   : > { %v2580_v41 = vadd.f32 %v2579_v43, %v2444_v40  ;;  %v2623_v52 = vadd.f32 %v2622_v44, %v2452_v49  ;;  %v2628_v11 = vmax.f32 %v2578_v37, 0.0  ;;  %v2630_v13 = vmax.f32 %v2621_v45, 0.0  ;;  %v8260_v49 = vld [vmem:[%s10549_s6 + $0x378] sm:$0xff]   ;;  %v8264_v44 = vld [vmem:[%s10549_s6 + $0x370] sm:$0xff]  }
 0x903   : > { %v2581_v3 = vpop.f32.mrf.mxu1  ;;  %v2624_v4 = vpop.f32.mrf.mxu0  ;;  %v6916_v40 = vcombine.low %v2980_v54, %v2982_v57  ;;  %v8263_v43 = vld [vmem:[%s10549_s6 + $0x3b8] sm:$0xff]   ;;  %v8265_v37 = vld [vmem:[%s10549_s6 + $0x3f0] sm:$0xff]  }
 0x904   : > { %v2582_v5 = vadd.f32 %v2581_v3, %v2448_v38  ;;  %v2625_v6 = vadd.f32 %v2624_v4, %v2456_v39  ;;  %v2631_v14 = vmax.f32 %v2580_v41, 0.0  ;;  %v2633_v8 = vmax.f32 %v2623_v52, 0.0  ;;  %v2981_v38 = vld [vmem:[%s10548_s5 + $0x70] sm:$0xff]  ;;  %v8269_v52 = vld [vmem:[%s10549_s6 + $0x3e8] sm:$0xff]   ;;  %v8272_v3 = vld [vmem:[%s10549_s6 + $0x360] sm:$0xff]  }
 0x905   : > { %v6914_v39 = vcombine.low %v2979_v36, %v2981_v38  ;;  %v8266_v45 = vld [vmem:[%s10549_s6 + $0x330] sm:$0xff]   ;;  %v8273_v4 = vld [vmem:[%s10549_s6 + $0x3e0] sm:$0xff]  }
 0x906   : > { %v2632_v16 = vmax.f32 %v2582_v5, 0.0  ;;  %v2634_v18 = vmax.f32 %v2625_v6, 0.0  ;;  %v2635_v24 = vpack.c.bf16 %v2631_v14, %v2627_v20  ;;  %v2637_v25 = vpack.c.bf16 %v2633_v8, %v2629_v21  ;;  %v8267_v41 = vld [vmem:[%s10549_s6 + $0x3b0] sm:$0xff]   ;;  %v8274_v5 = vld [vmem:[%s10549_s6 + $0x320] sm:$0xff]   ;;  %v8276_v14 = vld [vmem:[%s10549_s6 + $0x358] sm:$0xff]  }
 0x907   : > { %v8275_v6 = vld [vmem:[%s10549_s6 + $0x3a0] sm:$0xff]   ;;  %v8277_v8 = vld [vmem:[%s10549_s6 + $0x3d8] sm:$0xff]   ;;  %v8286_v20 = vld [vmem:[%s10549_s6 + $0x308] sm:$0xff]  }
 0x908   : > { %v2636_v22 = vpack.c.bf16 %v2632_v16, %v2628_v11  ;;  %v2638_v23 = vpack.c.bf16 %v2634_v18, %v2630_v13  ;;  %v8280_v11 = vld [vmem:[%s10549_s6 + $0x350] sm:$0xff]   ;;  %v8287_v21 = vld [vmem:[%s10549_s6 + $0x388] sm:$0xff]  }
 0x909   : > { %v8281_v13 = vld [vmem:[%s10549_s6 + $0x3d0] sm:$0xff]  }
 0x90a   : > { %2927 = vmatprep.mubr.bf16.mxu1 %v2636_v22  ;;  %2968 = vmatprep.mubr.bf16.mxu0 %v2638_v23  ;;  %v8282_v16 = vld [vmem:[%s10549_s6 + $0x310] sm:$0xff]   ;;  %v8288_v22 = vld [vmem:[%s10549_s6 + $0x340] sm:$0xff]  }
 0x90b   : > { %2928 = vmatmul.mubr.bf16.vlgmr.msra.gmra.mxu1 %v2635_v24  ;;  %2969 = vmatmul.mubr.bf16.vlgmr.msra.gmra.mxu0 %v2637_v25  ;;  %v8283_v18 = vld [vmem:[%s10549_s6 + $0x390] sm:$0xff]   ;;  %v8289_v23 = vld [vmem:[%s10549_s6 + $0x3c0] sm:$0xff]  }
 0x90c   : > { %3106 = vmatpush1.bf16.msra.mxu1 %v6926_v63  ;;  %3149 = vmatpush1.bf16.msra.mxu0 %v6928_v0  ;;  %v6915_v63 = vcombine.high %v2979_v36, %v2981_v38  ;;  %v6917_v0 = vcombine.high %v2980_v54, %v2982_v57  ;;  %v8290_v24 = vld [vmem:[%s10549_s6 + $0x300] sm:$0xff]  }
 0x90d   : > { %3107 = vmatprep.subr.bf16.mxu1 %v6923_v26  ;;  %3150 = vmatprep.subr.bf16.mxu0 %v6925_v27  ;;  %v8291_v25 = vld [vmem:[%s10549_s6 + $0x380] sm:$0xff]  }
 0x90e   : > { %3129 = vmatprep.mubr.bf16.mxu1 %v8580_v2  ;;  %3172 = vmatprep.mubr.bf16.mxu0 %v8580_v2 }
 0x910   : > { %3108 = vmatpush1.bf16.msra.mxu1 %v6922_v31  ;;  %3151 = vmatpush1.bf16.msra.mxu0 %v6924_v32 }
 0x911   : > { %3109 = vmatprep.subr.bf16.mxu1 %v6919_v34  ;;  %3152 = vmatprep.subr.bf16.mxu0 %v6921_v35 }
 0x914   : > { %3110 = vmatpush1.bf16.msra.mxu1 %v6918_v58  ;;  %3153 = vmatpush1.bf16.msra.mxu0 %v6920_v62 }
 0x915   : > { %3111 = vmatprep.subr.bf16.mxu1 %v6915_v63  ;;  %3154 = vmatprep.subr.bf16.mxu0 %v6917_v0  ;;  %v2995_v63 = vld [vmem:[%s10552_s9 + $0xc] sm:$0xf] }
 0x918   : > { %3112 = vmatpush1.bf16.msra.mxu1 %v6914_v39  ;;  %3155 = vmatpush1.bf16.msra.mxu0 %v6916_v40  ;;  %v3004_v40 = vrot.slane %v2995_v63, %v8775_v17 }
 0x919   : > { %7703 = vmatprep.subr.bf16.mxu1 %v8260_v49  ;;  %7725 = vmatprep.subr.bf16.mxu0 %v8261_v51  ;;  %v3012_v49 = vrot.slane %v2995_v63, %v9149_v59  ;;  %v3000_v51 = vrot.slane %v2995_v63, %v8769_v15 }
 0x91b   : > { %6930 = vmatmul.mubr.msk.bf16.vlgmr.msra.gmra.mxu1 %vm617_vm0, %v9002_v48  ;;  %6931 = vmatmul.mubr.msk.bf16.vlgmr.msra.gmra.mxu0 %vm617_vm0, %v9002_v48  ;;  %v8268_v48 = vld [vmem:[%s10549_s6 + $0x368] sm:$0xff]  }
 0x91c   : > { %7704 = vmatpush3.bf16.msra.mxu1 %v8262_v42  ;;  %7726 = vmatpush3.bf16.msra.mxu0 %v8263_v43  ;;  %v3008_v42 = vrot.slane %v2995_v63, %v9155_v61 }
 0x91d   : > { %7705 = vmatprep.subr.bf16.mxu1 %v8264_v44  ;;  %7727 = vmatprep.subr.bf16.mxu0 %v8265_v37 }
 0x920   : > { %7706 = vmatpush3.bf16.msra.mxu1 %v8266_v45  ;;  %7728 = vmatpush3.bf16.msra.mxu0 %v8267_v41 }
 0x921   : > { %7707 = vmatprep.subr.bf16.mxu1 %v8268_v48  ;;  %7729 = vmatprep.subr.bf16.mxu0 %v8269_v52 }
 0x924   : > { %7708 = vmatpush3.bf16.msra.mxu1 %v8270_v60  ;;  %7730 = vmatpush3.bf16.msra.mxu0 %v8271_v1 }
 0x925   : > { %7709 = vmatprep.subr.bf16.mxu1 %v8272_v3  ;;  %7731 = vmatprep.subr.bf16.mxu0 %v8273_v4 }
 0x928   : > { %7710 = vmatpush3.bf16.msra.mxu1 %v8274_v5  ;;  %7732 = vmatpush3.bf16.msra.mxu0 %v8275_v6 }
 0x929   : > { %7711 = vmatprep.subr.bf16.mxu1 %v8276_v14  ;;  %7733 = vmatprep.subr.bf16.mxu0 %v8277_v8 }
 0x92c   : > { %7712 = vmatpush3.bf16.msra.mxu1 %v8278_v9  ;;  %7734 = vmatpush3.bf16.msra.mxu0 %v8279_v10 }
 0x92d   : > { %7713 = vmatprep.subr.bf16.mxu1 %v8280_v11  ;;  %7735 = vmatprep.subr.bf16.mxu0 %v8281_v13 }
 0x930   : > { %7714 = vmatpush3.bf16.msra.mxu1 %v8282_v16  ;;  %7736 = vmatpush3.bf16.msra.mxu0 %v8283_v18 }
 0x931   : > { %7715 = vmatprep.subr.bf16.mxu1 %v8284_v19  ;;  %7737 = vmatprep.subr.bf16.mxu0 %v8285_v29 }
 0x934   : > { %7716 = vmatpush3.bf16.msra.mxu1 %v8286_v20  ;;  %7738 = vmatpush3.bf16.msra.mxu0 %v8287_v21 }
 0x935   : > { %7717 = vmatprep.subr.bf16.mxu1 %v8288_v22  ;;  %7739 = vmatprep.subr.bf16.mxu0 %v8289_v23 }
 0x938   : > { %7718 = vmatpush3.bf16.msra.mxu1 %v8290_v24  ;;  %7740 = vmatpush3.bf16.msra.mxu0 %v8291_v25 }
 0x939   : > { %8004 = vmatprep.subr.bf16.mxu0 %v8581_v12 }
 0x9cb   : > { %v7675_v26 = vpop.f32.mrf.mxu1  ;;  %v7697_v27 = vpop.f32.mrf.mxu0 }
 0x9cd   : > { %v7676_v7 = vpop.f32.mrf.mxu1  ;;  %v7698_v28 = vpop.f32.mrf.mxu0 }
 0x9ce   : > { %v7677_v30 = vadd.f32 %v7676_v7, %v7675_v26  ;;  %v7699_v56 = vadd.f32 %v7698_v28, %v7697_v27 }
 0x9cf   : > { %v7678_v31 = vpop.f32.mrf.mxu1  ;;  %v7700_v32 = vpop.f32.mrf.mxu0 }
 0x9d0   : > { %v2971_v34 = vadd.f32 %v7699_v56, %v7677_v30 }
 0x9d1   : > { %v7679_v35 = vpop.f32.mrf.mxu1  ;;  %v7701_v36 = vpop.f32.mrf.mxu0 }
 0x9d2   : > { %v2977_v38 = vadd.f32 %v2971_v34, %v9446_v55  ;;  %v7680_v54 = vadd.f32 %v7679_v35, %v7678_v31  ;;  %v7702_v57 = vadd.f32 %v7701_v36, %v7700_v32  ;;  %v6964_v31 = vld [vmem:[%s10553_s10] ss:$0 sm:$0xff] }
 0x9d4   : > { %v2974_v58 = vadd.f32 %v7702_v57, %v7680_v54 }
 0x9d6   : > { %v2978_v62 = vadd.f32 %v2974_v58, %v9448_v33 }
 0x9db   : > { %v3131_v0 = vpop.f32.mrf.mxu1  ;;  %v3174_v39 = vpop.f32.mrf.mxu0 }
 0x9dc   : > { %v3132_v52 = vadd.f32 %v3131_v0, %v3000_v51  ;;  %v3175_v60 = vadd.f32 %v3174_v39, %v3008_v42 }
 0x9dd   : > { %v3133_v55 = vpop.f32.mrf.mxu1  ;;  %v3176_v43 = vpop.f32.mrf.mxu0 }
 0x9de   : > { %v3134_v45 = vadd.f32 %v3133_v55, %v3004_v40  ;;  %v3177_v33 = vadd.f32 %v3176_v43, %v3012_v49  ;;  %v3183_v13 = vmax.f32 %v3132_v52, 0.0  ;;  %v3185_v16 = vmax.f32 %v3175_v60, 0.0  ;;  %v8298_v52 = vld [vmem:[%s10546_s3 + $0x50] ss:$8 sps:$4 sm:$0xff]   ;;  %v8303_v60 = vld [vmem:[%s10546_s3 + $0x44] ss:$8 sps:$4 sm:$0xff]  }
 0x9df   : > { %v3135_v44 = vpop.f32.mrf.mxu1  ;;  %v3178_v37 = vpop.f32.mrf.mxu0 }
 0x9e0   : > { %v3136_v41 = vadd.f32 %v3135_v44, %v3000_v51  ;;  %v3179_v48 = vadd.f32 %v3178_v37, %v3008_v42  ;;  %v3184_v8 = vmax.f32 %v3134_v45, 0.0  ;;  %v3186_v9 = vmax.f32 %v3177_v33, 0.0  ;;  %v8292_v45 = vld [vmem:[%s10546_s3 + $0x70] ss:$8 sps:$4 sm:$0xff]   ;;  %v8297_v33 = vld [vmem:[%s10546_s3 + $0x64] ss:$8 sps:$4 sm:$0xff]  }
 0x9e1   : > { %v3137_v1 = vpop.f32.mrf.mxu1  ;;  %v3180_v3 = vpop.f32.mrf.mxu0 }
 0x9e2   : > { %v3138_v4 = vadd.f32 %v3137_v1, %v3004_v40  ;;  %v3181_v5 = vadd.f32 %v3180_v3, %v3012_v49  ;;  %v3187_v6 = vmax.f32 %v3136_v41, 0.0  ;;  %v3189_v14 = vmax.f32 %v3179_v48, 0.0  ;;  %v8295_v41 = vld [vmem:[%s10546_s3 + $0x60] ss:$8 sps:$4 sm:$0xff]   ;;  %v8300_v48 = vld [vmem:[%s10546_s3 + $0x54] ss:$8 sps:$4 sm:$0xff]  }
 0x9e3   : > { %v8301_v1 = vld [vmem:[%s10546_s3 + $0x40] ss:$8 sps:$4 sm:$0xff]  }
 0x9e4   : > { %v3188_v10 = vmax.f32 %v3138_v4, 0.0  ;;  %v3190_v11 = vmax.f32 %v3181_v5, 0.0  ;;  %v3191_v29 = vpack.c.bf16 %v3187_v6, %v3183_v13  ;;  %v3193_v20 = vpack.c.bf16 %v3189_v14, %v3185_v16 }
 0x9e6   : > { %v3192_v18 = vpack.c.bf16 %v3188_v10, %v3184_v8  ;;  %v3194_v19 = vpack.c.bf16 %v3190_v11, %v3186_v9  ;;  %v6965_v11 = vld [vmem:[%s10556_s13] ss:$0 sm:$0xff] }
 0x9e8   : > { %3483 = vmatprep.mubr.bf16.mxu1 %v3192_v18  ;;  %3524 = vmatprep.mubr.bf16.mxu0 %v3194_v19  ;;  %v6966_v19 = vld [vmem:[%s10557_s14] ss:$0 sm:$0xff] }
 0x9e9   : > { %3484 = vmatmul.mubr.bf16.vlgmr.msra.gmra.mxu1 %v3191_v29  ;;  %3525 = vmatmul.mubr.bf16.vlgmr.msra.gmra.mxu0 %v3193_v20 }
 0x9ea   : > { %3688 = vmatprep.mubr.bf16.mxu1 %v8580_v2  ;;  %8006 = vmatprep.mubr.msk.bf16.mxu0 %vm8582_vm1, %v8581_v12 }
 0xaa9   : > { %v7719_v21 = vpop.f32.mrf.mxu1  ;;  %v7741_v22 = vpop.f32.mrf.mxu0 }
 0xaab   : > { %v7720_v23 = vpop.f32.mrf.mxu1  ;;  %v7742_v24 = vpop.f32.mrf.mxu0 }
 0xaac   : > { %v7721_v25 = vadd.f32 %v7720_v23, %v7719_v21  ;;  %v7743_v26 = vadd.f32 %v7742_v24, %v7741_v22  ;;  %v6975_v23 = vld [vmem:[%s10550_s7 + $0x2] sm:$0x3] }
 0xaad   : > { %v7722_v27 = vpop.f32.mrf.mxu1  ;;  %v7744_v7 = vpop.f32.mrf.mxu0 }
 0xaae   : > { %v3527_v28 = vadd.f32 %v7743_v26, %v7721_v25  ;;  %v3606_v25 = vrot.slane %v6975_v23, %v8769_v15 }
 0xaaf   : > { %v7723_v30 = vpop.f32.mrf.mxu1  ;;  %v7745_v56 = vpop.f32.mrf.mxu0 }
 0xab0   : > { %v3533_v32 = vadd.f32 %v3527_v28, %v2977_v38  ;;  %v7724_v34 = vadd.f32 %v7723_v30, %v7722_v27  ;;  %v7746_v35 = vadd.f32 %v7745_v56, %v7744_v7 }
 0xab2   : > { %v3530_v36 = vadd.f32 %v7746_v35, %v7724_v34  ;;  %v3542_v54 = vadd.f32 %v6964_v31, %v3533_v32 }
 0xab4   : > { %v3534_v57 = vadd.f32 %v3530_v36, %v2978_v62  ;;  %v3544_v58 = vadd.f32 %v3542_v54, %v8996_v46 }
 0xab6   : > { %v3546_v63 = vsel %vm617_vm0, %v3544_v58, 0.0  ;;  %v3543_v0 = vadd.f32 %v6964_v31, %v3534_v57 }
 0xab7   : > { %3547 = vadd.xlane.f32.xlu1 %v3546_v63 }
 0xab8   : > { %v3545_v39 = vadd.f32 %v3543_v0, %v8998_v47  ;;  %v8294_v47 = vld [vmem:[%s10546_s3 + $0x74] ss:$8 sps:$4 sm:$0xff]   ;;  %v3610_v0 = vrot.slane %v6975_v23, %v8775_v17 }
 0xab9   : > { %3664 = vmatprep.subr.bf16.mxu1 %v8294_v47 }
 0xaba   : > { %v3549_v40 = vsel %vm617_vm0, %v3545_v39, 0.0  ;;  %3665 = vmatpush1.bf16.msra.mxu1 %v8292_v45 }
 0xabb   : > { %3550 = vadd.xlane.f32.xlu0 %v3549_v40  ;;  %3666 = vmatprep.subr.bf16.mxu1 %v8297_v33 }
 0xabe   : > { %3667 = vmatpush1.bf16.msra.mxu1 %v8295_v41 }
 0xabf   : > { %3668 = vmatprep.subr.bf16.mxu1 %v8300_v48 }
 0xac2   : > { %3669 = vmatpush1.bf16.msra.mxu1 %v8298_v52 }
 0xac3   : > { %3670 = vmatprep.subr.bf16.mxu1 %v8303_v60 }
 0xac6   : > { %3671 = vmatpush1.bf16.msra.mxu1 %v8301_v1 }
 0xac7   : > { %8010 = vmatprep.subr.bf16.mxu1 %v8581_v12 }
 0xb40   : > { %v3548_v49 = vpop.xlane.xlu1 %3547 }
 0xb41   : > { %v3552_v51 = vmul.f32 0.015625, %v3548_v49 }
 0xb43   : > { %v3554_v42 = vsub.f32 %v3544_v58, %v3552_v51 }
 0xb44   : > { %v3551_v38 = vpop.xlane.xlu0 %3550 }
 0xb45   : > { %v3553_v55 = vmul.f32 0.015625, %v3551_v38  ;;  %v3556_v43 = vmul.f32 %v3554_v42, %v3554_v42 }
 0xb47   : > { %v3555_v44 = vsub.f32 %v3545_v39, %v3553_v55  ;;  %v3558_v62 = vsel %vm617_vm0, %v3556_v43, 0.0 }
 0xb48   : > { %3559 = vadd.xlane.f32.xlu1 %v3558_v62 }
 0xb49   : > { %v3557_v46 = vmul.f32 %v3555_v44, %v3555_v44 }
 0xb4b   : > { %v3561_v37 = vsel %vm617_vm0, %v3557_v46, 0.0 }
 0xb4c   : > { %3562 = vadd.xlane.f32.xlu0 %v3561_v37 }
 0xbd1   : > { %v3560_v3 = vpop.xlane.xlu1 %3559 }
 0xbd2   : > { %v3564_v4 = vmul.f32 0.015625, %v3560_v3 }
 0xbd4   : > { %v3566_v5 = vadd.f32 1e-05, %v3564_v4 }
 0xbd5   : > { %v3563_v6 = vpop.xlane.xlu0 %3562 }
 0xbd6   : > { %8472 = vrsqrt.f32 %v3566_v5  ;;  %v3565_v14 = vmul.f32 0.015625, %v3563_v6 }
 0xbd8   : > { %v3567_v8 = vadd.f32 1e-05, %v3565_v14 }
 0xbda   : > { %8474 = vrsqrt.f32 %v3567_v8 }
 0xbe3   : > { %v8473_v9 = vpop.eup %8472 }
 0xbe4   : > { %v3570_v10 = vmul.f32 %v8473_v9, %v3554_v42 }
 0xbe6   : > { %v3579_v18 = vmul.f32 %v6965_v11, %v3570_v10 }
 0xbe7   : > { %v8475_v13 = vpop.eup %8474 }
 0xbe8   : > { %v3571_v16 = vmul.f32 %v8475_v13, %v3555_v44  ;;  %v9654_v20 = vadd.f32 %v6966_v19, %v3579_v18 }
 0xbea   : > { %v3580_v29 = vmul.f32 %v6965_v11, %v3571_v16 }
 0xbec   : > { %v9656_v21 = vadd.f32 %v6966_v19, %v3580_v29 }
 0xbee   : > { %v3590_v22 = vpack.c.bf16 %v9656_v21, %v9654_v20 }
 0xbf0   : > { %6984 = vmatmul.mubr.msk.bf16.vlgmr.msra.gmra.mxu1 %vm617_vm0, %v3590_v22 }
 0xbf1   : > { %8012 = vmatprep.mubr.msk.bf16.mxu1 %vm8582_vm1, %v8581_v12 }
 0xcb0   : > { %v3690_v24 = vpop.f32.mrf.mxu1 }
 0xcb1   : > { %v3691_v7 = vadd.f32 %v3690_v24, %v3606_v25 }
 0xcb2   : > { %v3692_v26 = vpop.f32.mrf.mxu1 }
 0xcb3   : > { %v3693_v40 = vadd.f32 %v3692_v26, %v3610_v0 }
 0xcb4   : > { %v3694_v27 = vpop.f32.mrf.mxu1 }
 0xcb5   : > { %v3695_v28 = vadd.f32 %v3694_v27, %v3606_v25 }
 0xcb6   : > { %v3696_v57 = vpop.f32.mrf.mxu1 }
 0xcb7   : > { %v3699_v30 = vpack.c.bf16 %v3695_v28, %v3691_v7  ;;  %v3697_v39 = vadd.f32 %v3696_v57, %v3610_v0 }
 0xcb9   : > { %3703 = vrot.lane.b32.xlu0 %v3699_v30, %s10584_s26  ;;  %3701 = vrot.lane.b32.xlu1 %v3699_v30, %s10585_s20  ;;  %v9684_v51 = vpack.c.bf16 %v3697_v39, %v3693_v40 }
 0xcbd   : > { %3705 = vrot.lane.b32.xlu1 %v3699_v30, %s10586_s23 }
 0xcc1   : > { %3718 = vrot.lane.b32.xlu1 %v3699_v30, %s10587_s17 }
 0xd2b   : > { %v3704_v56 = vpop.permute.xlu0 %3703  ;;  %v3702_v31 = vpop.permute.xlu1 %3701 }
 0xd2c   : > { %3816 = vrot.lane.b32.xlu1 %v3704_v56, %s10587_s17  ;;  %3767 = vrot.lane.b32.xlu0 %v3702_v31, %s10587_s17 }
 0xd2f   : > { %v3706_v32 = vpop.permute.xlu1 %3705 }
 0xd30   : > { %3865 = vrot.lane.b32.xlu0 %v3706_v32, %s10587_s17 }
 0xd33   : > { %v3719_v34 = vpop.permute.xlu1 %3718 }
 0xd34   : > { %v3724_v35 = vsel %vm685_vm2, %v3719_v34, 0 }
 0xd35   : > { %8005 = vmatpush3.bf16.xpose.msra.mxu0 %v3724_v35 }
 0xd36   : > { %8016 = vmatprep.subr.bf16.mxu0 %v8581_v12 }
 0xd3c   : > { %8007 = vmatmul.mubr.msk.bf16.vlgmr.msra.gmra.mxu0 %vm685_vm2, %v3699_v30 }
 0xd3d   : > { %8018 = vmatprep.mubr.msk.bf16.mxu0 %vm8582_vm1, %v8581_v12 }
 0xd9e   : > { %v3768_v36 = vpop.permute.xlu0 %3767  ;;  %v3817_v54 = vpop.permute.xlu1 %3816 }
 0xd9f   : > { %v3773_v58 = vsel %vm685_vm2, %v3768_v36, 0  ;;  %v3822_v63 = vsel %vm685_vm2, %v3817_v54, 0 }
 0xda0   : > { %8011 = vmatpush3.bf16.xpose.msra.mxu1 %v3773_v58  ;;  %8017 = vmatpush3.bf16.xpose.msra.mxu0 %v3822_v63 }
 0xda1   : > { %8022 = vmatprep.subr.bf16.mxu1 %v8581_v12  ;;  %8028 = vmatprep.subr.bf16.mxu0 %v8581_v12 }
 0xda2   : > { %v3866_v49 = vpop.permute.xlu0 %3865 }
 0xda3   : > { %v3871_v42 = vsel %vm685_vm2, %v3866_v49, 0 }
 0xda7   : > { %8013 = vmatmul.mubr.msk.bf16.vlgmr.msra.gmra.mxu1 %vm685_vm2, %v3702_v31  ;;  %8019 = vmatmul.mubr.msk.bf16.vlgmr.msra.gmra.mxu0 %vm685_vm2, %v3704_v56 }
 0xda8   : > { %8023 = vmatpush3.bf16.xpose.msra.mxu1 %v3871_v42  ;;  %8029 = vmatpush3.bf16.msra.mxu0 %v9684_v51 }
 0xda9   : > { %8024 = vmatprep.mubr.msk.bf16.mxu1 %vm8582_vm1, %v8581_v12  ;;  %8030 = vmatprep.mubr.msk.bf16.mxu0 %vm8582_vm1, %v8581_v12 }
 0xdaa   : > { %8034 = vmatprep.subr.bf16.mxu1 %v8581_v12  ;;  %8040 = vmatprep.subr.bf16.mxu0 %v8581_v12 }
 0xdaf   : > { %8025 = vmatmul.mubr.msk.bf16.vlgmr.msra.gmra.mxu1 %vm685_vm2, %v3706_v32 }
 0xdb0   : > { %8036 = vmatprep.mubr.msk.bf16.mxu1 %vm8582_vm1, %v8581_v12 }
 0xdfc   : > { %v3760_v38 = vpop.f32.mrf.mxu0 }
 0xdfd   : > { %v3761_v55 = vadd.f32 %v3760_v38, %v8826_v50 }
 0xdfe   : > { %v8008_v43 = vpop.f32.mrf.mxu0 }
 0xdff   : > { %v3914_v44 = vsel %vm685_vm2, %v3761_v55, -inf }
 0xe00   : > { %3915 = vmax.xlane.f32.xlu1 %v3914_v44  ;;  %v3763_v62 = vpop.f32.mrf.mxu0 }
 0xe01   : > { %v3764_v46 = vadd.f32 %v3763_v62, %v8829_v53 }
 0xe02   : > { %v8009_v37 = vpop.f32.mrf.mxu0 }
 0xe03   : > { %v3917_v47 = vsel %vm685_vm2, %v3764_v46, -inf }
 0xe04   : > { %3918 = vmax.xlane.f32.xlu0 %v3917_v47 }
 0xe67   : > { %v3809_v45 = vpop.f32.mrf.mxu1  ;;  %v3858_v33 = vpop.f32.mrf.mxu0 }
 0xe68   : > { %v3810_v41 = vadd.f32 %v3809_v45, %v8826_v50  ;;  %v3859_v60 = vadd.f32 %v3858_v33, %v8826_v50 }
 0xe69   : > { %v8014_v48 = vpop.f32.mrf.mxu1  ;;  %v8020_v52 = vpop.f32.mrf.mxu0 }
 0xe6a   : > { %v3920_v1 = vsel %vm685_vm2, %v3810_v41, -inf  ;;  %v3926_v10 = vsel %vm685_vm2, %v3859_v60, -inf }
 0xe6b   : > { %v3812_v3 = vpop.f32.mrf.mxu1  ;;  %3921 = vmax.xlane.f32.xlu0 %v3920_v1  ;;  %v3861_v4 = vpop.f32.mrf.mxu0 }
 0xe6c   : > { %v3813_v5 = vadd.f32 %v3812_v3, %v8829_v53  ;;  %v3862_v8 = vadd.f32 %v3861_v4, %v8829_v53 }
 0xe6d   : > { %v8015_v6 = vpop.f32.mrf.mxu1  ;;  %v8021_v14 = vpop.f32.mrf.mxu0 }
 0xe6e   : > { %v3923_v9 = vsel %vm685_vm2, %v3813_v5, -inf  ;;  %v3929_v19 = vsel %vm685_vm2, %v3862_v8, -inf }
 0xe6f   : > { %v3907_v11 = vpop.f32.mrf.mxu1  ;;  %3924 = vmax.xlane.f32.xlu1 %v3923_v9  ;;  %3927 = vmax.xlane.f32.xlu0 %v3926_v10 }
 0xe70   : > { %v3908_v13 = vadd.f32 %v3907_v11, %v8826_v50 }
 0xe71   : > { %v8026_v16 = vpop.f32.mrf.mxu1 }
 0xe72   : > { %v3932_v18 = vsel %vm685_vm2, %v3908_v13, -inf }
 0xe73   : > { %v3910_v29 = vpop.f32.mrf.mxu1  ;;  %3933 = vmax.xlane.f32.xlu0 %v3932_v18  ;;  %3930 = vmax.xlane.f32.xlu1 %v3929_v19 }
 0xe74   : > { %v3911_v22 = vadd.f32 %v3910_v29, %v8829_v53 }
 0xe75   : > { %v8027_v23 = vpop.f32.mrf.mxu1 }
 0xe76   : > { %v3935_v24 = vsel %vm685_vm2, %v3911_v22, -inf }
 0xe77   : > { %3936 = vmax.xlane.f32.xlu1 %v3935_v24 }
 0xe89   : > { %v3916_v25 = vpop.xlane.xlu1 %3915 }
 0xe8a   : > { %v3938_v26 = vsub.f32 %v3761_v55, %v3916_v25 }
 0xe8c   : > { %v3946_v27 = vmul.f32 1.442695, %v3938_v26 }
 0xe8d   : > { %v3919_v7 = vpop.xlane.xlu0 %3918 }
 0xe8e   : > { %8476 = vpow2.f32 %v3946_v27  ;;  %v3939_v50 = vsub.f32 %v3764_v46, %v3919_v7 }
 0xe90   : > { %v3948_v28 = vmul.f32 1.442695, %v3939_v50 }
 0xe92   : > { %8478 = vpow2.f32 %v3948_v28 }
 0xe9b   : > { %v8477_v30 = vpop.eup %8476 }
 0xe9c   : > { %v3962_v56 = vsel %vm685_vm2, %v8477_v30, 0.0 }
 0xe9d   : > { %3963 = vadd.xlane.f32.xlu0 %v3962_v56 }
 0xe9f   : > { %v8479_v31 = vpop.eup %8478 }
 0xea0   : > { %v3965_v32 = vsel %vm685_vm2, %v8479_v31, 0.0 }
 0xea1   : > { %3966 = vadd.xlane.f32.xlu1 %v3965_v32 }
 0xef4   : > { %v3922_v53 = vpop.xlane.xlu0 %3921 }
 0xef5   : > { %v3940_v34 = vsub.f32 %v3810_v41, %v3922_v53 }
 0xef7   : > { %v3950_v35 = vmul.f32 1.442695, %v3940_v34 }
 0xef8   : > { %v3928_v36 = vpop.xlane.xlu0 %3927  ;;  %v3925_v54 = vpop.xlane.xlu1 %3924 }
 0xef9   : > { %8480 = vpow2.f32 %v3950_v35  ;;  %v3942_v57 = vsub.f32 %v3859_v60, %v3928_v36  ;;  %v3941_v58 = vsub.f32 %v3813_v5, %v3925_v54 }
 0xefb   : > { %v3954_v63 = vmul.f32 1.442695, %v3942_v57  ;;  %v3952_v0 = vmul.f32 1.442695, %v3941_v58 }
 0xefc   : > { %v3934_v39 = vpop.xlane.xlu0 %3933  ;;  %v3931_v40 = vpop.xlane.xlu1 %3930 }
 0xefd   : > { %8482 = vpow2.f32 %v3954_v63  ;;  %v3944_v49 = vsub.f32 %v3908_v13, %v3934_v39  ;;  %v3943_v42 = vsub.f32 %v3862_v8, %v3931_v40  ;;  %v8304_v40 = vld [vmem:[%s10547_s4 + $0x38] sm:$0xff]  }
 0xefe   : > { %8484 = vpow2.f32 %v3952_v0 }
 0xeff   : > { %v3958_v38 = vmul.f32 1.442695, %v3944_v49  ;;  %v3956_v55 = vmul.f32 1.442695, %v3943_v42  ;;  %v8305_v42 = vld [vmem:[%s10547_s4 + $0x30] sm:$0xff]  }
 0xf00   : > { %v3937_v52 = vpop.xlane.xlu1 %3936 }
 0xf01   : > { %8486 = vpow2.f32 %v3958_v38  ;;  %v3945_v3 = vsub.f32 %v3911_v22, %v3937_v52 }
 0xf02   : > { %8488 = vpow2.f32 %v3956_v55 }
 0xf03   : > { %v3960_v4 = vmul.f32 1.442695, %v3945_v3 }
 0xf06   : > { %v8481_v43 = vpop.eup %8480 }
 0xf07   : > { %v3968_v44 = vsel %vm685_vm2, %v8481_v43, 0.0 }
 0xf08   : > { %3969 = vadd.xlane.f32.xlu0 %v3968_v44 }
 0xf0a   : > { %v8483_v62 = vpop.eup %8482 }
 0xf0b   : > { %v8485_v46 = vpop.eup %8484  ;;  %v3974_v37 = vsel %vm685_vm2, %v8483_v62, 0.0 }
 0xf0c   : > { %3975 = vadd.xlane.f32.xlu0 %v3974_v37  ;;  %v3971_v47 = vsel %vm685_vm2, %v8485_v46, 0.0 }
 0xf0d   : > { %3972 = vadd.xlane.f32.xlu1 %v3971_v47 }
 0xf0e   : > { %v9720_v45 = vpop.eup %8486 }
 0xf0f   : > { %v8489_v33 = vpop.eup %8488  ;;  %v3980_v41 = vsel %vm685_vm2, %v9720_v45, 0.0 }
 0xf10   : > { %3981 = vadd.xlane.f32.xlu0 %v3980_v41  ;;  %v3977_v48 = vsel %vm685_vm2, %v8489_v33, 0.0 }
 0xf11   : > { %3978 = vadd.xlane.f32.xlu1 %v3977_v48 }
 0xf22   : > { %3712 = vrot.lane.b32.xlu1 %v9684_v51, %s10584_s26 }
 0xf26   : > { %3709 = vrot.lane.b32.xlu0 %v9684_v51, %s10585_s20  ;;  %v3964_v60 = vpop.xlane.xlu0 %3963  ;;  %s7549_s20 = sshll.u32 %s8695_s22, 8 }
 0xf27   : > { %8490 = vrcp.f32 %v3964_v60  ;;  %s10498_s24 = scalar_lea.hbm %s10558_s15, %s7549_s20 }
 0xf2a   : > { %v3967_v1 = vpop.xlane.xlu1 %3966 }
 0xf2b   : > { %8492 = vrcp.f32 %v3967_v1 }
 0xf2c   : > { %8494 = vpow2.f32 %v3960_v4 }
 0xf34   : > { %v8491_v5 = vpop.eup %8490 }
 0xf35   : > { %v3994_v14 = vmul.f32 %v8491_v5, %v8477_v30 }
 0xf38   : > { %v8493_v6 = vpop.eup %8492 }
 0xf39   : > { %v3995_v8 = vmul.f32 %v8493_v6, %v8479_v31  ;;  %v8495_v10 = vpop.eup %8494 }
 0xf3a   : > { %v3983_v11 = vsel %vm685_vm2, %v8495_v10, 0.0 }
 0xf3b   : > { %v4002_v9 = vpack.c.bf16 %v3995_v8, %v3994_v14 }
 0xf3d   : > { %8031 = vmatmul.mubr.msk.bf16.vlgmr.msra.gmra.mxu0 %vm685_vm2, %v4002_v9 }
 0xf3e   : > { %8042 = vmatprep.mubr.msk.bf16.mxu0 %vm8582_vm1, %v8581_v12 }
 0xf46   : > { %3984 = vadd.xlane.f32.xlu1 %v3983_v11 }
 0xf57   : > { %3715 = vrot.lane.b32.xlu1 %v9684_v51, %s10586_s23  ;;  %s10590_s23 = smov 48  }
 0xf91   : > { %v3970_v13 = vpop.xlane.xlu0 %3969 }
 0xf92   : > { %8496 = vrcp.f32 %v3970_v13 }
 0xf95   : > { %v3976_v16 = vpop.xlane.xlu0 %3975 }
 0xf96   : > { %v3973_v18 = vpop.xlane.xlu1 %3972 }
 0xf97   : > { %8498 = vrcp.f32 %v3973_v18 }
 0xf98   : > { %8500 = vrcp.f32 %v3976_v16 }
 0xf99   : > { %v3982_v19 = vpop.xlane.xlu0 %3981 }
 0xf9a   : > { %v3979_v29 = vpop.xlane.xlu1 %3978 }
 0xf9b   : > { %8502 = vrcp.f32 %v3979_v29 }
 0xf9c   : > { %8504 = vrcp.f32 %v3982_v19 }
 0xf9d   : > { %v3710_v22 = vpop.permute.xlu0 %3709 }
 0xf9e   : > { %v3713_v23 = vpop.permute.xlu1 %3712  ;;  %8035 = vmatpush3.bf16.msra.mxu1 %v3710_v22 }
 0xf9f   : > { %8041 = vmatpush3.bf16.msra.mxu0 %v3713_v23  ;;  %8046 = vmatprep.subr.bf16.mxu1 %v8581_v12  ;;  %v8497_v24 = vpop.eup %8496  ;;  %v7002_v23 = vld [vmem:[%s10551_s8 + $0x1] ss:$0 sm:$0xff] }
 0xfa0   : > { %8052 = vmatprep.subr.bf16.mxu0 %v8581_v12  ;;  %v3996_v51 = vmul.f32 %v8497_v24, %v8481_v43 }
 0xfa4   : > { %v8499_v25 = vpop.eup %8498 }
 0xfa5   : > { %v3997_v26 = vmul.f32 %v8499_v25, %v8485_v46  ;;  %v8501_v27 = vpop.eup %8500  ;;  %v8306_v46 = vld [vmem:[%s10547_s4 + $0x28] sm:$0xff]  }
 0xfa6   : > { %v3998_v28 = vmul.f32 %v8501_v27, %v8483_v62 }
 0xfa7   : > { %v4003_v7 = vpack.c.bf16 %v3997_v26, %v3996_v51 }
 0xfa8   : > { %v8503_v50 = vpop.eup %8502 }
 0xfa9   : > { %8037 = vmatmul.mubr.msk.bf16.vlgmr.msra.gmra.mxu1 %vm685_vm2, %v4003_v7  ;;  %v3999_v30 = vmul.f32 %v8503_v50, %v8489_v33  ;;  %v8505_v53 = vpop.eup %8504  ;;  %v8307_v33 = vld [vmem:[%s10547_s4 + $0x20] sm:$0xff]  }
 0xfaa   : > { %8048 = vmatprep.mubr.msk.bf16.mxu1 %vm8582_vm1, %v8581_v12  ;;  %v4000_v35 = vmul.f32 %v8505_v53, %v9720_v45 }
 0xfab   : > { %v4004_v56 = vpack.c.bf16 %v3999_v30, %v3998_v28 }
 0xfad   : > { %8043 = vmatmul.mubr.msk.bf16.vlgmr.msra.gmra.mxu0 %vm685_vm2, %v4004_v56 }
 0xfae   : > { %8060 = vmatprep.mubr.msk.bf16.mxu0 %vm8582_vm1, %v8581_v12  ;;  %8053 = vmatpush3.bf16.msra.mxu0 %v8304_v40  ;;  %v7027_v40 = vld [vmem:[%s10548_s5 + $0x3c8] sm:$0xff] }
 0xfaf   : > { %8054 = vmatprep.subr.bf16.mxu0 %v8581_v12 }
 0xfb2   : > { %8055 = vmatpush3.bf16.msra.mxu0 %v8305_v42 }
 0xfb3   : > { %8056 = vmatprep.subr.bf16.mxu0 %v8581_v12 }
 0xfb6   : > { %8057 = vmatpush3.bf16.msra.mxu0 %v8306_v46  ;;  %v7023_v46 = vld [vmem:[%s10548_s5 + $0x348] sm:$0xff] }
 0xfb7   : > { %8058 = vmatprep.subr.bf16.mxu0 %v8581_v12 }
 0xfba   : > { %8059 = vmatpush3.bf16.msra.mxu0 %v8307_v33  ;;  %v7016_v33 = vld [vmem:[%s10548_s5 + $0x280] sm:$0xff] }
 0xfcf   : > { %v3985_v31 = vpop.xlane.xlu1 %3984 }
 0xfd0   : > { %8506 = vrcp.f32 %v3985_v31 }
 0xfd3   : > { %v3716_v32 = vpop.permute.xlu1 %3715 }
 0xfd4   : > { %8047 = vmatpush3.bf16.msra.mxu1 %v3716_v32 }
 0xfdd   : > { %v8507_v34 = vpop.eup %8506 }
 0xfde   : > { %v4001_v36 = vmul.f32 %v8507_v34, %v8495_v10 }
 0xfe0   : > { %v4005_v54 = vpack.c.bf16 %v4001_v36, %v4000_v35 }
 0xfe2   : > { %8049 = vmatmul.mubr.msk.bf16.vlgmr.msra.gmra.mxu1 %vm685_vm2, %v4005_v54 }
 0xfe3   : > { %4502 = vmatprep.mubr.bf16.mxu1 %v8580_v2 }
 0xffd   : > { %v4043_v57 = vpop.f32.mrf.mxu0 }
 0xfff   : > { %v8032_v58 = vpop.f32.mrf.mxu0 }
0x1000   : > { %v7024_v58 = vld [vmem:[%s10548_s5 + $0x380] sm:$0xff] }
0x1001   : > { %v4046_v63 = vpop.f32.mrf.mxu0 }
0x1003   : > { %v8033_v0 = vpop.f32.mrf.mxu0 }
0x1004   : > { %v7025_v0 = vld [vmem:[%s10548_s5 + $0x388] sm:$0xff] }
0x1005   : > { %v7043_v42 = vcombine.low %v7025_v0, %v7027_v40 }
0x1069   : > { %v4087_v39 = vpop.f32.mrf.mxu1 }
0x106b   : > { %v8038_v49 = vpop.f32.mrf.mxu1 }
0x106d   : > { %v4090_v38 = vpop.f32.mrf.mxu1  ;;  %v4131_v55 = vpop.f32.mrf.mxu0 }
0x106e   : > { %v8133_v43 = vpack.i.bf16 %v4090_v38, %v4087_v39  ;;  %v7044_v38 = vcombine.high %v7025_v0, %v7027_v40  ;;  %v7115_v40 = vld [vmem:[%s10548_s5 + $0x290] sm:$0xff] }
0x106f   : > { %v8039_v44 = vpop.f32.mrf.mxu1  ;;  %v8044_v62 = vpop.f32.mrf.mxu0 }
0x1070   : > { %8134 = vrot.lane.b32.xlu0 %v8133_v43, %s10588_s30  ;;  %4521 = vmatprep.subr.bf16.mxu0 %v7044_v38  ;;  %v7022_v43 = vld [vmem:[%s10548_s5 + $0x340] sm:$0xff]  ;;  %v7021_v44 = vld [vmem:[%s10548_s5 + $0x308] sm:$0xff]  ;;  %v7118_v38 = vld [vmem:[%s10548_s5 + $0x2d8] sm:$0xff]  ;;  %s6734_s30 = sshll.u32 %s511_s18, 4 }
0x1071   : > { %v4134_v37 = vpop.f32.mrf.mxu0 }
0x1072   : > { %v8138_v47 = vpack.i.bf16 %v4134_v37, %v4131_v55  ;;  %v7020_v55 = vld [vmem:[%s10548_s5 + $0x300] sm:$0xff] }
0x1073   : > { %v8045_v45 = vpop.f32.mrf.mxu0  ;;  %v7038_v62 = vcombine.high %v7020_v55, %v7022_v43  ;;  %v7037_v37 = vcombine.low %v7020_v55, %v7022_v43 }
0x1074   : > { %8139 = vrot.lane.b32.xlu1 %v8138_v47, %s10589_s27  ;;  %v7039_v47 = vcombine.low %v7021_v44, %v7023_v46  ;;  %v7040_v45 = vcombine.high %v7021_v44, %v7023_v46  ;;  %v7111_v46 = vld [vmem:[%s10548_s5 + $0x210] sm:$0xff] }
0x10a2   : > { %v4175_v41 = vpop.f32.mrf.mxu1 }
0x10a4   : > { %v8050_v48 = vpop.f32.mrf.mxu1 }
0x10a5   : > { %v7017_v48 = vld [vmem:[%s10548_s5 + $0x288] sm:$0xff] }
0x10a6   : > { %v4178_v52 = vpop.f32.mrf.mxu1 }
0x10a7   : > { %v8143_v60 = vpack.i.bf16 %v4178_v52, %v4175_v41  ;;  %v7018_v41 = vld [vmem:[%s10548_s5 + $0x2c0] sm:$0xff] }
0x10a8   : > { %v8051_v1 = vpop.f32.mrf.mxu1  ;;  %v7034_v52 = vcombine.high %v7016_v33, %v7018_v41 }
0x10a9   : > { %8144 = vrot.lane.b32.xlu0 %v8143_v60, %s10590_s23  ;;  %v7019_v60 = vld [vmem:[%s10548_s5 + $0x2c8] sm:$0xff]  ;;  %v7033_v1 = vcombine.low %v7016_v33, %v7018_v41  ;;  %s513_s23 = scalar_lea.vmem [#allocation2], %s6734_s30  ;;  %s8522_s30 = sshll.u32 %s8591_s16, 4  ;;  %s8523_s30 = int_to_ptr.vmem [resolvable:$false] %s8522_s30 }
0x10aa   : > { %s6647_s17 = sshll.u32 %s513_s23, 4  ;;  %s8524_s27 = scalar_lea.vmem %s8523_s30, 512  ;;  %s10500_s17 = int_to_ptr.vmem [resolvable:$true] %s6647_s17 }
0x10ab   : > { %s8518_s22 = scalar_lea.vmem %s10500_s17, 256  ;;  %p8525_p0 = scmp.lt.s32.totalorder %s10500_s17, %s8523_s30 }
0x10ac   : > { %p8519_p11 = scmp.ne.s32.totalorder %s10500_s17, %s8518_s22  ;;  %p8526_p1 = scmp.lt.s32.totalorder %s8524_s27, %s8518_s22 }
0x10ae   : > { %p8520_p12 = pnand %p8519_p11, %p8712_p5  ;;  %p8527_p2 = por %p8526_p1, %p8525_p0 }
0x10b0   : > { %p8521_p13 = pneg %p8520_p12 }
0x10b2   : > { %p8528_p3 = pnand %p8527_p2, %p8521_p13 }
0x10e2   : > { %v8135_v3 = vpop.permute.xlu0 %8134 }
0x10e3   : > { %v8137_v5 = vunpack.i.h.bf16 %v8135_v3  ;;  %v8136_v6 = vunpack.i.l.bf16 %v8135_v3  ;;  %v7035_v3 = vcombine.low %v7017_v48, %v7019_v60 }
0x10e5   : > { %v4207_v12 = vsel %vm685_vm2, %v4046_v63, %v8137_v5  ;;  %v4206_v10 = vsel %vm685_vm2, %v4043_v57, %v8136_v6  ;;  %v7026_v63 = vld [vmem:[%s10548_s5 + $0x3c0] sm:$0xff] }
0x10e6   : > { %v8140_v4 = vpop.permute.xlu1 %8139  ;;  %v7042_v39 = vcombine.high %v7024_v58, %v7026_v63  ;;  %v7041_v49 = vcombine.low %v7024_v58, %v7026_v63  ;;  %v7012_v5 = vld [vmem:[%s10548_s5 + $0x200] sm:$0xff] }
0x10e7   : > { %v8142_v14 = vunpack.i.h.bf16 %v8140_v4  ;;  %v8141_v8 = vunpack.i.l.bf16 %v8140_v4  ;;  %v7036_v4 = vcombine.high %v7017_v48, %v7019_v60  ;;  %v7014_v6 = vld [vmem:[%s10548_s5 + $0x240] sm:$0xff] }
0x10e8   : > { %4478 = vmatprep.subr.bf16.mxu1 %v7042_v39 }
0x10e9   : > { %v4209_v16 = vsel %vm1174_vm9, %v4207_v12, %v8142_v14  ;;  %v4208_v18 = vsel %vm1174_vm9, %v4206_v10, %v8141_v8  ;;  %4479 = vmatpush1.bf16.msra.mxu1 %v7041_v49  ;;  %v7013_v14 = vld [vmem:[%s10548_s5 + $0x208] sm:$0xff]  ;;  %v7030_v8 = vcombine.high %v7012_v5, %v7014_v6  ;;  %v7029_v12 = vcombine.low %v7012_v5, %v7014_v6  ;;  %v7117_v49 = vld [vmem:[%s10548_s5 + $0x2d0] sm:$0xff]  ;;  %v8310_v5 = vld [vmem:[%s10549_s6 + $0x538] sm:$0xff]  }
0x10ea   : > { %4480 = vmatprep.subr.bf16.mxu1 %v7038_v62  ;;  %v7133_v44 = vcombine.high %v7115_v40, %v7117_v49  ;;  %v7132_v33 = vcombine.low %v7115_v40, %v7117_v49  ;;  %v8311_v6 = vld [vmem:[%s10549_s6 + $0x5b8] sm:$0xff]  }
0x10ed   : > { %4481 = vmatpush1.bf16.msra.mxu1 %v7037_v37  ;;  %v7113_v37 = vld [vmem:[%s10548_s5 + $0x250] sm:$0xff] }
0x10ee   : > { %4482 = vmatprep.subr.bf16.mxu1 %v7034_v52  ;;  %v7129_v48 = vcombine.high %v7111_v46, %v7113_v37  ;;  %v7128_v60 = vcombine.low %v7111_v46, %v7113_v37 }
0x10f1   : > { %4483 = vmatpush1.bf16.msra.mxu1 %v7033_v1 }
0x10f2   : > { %4484 = vmatprep.subr.bf16.mxu1 %v7030_v8  ;;  %v8313_v8 = vld [vmem:[%s10549_s6 + $0x5f0] sm:$0xff]  }
0x10f5   : > { %4485 = vmatpush1.bf16.msra.mxu1 %v7029_v12  ;;  %v8315_v12 = vld [vmem:[%s10549_s6 + $0x5b0] sm:$0xff]  }
0x111b   : > { %v8145_v9 = vpop.permute.xlu0 %8144 }
0x111c   : > { %v8147_v11 = vunpack.i.h.bf16 %v8145_v9  ;;  %v8146_v13 = vunpack.i.l.bf16 %v8145_v9  ;;  %v7015_v9 = vld [vmem:[%s10548_s5 + $0x248] sm:$0xff] }
0x111d   : > { %v7031_v10 = vcombine.low %v7013_v14, %v7015_v9 }
0x111e   : > { %v4210_v19 = vsel %vm1177_vm10, %v4208_v18, %v8146_v13  ;;  %v4211_v29 = vsel %vm1177_vm10, %v4209_v16, %v8147_v11  ;;  %v7032_v11 = vcombine.high %v7013_v14, %v7015_v9  ;;  %v7123_v13 = vld [vmem:[%s10548_s5 + $0x390] sm:$0xff]  ;;  %v7124_v18 = vld [vmem:[%s10548_s5 + $0x398] sm:$0xff] }
0x111f   : > { %v4212_v22 = vpack.c.bf16 %v4211_v29, %v4210_v19  ;;  %v7125_v16 = vld [vmem:[%s10548_s5 + $0x3d0] sm:$0xff]  ;;  %v7126_v29 = vld [vmem:[%s10548_s5 + $0x3d8] sm:$0xff] }
0x1120   : > { %v7141_v19 = vcombine.high %v7123_v13, %v7125_v16  ;;  %v8312_v14 = vld [vmem:[%s10549_s6 + $0x570] sm:$0xff]  }
0x1121   : > { %8061 = vmatmul.mubr.msk.bf16.vlgmr.msra.gmra.mxu0 %vm617_vm0, %v4212_v22  ;;  %v7140_v22 = vcombine.low %v7123_v13, %v7125_v16  ;;  %v8314_v9 = vld [vmem:[%s10549_s6 + $0x530] sm:$0xff]   ;;  %v8318_v13 = vld [vmem:[%s10549_s6 + $0x528] sm:$0xff]  }
0x1122   : > { %4545 = vmatprep.mubr.bf16.mxu0 %v8580_v2  ;;  %4522 = vmatpush1.bf16.msra.mxu0 %v7043_v42  ;;  %v7116_v42 = vld [vmem:[%s10548_s5 + $0x298] sm:$0xff]  ;;  %v8319_v16 = vld [vmem:[%s10549_s6 + $0x5a8] sm:$0xff]  }
0x1123   : > { %4523 = vmatprep.subr.bf16.mxu0 %v7040_v45  ;;  %4759 = vmatprep.subr.bf16.mxu1 %v7141_v19  ;;  %v7135_v62 = vcombine.high %v7116_v42, %v7118_v38  ;;  %v7114_v45 = vld [vmem:[%s10548_s5 + $0x258] sm:$0xff]  ;;  %v7134_v41 = vcombine.low %v7116_v42, %v7118_v38  ;;  %v8321_v19 = vld [vmem:[%s10549_s6 + $0x5e0] sm:$0xff]  }
0x1126   : > { %4524 = vmatpush1.bf16.msra.mxu0 %v7039_v47  ;;  %v7112_v47 = vld [vmem:[%s10548_s5 + $0x218] sm:$0xff] }
0x1127   : > { %4525 = vmatprep.subr.bf16.mxu0 %v7036_v4  ;;  %v7131_v52 = vcombine.high %v7112_v47, %v7114_v45  ;;  %v7130_v1 = vcombine.low %v7112_v47, %v7114_v45  ;;  %v8309_v4 = vld [vmem:[%s10549_s6 + $0x5f8] sm:$0xff]  }
0x112a   : > { %4526 = vmatpush1.bf16.msra.mxu0 %v7035_v3  ;;  %v8308_v3 = vld [vmem:[%s10549_s6 + $0x578] sm:$0xff]  }
0x112b   : > { %4527 = vmatprep.subr.bf16.mxu0 %v7032_v11  ;;  %v8317_v11 = vld [vmem:[%s10549_s6 + $0x5e8] sm:$0xff]  }
0x112e   : > { %4528 = vmatpush1.bf16.msra.mxu0 %v7031_v10  ;;  %v8316_v10 = vld [vmem:[%s10549_s6 + $0x568] sm:$0xff]  }
0x11e1   : > { %v4291_v24 = vpop.f32.mrf.mxu0 }
0x11e2   : > { %v4292_v25 = vadd.f32 %v7002_v23, %v4291_v24  ;;  %v7143_v24 = vcombine.high %v7124_v18, %v7126_v29 }
0x11e3   : > { %v8062_v51 = vpop.f32.mrf.mxu0 }
0x11e4   : > { %v4298_v26 = vadd.f32 %v4292_v25, %v9654_v20  ;;  %4802 = vmatprep.subr.bf16.mxu0 %v7143_v24  ;;  %v8325_v24 = vld [vmem:[%s10549_s6 + $0x5d8] sm:$0xff]  }
0x11e5   : > { %v4294_v27 = vpop.f32.mrf.mxu0 }
0x11e6   : > { %v4295_v7 = vadd.f32 %v7002_v23, %v4294_v27  ;;  %v4300_v50 = vsel %vm617_vm0, %v4298_v26, 0.0  ;;  %v7142_v23 = vcombine.low %v7124_v18, %v7126_v29  ;;  %v8320_v18 = vld [vmem:[%s10549_s6 + $0x560] sm:$0xff]  }
0x11e7   : > { %4301 = vadd.xlane.f32.xlu1 %v4300_v50  ;;  %v8063_v28 = vpop.f32.mrf.mxu0  ;;  %v8322_v29 = vld [vmem:[%s10549_s6 + $0x520] sm:$0xff]  }
0x11e8   : > { %v4299_v30 = vadd.f32 %v4295_v7, %v9656_v21 }
0x11ea   : > { %v4303_v56 = vsel %vm617_vm0, %v4299_v30, 0.0 }
0x11eb   : > { %4304 = vadd.xlane.f32.xlu0 %v4303_v56  ;;  %v7009_v56 = vld [vmem:[%s10554_s11 + $0x1] ss:$0 sm:$0xff] }
0x1270   : > { %v4302_v31 = vpop.xlane.xlu1 %4301 }
0x1271   : > { %v4306_v32 = vmul.f32 0.015625, %v4302_v31 }
0x1273   : > { %v9779_v53 = vsub.f32 %v4298_v26, %v4306_v32 }
0x1274   : > { %v4305_v34 = vpop.xlane.xlu0 %4304 }
0x1275   : > { %v4307_v35 = vmul.f32 0.015625, %v4305_v34  ;;  %v4310_v20 = vmul.f32 %v9779_v53, %v9779_v53 }
0x1277   : > { %v9783_v36 = vsub.f32 %v4299_v30, %v4307_v35  ;;  %v4312_v54 = vsel %vm617_vm0, %v4310_v20, 0.0  ;;  %v7011_v35 = vld [vmem:[%s10555_s12 + $0x1] ss:$0 sm:$0xff] }
0x1278   : > { %4313 = vadd.xlane.f32.xlu0 %v4312_v54  ;;  %v7119_v54 = vld [vmem:[%s10548_s5 + $0x310] sm:$0xff] }
0x1279   : > { %v4311_v21 = vmul.f32 %v9783_v36, %v9783_v36 }
0x127b   : > { %v4315_v57 = vsel %vm617_vm0, %v4311_v21, 0.0  ;;  %v7120_v21 = vld [vmem:[%s10548_s5 + $0x318] sm:$0xff] }
0x127c   : > { %4316 = vadd.xlane.f32.xlu1 %v4315_v57 }
0x1301   : > { %v4314_v25 = vpop.xlane.xlu0 %4313 }
0x1302   : > { %v4318_v51 = vmul.f32 0.015625, %v4314_v25  ;;  %v8326_v25 = vld [vmem:[%s10549_s6 + $0x518] sm:$0xff]  }
0x1304   : > { %v4320_v26 = vadd.f32 1e-05, %v4318_v51  ;;  %v8327_v51 = vld [vmem:[%s10549_s6 + $0x598] sm:$0xff]  }
0x1305   : > { %v4317_v27 = vpop.xlane.xlu1 %4316 }
0x1306   : > { %8508 = vrsqrt.f32 %v4320_v26  ;;  %v4319_v7 = vmul.f32 0.015625, %v4317_v27  ;;  %v8328_v26 = vld [vmem:[%s10549_s6 + $0x550] sm:$0xff]  }
0x1307   : > { %v8329_v27 = vld [vmem:[%s10549_s6 + $0x5d0] sm:$0xff]  }
0x1308   : > { %v4321_v50 = vadd.f32 1e-05, %v4319_v7  ;;  %v8330_v7 = vld [vmem:[%s10549_s6 + $0x510] sm:$0xff]  }
0x130a   : > { %8510 = vrsqrt.f32 %v4321_v50  ;;  %v8331_v50 = vld [vmem:[%s10549_s6 + $0x590] sm:$0xff]  }
0x1313   : > { %v8509_v28 = vpop.eup %8508 }
0x1314   : > { %v4324_v30 = vmul.f32 %v8509_v28, %v9779_v53  ;;  %v7121_v53 = vld [vmem:[%s10548_s5 + $0x350] sm:$0xff]  ;;  %v8332_v28 = vld [vmem:[%s10549_s6 + $0x548] sm:$0xff]  }
0x1315   : > { %v7137_v0 = vcombine.high %v7119_v54, %v7121_v53  ;;  %v7136_v55 = vcombine.low %v7119_v54, %v7121_v53  ;;  %v8340_v54 = vld [vmem:[%s10549_s6 + $0x478] sm:$0xff]  }
0x1316   : > { %v4334_v32 = vmul.f32 %v7009_v56, %v4324_v30  ;;  %v8333_v30 = vld [vmem:[%s10549_s6 + $0x5c8] sm:$0xff]   ;;  %v8341_v53 = vld [vmem:[%s10549_s6 + $0x4f8] sm:$0xff]  }
0x1317   : > { %v8511_v31 = vpop.eup %8510 }
0x1318   : > { %v4325_v34 = vmul.f32 %v8511_v31, %v9783_v36  ;;  %v7122_v36 = vld [vmem:[%s10548_s5 + $0x358] sm:$0xff]  ;;  %v9869_v57 = vadd.f32 %v7011_v35, %v4334_v32  ;;  %v8335_v31 = vld [vmem:[%s10549_s6 + $0x588] sm:$0xff]   ;;  %v8336_v32 = vld [vmem:[%s10549_s6 + $0x540] sm:$0xff]  }
0x1319   : > { %v7139_v39 = vcombine.high %v7120_v21, %v7122_v36  ;;  %v7138_v43 = vcombine.low %v7120_v21, %v7122_v36 }
0x131a   : > { %v4335_v20 = vmul.f32 %v7009_v56, %v4325_v34  ;;  %v8334_v56 = vld [vmem:[%s10549_s6 + $0x508] sm:$0xff]   ;;  %v8337_v34 = vld [vmem:[%s10549_s6 + $0x5c0] sm:$0xff]  }
0x131c   : > { %v9871_v58 = vadd.f32 %v7011_v35, %v4335_v20  ;;  %v8338_v35 = vld [vmem:[%s10549_s6 + $0x500] sm:$0xff]  }
0x131d   : > { %v8339_v20 = vld [vmem:[%s10549_s6 + $0x580] sm:$0xff]  }
0x131e   : > { %v9875_v63 = vpack.c.bf16 %v9871_v58, %v9869_v57 }
0x1320   : > { %7045 = vmatmul.mubr.msk.bf16.vlgmr.msra.gmra.mxu1 %vm617_vm0, %v9875_v63  ;;  %7046 = vmatmul.mubr.msk.bf16.vlgmr.msra.gmra.mxu0 %vm617_vm0, %v9875_v63 }
0x1321   : > { %4760 = vmatpush1.bf16.msra.mxu1 %v7140_v22  ;;  %4803 = vmatpush1.bf16.msra.mxu0 %v7142_v23  ;;  %v8323_v22 = vld [vmem:[%s10549_s6 + $0x5a0] sm:$0xff]   ;;  %v8324_v23 = vld [vmem:[%s10549_s6 + $0x558] sm:$0xff]  }
0x1322   : > { %4761 = vmatprep.subr.bf16.mxu1 %v7137_v0  ;;  %4804 = vmatprep.subr.bf16.mxu0 %v7139_v39 }
0x1323   : > { %4783 = vmatprep.mubr.bf16.mxu1 %v8580_v2  ;;  %4826 = vmatprep.mubr.bf16.mxu0 %v8580_v2 }
0x1325   : > { %4762 = vmatpush1.bf16.msra.mxu1 %v7136_v55  ;;  %4805 = vmatpush1.bf16.msra.mxu0 %v7138_v43  ;;  %v7127_v55 = vld [vmem:[%s10552_s9 + $0x14] sm:$0xf] }
0x1326   : > { %4763 = vmatprep.subr.bf16.mxu1 %v7133_v44  ;;  %4806 = vmatprep.subr.bf16.mxu0 %v7135_v62  ;;  %v4658_v62 = vrot.slane %v7127_v55, %v8775_v17  ;;  %v4666_v46 = vrot.slane %v7127_v55, %v9149_v59  ;;  %v4654_v37 = vrot.slane %v7127_v55, %v8769_v15 }
0x1327   : > { %v4662_v47 = vrot.slane %v7127_v55, %v9155_v61  ;;  %v8348_v55 = vld [vmem:[%s10549_s6 + $0x468] sm:$0xff]  }
0x1329   : > { %4764 = vmatpush1.bf16.msra.mxu1 %v7132_v33  ;;  %4807 = vmatpush1.bf16.msra.mxu0 %v7134_v41  ;;  %v10031_v41 = vld [vmem:[%s10552_s9 + $0x10] sm:$0xf] }
0x132a   : > { %4765 = vmatprep.subr.bf16.mxu1 %v7129_v48  ;;  %4808 = vmatprep.subr.bf16.mxu0 %v7131_v52  ;;  %v4374_v48 = vrot.slane %v10031_v41, %v8775_v17  ;;  %v4382_v52 = vrot.slane %v10031_v41, %v9149_v59 }
0x132d   : > { %4766 = vmatpush1.bf16.msra.mxu1 %v7128_v60  ;;  %4809 = vmatpush1.bf16.msra.mxu0 %v7130_v1 }
0x132e   : > { %7768 = vmatprep.subr.bf16.mxu1 %v8308_v3  ;;  %7790 = vmatprep.subr.bf16.mxu0 %v8309_v4 }
0x1330   : > { %7144 = vmatmul.mubr.msk.bf16.vlgmr.msra.gmra.mxu1 %vm617_vm0, %v9875_v63  ;;  %7145 = vmatmul.mubr.msk.bf16.vlgmr.msra.gmra.mxu0 %vm617_vm0, %v9875_v63 }
0x1331   : > { %7769 = vmatpush3.bf16.msra.mxu1 %v8310_v5  ;;  %7791 = vmatpush3.bf16.msra.mxu0 %v8311_v6 }
0x1332   : > { %7770 = vmatprep.subr.bf16.mxu1 %v8312_v14  ;;  %7792 = vmatprep.subr.bf16.mxu0 %v8313_v8 }
0x1335   : > { %7771 = vmatpush3.bf16.msra.mxu1 %v8314_v9  ;;  %7793 = vmatpush3.bf16.msra.mxu0 %v8315_v12 }
0x1336   : > { %7772 = vmatprep.subr.bf16.mxu1 %v8316_v10  ;;  %7794 = vmatprep.subr.bf16.mxu0 %v8317_v11 }
0x1339   : > { %7773 = vmatpush3.bf16.msra.mxu1 %v8318_v13  ;;  %7795 = vmatpush3.bf16.msra.mxu0 %v8319_v16 }
0x133a   : > { %7774 = vmatprep.subr.bf16.mxu1 %v8320_v18  ;;  %7796 = vmatprep.subr.bf16.mxu0 %v8321_v19 }
0x133d   : > { %7775 = vmatpush3.bf16.msra.mxu1 %v8322_v29  ;;  %7797 = vmatpush3.bf16.msra.mxu0 %v8323_v22 }
0x133e   : > { %7776 = vmatprep.subr.bf16.mxu1 %v8324_v23  ;;  %7798 = vmatprep.subr.bf16.mxu0 %v8325_v24 }
0x1341   : > { %7777 = vmatpush3.bf16.msra.mxu1 %v8326_v25  ;;  %7799 = vmatpush3.bf16.msra.mxu0 %v8327_v51 }
0x1342   : > { %7778 = vmatprep.subr.bf16.mxu1 %v8328_v26  ;;  %7800 = vmatprep.subr.bf16.mxu0 %v8329_v27 }
0x1345   : > { %7779 = vmatpush3.bf16.msra.mxu1 %v8330_v7  ;;  %7801 = vmatpush3.bf16.msra.mxu0 %v8331_v50 }
0x1346   : > { %7780 = vmatprep.subr.bf16.mxu1 %v8332_v28  ;;  %7802 = vmatprep.subr.bf16.mxu0 %v8333_v30 }
0x1349   : > { %7781 = vmatpush3.bf16.msra.mxu1 %v8334_v56  ;;  %7803 = vmatpush3.bf16.msra.mxu0 %v8335_v31  ;;  %v8342_v56 = vld [vmem:[%s10549_s6 + $0x438] sm:$0xff]  }
0x134a   : > { %7782 = vmatprep.subr.bf16.mxu1 %v8336_v32  ;;  %7804 = vmatprep.subr.bf16.mxu0 %v8337_v34  ;;  %v8343_v31 = vld [vmem:[%s10549_s6 + $0x4b8] sm:$0xff]  }
0x134d   : > { %7783 = vmatpush3.bf16.msra.mxu1 %v8338_v35  ;;  %7805 = vmatpush3.bf16.msra.mxu0 %v8339_v20 }
0x134e   : > { %7812 = vmatprep.subr.bf16.mxu1 %v8340_v54  ;;  %7834 = vmatprep.subr.bf16.mxu0 %v8341_v53  ;;  %v8344_v54 = vld [vmem:[%s10549_s6 + $0x470] sm:$0xff]  }
0x134f   : > { %v8345_v53 = vld [vmem:[%s10549_s6 + $0x4f0] sm:$0xff]  }
0x13e0   : > { %v10013_v21 = vpop.f32.mrf.mxu1  ;;  %v10015_v36 = vpop.f32.mrf.mxu0 }
0x13e2   : > { %v4506_v0 = vpop.f32.mrf.mxu1  ;;  %v4549_v39 = vpop.f32.mrf.mxu0 }
0x13e3   : > { %v4507_v18 = vadd.f32 %v4506_v0, %v4374_v48  ;;  %v4550_v19 = vadd.f32 %v4549_v39, %v4382_v52 }
0x13e4   : > { %v10017_v40 = vpop.f32.mrf.mxu1  ;;  %v10019_v49 = vpop.f32.mrf.mxu0 }
0x13e5   : > { %v4557_v32 = vmax.f32 %v4507_v18, 0.0  ;;  %v4559_v34 = vmax.f32 %v4550_v19, 0.0  ;;  %v7286_v18 = vld [vmem:[%s10548_s5 + $0x3a0] sm:$0xff]  ;;  %v7289_v19 = vld [vmem:[%s10548_s5 + $0x3e8] sm:$0xff] }
0x13e6   : > { %v4510_v42 = vpop.f32.mrf.mxu1  ;;  %v4553_v38 = vpop.f32.mrf.mxu0 }
0x13e7   : > { %v4511_v14 = vadd.f32 %v4510_v42, %v4374_v48  ;;  %v4554_v8 = vadd.f32 %v4553_v38, %v4382_v52  ;;  %v8346_v42 = vld [vmem:[%s10549_s6 + $0x430] sm:$0xff]   ;;  %v8357_v48 = vld [vmem:[%s10549_s6 + $0x4d8] sm:$0xff]  }
0x13e8   : > { %v8347_v38 = vld [vmem:[%s10549_s6 + $0x4b0] sm:$0xff]   ;;  %v8358_v52 = vld [vmem:[%s10549_s6 + $0x418] sm:$0xff]  }
0x13e9   : > { %v4561_v26 = vmax.f32 %v4511_v14, 0.0  ;;  %v4563_v27 = vmax.f32 %v4554_v8, 0.0  ;;  %v8365_v14 = vld [vmem:[%s10549_s6 + $0x4c8] sm:$0xff]   ;;  %v4370_v8 = vrot.slane %v10031_v41, %v8769_v15 }
0x13eb   : > { %v4565_v0 = vpack.c.bf16 %v4561_v26, %v4557_v32  ;;  %v4567_v39 = vpack.c.bf16 %v4563_v27, %v4559_v34 }
0x13f0   : > { %v4785_v43 = vpop.f32.mrf.mxu1  ;;  %v4828_v44 = vpop.f32.mrf.mxu0 }
0x13f1   : > { %v4786_v9 = vadd.f32 %v4785_v43, %v4654_v37  ;;  %v4829_v12 = vadd.f32 %v4828_v44, %v4662_v47  ;;  %v8349_v43 = vld [vmem:[%s10549_s6 + $0x4e8] sm:$0xff]  }
0x13f2   : > { %v4787_v45 = vpop.f32.mrf.mxu1  ;;  %v4830_v33 = vpop.f32.mrf.mxu0  ;;  %v8350_v44 = vld [vmem:[%s10549_s6 + $0x428] sm:$0xff]  }
0x13f3   : > { %v4788_v3 = vadd.f32 %v4787_v45, %v4658_v62  ;;  %v4831_v4 = vadd.f32 %v4830_v33, %v4666_v46  ;;  %v4837_v7 = vmax.f32 %v4786_v9, 0.0  ;;  %v4839_v50 = vmax.f32 %v4829_v12, 0.0  ;;  %v8355_v45 = vld [vmem:[%s10549_s6 + $0x4a0] sm:$0xff]   ;;  %v8356_v33 = vld [vmem:[%s10549_s6 + $0x458] sm:$0xff]   ;;  %v8366_v12 = vld [vmem:[%s10549_s6 + $0x408] sm:$0xff]  }
0x13f4   : > { %v4789_v60 = vpop.f32.mrf.mxu1  ;;  %v4832_v1 = vpop.f32.mrf.mxu0  ;;  %v4378_v9 = vrot.slane %v10031_v41, %v9155_v61  ;;  %v8368_v41 = vld [vmem:[%s10549_s6 + $0x440] sm:$0xff]  }
0x13f5   : > { %v4790_v5 = vadd.f32 %v4789_v60, %v4654_v37  ;;  %v4833_v6 = vadd.f32 %v4832_v1, %v4662_v47  ;;  %v4838_v23 = vmax.f32 %v4788_v3, 0.0  ;;  %v4840_v24 = vmax.f32 %v4831_v4, 0.0  ;;  %v8353_v37 = vld [vmem:[%s10549_s6 + $0x4e0] sm:$0xff]   ;;  %v8359_v60 = vld [vmem:[%s10549_s6 + $0x498] sm:$0xff]   ;;  %v8360_v1 = vld [vmem:[%s10549_s6 + $0x450] sm:$0xff]  }
0x13f6   : > { %v4791_v10 = vpop.f32.mrf.mxu1  ;;  %v4834_v11 = vpop.f32.mrf.mxu0  ;;  %v8354_v47 = vld [vmem:[%s10549_s6 + $0x420] sm:$0xff]   ;;  %v8361_v3 = vld [vmem:[%s10549_s6 + $0x4d0] sm:$0xff]  }
0x13f7   : > { %v4792_v13 = vadd.f32 %v4791_v10, %v4658_v62  ;;  %v4835_v16 = vadd.f32 %v4834_v11, %v4666_v46  ;;  %v4841_v29 = vmax.f32 %v4790_v5, 0.0  ;;  %v4843_v22 = vmax.f32 %v4833_v6, 0.0  ;;  %v8351_v62 = vld [vmem:[%s10549_s6 + $0x4a8] sm:$0xff]   ;;  %v8352_v46 = vld [vmem:[%s10549_s6 + $0x460] sm:$0xff]   ;;  %v8362_v4 = vld [vmem:[%s10549_s6 + $0x410] sm:$0xff]  }
0x13f8   : > { %v8363_v5 = vld [vmem:[%s10549_s6 + $0x490] sm:$0xff]   ;;  %v8364_v6 = vld [vmem:[%s10549_s6 + $0x448] sm:$0xff]   ;;  %v4509_v11 = vadd.f32 %v10017_v40, %v4370_v8  ;;  %v7288_v40 = vld [vmem:[%s10548_s5 + $0x3e0] sm:$0xff] }
0x13f9   : > { %v4842_v25 = vmax.f32 %v4792_v13, 0.0  ;;  %v4844_v51 = vmax.f32 %v4835_v16, 0.0  ;;  %v4845_v35 = vpack.c.bf16 %v4841_v29, %v4837_v7  ;;  %v4847_v20 = vpack.c.bf16 %v4843_v22, %v4839_v50  ;;  %v8367_v10 = vld [vmem:[%s10549_s6 + $0x488] sm:$0xff]   ;;  %v8369_v16 = vld [vmem:[%s10549_s6 + $0x4c0] sm:$0xff]  }
0x13fa   : > { %v4552_v13 = vadd.f32 %v10019_v49, %v4378_v9  ;;  %v7287_v49 = vld [vmem:[%s10548_s5 + $0x3a8] sm:$0xff]  ;;  %v4505_v29 = vadd.f32 %v10013_v21, %v4370_v8  ;;  %v4548_v22 = vadd.f32 %v10015_v36, %v4378_v9  ;;  %v7304_v26 = vcombine.high %v7286_v18, %v7288_v40  ;;  %v7282_v21 = vld [vmem:[%s10548_s5 + $0x320] sm:$0xff]  ;;  %v8378_v8 = vld [vmem:[%s10549_s6 + $0x630] sm:$0xff]  }
0x13fb   : > { %v4846_v28 = vpack.c.bf16 %v4842_v25, %v4838_v23  ;;  %v4848_v30 = vpack.c.bf16 %v4844_v51, %v4840_v24  ;;  %v8370_v23 = vld [vmem:[%s10549_s6 + $0x400] sm:$0xff]   ;;  %v4560_v25 = vmax.f32 %v4509_v11, 0.0  ;;  %v7306_v27 = vcombine.high %v7287_v49, %v7289_v19  ;;  %v7283_v7 = vld [vmem:[%s10548_s5 + $0x328] sm:$0xff]  ;;  %v8379_v9 = vld [vmem:[%s10549_s6 + $0x6b0] sm:$0xff]  }
0x13fc   : > { %v8371_v24 = vld [vmem:[%s10549_s6 + $0x480] sm:$0xff]   ;;  %v4562_v51 = vmax.f32 %v4552_v13, 0.0  ;;  %v7285_v50 = vld [vmem:[%s10548_s5 + $0x368] sm:$0xff] }
0x13fd   : > { %5137 = vmatprep.mubr.bf16.mxu1 %v4846_v28  ;;  %5178 = vmatprep.mubr.bf16.mxu0 %v4848_v30  ;;  %v7284_v36 = vld [vmem:[%s10548_s5 + $0x360] sm:$0xff]  ;;  %v4556_v28 = vmax.f32 %v4505_v29, 0.0  ;;  %v4558_v30 = vmax.f32 %v4548_v22, 0.0  ;;  %v8382_v11 = vld [vmem:[%s10549_s6 + $0x628] sm:$0xff]   ;;  %v8390_v29 = vld [vmem:[%s10549_s6 + $0x618] sm:$0xff]  }
0x13fe   : > { %5138 = vmatmul.mubr.bf16.vlgmr.msra.gmra.mxu1 %v4845_v35  ;;  %5179 = vmatmul.mubr.bf16.vlgmr.msra.gmra.mxu0 %v4847_v20  ;;  %v7300_v32 = vcombine.high %v7282_v21, %v7284_v36  ;;  %v7302_v20 = vcombine.high %v7283_v7, %v7285_v50  ;;  %v8383_v13 = vld [vmem:[%s10549_s6 + $0x6a8] sm:$0xff]   ;;  %v8391_v22 = vld [vmem:[%s10549_s6 + $0x698] sm:$0xff]  }
0x13ff   : > { %7813 = vmatpush3.bf16.msra.mxu1 %v8342_v56  ;;  %7835 = vmatpush3.bf16.msra.mxu0 %v8343_v31  ;;  %v7303_v56 = vcombine.low %v7286_v18, %v7288_v40  ;;  %v7305_v31 = vcombine.low %v7287_v49, %v7289_v19  ;;  %v4564_v34 = vpack.c.bf16 %v4560_v25, %v4556_v28  ;;  %v8386_v18 = vld [vmem:[%s10549_s6 + $0x620] sm:$0xff]   ;;  %v8388_v49 = vld [vmem:[%s10549_s6 + $0x658] sm:$0xff]   ;;  %v8394_v25 = vld [vmem:[%s10549_s6 + $0x610] sm:$0xff]  }
0x1400   : > { %5411 = vmatprep.mubr.bf16.mxu1 %v4565_v0  ;;  %5452 = vmatprep.mubr.bf16.mxu0 %v4567_v39  ;;  %v4566_v35 = vpack.c.bf16 %v4562_v51, %v4558_v30  ;;  %v7279_v0 = vld [vmem:[%s10548_s5 + $0x2a8] sm:$0xff]  ;;  %v8387_v40 = vld [vmem:[%s10549_s6 + $0x6a0] sm:$0xff]   ;;  %v8389_v19 = vld [vmem:[%s10549_s6 + $0x6d8] sm:$0xff]  }
0x1401   : > { %7814 = vmatprep.subr.bf16.mxu1 %v8344_v54  ;;  %7836 = vmatprep.subr.bf16.mxu0 %v8345_v53  ;;  %v7278_v54 = vld [vmem:[%s10548_s5 + $0x2a0] sm:$0xff]  ;;  %v7281_v39 = vld [vmem:[%s10548_s5 + $0x2e8] sm:$0xff]  ;;  %v8395_v51 = vld [vmem:[%s10549_s6 + $0x690] sm:$0xff]  }
0x1402   : > { %v7280_v53 = vld [vmem:[%s10548_s5 + $0x2e0] sm:$0xff] }
0x1403   : > { %7815 = vmatpush3.bf16.msra.mxu1 %v8346_v42  ;;  %7837 = vmatpush3.bf16.msra.mxu0 %v8347_v38  ;;  %v7299_v42 = vcombine.low %v7282_v21, %v7284_v36  ;;  %v7301_v38 = vcombine.low %v7283_v7, %v7285_v50  ;;  %v8398_v21 = vld [vmem:[%s10549_s6 + $0x608] sm:$0xff]   ;;  %v8400_v7 = vld [vmem:[%s10549_s6 + $0x640] sm:$0xff]  }
0x1404   : > { %7816 = vmatprep.subr.bf16.mxu1 %v8348_v55  ;;  %7838 = vmatprep.subr.bf16.mxu0 %v8349_v43  ;;  %v7296_v55 = vcombine.high %v7278_v54, %v7280_v53  ;;  %v7298_v43 = vcombine.high %v7279_v0, %v7281_v39  ;;  %v8399_v36 = vld [vmem:[%s10549_s6 + $0x688] sm:$0xff]   ;;  %v8401_v50 = vld [vmem:[%s10549_s6 + $0x6c0] sm:$0xff]  }
0x1405   : > { %v8402_v28 = vld [vmem:[%s10549_s6 + $0x600] sm:$0xff]  }
0x1406   : > { %v8403_v30 = vld [vmem:[%s10549_s6 + $0x680] sm:$0xff]  }
0x1407   : > { %7817 = vmatpush3.bf16.msra.mxu1 %v8350_v44  ;;  %7839 = vmatpush3.bf16.msra.mxu0 %v8351_v62  ;;  %v7274_v44 = vld [vmem:[%s10548_s5 + $0x220] sm:$0xff] }
0x1408   : > { %7818 = vmatprep.subr.bf16.mxu1 %v8352_v46  ;;  %7840 = vmatprep.subr.bf16.mxu0 %v8353_v37  ;;  %v7276_v62 = vld [vmem:[%s10548_s5 + $0x260] sm:$0xff]  ;;  %v7275_v46 = vld [vmem:[%s10548_s5 + $0x228] sm:$0xff] }
0x1409   : > { %v7277_v37 = vld [vmem:[%s10548_s5 + $0x268] sm:$0xff] }
0x140b   : > { %7819 = vmatpush3.bf16.msra.mxu1 %v8354_v47  ;;  %7841 = vmatpush3.bf16.msra.mxu0 %v8355_v45  ;;  %v7295_v47 = vcombine.low %v7278_v54, %v7280_v53  ;;  %v7297_v45 = vcombine.low %v7279_v0, %v7281_v39 }
0x140c   : > { %7820 = vmatprep.subr.bf16.mxu1 %v8356_v33  ;;  %7842 = vmatprep.subr.bf16.mxu0 %v8357_v48  ;;  %v7292_v33 = vcombine.high %v7274_v44, %v7276_v62  ;;  %v7294_v48 = vcombine.high %v7275_v46, %v7277_v37 }
0x140f   : > { %7821 = vmatpush3.bf16.msra.mxu1 %v8358_v52  ;;  %7843 = vmatpush3.bf16.msra.mxu0 %v8359_v60  ;;  %v7291_v52 = vcombine.low %v7274_v44, %v7276_v62  ;;  %v7293_v60 = vcombine.low %v7275_v46, %v7277_v37 }
0x1410   : > { %7822 = vmatprep.subr.bf16.mxu1 %v8360_v1  ;;  %7844 = vmatprep.subr.bf16.mxu0 %v8361_v3  ;;  %v8372_v1 = vld [vmem:[%s10549_s6 + $0x678] sm:$0xff]  }
0x1411   : > { %v8373_v3 = vld [vmem:[%s10549_s6 + $0x6f8] sm:$0xff]  }
0x1413   : > { %7823 = vmatpush3.bf16.msra.mxu1 %v8362_v4  ;;  %7845 = vmatpush3.bf16.msra.mxu0 %v8363_v5  ;;  %v8374_v4 = vld [vmem:[%s10549_s6 + $0x638] sm:$0xff]  }
0x1414   : > { %7824 = vmatprep.subr.bf16.mxu1 %v8364_v6  ;;  %7846 = vmatprep.subr.bf16.mxu0 %v8365_v14  ;;  %v8375_v5 = vld [vmem:[%s10549_s6 + $0x6b8] sm:$0xff]   ;;  %v8376_v6 = vld [vmem:[%s10549_s6 + $0x670] sm:$0xff]  }
0x1415   : > { %v8377_v14 = vld [vmem:[%s10549_s6 + $0x6f0] sm:$0xff]  }
0x1417   : > { %7825 = vmatpush3.bf16.msra.mxu1 %v8366_v12  ;;  %7847 = vmatpush3.bf16.msra.mxu0 %v8367_v10  ;;  %v8380_v12 = vld [vmem:[%s10549_s6 + $0x668] sm:$0xff]  }
0x1418   : > { %7826 = vmatprep.subr.bf16.mxu1 %v8368_v41  ;;  %7848 = vmatprep.subr.bf16.mxu0 %v8369_v16  ;;  %v8381_v10 = vld [vmem:[%s10549_s6 + $0x6e8] sm:$0xff]   ;;  %v8384_v41 = vld [vmem:[%s10549_s6 + $0x660] sm:$0xff]  }
0x1419   : > { %v8385_v16 = vld [vmem:[%s10549_s6 + $0x6e0] sm:$0xff]  }
0x141b   : > { %7827 = vmatpush3.bf16.msra.mxu1 %v8370_v23  ;;  %7849 = vmatpush3.bf16.msra.mxu0 %v8371_v24  ;;  %v8392_v23 = vld [vmem:[%s10549_s6 + $0x650] sm:$0xff]  }
0x141c   : > { %5587 = vmatprep.subr.bf16.mxu1 %v7304_v26  ;;  %5630 = vmatprep.subr.bf16.mxu0 %v7306_v27  ;;  %v8393_v24 = vld [vmem:[%s10549_s6 + $0x6d0] sm:$0xff]   ;;  %v8396_v26 = vld [vmem:[%s10549_s6 + $0x648] sm:$0xff]  }
0x141d   : > { %v8397_v27 = vld [vmem:[%s10549_s6 + $0x6c8] sm:$0xff]  }
0x141e   : > { %5412 = vmatmul.mubr.bf16.vlgmr.msra.gmra.mxu1 %v4564_v34  ;;  %5453 = vmatmul.mubr.bf16.vlgmr.msra.gmra.mxu0 %v4566_v35  ;;  %v10305_v35 = vld [vmem:[%s10548_s5 + $0x3f8] sm:$0xff] }
0x141f   : > { %5588 = vmatpush1.bf16.msra.mxu1 %v7303_v56  ;;  %5631 = vmatpush1.bf16.msra.mxu0 %v7305_v31  ;;  %v10288_v56 = vld [vmem:[%s10548_s5 + $0x3b0] sm:$0xff] }
0x1420   : > { %5589 = vmatprep.subr.bf16.mxu1 %v7300_v32  ;;  %5632 = vmatprep.subr.bf16.mxu0 %v7302_v20  ;;  %v10293_v31 = vld [vmem:[%s10548_s5 + $0x3f0] sm:$0xff]  ;;  %v10298_v32 = vld [vmem:[%s10548_s5 + $0x3b8] sm:$0xff] }
0x1421   : > { %5611 = vmatprep.mubr.bf16.mxu1 %v8580_v2  ;;  %5654 = vmatprep.mubr.bf16.mxu0 %v8580_v2  ;;  %v7435_v34 = vcombine.high %v10288_v56, %v10293_v31  ;;  %v7434_v20 = vcombine.low %v10288_v56, %v10293_v31  ;;  %v7436_v54 = vcombine.low %v10298_v32, %v10305_v35  ;;  %v7406_v56 = vld [vmem:[%s10548_s5 + $0x238] sm:$0xff] }
0x1422   : > { %v7437_v53 = vcombine.high %v10298_v32, %v10305_v35  ;;  %v7408_v31 = vld [vmem:[%s10548_s5 + $0x278] sm:$0xff] }
0x1423   : > { %5590 = vmatpush1.bf16.msra.mxu1 %v7299_v42  ;;  %5633 = vmatpush1.bf16.msra.mxu0 %v7301_v38 }
0x1424   : > { %5591 = vmatprep.subr.bf16.mxu1 %v7296_v55  ;;  %5634 = vmatprep.subr.bf16.mxu0 %v7298_v43 }
0x1427   : > { %5592 = vmatpush1.bf16.msra.mxu1 %v7295_v47  ;;  %5635 = vmatpush1.bf16.msra.mxu0 %v7297_v45 }
0x1428   : > { %5593 = vmatprep.subr.bf16.mxu1 %v7292_v33  ;;  %5636 = vmatprep.subr.bf16.mxu0 %v7294_v48 }
0x142b   : > { %5594 = vmatpush1.bf16.msra.mxu1 %v7291_v52  ;;  %5637 = vmatpush1.bf16.msra.mxu0 %v7293_v60 }
0x142c   : > { %7856 = vmatprep.subr.bf16.mxu1 %v8372_v1  ;;  %7878 = vmatprep.subr.bf16.mxu0 %v8373_v3 }
0x142e   : > { %7307 = vmatmul.mubr.msk.bf16.vlgmr.msra.gmra.mxu1 %vm617_vm0, %v9875_v63  ;;  %7308 = vmatmul.mubr.msk.bf16.vlgmr.msra.gmra.mxu0 %vm617_vm0, %v9875_v63 }
0x142f   : > { %7857 = vmatpush3.bf16.msra.mxu1 %v8374_v4  ;;  %7879 = vmatpush3.bf16.msra.mxu0 %v8375_v5 }
0x1430   : > { %7858 = vmatprep.subr.bf16.mxu1 %v8376_v6  ;;  %7880 = vmatprep.subr.bf16.mxu0 %v8377_v14 }
0x1433   : > { %7859 = vmatpush3.bf16.msra.mxu1 %v8378_v8  ;;  %7881 = vmatpush3.bf16.msra.mxu0 %v8379_v9 }
0x1434   : > { %7860 = vmatprep.subr.bf16.mxu1 %v8380_v12  ;;  %7882 = vmatprep.subr.bf16.mxu0 %v8381_v10 }
0x1437   : > { %7861 = vmatpush3.bf16.msra.mxu1 %v8382_v11  ;;  %7883 = vmatpush3.bf16.msra.mxu0 %v8383_v13 }
0x1438   : > { %7862 = vmatprep.subr.bf16.mxu1 %v8384_v41  ;;  %7884 = vmatprep.subr.bf16.mxu0 %v8385_v16 }
0x143b   : > { %7863 = vmatpush3.bf16.msra.mxu1 %v8386_v18  ;;  %7885 = vmatpush3.bf16.msra.mxu0 %v8387_v40  ;;  %v7290_v18 = vld [vmem:[%s10552_s9 + $0x18] sm:$0xf] }
0x143c   : > { %7864 = vmatprep.subr.bf16.mxu1 %v8388_v49  ;;  %7886 = vmatprep.subr.bf16.mxu0 %v8389_v19  ;;  %v5486_v19 = vrot.slane %v7290_v18, %v8775_v17 }
0x143f   : > { %7865 = vmatpush3.bf16.msra.mxu1 %v8390_v29  ;;  %7887 = vmatpush3.bf16.msra.mxu0 %v8391_v22  ;;  %v5494_v29 = vrot.slane %v7290_v18, %v9149_v59  ;;  %v5482_v22 = vrot.slane %v7290_v18, %v8769_v15 }
0x1440   : > { %7866 = vmatprep.subr.bf16.mxu1 %v8392_v23  ;;  %7888 = vmatprep.subr.bf16.mxu0 %v8393_v24  ;;  %v5490_v23 = vrot.slane %v7290_v18, %v9155_v61  ;;  %v7407_v18 = vld [vmem:[%s10548_s5 + $0x270] sm:$0xff] }
0x1443   : > { %7867 = vmatpush3.bf16.msra.mxu1 %v8394_v25  ;;  %7889 = vmatpush3.bf16.msra.mxu0 %v8395_v51 }
0x1444   : > { %7868 = vmatprep.subr.bf16.mxu1 %v8396_v26  ;;  %7890 = vmatprep.subr.bf16.mxu0 %v8397_v27 }
0x1447   : > { %7869 = vmatpush3.bf16.msra.mxu1 %v8398_v21  ;;  %7891 = vmatpush3.bf16.msra.mxu0 %v8399_v36 }
0x1448   : > { %7870 = vmatprep.subr.bf16.mxu1 %v8400_v7  ;;  %7892 = vmatprep.subr.bf16.mxu0 %v8401_v50 }
0x144b   : > { %7871 = vmatpush3.bf16.msra.mxu1 %v8402_v28  ;;  %7893 = vmatpush3.bf16.msra.mxu0 %v8403_v30 }
0x144c   : > { %6143 = vmatprep.subr.bf16.mxu1 %v7435_v34  ;;  %6186 = vmatprep.subr.bf16.mxu0 %v7437_v53 }
0x14be   : > { %v7784_v0 = vpop.f32.mrf.mxu1  ;;  %v7806_v39 = vpop.f32.mrf.mxu0 }
0x14c0   : > { %v7785_v42 = vpop.f32.mrf.mxu1  ;;  %v7807_v38 = vpop.f32.mrf.mxu0 }
0x14c1   : > { %v7786_v55 = vadd.f32 %v7785_v42, %v7784_v0  ;;  %v7808_v43 = vadd.f32 %v7807_v38, %v7806_v39  ;;  %v7413_v38 = vld [vmem:[%s10548_s5 + $0x330] sm:$0xff] }
0x14c2   : > { %v7787_v44 = vpop.f32.mrf.mxu1  ;;  %v7809_v62 = vpop.f32.mrf.mxu0 }
0x14c3   : > { %v5181_v46 = vadd.f32 %v7808_v43, %v7786_v55  ;;  %v7415_v55 = vld [vmem:[%s10548_s5 + $0x370] sm:$0xff] }
0x14c4   : > { %v7788_v37 = vpop.f32.mrf.mxu1  ;;  %v7810_v47 = vpop.f32.mrf.mxu0 }
0x14c5   : > { %v7789_v45 = vadd.f32 %v7788_v37, %v7787_v44  ;;  %v7811_v33 = vadd.f32 %v7810_v47, %v7809_v62  ;;  %v7414_v37 = vld [vmem:[%s10548_s5 + $0x338] sm:$0xff] }
0x14c6   : > { %v7416_v47 = vld [vmem:[%s10548_s5 + $0x378] sm:$0xff] }
0x14c7   : > { %v5184_v48 = vadd.f32 %v7811_v33, %v7789_v45 }
0x14de   : > { %v7828_v52 = vpop.f32.mrf.mxu1  ;;  %v7850_v60 = vpop.f32.mrf.mxu0 }
0x14e0   : > { %v7829_v1 = vpop.f32.mrf.mxu1  ;;  %v7851_v3 = vpop.f32.mrf.mxu0 }
0x14e1   : > { %v7830_v4 = vadd.f32 %v7829_v1, %v7828_v52  ;;  %v7852_v5 = vadd.f32 %v7851_v3, %v7850_v60  ;;  %v7431_v3 = vcombine.high %v7413_v38, %v7415_v55 }
0x14e2   : > { %v7831_v6 = vpop.f32.mrf.mxu1  ;;  %v7853_v14 = vpop.f32.mrf.mxu0 }
0x14e3   : > { %v5414_v8 = vadd.f32 %v7830_v4, %v5181_v46  ;;  %v7433_v4 = vcombine.high %v7414_v37, %v7416_v47 }
0x14e4   : > { %v7832_v9 = vpop.f32.mrf.mxu1  ;;  %v7854_v12 = vpop.f32.mrf.mxu0 }
0x14e5   : > { %v10313_v10 = vadd.f32 %v7852_v5, %v5414_v8  ;;  %v7833_v11 = vadd.f32 %v7832_v9, %v7831_v6  ;;  %v7855_v13 = vadd.f32 %v7854_v12, %v7853_v14  ;;  %v7409_v5 = vld [vmem:[%s10548_s5 + $0x2b0] sm:$0xff]  ;;  %v7410_v14 = vld [vmem:[%s10548_s5 + $0x2b8] sm:$0xff]  ;;  %v7430_v9 = vcombine.low %v7413_v38, %v7415_v55 }
0x14e6   : > { %v7411_v6 = vld [vmem:[%s10548_s5 + $0x2f0] sm:$0xff]  ;;  %v7412_v8 = vld [vmem:[%s10548_s5 + $0x2f8] sm:$0xff]  ;;  %v7432_v12 = vcombine.low %v7414_v37, %v7416_v47  ;;  %v8432_v37 = vld [vmem:[%s10549_s6 + $0x740] sm:$0xff]  }
0x14e7   : > { %v5417_v41 = vadd.f32 %v7833_v11, %v5184_v48  ;;  %v7427_v11 = vcombine.high %v7409_v5, %v7411_v6  ;;  %v7426_v32 = vcombine.low %v7409_v5, %v7411_v6  ;;  %v7428_v35 = vcombine.low %v7410_v14, %v7412_v8  ;;  %v8426_v38 = vld [vmem:[%s10549_s6 + $0x710] sm:$0xff]   ;;  %v8433_v47 = vld [vmem:[%s10549_s6 + $0x7c0] sm:$0xff]  }
0x14e8   : > { %v8427_v55 = vld [vmem:[%s10549_s6 + $0x790] sm:$0xff]  }
0x14e9   : > { %v10315_v16 = vadd.f32 %v7855_v13, %v5417_v41  ;;  %v7429_v13 = vcombine.high %v7410_v14, %v7412_v8  ;;  %v7405_v41 = vld [vmem:[%s10548_s5 + $0x230] sm:$0xff] }
0x14ee   : > { %v5613_v40 = vpop.f32.mrf.mxu1  ;;  %v5656_v49 = vpop.f32.mrf.mxu0 }
0x14ef   : > { %v5614_v50 = vadd.f32 %v5613_v40, %v5482_v22  ;;  %v5657_v28 = vadd.f32 %v5656_v49, %v5490_v23  ;;  %v7422_v40 = vcombine.low %v7405_v41, %v7407_v18  ;;  %v7424_v49 = vcombine.low %v7406_v56, %v7408_v31 }
0x14f0   : > { %v5615_v24 = vpop.f32.mrf.mxu1  ;;  %v5658_v25 = vpop.f32.mrf.mxu0 }
0x14f1   : > { %v5616_v27 = vadd.f32 %v5615_v24, %v5486_v19  ;;  %v5659_v21 = vadd.f32 %v5658_v25, %v5494_v29  ;;  %v5665_v45 = vmax.f32 %v5614_v50, 0.0  ;;  %v5667_v33 = vmax.f32 %v5657_v28, 0.0  ;;  %v8409_v24 = vld [vmem:[%s10549_s6 + $0x7f0] sm:$0xff]   ;;  %v8418_v50 = vld [vmem:[%s10549_s6 + $0x720] sm:$0xff]  }
0x14f2   : > { %v5617_v51 = vpop.f32.mrf.mxu1  ;;  %v5660_v26 = vpop.f32.mrf.mxu0  ;;  %v8410_v25 = vld [vmem:[%s10549_s6 + $0x730] sm:$0xff]   ;;  %v8419_v28 = vld [vmem:[%s10549_s6 + $0x7a0] sm:$0xff]  }
0x14f3   : > { %v5618_v36 = vadd.f32 %v5617_v51, %v5482_v22  ;;  %v5661_v7 = vadd.f32 %v5660_v26, %v5490_v23  ;;  %v5666_v43 = vmax.f32 %v5616_v27, 0.0  ;;  %v5668_v44 = vmax.f32 %v5659_v21, 0.0  ;;  %v8407_v22 = vld [vmem:[%s10549_s6 + $0x7b8] sm:$0xff]   ;;  %v8408_v23 = vld [vmem:[%s10549_s6 + $0x770] sm:$0xff]   ;;  %v8413_v26 = vld [vmem:[%s10549_s6 + $0x7e8] sm:$0xff]  }
0x14f4   : > { %v5619_v30 = vpop.f32.mrf.mxu1  ;;  %v5662_v34 = vpop.f32.mrf.mxu0  ;;  %v8411_v51 = vld [vmem:[%s10549_s6 + $0x7b0] sm:$0xff]   ;;  %v8414_v27 = vld [vmem:[%s10549_s6 + $0x728] sm:$0xff]  }
0x14f5   : > { %v5620_v53 = vadd.f32 %v5619_v30, %v5486_v19  ;;  %v5663_v0 = vadd.f32 %v5662_v34, %v5494_v29  ;;  %v5669_v39 = vmax.f32 %v5618_v36, 0.0  ;;  %v5671_v42 = vmax.f32 %v5661_v7, 0.0  ;;  %v8404_v19 = vld [vmem:[%s10549_s6 + $0x778] sm:$0xff]   ;;  %v8415_v21 = vld [vmem:[%s10549_s6 + $0x7a8] sm:$0xff]   ;;  %v8416_v36 = vld [vmem:[%s10549_s6 + $0x760] sm:$0xff]  }
0x14f6   : > { %v8406_v29 = vld [vmem:[%s10549_s6 + $0x738] sm:$0xff]   ;;  %v8417_v7 = vld [vmem:[%s10549_s6 + $0x7e0] sm:$0xff]  }
0x14f7   : > { %v5670_v62 = vmax.f32 %v5620_v53, 0.0  ;;  %v5672_v46 = vmax.f32 %v5663_v0, 0.0  ;;  %v5673_v60 = vpack.c.bf16 %v5669_v39, %v5665_v45  ;;  %v5675_v1 = vpack.c.bf16 %v5671_v42, %v5667_v33  ;;  %v8420_v30 = vld [vmem:[%s10549_s6 + $0x758] sm:$0xff]   ;;  %v8424_v39 = vld [vmem:[%s10549_s6 + $0x750] sm:$0xff]   ;;  %v8434_v45 = vld [vmem:[%s10549_s6 + $0x700] sm:$0xff]  }
0x14f8   : > { %v8421_v34 = vld [vmem:[%s10549_s6 + $0x7d8] sm:$0xff]   ;;  %v8425_v42 = vld [vmem:[%s10549_s6 + $0x7d0] sm:$0xff]   ;;  %v8435_v33 = vld [vmem:[%s10549_s6 + $0x780] sm:$0xff]  }
0x14f9   : > { %v5674_v48 = vpack.c.bf16 %v5670_v62, %v5666_v43  ;;  %v5676_v52 = vpack.c.bf16 %v5672_v46, %v5668_v44  ;;  %v8422_v53 = vld [vmem:[%s10549_s6 + $0x718] sm:$0xff]   ;;  %v8428_v43 = vld [vmem:[%s10549_s6 + $0x748] sm:$0xff]  }
0x14fa   : > { %v8423_v0 = vld [vmem:[%s10549_s6 + $0x798] sm:$0xff]   ;;  %v8429_v44 = vld [vmem:[%s10549_s6 + $0x7c8] sm:$0xff]  }
0x14fb   : > { %5965 = vmatprep.mubr.bf16.mxu1 %v5674_v48  ;;  %6006 = vmatprep.mubr.bf16.mxu0 %v5676_v52  ;;  %v8430_v62 = vld [vmem:[%s10549_s6 + $0x708] sm:$0xff]  }
0x14fc   : > { %5966 = vmatmul.mubr.bf16.vlgmr.msra.gmra.mxu1 %v5673_v60  ;;  %6007 = vmatmul.mubr.bf16.vlgmr.msra.gmra.mxu0 %v5675_v1  ;;  %v8431_v46 = vld [vmem:[%s10549_s6 + $0x788] sm:$0xff]  }
0x14fd   : > { %6144 = vmatpush1.bf16.msra.mxu1 %v7434_v20  ;;  %6187 = vmatpush1.bf16.msra.mxu0 %v7436_v54  ;;  %v7423_v20 = vcombine.high %v7405_v41, %v7407_v18  ;;  %v7425_v54 = vcombine.high %v7406_v56, %v7408_v31  ;;  %v7421_v56 = vld [vmem:[%s10552_s9 + $0x1c] sm:$0xf] }
0x14fe   : > { %6145 = vmatprep.subr.bf16.mxu1 %v7431_v3  ;;  %6188 = vmatprep.subr.bf16.mxu0 %v7433_v4 }
0x14ff   : > { %6167 = vmatprep.mubr.bf16.mxu1 %v8580_v2  ;;  %6210 = vmatprep.mubr.bf16.mxu0 %v8580_v2  ;;  %v8405_v2 = vld [vmem:[%s10549_s6 + $0x7f8] sm:$0xff]  }
0x1501   : > { %6146 = vmatpush1.bf16.msra.mxu1 %v7430_v9  ;;  %6189 = vmatpush1.bf16.msra.mxu0 %v7432_v12 }
0x1502   : > { %6147 = vmatprep.subr.bf16.mxu1 %v7427_v11  ;;  %6190 = vmatprep.subr.bf16.mxu0 %v7429_v13 }
0x1505   : > { %6148 = vmatpush1.bf16.msra.mxu1 %v7426_v32  ;;  %6191 = vmatpush1.bf16.msra.mxu0 %v7428_v35  ;;  %v6042_v35 = vrot.slane %v7421_v56, %v8775_v17 }
0x1506   : > { %6149 = vmatprep.subr.bf16.mxu1 %v7423_v20  ;;  %6192 = vmatprep.subr.bf16.mxu0 %v7425_v54  ;;  %v6050_v20 = vrot.slane %v7421_v56, %v9149_v59  ;;  %v6038_v54 = vrot.slane %v7421_v56, %v8769_v15 }
0x1509   : > { %6150 = vmatpush1.bf16.msra.mxu1 %v7422_v40  ;;  %6193 = vmatpush1.bf16.msra.mxu0 %v7424_v49  ;;  %v6046_v40 = vrot.slane %v7421_v56, %v9155_v61 }
0x150a   : > { %7900 = vmatprep.subr.bf16.mxu1 %v8404_v19  ;;  %7922 = vmatprep.subr.bf16.mxu0 %v8405_v2 }
0x150c   : > { %7438 = vmatmul.mubr.msk.bf16.vlgmr.msra.gmra.mxu1 %vm617_vm0, %v9875_v63  ;;  %7439 = vmatmul.mubr.msk.bf16.vlgmr.msra.gmra.mxu0 %vm617_vm0, %v9875_v63  ;;  %v8412_v63 = vld [vmem:[%s10549_s6 + $0x768] sm:$0xff]  }
0x150d   : > { %7901 = vmatpush3.bf16.msra.mxu1 %v8406_v29  ;;  %7923 = vmatpush3.bf16.msra.mxu0 %v8407_v22 }
0x150e   : > { %7902 = vmatprep.subr.bf16.mxu1 %v8408_v23  ;;  %7924 = vmatprep.subr.bf16.mxu0 %v8409_v24 }
0x1511   : > { %7903 = vmatpush3.bf16.msra.mxu1 %v8410_v25  ;;  %7925 = vmatpush3.bf16.msra.mxu0 %v8411_v51 }
0x1512   : > { %7904 = vmatprep.subr.bf16.mxu1 %v8412_v63  ;;  %7926 = vmatprep.subr.bf16.mxu0 %v8413_v26 }
0x1515   : > { %7905 = vmatpush3.bf16.msra.mxu1 %v8414_v27  ;;  %7927 = vmatpush3.bf16.msra.mxu0 %v8415_v21 }
0x1516   : > { %7906 = vmatprep.subr.bf16.mxu1 %v8416_v36  ;;  %7928 = vmatprep.subr.bf16.mxu0 %v8417_v7 }
0x1519   : > { %7907 = vmatpush3.bf16.msra.mxu1 %v8418_v50  ;;  %7929 = vmatpush3.bf16.msra.mxu0 %v8419_v28 }
0x151a   : > { %7908 = vmatprep.subr.bf16.mxu1 %v8420_v30  ;;  %7930 = vmatprep.subr.bf16.mxu0 %v8421_v34 }
0x151d   : > { %7909 = vmatpush3.bf16.msra.mxu1 %v8422_v53  ;;  %7931 = vmatpush3.bf16.msra.mxu0 %v8423_v0 }
0x151e   : > { %7910 = vmatprep.subr.bf16.mxu1 %v8424_v39  ;;  %7932 = vmatprep.subr.bf16.mxu0 %v8425_v42 }
0x1521   : > { %7911 = vmatpush3.bf16.msra.mxu1 %v8426_v38  ;;  %7933 = vmatpush3.bf16.msra.mxu0 %v8427_v55 }
0x1522   : > { %7912 = vmatprep.subr.bf16.mxu1 %v8428_v43  ;;  %7934 = vmatprep.subr.bf16.mxu0 %v8429_v44 }
0x1525   : > { %7913 = vmatpush3.bf16.msra.mxu1 %v8430_v62  ;;  %7935 = vmatpush3.bf16.msra.mxu0 %v8431_v46 }
0x1526   : > { %7914 = vmatprep.subr.bf16.mxu1 %v8432_v37  ;;  %7936 = vmatprep.subr.bf16.mxu0 %v8433_v47 }
0x1529   : > { %7915 = vmatpush3.bf16.msra.mxu1 %v8434_v45  ;;  %7937 = vmatpush3.bf16.msra.mxu0 %v8435_v33  ;;  %v7537_v45 = vld [vmem:[%s10553_s10 + $0x1] ss:$0 sm:$0xff] }
0x15bc   : > { %v7872_v48 = vpop.f32.mrf.mxu1  ;;  %v7894_v52 = vpop.f32.mrf.mxu0 }
0x15be   : > { %v7873_v60 = vpop.f32.mrf.mxu1  ;;  %v7895_v1 = vpop.f32.mrf.mxu0 }
0x15bf   : > { %v7874_v3 = vadd.f32 %v7873_v60, %v7872_v48  ;;  %v7896_v4 = vadd.f32 %v7895_v1, %v7894_v52 }
0x15c0   : > { %v7875_v5 = vpop.f32.mrf.mxu1  ;;  %v7897_v6 = vpop.f32.mrf.mxu0 }
0x15c1   : > { %v6009_v14 = vadd.f32 %v7896_v4, %v7874_v3 }
0x15c2   : > { %v7876_v8 = vpop.f32.mrf.mxu1  ;;  %v7898_v9 = vpop.f32.mrf.mxu0 }
0x15c3   : > { %v6015_v12 = vadd.f32 %v6009_v14, %v10313_v10  ;;  %v7877_v11 = vadd.f32 %v7876_v8, %v7875_v5  ;;  %v7899_v13 = vadd.f32 %v7898_v9, %v7897_v6 }
0x15c5   : > { %v6012_v41 = vadd.f32 %v7899_v13, %v7877_v11 }
0x15c7   : > { %v6016_v18 = vadd.f32 %v6012_v41, %v10315_v16 }
0x15cc   : > { %v6169_v31 = vpop.f32.mrf.mxu1  ;;  %v6212_v32 = vpop.f32.mrf.mxu0 }
0x15cd   : > { %v6170_v24 = vadd.f32 %v6169_v31, %v6038_v54  ;;  %v6213_v25 = vadd.f32 %v6212_v32, %v6046_v40 }
0x15ce   : > { %v6171_v10 = vpop.f32.mrf.mxu1  ;;  %v6214_v49 = vpop.f32.mrf.mxu0 }
0x15cf   : > { %v6172_v29 = vadd.f32 %v6171_v10, %v6042_v35  ;;  %v6215_v16 = vadd.f32 %v6214_v49, %v6050_v20  ;;  %v6221_v7 = vmax.f32 %v6170_v24, 0.0  ;;  %v6223_v50 = vmax.f32 %v6213_v25, 0.0 }
0x15d0   : > { %v6173_v19 = vpop.f32.mrf.mxu1  ;;  %v6216_v2 = vpop.f32.mrf.mxu0 }
0x15d1   : > { %v6174_v22 = vadd.f32 %v6173_v19, %v6038_v54  ;;  %v6217_v23 = vadd.f32 %v6216_v2, %v6046_v40  ;;  %v6222_v21 = vmax.f32 %v6172_v29, 0.0  ;;  %v6224_v15 = vmax.f32 %v6215_v16, 0.0  ;;  %v7539_v19 = vld [vmem:[%s10556_s13 + $0x1] ss:$0 sm:$0xff] }
0x15d2   : > { %v6175_v51 = vpop.f32.mrf.mxu1  ;;  %v6218_v63 = vpop.f32.mrf.mxu0  ;;  %v7541_v29 = vld [vmem:[%s10557_s14 + $0x1] ss:$0 sm:$0xff] }
0x15d3   : > { %v6176_v26 = vadd.f32 %v6175_v51, %v6042_v35  ;;  %v6219_v17 = vadd.f32 %v6218_v63, %v6050_v20  ;;  %v6225_v27 = vmax.f32 %v6174_v22, 0.0  ;;  %v6227_v59 = vmax.f32 %v6217_v23, 0.0 }
0x15d5   : > { %v6226_v36 = vmax.f32 %v6176_v26, 0.0  ;;  %v6228_v61 = vmax.f32 %v6219_v17, 0.0  ;;  %v6229_v34 = vpack.c.bf16 %v6225_v27, %v6221_v7  ;;  %v6231_v53 = vpack.c.bf16 %v6227_v59, %v6223_v50 }
0x15d7   : > { %v6230_v28 = vpack.c.bf16 %v6226_v36, %v6222_v21  ;;  %v6232_v30 = vpack.c.bf16 %v6228_v61, %v6224_v15 }
0x15d9   : > { %6521 = vmatprep.mubr.bf16.mxu1 %v6230_v28  ;;  %6562 = vmatprep.mubr.bf16.mxu0 %v6232_v30 }
0x15da   : > { %6522 = vmatmul.mubr.bf16.vlgmr.msra.gmra.mxu1 %v6229_v34  ;;  %6563 = vmatmul.mubr.bf16.vlgmr.msra.gmra.mxu0 %v6231_v53 }
0x169a   : > { %v7916_v0 = vpop.f32.mrf.mxu1  ;;  %v7938_v39 = vpop.f32.mrf.mxu0 }
0x169c   : > { %v7917_v42 = vpop.f32.mrf.mxu1  ;;  %v7939_v38 = vpop.f32.mrf.mxu0 }
0x169d   : > { %v7918_v55 = vadd.f32 %v7917_v42, %v7916_v0  ;;  %v7940_v43 = vadd.f32 %v7939_v38, %v7938_v39 }
0x169e   : > { %v7919_v44 = vpop.f32.mrf.mxu1  ;;  %v7941_v62 = vpop.f32.mrf.mxu0 }
0x169f   : > { %v6565_v46 = vadd.f32 %v7940_v43, %v7918_v55 }
0x16a0   : > { %v7920_v37 = vpop.f32.mrf.mxu1  ;;  %v7942_v47 = vpop.f32.mrf.mxu0 }
0x16a1   : > { %v6571_v33 = vadd.f32 %v6565_v46, %v6015_v12  ;;  %v7921_v48 = vadd.f32 %v7920_v37, %v7919_v44  ;;  %v7943_v52 = vadd.f32 %v7942_v47, %v7941_v62 }
0x16a3   : > { %v6568_v60 = vadd.f32 %v7943_v52, %v7921_v48  ;;  %v6581_v1 = vadd.f32 %v7537_v45, %v6571_v33 }
0x16a5   : > { %v6572_v3 = vadd.f32 %v6568_v60, %v6016_v18  ;;  %v6583_v4 = vadd.f32 %v6581_v1, %v9869_v57 }
0x16a7   : > { %v6585_v5 = vsel %vm617_vm0, %v6583_v4, 0.0  ;;  %v6582_v6 = vadd.f32 %v7537_v45, %v6572_v3 }
0x16a8   : > { %6586 = vadd.xlane.f32.xlu0 %v6585_v5 }
0x16a9   : > { %v6584_v14 = vadd.f32 %v6582_v6, %v9871_v58 }
0x16ab   : > { %v6588_v8 = vsel %vm617_vm0, %v6584_v14, 0.0 }
0x16ac   : > { %6589 = vadd.xlane.f32.xlu1 %v6588_v8 }
0x1731   : > { %v6587_v9 = vpop.xlane.xlu0 %6586 }
0x1732   : > { %v6591_v11 = vmul.f32 0.015625, %v6587_v9 }
0x1734   : > { %v6593_v13 = vsub.f32 %v6583_v4, %v6591_v11 }
0x1735   : > { %v6590_v12 = vpop.xlane.xlu1 %6589 }
0x1736   : > { %v6592_v41 = vmul.f32 0.015625, %v6590_v12  ;;  %v6595_v56 = vmul.f32 %v6593_v13, %v6593_v13 }
0x1738   : > { %v6594_v31 = vsub.f32 %v6584_v14, %v6592_v41  ;;  %v6597_v18 = vsel %vm617_vm0, %v6595_v56, 0.0 }
0x1739   : > { %6598 = vadd.xlane.f32.xlu0 %v6597_v18 }
0x173a   : > { %v6596_v57 = vmul.f32 %v6594_v31, %v6594_v31 }
0x173c   : > { %v6600_v32 = vsel %vm617_vm0, %v6596_v57, 0.0 }
0x173d   : > { %6601 = vadd.xlane.f32.xlu1 %v6600_v32 }
0x17c2   : > { %v6599_v35 = vpop.xlane.xlu0 %6598 }
0x17c3   : > { %v6603_v58 = vmul.f32 0.015625, %v6599_v35 }
0x17c5   : > { %v6605_v20 = vadd.f32 1e-05, %v6603_v58 }
0x17c6   : > { %v6602_v54 = vpop.xlane.xlu1 %6601 }
0x17c7   : > { %8512 = vrsqrt.f32 %v6605_v20  ;;  %v6604_v40 = vmul.f32 0.015625, %v6602_v54 }
0x17c9   : > { %v6606_v10 = vadd.f32 1e-05, %v6604_v40 }
0x17cb   : > { %8514 = vrsqrt.f32 %v6606_v10 }
0x17d4   : > { %v8513_v49 = vpop.eup %8512 }
0x17d5   : > { %v6609_v2 = vmul.f32 %v8513_v49, %v6593_v13 }
0x17d7   : > { %v6619_v16 = vmul.f32 %v7539_v19, %v6609_v2 }
0x17d8   : > { %v8515_v22 = vpop.eup %8514 }
0x17d9   : > { %v6610_v23 = vmul.f32 %v8515_v22, %v6594_v31  ;;  %v6629_v24 = vadd.f32 %v7541_v29, %v6619_v16 }
0x17db   : > { %v6620_v25 = vmul.f32 %v7539_v19, %v6610_v23  ;;  %6631 = vst.msk [vmem:[%s513_s23] sm:$0xff] %vm617_vm0, %v6629_v24 }
0x17dd   : > { %v6630_v51 = vadd.f32 %v7541_v29, %v6620_v25 }
0x17df   : > { %6632 = vst.msk [vmem:[%s513_s23 + $0x8] sm:$0xff] %vm617_vm0, %v6630_v51 }
0x17e0   : > { %8531 = shalt.err (!%p8528_p3)
}
0x17e1   : > { %s8532_s18 = scalar_lea.hbm %s10498_s24, 256  ;;  %s8536_s23 = scalar_lea.hbm %s10558_s15, 512 }
0x17e2   : > { %p8533_p4 = scmp.ne.s32.totalorder %s10498_s24, %s8532_s18  ;;  %p8537_p9 = scmp.lt.s32.totalorder %s10498_s24, %s10558_s15 }
0x17e3   : > { %p8538_p10 = scmp.lt.s32.totalorder %s8536_s23, %s8532_s18 }
0x17e4   : > { %p8534_p7 = pnand %p8533_p4, %p8712_p5 }
0x17e5   : > { %p8539_p11 = por %p8538_p10, %p8537_p9 }
0x17e6   : > { %p8535_p8 = pneg %p8534_p7 }
0x17e8   : > { %p8540_p12 = pnand %p8539_p11, %p8535_p8 }
0x17ea   : > { %8543 = shalt.err (!%p8540_p12)
}
0x17eb   : > { %s8592_s22 = smov 128   ;;  %s8593_s16 = smov 8  }
0x17ec   : > { %8064 = dma.vmem_to_hbm [thread:$0]  (%p8712_p5), %s10500_s17, 256, %s10498_s24, %s10503_s21, %s8592_s22, %s8592_s22, %s8593_s16  }
0x17ed PF: > { %s10591_s30 = sld [smem:[#allocation7_spill]] }
0x17ee   : > { %s10592_s27 = sld [smem:[#allocation5_spill]] }
0x17f3   : > { %p8070_p13 = scmp.ge.s32.totalorder %s10591_s30, 2 }
0x17f4   : > { %s6662_s20 = sand.u32 1, %s10592_s27  }
0x17f5   : > { %p8067_p0 = pnand %p8070_p13, %p8716_p6  ;;  %s6663_s18 = scalar_lea.sflag [#allocation3], %s6662_s20 }
0x17f7   : > { %p8068_p1 = pneg %p8067_p0 }
0x17f9   : > { %8561 = dma.done.wait (%p8068_p1), %s6663_s18, 256  }
0x17fa   : > { %8563 = vsyncadd (%p8068_p1), %s6663_s18, 4294967040  ;;  %s10594_s21 = sld [smem:[#allocation8_spill]]  ;;  %s10597_s18 = smov %s8570_s19 }
0x17fb   : > { %s10595_s23 = sld [smem:[#allocation6_spill]] }
0x17fc   : > { %s10596_s20 = sld [smem:[#allocation9_spill]] }
0x1800   : > { %p25_p2 = scmp.ge.s32.totalorder %s10594_s21, 4  }
0x1801   : > { %s10598_s19 = smov %s10595_s23 }
0x1802   :  { %27 = sbr.rel (!%p25_p2) target bundleno = 3 (0x3), region = 133 }
0x1807   :  { %6668 = vsyncpa [#allocation3], 1 }
0x1808   :  { %6670 = vsyncpa [#allocation3 + $0x1], 1 }

</bundles_post_ra>
